<compile_context>
chip_gen: v7x
topology: tpu7x:2x2x1
jax: 0.10.0
libtpu: 0.0.40
codegen_flags: <defaults>
</compile_context>

<pallas_src>
import functools
import math

import jax
import jax.numpy as jnp
import numpy as np
from jax.experimental import pallas as pl
from jax.experimental.pallas import tpu as pltpu

_BN_EPS = 1e-5


def _round_up(x, m):
    return ((x + m - 1) // m) * m


def _vmem_limit_bytes():
    # Generation-aware scoped-VMEM limit: ~half of physical, capped at 64 MiB
    # (raises the default on 128 MiB v5e/v6e parts, ~32 MiB on 64 MiB v7x).
    try:
        cap = int(pltpu.get_tpu_info().vmem_capacity_bytes)
        return max(32 * 1024 * 1024, min(cap // 2, 64 * 1024 * 1024))
    except Exception:
        return 32 * 1024 * 1024


_VMEM_LIMIT = _vmem_limit_bytes()


def _cparams(n_parallel=1):
    return pltpu.CompilerParams(
        dimension_semantics=("parallel",) * n_parallel,
        vmem_limit_bytes=_VMEM_LIMIT)


# ---------------------------------------------------------------------------
# Kernel 1: fully fused ResidualBlock (stride 1), one image per grid step.
#   bn1 + relu + conv1(1x1) + bn2 + relu + conv2(3x3, pad 1) + bn3 + relu
#   + conv3(1x1).  The 3x3 conv is 9 shifted-window matmuls over a
#   zero-margined VMEM activation; column masks emulate the left/right pad.
# ---------------------------------------------------------------------------
def _residual_block_kernel(x_ref, s1_ref, t1_ref, w1_ref, b1_ref,
                           s2_ref, t2_ref, w2_ref, b2_ref,
                           s3_ref, t3_ref, w3_ref, b3_ref,
                           ml_ref, mr_ref,
                           o_ref, act_ref, acc_ref, *, H, W, C, margin):
    HW = H * W

    # --- head: bn1 + relu + conv1 (1x1) + bn2 + relu (per-pixel) ---
    x = x_ref[0].astype(jnp.float32)                            # (HW, Cin)
    h = jnp.maximum(x * s1_ref[...] + t1_ref[...], 0.0)
    a = jnp.dot(h.astype(jnp.bfloat16), w1_ref[...],
                preferred_element_type=jnp.float32) + b1_ref[...]
    a = jnp.maximum(a * s2_ref[...] + t2_ref[...], 0.0)         # (HW, C) f32

    # --- stage activation with zero top/bottom margins.  One aligned interior
    #     store; only the small margins (8-aligned) are re-zeroed per image. ---
    act_ref[0:margin, :] = jnp.zeros((margin, C), jnp.float32)
    act_ref[margin + HW:2 * margin + HW, :] = jnp.zeros((margin, C), jnp.float32)
    act_ref[margin:margin + HW, :] = a

    # --- 3x3 conv (pad=1) as 9 shifted-window matmuls, accumulated in VMEM ---
    ml = ml_ref[...]                                            # (HW, 1) f32
    mr = mr_ref[...]
    for dy in (-1, 0, 1):
        for dx in (-1, 0, 1):
            shift = dy * W + dx
            win = act_ref[margin + shift: margin + shift + HW, :]
            if dx == -1:
                win = win * ml      # kill wrapped left-neighbour reads (col 0)
            elif dx == 1:
                win = win * mr      # kill wrapped right-neighbour reads (col W-1)
            t = (dy + 1) * 3 + (dx + 1)
            contrib = jnp.dot(win.astype(jnp.bfloat16),
                              w2_ref[t * C:(t + 1) * C, :],
                              preferred_element_type=jnp.float32)
            if t == 0:
                acc_ref[...] = contrib
            else:
                acc_ref[...] += contrib

    # --- + b2, bn3, relu, conv3 (1x1) + b3 ---
    z = acc_ref[...] + b2_ref[...]
    h3 = jnp.maximum(z * s3_ref[...] + t3_ref[...], 0.0)
    o_ref[0] = (jnp.dot(h3.astype(jnp.bfloat16), w3_ref[...],
                        preferred_element_type=jnp.float32)
                + b3_ref[...]).astype(o_ref.dtype)


def residual_block(x_rows, kp, H, W):
    """Fused ResidualBlock, stride 1.  x_rows: (N, H*W, Cin) -> (N, H*W, f) bf16."""
    N, HW, Cin = x_rows.shape
    assert HW == H * W
    C = kp['w1'].shape[1]             # numOut // 2
    f = kp['w3'].shape[1]             # numOut
    margin = _round_up(W + 1, 8)

    col = np.arange(HW, dtype=np.int64) % W
    ml = jnp.asarray((col != 0).astype(np.float32)).reshape(HW, 1)
    mr = jnp.asarray((col != W - 1).astype(np.float32)).reshape(HW, 1)

    img = lambda b: (b, 0, 0)
    cst = lambda b: (0, 0)
    return pl.pallas_call(
        functools.partial(_residual_block_kernel, H=H, W=W, C=C, margin=margin),
        grid=(N,),
        out_shape=jax.ShapeDtypeStruct((N, HW, f), jnp.bfloat16),
        in_specs=[
            pl.BlockSpec((1, HW, Cin), img),
            pl.BlockSpec((1, Cin), cst), pl.BlockSpec((1, Cin), cst),
            pl.BlockSpec((Cin, C), cst), pl.BlockSpec((1, C), cst),
            pl.BlockSpec((1, C), cst), pl.BlockSpec((1, C), cst),
            pl.BlockSpec((9 * C, C), cst), pl.BlockSpec((1, C), cst),
            pl.BlockSpec((1, C), cst), pl.BlockSpec((1, C), cst),
            pl.BlockSpec((C, f), cst), pl.BlockSpec((1, f), cst),
            pl.BlockSpec((HW, 1), cst), pl.BlockSpec((HW, 1), cst),
        ],
        out_specs=pl.BlockSpec((1, HW, f), img),
        scratch_shapes=[pltpu.VMEM((2 * margin + HW, C), jnp.float32),
                        pltpu.VMEM((HW, C), jnp.float32)],
        compiler_params=_cparams(1),
    )(x_rows,
      kp['bn1_s'], kp['bn1_b'], kp['w1'], kp['b1'],
      kp['bn2_s'], kp['bn2_b'], kp['w2'], kp['b2'],
      kp['bn3_s'], kp['bn3_b'], kp['w3'], kp['b3'],
      ml, mr)


def residual_block_fwd(kp, x_rows, H, W, stride=1):
    N = x_rows.shape[0]
    out = residual_block(x_rows, kp, H, W)                       # (N, H*W, f) bf16
    if stride == 2:
        # A stride-2 3x3 conv equals the stride-1 conv sampled at even pixels
        # and bn3/relu/conv3 are per-pixel, so decimating is exact.
        # TODO(synk): dedicated strided fused conv kernel to skip the 4x MACs
        # and the full-res writeback.
        f = out.shape[-1]
        out = out.reshape(N, H, W, f)[:, ::2, ::2, :].reshape(
            N, (H // 2) * (W // 2), f)
    return out


# ---------------------------------------------------------------------------
# Kernel 2: bilinear x2 upsample (align_corners=True) + channel concat + conv2.
#   conv2 bottom half hoisted below the upsample (applied at low resolution),
#   upsample as ONE dense kron(Ah, Aw) matmul, conv2 top half as ONE matmul.
# ---------------------------------------------------------------------------
def _upsample_cat_conv_kernel(up1_ref, low3_ref, u_ref, wt_ref, wb_ref, o_ref):
    y = jnp.dot(low3_ref[0].astype(jnp.bfloat16), wb_ref[...],
                preferred_element_type=jnp.float32)              # (Hh*Wh, C)
    up2 = jnp.dot(u_ref[...], y.astype(jnp.bfloat16),
                  preferred_element_type=jnp.float32)            # (H*W, C)
    top = jnp.dot(up1_ref[0].astype(jnp.bfloat16), wt_ref[...],
                  preferred_element_type=jnp.float32)            # (H*W, C)
    o_ref[0] = (top + up2).astype(o_ref.dtype)


def _interp_matrix_np(out_size, in_size):
    """Bilinear interpolation matrix, align_corners=True (PyTorch semantics)."""
    A = np.zeros((out_size, in_size), np.float32)
    if in_size == 1:
        A[:, 0] = 1.0
        return A
    scale = (in_size - 1) / (out_size - 1)
    for p in range(out_size):
        src = p * scale
        i0 = min(int(math.floor(src)), in_size - 1)
        i1 = min(i0 + 1, in_size - 1)
        fr = src - i0
        A[p, i0] += 1.0 - fr
        A[p, i1] += fr
    return A


def upsample_cat_conv(up1_rows, low3_rows, wt, wb, H, W):
    """conv2(cat([up1, upsample_x2(low3)])) with W_bot hoisted below the upsample."""
    N, HW, C = up1_rows.shape
    Hh, Wh = H // 2, W // 2
    assert low3_rows.shape == (N, Hh * Wh, C)
    # TODO(synk): for large spatial sizes replace the dense kron(Ah, Aw) matrix
    # with a separable two-matmul (H-axis, then W-axis) upsample.
    U = jnp.asarray(np.kron(_interp_matrix_np(H, Hh), _interp_matrix_np(W, Wh)),
                    dtype=jnp.bfloat16)                          # (HW, Hh*Wh)
    img = lambda b: (b, 0, 0)
    cst = lambda b: (0, 0)
    return pl.pallas_call(
        _upsample_cat_conv_kernel,
        grid=(N,),
        out_shape=jax.ShapeDtypeStruct((N, HW, C), jnp.bfloat16),
        in_specs=[
            pl.BlockSpec((1, HW, C), img),
            pl.BlockSpec((1, Hh * Wh, C), img),
            pl.BlockSpec((HW, Hh * Wh), cst),
            pl.BlockSpec((C, C), cst),
            pl.BlockSpec((C, C), cst),
        ],
        out_specs=pl.BlockSpec((1, HW, C), img),
        compiler_params=_cparams(1),
    )(up1_rows, low3_rows, U, wt, wb)


# ---------------------------------------------------------------------------
# Parameter init (deterministic, shapes follow the PyTorch __init__) + prep
# ---------------------------------------------------------------------------
def _init_bn(c):
    gamma = jnp.ones((c,), jnp.float32)
    beta = jnp.zeros((c,), jnp.float32)
    mean = jnp.zeros((c,), jnp.float32)
    var = jnp.ones((c,), jnp.float32)
    scale = gamma / jnp.sqrt(var + _BN_EPS)
    shift = beta - mean * scale
    return scale, shift


def _init_residual_block(key, f):
    half = f // 2
    ks = jax.random.split(key, 6)
    p = {}
    p['bn1_s'], p['bn1_b'] = _init_bn(f)
    p['bn2_s'], p['bn2_b'] = _init_bn(half)
    p['bn3_s'], p['bn3_b'] = _init_bn(half)
    p['w1'] = 0.1 * jax.random.normal(ks[0], (f, half), jnp.float32)         # 1x1
    p['b1'] = 0.1 * jax.random.normal(ks[1], (half,), jnp.float32)
    p['w2'] = 0.1 * jax.random.normal(ks[2], (9 * half, half), jnp.float32)  # 3x3
    p['b2'] = 0.1 * jax.random.normal(ks[3], (half,), jnp.float32)
    p['w3'] = 0.1 * jax.random.normal(ks[4], (half, f), jnp.float32)         # 1x1
    p['b3'] = 0.1 * jax.random.normal(ks[5], (f,), jnp.float32)
    return p


def init_hourglass(key, n, f):
    ks = jax.random.split(key, 4)
    p = {'rb': _init_residual_block(ks[0], f),
         'rb_s': _init_residual_block(ks[1], f),
         'conv2_w': 0.1 * jax.random.normal(ks[2], (2 * f, f), jnp.float32)}
    if n > 1:
        p['inner'] = init_hourglass(ks[3], n - 1, f)
    return p


def _prep_rb(p):
    """Pre-cast weights to bf16 once, fold biases/affines into kernel layout."""
    cin = p['w1'].shape[0]
    half = p['w1'].shape[1]
    f = p['w3'].shape[1]
    return {
        'bn1_s': p['bn1_s'].reshape(1, cin), 'bn1_b': p['bn1_b'].reshape(1, cin),
        'bn2_s': p['bn2_s'].reshape(1, half), 'bn2_b': p['bn2_b'].reshape(1, half),
        'bn3_s': p['bn3_s'].reshape(1, half), 'bn3_b': p['bn3_b'].reshape(1, half),
        'w1': p['w1'].astype(jnp.bfloat16), 'b1': p['b1'].reshape(1, half),
        'w2': p['w2'].astype(jnp.bfloat16), 'b2': p['b2'].reshape(1, half),
        'w3': p['w3'].astype(jnp.bfloat16), 'b3': p['b3'].reshape(1, f),
    }


def prep_hourglass(params):
    f = params['conv2_w'].shape[1]
    kp = {'rb': _prep_rb(params['rb']),
          'rb_s': _prep_rb(params['rb_s']),
          'conv2_wt': params['conv2_w'][:f].astype(jnp.bfloat16),
          'conv2_wb': params['conv2_w'][f:].astype(jnp.bfloat16)}
    if 'inner' in params:
        kp['inner'] = prep_hourglass(params['inner'])
    return kp


# ---------------------------------------------------------------------------
# Forward (Pallas)
# ---------------------------------------------------------------------------
def hourglass_fwd(kp, x_rows, H, W, n):
    up1 = residual_block_fwd(kp['rb'], x_rows, H, W, stride=1)
    low1 = residual_block_fwd(kp['rb_s'], x_rows, H, W, stride=2)
    low2 = hourglass_fwd(kp['inner'], low1, H // 2, W // 2, n - 1) if n > 1 else low1
    low3 = residual_block_fwd(kp['rb'], low2, H // 2, W // 2, stride=1)  # shared w/ up1
    return upsample_cat_conv(up1, low3, kp['conv2_wt'], kp['conv2_wb'], H, W)


def hourglass_apply(kparams, x_nchw, n):
    """Public entry: NCHW in, NCHW out (matches PyTorch)."""
    N, C, H, W = x_nchw.shape
    x = jnp.transpose(x_nchw, (0, 2, 3, 1)).reshape(N, H * W, C).astype(jnp.bfloat16)
    y = hourglass_fwd(kparams, x, H, W, n)                       # (N, H*W, C) bf16
    y = y.astype(jnp.float32).reshape(N, H, W, C)
    return jnp.transpose(y, (0, 3, 1, 2))


# ---------------------------------------------------------------------------
# Pure-JAX f32 reference (same math, no Pallas) for a sanity check
# ---------------------------------------------------------------------------
def _im2col3x3(x, stride):
    N, H, W, C = x.shape
    xp = jnp.pad(x, ((0, 0), (1, 1), (1, 1), (0, 0)))
    Ho = (H + 2 - 3) // stride + 1
    Wo = (W + 2 - 3) // stride + 1
    cols = []
    for dy in range(3):
        for dx in range(3):
            cols.append(xp[:, dy:dy + stride * (Ho - 1) + 1:stride,
                           dx:dx + stride * (Wo - 1) + 1:stride, :])
    patches = jnp.stack(cols, axis=3)
    return patches.reshape(N * Ho * Wo, 9 * C), Ho, Wo


def _rb_ref(p, x, stride):
    hi = jax.lax.Precision.HIGHEST
    a = jnp.maximum(x * p['bn1_s'] + p['bn1_b'], 0.0)
    y = jnp.einsum('nhwc,cd->nhwd', a, p['w1'], precision=hi) + p['b1']
    a = jnp.maximum(y * p['bn2_s'] + p['bn2_b'], 0.0)
    patches, Ho, Wo = _im2col3x3(a, stride)
    N = x.shape[0]
    half = p['w1'].shape[1]
    z = (jnp.dot(patches, p['w2'], precision=hi) + p['b2']).reshape(N, Ho, Wo, half)
    a = jnp.maximum(z * p['bn3_s'] + p['bn3_b'], 0.0)
    return jnp.einsum('nhwc,cd->nhwd', a, p['w3'], precision=hi) + p['b3']


def _hourglass_ref(params, x, n):
    hi = jax.lax.Precision.HIGHEST
    up1 = _rb_ref(params['rb'], x, 1)
    low1 = _rb_ref(params['rb_s'], x, 2)
    low2 = _hourglass_ref(params['inner'], low1, n - 1) if n > 1 else low1
    low3 = _rb_ref(params['rb'], low2, 1)
    _, Hh, Wh, _ = low3.shape
    Ah = jnp.asarray(_interp_matrix_np(2 * Hh, Hh))
    Aw = jnp.asarray(_interp_matrix_np(2 * Wh, Wh))
    up2 = jnp.einsum('oh,nhwc->nowc', Ah, low3, precision=hi)
    up2 = jnp.einsum('pw,nowc->nopc', Aw, up2, precision=hi)
    cat = jnp.concatenate([up1, up2], axis=-1)
    return jnp.einsum('nhwc,cd->nhwd', cat, params['conv2_w'], precision=hi)


# ---------------------------------------------------------------------------
if __name__ == "__main__":
    key = jax.random.PRNGKey(0)
    k_param, k_x = jax.random.split(key)

    n_levels = 2
    f = 4            # channels (must be even: conv1 maps f -> f//2)
    N, H, W = 2, 16, 16

    params = init_hourglass(k_param, n_levels, f)     # f32 masters (for the reference)
    kparams = prep_hourglass(params)                  # bf16 weights, kernel layout
    x = jax.random.normal(k_x, (N, f, H, W), jnp.float32)   # NCHW like PyTorch

    fwd = jax.jit(functools.partial(hourglass_apply, n=n_levels))
    out = jax.block_until_ready(fwd(kparams, x))
    assert out.shape == (N, f, H, W), out.shape

    # sanity check against a pure-JAX f32 reference of the same math
    x_nhwc = jnp.transpose(x, (0, 2, 3, 1))
    ref = jnp.transpose(_hourglass_ref(params, x_nhwc, n_levels), (0, 3, 1, 2))
    ref = jax.block_until_ready(ref)
    rel_err = float(jnp.linalg.norm(out - ref) / (jnp.linalg.norm(ref) + 1e-12))
    # bf16 intermediates + bf16 MXU inputs (f32 accumulation) -> loose tolerance
    assert rel_err < 8e-2, rel_err

    print("KERNEL_OK")
</pallas_src>

<mosaic_0001>
module attributes {stable_mosaic.version = 11 : i64} {
  func.func @_residual_block_kernel(%arg0: i32, %arg1: memref<1x64x4xbf16, #tpu.memory_space<vmem>>, %arg2: memref<1x4xf32, #tpu.memory_space<vmem>>, %arg3: memref<1x4xf32, #tpu.memory_space<vmem>>, %arg4: memref<4x2xbf16, #tpu.memory_space<vmem>>, %arg5: memref<1x2xf32, #tpu.memory_space<vmem>>, %arg6: memref<1x2xf32, #tpu.memory_space<vmem>>, %arg7: memref<1x2xf32, #tpu.memory_space<vmem>>, %arg8: memref<18x2xbf16, #tpu.memory_space<vmem>>, %arg9: memref<1x2xf32, #tpu.memory_space<vmem>>, %arg10: memref<1x2xf32, #tpu.memory_space<vmem>>, %arg11: memref<1x2xf32, #tpu.memory_space<vmem>>, %arg12: memref<2x4xbf16, #tpu.memory_space<vmem>>, %arg13: memref<1x4xf32, #tpu.memory_space<vmem>>, %arg14: memref<64x1xf32, #tpu.memory_space<vmem>>, %arg15: memref<64x1xf32, #tpu.memory_space<vmem>>, %arg16: memref<1x64x4xbf16, #tpu.memory_space<vmem>>, %arg17: memref<96x2xf32, #tpu.memory_space<vmem>>, %arg18: memref<64x2xf32, #tpu.memory_space<vmem>>) attributes {dimension_semantics = [#tpu.dimension_semantics<parallel>], iteration_bounds = array<i64: 2>, scalar_prefetch = 0 : i64, scratch_operands = 2 : i64, tpu.core_type = #tpu.core_type<tc>, window_params = [{transform_indices = @transform_0, window_bounds = array<i64: 1, 64, 4>}, {pipeline_mode = #tpu.pipeline_mode<synchronous>, transform_indices = @transform_1, window_bounds = array<i64: 1, 4>}, {pipeline_mode = #tpu.pipeline_mode<synchronous>, transform_indices = @transform_2, window_bounds = array<i64: 1, 4>}, {pipeline_mode = #tpu.pipeline_mode<synchronous>, transform_indices = @transform_3, window_bounds = array<i64: 4, 2>}, {pipeline_mode = #tpu.pipeline_mode<synchronous>, transform_indices = @transform_4, window_bounds = array<i64: 1, 2>}, {pipeline_mode = #tpu.pipeline_mode<synchronous>, transform_indices = @transform_5, window_bounds = array<i64: 1, 2>}, {pipeline_mode = #tpu.pipeline_mode<synchronous>, transform_indices = @transform_6, window_bounds = array<i64: 1, 2>}, {pipeline_mode = #tpu.pipeline_mode<synchronous>, transform_indices = @transform_7, window_bounds = array<i64: 18, 2>}, {pipeline_mode = #tpu.pipeline_mode<synchronous>, transform_indices = @transform_8, window_bounds = array<i64: 1, 2>}, {pipeline_mode = #tpu.pipeline_mode<synchronous>, transform_indices = @transform_9, window_bounds = array<i64: 1, 2>}, {pipeline_mode = #tpu.pipeline_mode<synchronous>, transform_indices = @transform_10, window_bounds = array<i64: 1, 2>}, {pipeline_mode = #tpu.pipeline_mode<synchronous>, transform_indices = @transform_11, window_bounds = array<i64: 2, 4>}, {pipeline_mode = #tpu.pipeline_mode<synchronous>, transform_indices = @transform_12, window_bounds = array<i64: 1, 4>}, {pipeline_mode = #tpu.pipeline_mode<synchronous>, transform_indices = @transform_13, window_bounds = array<i64: 64, 1>}, {pipeline_mode = #tpu.pipeline_mode<synchronous>, transform_indices = @transform_14, window_bounds = array<i64: 64, 1>}, {transform_indices = @transform_15, window_bounds = array<i64: 1, 64, 4>}]} {
    %c0 = arith.constant 0 : index
    %c0_0 = arith.constant 0 : index
    %c0_1 = arith.constant 0 : index
    %0 = vector.load %arg1[%c0, %c0_0, %c0_1] : memref<1x64x4xbf16, #tpu.memory_space<vmem>>, vector<1x64x4xbf16>
    %1 = vector.shape_cast %0 : vector<1x64x4xbf16> to vector<64x4xbf16>
    %2 = arith.extf %1 : vector<64x4xbf16> to vector<64x4xf32>
    %c0_2 = arith.constant 0 : index
    %c0_3 = arith.constant 0 : index
    %3 = vector.load %arg2[%c0_2, %c0_3] : memref<1x4xf32, #tpu.memory_space<vmem>>, vector<1x4xf32>
    %4 = vector.broadcast %3 : vector<1x4xf32> to vector<64x4xf32>
    %5 = arith.mulf %2, %4 : vector<64x4xf32>
    %c0_4 = arith.constant 0 : index
    %c0_5 = arith.constant 0 : index
    %6 = vector.load %arg3[%c0_4, %c0_5] : memref<1x4xf32, #tpu.memory_space<vmem>>, vector<1x4xf32>
    %7 = vector.broadcast %6 : vector<1x4xf32> to vector<64x4xf32>
    %8 = arith.addf %5, %7 : vector<64x4xf32>
    %cst = arith.constant 0.000000e+00 : f32
    %9 = vector.broadcast %cst : f32 to vector<64x4xf32>
    %10 = arith.maximumf %8, %9 : vector<64x4xf32>
    %11 = arith.truncf %10 : vector<64x4xf32> to vector<64x4xbf16>
    %c0_6 = arith.constant 0 : index
    %c0_7 = arith.constant 0 : index
    %12 = vector.load %arg4[%c0_6, %c0_7] : memref<4x2xbf16, #tpu.memory_space<vmem>>, vector<4x2xbf16>
    %cst_8 = arith.constant dense<0.000000e+00> : vector<64x2xf32>
    %13 = tpu.matmul %11, %12, %cst_8 {dimension_numbers = #tpu.dot_dimension_numbers<[1], [0], [0], [1], [0, 0, 1, 1], [], []>} : vector<64x4xbf16>, vector<4x2xbf16>, vector<64x2xf32> -> vector<64x2xf32>
    %c0_9 = arith.constant 0 : index
    %c0_10 = arith.constant 0 : index
    %14 = vector.load %arg5[%c0_9, %c0_10] : memref<1x2xf32, #tpu.memory_space<vmem>>, vector<1x2xf32>
    %15 = vector.broadcast %14 : vector<1x2xf32> to vector<64x2xf32>
    %16 = arith.addf %13, %15 : vector<64x2xf32>
    %c0_11 = arith.constant 0 : index
    %c0_12 = arith.constant 0 : index
    %17 = vector.load %arg6[%c0_11, %c0_12] : memref<1x2xf32, #tpu.memory_space<vmem>>, vector<1x2xf32>
    %18 = vector.broadcast %17 : vector<1x2xf32> to vector<64x2xf32>
    %19 = arith.mulf %16, %18 : vector<64x2xf32>
    %c0_13 = arith.constant 0 : index
    %c0_14 = arith.constant 0 : index
    %20 = vector.load %arg7[%c0_13, %c0_14] : memref<1x2xf32, #tpu.memory_space<vmem>>, vector<1x2xf32>
    %21 = vector.broadcast %20 : vector<1x2xf32> to vector<64x2xf32>
    %22 = arith.addf %19, %21 : vector<64x2xf32>
    %cst_15 = arith.constant 0.000000e+00 : f32
    %23 = vector.broadcast %cst_15 : f32 to vector<64x2xf32>
    %24 = arith.maximumf %22, %23 : vector<64x2xf32>
    %cst_16 = arith.constant 0.000000e+00 : f32
    %25 = vector.broadcast %cst_16 : f32 to vector<16x2xf32>
    %c0_17 = arith.constant 0 : index
    %c0_18 = arith.constant 0 : index
    %26 = vector.load %arg17[%c0_17, %c0_18] : memref<96x2xf32, #tpu.memory_space<vmem>>, vector<16x2xf32>
    tpu.vector_store %arg17[%c0_17, %c0_18], %25 {strides = array<i32>} : memref<96x2xf32, #tpu.memory_space<vmem>>, vector<16x2xf32>,
    %cst_19 = arith.constant 0.000000e+00 : f32
    %27 = vector.broadcast %cst_19 : f32 to vector<16x2xf32>
    %c80 = arith.constant 80 : index
    %c0_20 = arith.constant 0 : index
    %28 = vector.load %arg17[%c80, %c0_20] : memref<96x2xf32, #tpu.memory_space<vmem>>, vector<16x2xf32>
    tpu.vector_store %arg17[%c80, %c0_20], %27 {strides = array<i32>} : memref<96x2xf32, #tpu.memory_space<vmem>>, vector<16x2xf32>,
    %c16 = arith.constant 16 : index
    %c0_21 = arith.constant 0 : index
    %29 = vector.load %arg17[%c16, %c0_21] : memref<96x2xf32, #tpu.memory_space<vmem>>, vector<64x2xf32>
    tpu.vector_store %arg17[%c16, %c0_21], %24 {strides = array<i32>} : memref<96x2xf32, #tpu.memory_space<vmem>>, vector<64x2xf32>,
    %c0_22 = arith.constant 0 : index
    %c0_23 = arith.constant 0 : index
    %30 = vector.load %arg14[%c0_22, %c0_23] : memref<64x1xf32, #tpu.memory_space<vmem>>, vector<64x1xf32>
    %c0_24 = arith.constant 0 : index
    %c0_25 = arith.constant 0 : index
    %31 = vector.load %arg15[%c0_24, %c0_25] : memref<64x1xf32, #tpu.memory_space<vmem>>, vector<64x1xf32>
    %c7 = arith.constant 7 : index
    %c0_26 = arith.constant 0 : index
    %32 = vector.load %arg17[%c7, %c0_26] : memref<96x2xf32, #tpu.memory_space<vmem>>, vector<64x2xf32>
    %33 = vector.broadcast %30 : vector<64x1xf32> to vector<64x2xf32>
    %34 = arith.mulf %32, %33 : vector<64x2xf32>
    %35 = arith.truncf %34 : vector<64x2xf32> to vector<64x2xbf16>
    %c0_27 = arith.constant 0 : index
    %c0_28 = arith.constant 0 : index
    %36 = vector.load %arg8[%c0_27, %c0_28] : memref<18x2xbf16, #tpu.memory_space<vmem>>, vector<2x2xbf16>
    %cst_29 = arith.constant dense<0.000000e+00> : vector<64x2xf32>
    %37 = tpu.matmul %35, %36, %cst_29 {dimension_numbers = #tpu.dot_dimension_numbers<[1], [0], [0], [1], [0, 0, 1, 1], [], []>} : vector<64x2xbf16>, vector<2x2xbf16>, vector<64x2xf32> -> vector<64x2xf32>
    %c0_30 = arith.constant 0 : index
    %c0_31 = arith.constant 0 : index
    %38 = vector.load %arg18[%c0_30, %c0_31] : memref<64x2xf32, #tpu.memory_space<vmem>>, vector<64x2xf32>
    tpu.vector_store %arg18[%c0_30, %c0_31], %37 {strides = array<i32>} : memref<64x2xf32, #tpu.memory_space<vmem>>, vector<64x2xf32>,
    %c8 = arith.constant 8 : index
    %c0_32 = arith.constant 0 : index
    %39 = vector.load %arg17[%c8, %c0_32] : memref<96x2xf32, #tpu.memory_space<vmem>>, vector<64x2xf32>
    %40 = arith.truncf %39 : vector<64x2xf32> to vector<64x2xbf16>
    %c2 = arith.constant 2 : index
    %c0_33 = arith.constant 0 : index
    %41 = vector.load %arg8[%c2, %c0_33] : memref<18x2xbf16, #tpu.memory_space<vmem>>, vector<2x2xbf16>
    %cst_34 = arith.constant dense<0.000000e+00> : vector<64x2xf32>
    %42 = tpu.matmul %40, %41, %cst_34 {dimension_numbers = #tpu.dot_dimension_numbers<[1], [0], [0], [1], [0, 0, 1, 1], [], []>} : vector<64x2xbf16>, vector<2x2xbf16>, vector<64x2xf32> -> vector<64x2xf32>
    %c0_35 = arith.constant 0 : index
    %c0_36 = arith.constant 0 : index
    %43 = vector.load %arg18[%c0_35, %c0_36] : memref<64x2xf32, #tpu.memory_space<vmem>>, vector<64x2xf32>
    %44 = arith.addf %43, %42 : vector<64x2xf32>
    %c0_37 = arith.constant 0 : index
    %c0_38 = arith.constant 0 : index
    %45 = vector.load %arg18[%c0_37, %c0_38] : memref<64x2xf32, #tpu.memory_space<vmem>>, vector<64x2xf32>
    tpu.vector_store %arg18[%c0_37, %c0_38], %44 {strides = array<i32>} : memref<64x2xf32, #tpu.memory_space<vmem>>, vector<64x2xf32>,
    %c9 = arith.constant 9 : index
    %c0_39 = arith.constant 0 : index
    %46 = vector.load %arg17[%c9, %c0_39] : memref<96x2xf32, #tpu.memory_space<vmem>>, vector<64x2xf32>
    %47 = vector.broadcast %31 : vector<64x1xf32> to vector<64x2xf32>
    %48 = arith.mulf %46, %47 : vector<64x2xf32>
    %49 = arith.truncf %48 : vector<64x2xf32> to vector<64x2xbf16>
    %c4 = arith.constant 4 : index
    %c0_40 = arith.constant 0 : index
    %50 = vector.load %arg8[%c4, %c0_40] : memref<18x2xbf16, #tpu.memory_space<vmem>>, vector<2x2xbf16>
    %cst_41 = arith.constant dense<0.000000e+00> : vector<64x2xf32>
    %51 = tpu.matmul %49, %50, %cst_41 {dimension_numbers = #tpu.dot_dimension_numbers<[1], [0], [0], [1], [0, 0, 1, 1], [], []>} : vector<64x2xbf16>, vector<2x2xbf16>, vector<64x2xf32> -> vector<64x2xf32>
    %c0_42 = arith.constant 0 : index
    %c0_43 = arith.constant 0 : index
    %52 = vector.load %arg18[%c0_42, %c0_43] : memref<64x2xf32, #tpu.memory_space<vmem>>, vector<64x2xf32>
    %53 = arith.addf %52, %51 : vector<64x2xf32>
    %c0_44 = arith.constant 0 : index
    %c0_45 = arith.constant 0 : index
    %54 = vector.load %arg18[%c0_44, %c0_45] : memref<64x2xf32, #tpu.memory_space<vmem>>, vector<64x2xf32>
    tpu.vector_store %arg18[%c0_44, %c0_45], %53 {strides = array<i32>} : memref<64x2xf32, #tpu.memory_space<vmem>>, vector<64x2xf32>,
    %c15 = arith.constant 15 : index
    %c0_46 = arith.constant 0 : index
    %55 = vector.load %arg17[%c15, %c0_46] : memref<96x2xf32, #tpu.memory_space<vmem>>, vector<64x2xf32>
    %56 = vector.broadcast %30 : vector<64x1xf32> to vector<64x2xf32>
    %57 = arith.mulf %55, %56 : vector<64x2xf32>
    %58 = arith.truncf %57 : vector<64x2xf32> to vector<64x2xbf16>
    %c6 = arith.constant 6 : index
    %c0_47 = arith.constant 0 : index
    %59 = vector.load %arg8[%c6, %c0_47] : memref<18x2xbf16, #tpu.memory_space<vmem>>, vector<2x2xbf16>
    %cst_48 = arith.constant dense<0.000000e+00> : vector<64x2xf32>
    %60 = tpu.matmul %58, %59, %cst_48 {dimension_numbers = #tpu.dot_dimension_numbers<[1], [0], [0], [1], [0, 0, 1, 1], [], []>} : vector<64x2xbf16>, vector<2x2xbf16>, vector<64x2xf32> -> vector<64x2xf32>
    %c0_49 = arith.constant 0 : index
    %c0_50 = arith.constant 0 : index
    %61 = vector.load %arg18[%c0_49, %c0_50] : memref<64x2xf32, #tpu.memory_space<vmem>>, vector<64x2xf32>
    %62 = arith.addf %61, %60 : vector<64x2xf32>
    %c0_51 = arith.constant 0 : index
    %c0_52 = arith.constant 0 : index
    %63 = vector.load %arg18[%c0_51, %c0_52] : memref<64x2xf32, #tpu.memory_space<vmem>>, vector<64x2xf32>
    tpu.vector_store %arg18[%c0_51, %c0_52], %62 {strides = array<i32>} : memref<64x2xf32, #tpu.memory_space<vmem>>, vector<64x2xf32>,
    %c16_53 = arith.constant 16 : index
    %c0_54 = arith.constant 0 : index
    %64 = vector.load %arg17[%c16_53, %c0_54] : memref<96x2xf32, #tpu.memory_space<vmem>>, vector<64x2xf32>
    %65 = arith.truncf %64 : vector<64x2xf32> to vector<64x2xbf16>
    %c8_55 = arith.constant 8 : index
    %c0_56 = arith.constant 0 : index
    %66 = vector.load %arg8[%c8_55, %c0_56] : memref<18x2xbf16, #tpu.memory_space<vmem>>, vector<2x2xbf16>
    %cst_57 = arith.constant dense<0.000000e+00> : vector<64x2xf32>
    %67 = tpu.matmul %65, %66, %cst_57 {dimension_numbers = #tpu.dot_dimension_numbers<[1], [0], [0], [1], [0, 0, 1, 1], [], []>} : vector<64x2xbf16>, vector<2x2xbf16>, vector<64x2xf32> -> vector<64x2xf32>
    %c0_58 = arith.constant 0 : index
    %c0_59 = arith.constant 0 : index
    %68 = vector.load %arg18[%c0_58, %c0_59] : memref<64x2xf32, #tpu.memory_space<vmem>>, vector<64x2xf32>
    %69 = arith.addf %68, %67 : vector<64x2xf32>
    %c0_60 = arith.constant 0 : index
    %c0_61 = arith.constant 0 : index
    %70 = vector.load %arg18[%c0_60, %c0_61] : memref<64x2xf32, #tpu.memory_space<vmem>>, vector<64x2xf32>
    tpu.vector_store %arg18[%c0_60, %c0_61], %69 {strides = array<i32>} : memref<64x2xf32, #tpu.memory_space<vmem>>, vector<64x2xf32>,
    %c17 = arith.constant 17 : index
    %c0_62 = arith.constant 0 : index
    %71 = vector.load %arg17[%c17, %c0_62] : memref<96x2xf32, #tpu.memory_space<vmem>>, vector<64x2xf32>
    %72 = vector.broadcast %31 : vector<64x1xf32> to vector<64x2xf32>
    %73 = arith.mulf %71, %72 : vector<64x2xf32>
    %74 = arith.truncf %73 : vector<64x2xf32> to vector<64x2xbf16>
    %c10 = arith.constant 10 : index
    %c0_63 = arith.constant 0 : index
    %75 = vector.load %arg8[%c10, %c0_63] : memref<18x2xbf16, #tpu.memory_space<vmem>>, vector<2x2xbf16>
    %cst_64 = arith.constant dense<0.000000e+00> : vector<64x2xf32>
    %76 = tpu.matmul %74, %75, %cst_64 {dimension_numbers = #tpu.dot_dimension_numbers<[1], [0], [0], [1], [0, 0, 1, 1], [], []>} : vector<64x2xbf16>, vector<2x2xbf16>, vector<64x2xf32> -> vector<64x2xf32>
    %c0_65 = arith.constant 0 : index
    %c0_66 = arith.constant 0 : index
    %77 = vector.load %arg18[%c0_65, %c0_66] : memref<64x2xf32, #tpu.memory_space<vmem>>, vector<64x2xf32>
    %78 = arith.addf %77, %76 : vector<64x2xf32>
    %c0_67 = arith.constant 0 : index
    %c0_68 = arith.constant 0 : index
    %79 = vector.load %arg18[%c0_67, %c0_68] : memref<64x2xf32, #tpu.memory_space<vmem>>, vector<64x2xf32>
    tpu.vector_store %arg18[%c0_67, %c0_68], %78 {strides = array<i32>} : memref<64x2xf32, #tpu.memory_space<vmem>>, vector<64x2xf32>,
    %c23 = arith.constant 23 : index
    %c0_69 = arith.constant 0 : index
    %80 = vector.load %arg17[%c23, %c0_69] : memref<96x2xf32, #tpu.memory_space<vmem>>, vector<64x2xf32>
    %81 = vector.broadcast %30 : vector<64x1xf32> to vector<64x2xf32>
    %82 = arith.mulf %80, %81 : vector<64x2xf32>
    %83 = arith.truncf %82 : vector<64x2xf32> to vector<64x2xbf16>
    %c12 = arith.constant 12 : index
    %c0_70 = arith.constant 0 : index
    %84 = vector.load %arg8[%c12, %c0_70] : memref<18x2xbf16, #tpu.memory_space<vmem>>, vector<2x2xbf16>
    %cst_71 = arith.constant dense<0.000000e+00> : vector<64x2xf32>
    %85 = tpu.matmul %83, %84, %cst_71 {dimension_numbers = #tpu.dot_dimension_numbers<[1], [0], [0], [1], [0, 0, 1, 1], [], []>} : vector<64x2xbf16>, vector<2x2xbf16>, vector<64x2xf32> -> vector<64x2xf32>
    %c0_72 = arith.constant 0 : index
    %c0_73 = arith.constant 0 : index
    %86 = vector.load %arg18[%c0_72, %c0_73] : memref<64x2xf32, #tpu.memory_space<vmem>>, vector<64x2xf32>
    %87 = arith.addf %86, %85 : vector<64x2xf32>
    %c0_74 = arith.constant 0 : index
    %c0_75 = arith.constant 0 : index
    %88 = vector.load %arg18[%c0_74, %c0_75] : memref<64x2xf32, #tpu.memory_space<vmem>>, vector<64x2xf32>
    tpu.vector_store %arg18[%c0_74, %c0_75], %87 {strides = array<i32>} : memref<64x2xf32, #tpu.memory_space<vmem>>, vector<64x2xf32>,
    %c24 = arith.constant 24 : index
    %c0_76 = arith.constant 0 : index
    %89 = vector.load %arg17[%c24, %c0_76] : memref<96x2xf32, #tpu.memory_space<vmem>>, vector<64x2xf32>
    %90 = arith.truncf %89 : vector<64x2xf32> to vector<64x2xbf16>
    %c14 = arith.constant 14 : index
    %c0_77 = arith.constant 0 : index
    %91 = vector.load %arg8[%c14, %c0_77] : memref<18x2xbf16, #tpu.memory_space<vmem>>, vector<2x2xbf16>
    %cst_78 = arith.constant dense<0.000000e+00> : vector<64x2xf32>
    %92 = tpu.matmul %90, %91, %cst_78 {dimension_numbers = #tpu.dot_dimension_numbers<[1], [0], [0], [1], [0, 0, 1, 1], [], []>} : vector<64x2xbf16>, vector<2x2xbf16>, vector<64x2xf32> -> vector<64x2xf32>
    %c0_79 = arith.constant 0 : index
    %c0_80 = arith.constant 0 : index
    %93 = vector.load %arg18[%c0_79, %c0_80] : memref<64x2xf32, #tpu.memory_space<vmem>>, vector<64x2xf32>
    %94 = arith.addf %93, %92 : vector<64x2xf32>
    %c0_81 = arith.constant 0 : index
    %c0_82 = arith.constant 0 : index
    %95 = vector.load %arg18[%c0_81, %c0_82] : memref<64x2xf32, #tpu.memory_space<vmem>>, vector<64x2xf32>
    tpu.vector_store %arg18[%c0_81, %c0_82], %94 {strides = array<i32>} : memref<64x2xf32, #tpu.memory_space<vmem>>, vector<64x2xf32>,
    %c25 = arith.constant 25 : index
    %c0_83 = arith.constant 0 : index
    %96 = vector.load %arg17[%c25, %c0_83] : memref<96x2xf32, #tpu.memory_space<vmem>>, vector<64x2xf32>
    %97 = vector.broadcast %31 : vector<64x1xf32> to vector<64x2xf32>
    %98 = arith.mulf %96, %97 : vector<64x2xf32>
    %99 = arith.truncf %98 : vector<64x2xf32> to vector<64x2xbf16>
    %c16_84 = arith.constant 16 : index
    %c0_85 = arith.constant 0 : index
    %100 = vector.load %arg8[%c16_84, %c0_85] : memref<18x2xbf16, #tpu.memory_space<vmem>>, vector<2x2xbf16>
    %cst_86 = arith.constant dense<0.000000e+00> : vector<64x2xf32>
    %101 = tpu.matmul %99, %100, %cst_86 {dimension_numbers = #tpu.dot_dimension_numbers<[1], [0], [0], [1], [0, 0, 1, 1], [], []>} : vector<64x2xbf16>, vector<2x2xbf16>, vector<64x2xf32> -> vector<64x2xf32>
    %c0_87 = arith.constant 0 : index
    %c0_88 = arith.constant 0 : index
    %102 = vector.load %arg18[%c0_87, %c0_88] : memref<64x2xf32, #tpu.memory_space<vmem>>, vector<64x2xf32>
    %103 = arith.addf %102, %101 : vector<64x2xf32>
    %c0_89 = arith.constant 0 : index
    %c0_90 = arith.constant 0 : index
    %104 = vector.load %arg18[%c0_89, %c0_90] : memref<64x2xf32, #tpu.memory_space<vmem>>, vector<64x2xf32>
    tpu.vector_store %arg18[%c0_89, %c0_90], %103 {strides = array<i32>} : memref<64x2xf32, #tpu.memory_space<vmem>>, vector<64x2xf32>,
    %c0_91 = arith.constant 0 : index
    %c0_92 = arith.constant 0 : index
    %105 = vector.load %arg18[%c0_91, %c0_92] : memref<64x2xf32, #tpu.memory_space<vmem>>, vector<64x2xf32>
    %c0_93 = arith.constant 0 : index
    %c0_94 = arith.constant 0 : index
    %106 = vector.load %arg9[%c0_93, %c0_94] : memref<1x2xf32, #tpu.memory_space<vmem>>, vector<1x2xf32>
    %107 = vector.broadcast %106 : vector<1x2xf32> to vector<64x2xf32>
    %108 = arith.addf %105, %107 : vector<64x2xf32>
    %c0_95 = arith.constant 0 : index
    %c0_96 = arith.constant 0 : index
    %109 = vector.load %arg10[%c0_95, %c0_96] : memref<1x2xf32, #tpu.memory_space<vmem>>, vector<1x2xf32>
    %110 = vector.broadcast %109 : vector<1x2xf32> to vector<64x2xf32>
    %111 = arith.mulf %108, %110 : vector<64x2xf32>
    %c0_97 = arith.constant 0 : index
    %c0_98 = arith.constant 0 : index
    %112 = vector.load %arg11[%c0_97, %c0_98] : memref<1x2xf32, #tpu.memory_space<vmem>>, vector<1x2xf32>
    %113 = vector.broadcast %112 : vector<1x2xf32> to vector<64x2xf32>
    %114 = arith.addf %111, %113 : vector<64x2xf32>
    %cst_99 = arith.constant 0.000000e+00 : f32
    %115 = vector.broadcast %cst_99 : f32 to vector<64x2xf32>
    %116 = arith.maximumf %114, %115 : vector<64x2xf32>
    %117 = arith.truncf %116 : vector<64x2xf32> to vector<64x2xbf16>
    %c0_100 = arith.constant 0 : index
    %c0_101 = arith.constant 0 : index
    %118 = vector.load %arg12[%c0_100, %c0_101] : memref<2x4xbf16, #tpu.memory_space<vmem>>, vector<2x4xbf16>
    %cst_102 = arith.constant dense<0.000000e+00> : vector<64x4xf32>
    %119 = tpu.matmul %117, %118, %cst_102 {dimension_numbers = #tpu.dot_dimension_numbers<[1], [0], [0], [1], [0, 0, 1, 1], [], []>} : vector<64x2xbf16>, vector<2x4xbf16>, vector<64x4xf32> -> vector<64x4xf32>
    %c0_103 = arith.constant 0 : index
    %c0_104 = arith.constant 0 : index
    %120 = vector.load %arg13[%c0_103, %c0_104] : memref<1x4xf32, #tpu.memory_space<vmem>>, vector<1x4xf32>
    %121 = vector.broadcast %120 : vector<1x4xf32> to vector<64x4xf32>
    %122 = arith.addf %119, %121 : vector<64x4xf32>
    %123 = arith.truncf %122 : vector<64x4xf32> to vector<64x4xbf16>
    %c0_105 = arith.constant 0 : index
    %c0_106 = arith.constant 0 : index
    %c0_107 = arith.constant 0 : index
    %124 = vector.load %arg16[%c0_105, %c0_106, %c0_107] : memref<1x64x4xbf16, #tpu.memory_space<vmem>>, vector<1x64x4xbf16>
    %125 = vector.shape_cast %124 : vector<1x64x4xbf16> to vector<64x4xbf16>
    %126 = vector.shape_cast %123 : vector<64x4xbf16> to vector<1x64x4xbf16>
    tpu.vector_store %arg16[%c0_105, %c0_106, %c0_107], %126 {strides = array<i32>} : memref<1x64x4xbf16, #tpu.memory_space<vmem>>, vector<1x64x4xbf16>,
    return
  }
  func.func @transform_0(%arg0: i32) -> (i32, i32, i32) {
    %c0_i32 = arith.constant 0 : i32
    %c0_i32_0 = arith.constant 0 : i32
    %c0_i32_1 = arith.constant 0 : i32
    return %arg0, %c0_i32, %c0_i32_0 : i32, i32, i32
  }
  func.func @transform_1(%arg0: i32) -> (i32, i32) {
    %c0_i32 = arith.constant 0 : i32
    %c0_i32_0 = arith.constant 0 : i32
    %c0_i32_1 = arith.constant 0 : i32
    return %c0_i32, %c0_i32_0 : i32, i32
  }
  func.func @transform_2(%arg0: i32) -> (i32, i32) {
    %c0_i32 = arith.constant 0 : i32
    %c0_i32_0 = arith.constant 0 : i32
    %c0_i32_1 = arith.constant 0 : i32
    return %c0_i32, %c0_i32_0 : i32, i32
  }
  func.func @transform_3(%arg0: i32) -> (i32, i32) {
    %c0_i32 = arith.constant 0 : i32
    %c0_i32_0 = arith.constant 0 : i32
    %c0_i32_1 = arith.constant 0 : i32
    return %c0_i32, %c0_i32_0 : i32, i32
  }
  func.func @transform_4(%arg0: i32) -> (i32, i32) {
    %c0_i32 = arith.constant 0 : i32
    %c0_i32_0 = arith.constant 0 : i32
    %c0_i32_1 = arith.constant 0 : i32
    return %c0_i32, %c0_i32_0 : i32, i32
  }
  func.func @transform_5(%arg0: i32) -> (i32, i32) {
    %c0_i32 = arith.constant 0 : i32
    %c0_i32_0 = arith.constant 0 : i32
    %c0_i32_1 = arith.constant 0 : i32
    return %c0_i32, %c0_i32_0 : i32, i32
  }
  func.func @transform_6(%arg0: i32) -> (i32, i32) {
    %c0_i32 = arith.constant 0 : i32
    %c0_i32_0 = arith.constant 0 : i32
    %c0_i32_1 = arith.constant 0 : i32
    return %c0_i32, %c0_i32_0 : i32, i32
  }
  func.func @transform_7(%arg0: i32) -> (i32, i32) {
    %c0_i32 = arith.constant 0 : i32
    %c0_i32_0 = arith.constant 0 : i32
    %c0_i32_1 = arith.constant 0 : i32
    return %c0_i32, %c0_i32_0 : i32, i32
  }
  func.func @transform_8(%arg0: i32) -> (i32, i32) {
    %c0_i32 = arith.constant 0 : i32
    %c0_i32_0 = arith.constant 0 : i32
    %c0_i32_1 = arith.constant 0 : i32
    return %c0_i32, %c0_i32_0 : i32, i32
  }
  func.func @transform_9(%arg0: i32) -> (i32, i32) {
    %c0_i32 = arith.constant 0 : i32
    %c0_i32_0 = arith.constant 0 : i32
    %c0_i32_1 = arith.constant 0 : i32
    return %c0_i32, %c0_i32_0 : i32, i32
  }
  func.func @transform_10(%arg0: i32) -> (i32, i32) {
    %c0_i32 = arith.constant 0 : i32
    %c0_i32_0 = arith.constant 0 : i32
    %c0_i32_1 = arith.constant 0 : i32
    return %c0_i32, %c0_i32_0 : i32, i32
  }
  func.func @transform_11(%arg0: i32) -> (i32, i32) {
    %c0_i32 = arith.constant 0 : i32
    %c0_i32_0 = arith.constant 0 : i32
    %c0_i32_1 = arith.constant 0 : i32
    return %c0_i32, %c0_i32_0 : i32, i32
  }
  func.func @transform_12(%arg0: i32) -> (i32, i32) {
    %c0_i32 = arith.constant 0 : i32
    %c0_i32_0 = arith.constant 0 : i32
    %c0_i32_1 = arith.constant 0 : i32
    return %c0_i32, %c0_i32_0 : i32, i32
  }
  func.func @transform_13(%arg0: i32) -> (i32, i32) {
    %c0_i32 = arith.constant 0 : i32
    %c0_i32_0 = arith.constant 0 : i32
    %c0_i32_1 = arith.constant 0 : i32
    return %c0_i32, %c0_i32_0 : i32, i32
  }
  func.func @transform_14(%arg0: i32) -> (i32, i32) {
    %c0_i32 = arith.constant 0 : i32
    %c0_i32_0 = arith.constant 0 : i32
    %c0_i32_1 = arith.constant 0 : i32
    return %c0_i32, %c0_i32_0 : i32, i32
  }
  func.func @transform_15(%arg0: i32) -> (i32, i32, i32) {
    %c0_i32 = arith.constant 0 : i32
    %c0_i32_0 = arith.constant 0 : i32
    %c0_i32_1 = arith.constant 0 : i32
    return %arg0, %c0_i32, %c0_i32_0 : i32, i32, i32
  }
}

module attributes {stable_mosaic.version = 11 : i64} {
  func.func @_residual_block_kernel(%arg0: i32, %arg1: memref<1x256x4xbf16, #tpu.memory_space<vmem>>, %arg2: memref<1x4xf32, #tpu.memory_space<vmem>>, %arg3: memref<1x4xf32, #tpu.memory_space<vmem>>, %arg4: memref<4x2xbf16, #tpu.memory_space<vmem>>, %arg5: memref<1x2xf32, #tpu.memory_space<vmem>>, %arg6: memref<1x2xf32, #tpu.memory_space<vmem>>, %arg7: memref<1x2xf32, #tpu.memory_space<vmem>>, %arg8: memref<18x2xbf16, #tpu.memory_space<vmem>>, %arg9: memref<1x2xf32, #tpu.memory_space<vmem>>, %arg10: memref<1x2xf32, #tpu.memory_space<vmem>>, %arg11: memref<1x2xf32, #tpu.memory_space<vmem>>, %arg12: memref<2x4xbf16, #tpu.memory_space<vmem>>, %arg13: memref<1x4xf32, #tpu.memory_space<vmem>>, %arg14: memref<256x1xf32, #tpu.memory_space<vmem>>, %arg15: memref<256x1xf32, #tpu.memory_space<vmem>>, %arg16: memref<1x256x4xbf16, #tpu.memory_space<vmem>>, %arg17: memref<304x2xf32, #tpu.memory_space<vmem>>, %arg18: memref<256x2xf32, #tpu.memory_space<vmem>>) attributes {dimension_semantics = [#tpu.dimension_semantics<parallel>], iteration_bounds = array<i64: 2>, scalar_prefetch = 0 : i64, scratch_operands = 2 : i64, tpu.core_type = #tpu.core_type<tc>, window_params = [{transform_indices = @transform_0, window_bounds = array<i64: 1, 256, 4>}, {pipeline_mode = #tpu.pipeline_mode<synchronous>, transform_indices = @transform_1, window_bounds = array<i64: 1, 4>}, {pipeline_mode = #tpu.pipeline_mode<synchronous>, transform_indices = @transform_2, window_bounds = array<i64: 1, 4>}, {pipeline_mode = #tpu.pipeline_mode<synchronous>, transform_indices = @transform_3, window_bounds = array<i64: 4, 2>}, {pipeline_mode = #tpu.pipeline_mode<synchronous>, transform_indices = @transform_4, window_bounds = array<i64: 1, 2>}, {pipeline_mode = #tpu.pipeline_mode<synchronous>, transform_indices = @transform_5, window_bounds = array<i64: 1, 2>}, {pipeline_mode = #tpu.pipeline_mode<synchronous>, transform_indices = @transform_6, window_bounds = array<i64: 1, 2>}, {pipeline_mode = #tpu.pipeline_mode<synchronous>, transform_indices = @transform_7, window_bounds = array<i64: 18, 2>}, {pipeline_mode = #tpu.pipeline_mode<synchronous>, transform_indices = @transform_8, window_bounds = array<i64: 1, 2>}, {pipeline_mode = #tpu.pipeline_mode<synchronous>, transform_indices = @transform_9, window_bounds = array<i64: 1, 2>}, {pipeline_mode = #tpu.pipeline_mode<synchronous>, transform_indices = @transform_10, window_bounds = array<i64: 1, 2>}, {pipeline_mode = #tpu.pipeline_mode<synchronous>, transform_indices = @transform_11, window_bounds = array<i64: 2, 4>}, {pipeline_mode = #tpu.pipeline_mode<synchronous>, transform_indices = @transform_12, window_bounds = array<i64: 1, 4>}, {pipeline_mode = #tpu.pipeline_mode<synchronous>, transform_indices = @transform_13, window_bounds = array<i64: 256, 1>}, {pipeline_mode = #tpu.pipeline_mode<synchronous>, transform_indices = @transform_14, window_bounds = array<i64: 256, 1>}, {transform_indices = @transform_15, window_bounds = array<i64: 1, 256, 4>}]} {
    %c0 = arith.constant 0 : index
    %c0_0 = arith.constant 0 : index
    %c0_1 = arith.constant 0 : index
    %0 = vector.load %arg1[%c0, %c0_0, %c0_1] : memref<1x256x4xbf16, #tpu.memory_space<vmem>>, vector<1x256x4xbf16>
    %1 = vector.shape_cast %0 : vector<1x256x4xbf16> to vector<256x4xbf16>
    %2 = arith.extf %1 : vector<256x4xbf16> to vector<256x4xf32>
    %c0_2 = arith.constant 0 : index
    %c0_3 = arith.constant 0 : index
    %3 = vector.load %arg2[%c0_2, %c0_3] : memref<1x4xf32, #tpu.memory_space<vmem>>, vector<1x4xf32>
    %4 = vector.broadcast %3 : vector<1x4xf32> to vector<256x4xf32>
    %5 = arith.mulf %2, %4 : vector<256x4xf32>
    %c0_4 = arith.constant 0 : index
    %c0_5 = arith.constant 0 : index
    %6 = vector.load %arg3[%c0_4, %c0_5] : memref<1x4xf32, #tpu.memory_space<vmem>>, vector<1x4xf32>
    %7 = vector.broadcast %6 : vector<1x4xf32> to vector<256x4xf32>
    %8 = arith.addf %5, %7 : vector<256x4xf32>
    %cst = arith.constant 0.000000e+00 : f32
    %9 = vector.broadcast %cst : f32 to vector<256x4xf32>
    %10 = arith.maximumf %8, %9 : vector<256x4xf32>
    %11 = arith.truncf %10 : vector<256x4xf32> to vector<256x4xbf16>
    %c0_6 = arith.constant 0 : index
    %c0_7 = arith.constant 0 : index
    %12 = vector.load %arg4[%c0_6, %c0_7] : memref<4x2xbf16, #tpu.memory_space<vmem>>, vector<4x2xbf16>
    %cst_8 = arith.constant dense<0.000000e+00> : vector<256x2xf32>
    %13 = tpu.matmul %11, %12, %cst_8 {dimension_numbers = #tpu.dot_dimension_numbers<[1], [0], [0], [1], [0, 0, 1, 1], [], []>} : vector<256x4xbf16>, vector<4x2xbf16>, vector<256x2xf32> -> vector<256x2xf32>
    %c0_9 = arith.constant 0 : index
    %c0_10 = arith.constant 0 : index
    %14 = vector.load %arg5[%c0_9, %c0_10] : memref<1x2xf32, #tpu.memory_space<vmem>>, vector<1x2xf32>
    %15 = vector.broadcast %14 : vector<1x2xf32> to vector<256x2xf32>
    %16 = arith.addf %13, %15 : vector<256x2xf32>
    %c0_11 = arith.constant 0 : index
    %c0_12 = arith.constant 0 : index
    %17 = vector.load %arg6[%c0_11, %c0_12] : memref<1x2xf32, #tpu.memory_space<vmem>>, vector<1x2xf32>
    %18 = vector.broadcast %17 : vector<1x2xf32> to vector<256x2xf32>
    %19 = arith.mulf %16, %18 : vector<256x2xf32>
    %c0_13 = arith.constant 0 : index
    %c0_14 = arith.constant 0 : index
    %20 = vector.load %arg7[%c0_13, %c0_14] : memref<1x2xf32, #tpu.memory_space<vmem>>, vector<1x2xf32>
    %21 = vector.broadcast %20 : vector<1x2xf32> to vector<256x2xf32>
    %22 = arith.addf %19, %21 : vector<256x2xf32>
    %cst_15 = arith.constant 0.000000e+00 : f32
    %23 = vector.broadcast %cst_15 : f32 to vector<256x2xf32>
    %24 = arith.maximumf %22, %23 : vector<256x2xf32>
    %cst_16 = arith.constant 0.000000e+00 : f32
    %25 = vector.broadcast %cst_16 : f32 to vector<24x2xf32>
    %c0_17 = arith.constant 0 : index
    %c0_18 = arith.constant 0 : index
    %26 = vector.load %arg17[%c0_17, %c0_18] : memref<304x2xf32, #tpu.memory_space<vmem>>, vector<24x2xf32>
    tpu.vector_store %arg17[%c0_17, %c0_18], %25 {strides = array<i32>} : memref<304x2xf32, #tpu.memory_space<vmem>>, vector<24x2xf32>,
    %cst_19 = arith.constant 0.000000e+00 : f32
    %27 = vector.broadcast %cst_19 : f32 to vector<24x2xf32>
    %c280 = arith.constant 280 : index
    %c0_20 = arith.constant 0 : index
    %28 = vector.load %arg17[%c280, %c0_20] : memref<304x2xf32, #tpu.memory_space<vmem>>, vector<24x2xf32>
    tpu.vector_store %arg17[%c280, %c0_20], %27 {strides = array<i32>} : memref<304x2xf32, #tpu.memory_space<vmem>>, vector<24x2xf32>,
    %c24 = arith.constant 24 : index
    %c0_21 = arith.constant 0 : index
    %29 = vector.load %arg17[%c24, %c0_21] : memref<304x2xf32, #tpu.memory_space<vmem>>, vector<256x2xf32>
    tpu.vector_store %arg17[%c24, %c0_21], %24 {strides = array<i32>} : memref<304x2xf32, #tpu.memory_space<vmem>>, vector<256x2xf32>,
    %c0_22 = arith.constant 0 : index
    %c0_23 = arith.constant 0 : index
    %30 = vector.load %arg14[%c0_22, %c0_23] : memref<256x1xf32, #tpu.memory_space<vmem>>, vector<256x1xf32>
    %c0_24 = arith.constant 0 : index
    %c0_25 = arith.constant 0 : index
    %31 = vector.load %arg15[%c0_24, %c0_25] : memref<256x1xf32, #tpu.memory_space<vmem>>, vector<256x1xf32>
    %c7 = arith.constant 7 : index
    %c0_26 = arith.constant 0 : index
    %32 = vector.load %arg17[%c7, %c0_26] : memref<304x2xf32, #tpu.memory_space<vmem>>, vector<256x2xf32>
    %33 = vector.broadcast %30 : vector<256x1xf32> to vector<256x2xf32>
    %34 = arith.mulf %32, %33 : vector<256x2xf32>
    %35 = arith.truncf %34 : vector<256x2xf32> to vector<256x2xbf16>
    %c0_27 = arith.constant 0 : index
    %c0_28 = arith.constant 0 : index
    %36 = vector.load %arg8[%c0_27, %c0_28] : memref<18x2xbf16, #tpu.memory_space<vmem>>, vector<2x2xbf16>
    %cst_29 = arith.constant dense<0.000000e+00> : vector<256x2xf32>
    %37 = tpu.matmul %35, %36, %cst_29 {dimension_numbers = #tpu.dot_dimension_numbers<[1], [0], [0], [1], [0, 0, 1, 1], [], []>} : vector<256x2xbf16>, vector<2x2xbf16>, vector<256x2xf32> -> vector<256x2xf32>
    %c0_30 = arith.constant 0 : index
    %c0_31 = arith.constant 0 : index
    %38 = vector.load %arg18[%c0_30, %c0_31] : memref<256x2xf32, #tpu.memory_space<vmem>>, vector<256x2xf32>
    tpu.vector_store %arg18[%c0_30, %c0_31], %37 {strides = array<i32>} : memref<256x2xf32, #tpu.memory_space<vmem>>, vector<256x2xf32>,
    %c8 = arith.constant 8 : index
    %c0_32 = arith.constant 0 : index
    %39 = vector.load %arg17[%c8, %c0_32] : memref<304x2xf32, #tpu.memory_space<vmem>>, vector<256x2xf32>
    %40 = arith.truncf %39 : vector<256x2xf32> to vector<256x2xbf16>
    %c2 = arith.constant 2 : index
    %c0_33 = arith.constant 0 : index
    %41 = vector.load %arg8[%c2, %c0_33] : memref<18x2xbf16, #tpu.memory_space<vmem>>, vector<2x2xbf16>
    %cst_34 = arith.constant dense<0.000000e+00> : vector<256x2xf32>
    %42 = tpu.matmul %40, %41, %cst_34 {dimension_numbers = #tpu.dot_dimension_numbers<[1], [0], [0], [1], [0, 0, 1, 1], [], []>} : vector<256x2xbf16>, vector<2x2xbf16>, vector<256x2xf32> -> vector<256x2xf32>
    %c0_35 = arith.constant 0 : index
    %c0_36 = arith.constant 0 : index
    %43 = vector.load %arg18[%c0_35, %c0_36] : memref<256x2xf32, #tpu.memory_space<vmem>>, vector<256x2xf32>
    %44 = arith.addf %43, %42 : vector<256x2xf32>
    %c0_37 = arith.constant 0 : index
    %c0_38 = arith.constant 0 : index
    %45 = vector.load %arg18[%c0_37, %c0_38] : memref<256x2xf32, #tpu.memory_space<vmem>>, vector<256x2xf32>
    tpu.vector_store %arg18[%c0_37, %c0_38], %44 {strides = array<i32>} : memref<256x2xf32, #tpu.memory_space<vmem>>, vector<256x2xf32>,
    %c9 = arith.constant 9 : index
    %c0_39 = arith.constant 0 : index
    %46 = vector.load %arg17[%c9, %c0_39] : memref<304x2xf32, #tpu.memory_space<vmem>>, vector<256x2xf32>
    %47 = vector.broadcast %31 : vector<256x1xf32> to vector<256x2xf32>
    %48 = arith.mulf %46, %47 : vector<256x2xf32>
    %49 = arith.truncf %48 : vector<256x2xf32> to vector<256x2xbf16>
    %c4 = arith.constant 4 : index
    %c0_40 = arith.constant 0 : index
    %50 = vector.load %arg8[%c4, %c0_40] : memref<18x2xbf16, #tpu.memory_space<vmem>>, vector<2x2xbf16>
    %cst_41 = arith.constant dense<0.000000e+00> : vector<256x2xf32>
    %51 = tpu.matmul %49, %50, %cst_41 {dimension_numbers = #tpu.dot_dimension_numbers<[1], [0], [0], [1], [0, 0, 1, 1], [], []>} : vector<256x2xbf16>, vector<2x2xbf16>, vector<256x2xf32> -> vector<256x2xf32>
    %c0_42 = arith.constant 0 : index
    %c0_43 = arith.constant 0 : index
    %52 = vector.load %arg18[%c0_42, %c0_43] : memref<256x2xf32, #tpu.memory_space<vmem>>, vector<256x2xf32>
    %53 = arith.addf %52, %51 : vector<256x2xf32>
    %c0_44 = arith.constant 0 : index
    %c0_45 = arith.constant 0 : index
    %54 = vector.load %arg18[%c0_44, %c0_45] : memref<256x2xf32, #tpu.memory_space<vmem>>, vector<256x2xf32>
    tpu.vector_store %arg18[%c0_44, %c0_45], %53 {strides = array<i32>} : memref<256x2xf32, #tpu.memory_space<vmem>>, vector<256x2xf32>,
    %c23 = arith.constant 23 : index
    %c0_46 = arith.constant 0 : index
    %55 = vector.load %arg17[%c23, %c0_46] : memref<304x2xf32, #tpu.memory_space<vmem>>, vector<256x2xf32>
    %56 = vector.broadcast %30 : vector<256x1xf32> to vector<256x2xf32>
    %57 = arith.mulf %55, %56 : vector<256x2xf32>
    %58 = arith.truncf %57 : vector<256x2xf32> to vector<256x2xbf16>
    %c6 = arith.constant 6 : index
    %c0_47 = arith.constant 0 : index
    %59 = vector.load %arg8[%c6, %c0_47] : memref<18x2xbf16, #tpu.memory_space<vmem>>, vector<2x2xbf16>
    %cst_48 = arith.constant dense<0.000000e+00> : vector<256x2xf32>
    %60 = tpu.matmul %58, %59, %cst_48 {dimension_numbers = #tpu.dot_dimension_numbers<[1], [0], [0], [1], [0, 0, 1, 1], [], []>} : vector<256x2xbf16>, vector<2x2xbf16>, vector<256x2xf32> -> vector<256x2xf32>
    %c0_49 = arith.constant 0 : index
    %c0_50 = arith.constant 0 : index
    %61 = vector.load %arg18[%c0_49, %c0_50] : memref<256x2xf32, #tpu.memory_space<vmem>>, vector<256x2xf32>
    %62 = arith.addf %61, %60 : vector<256x2xf32>
    %c0_51 = arith.constant 0 : index
    %c0_52 = arith.constant 0 : index
    %63 = vector.load %arg18[%c0_51, %c0_52] : memref<256x2xf32, #tpu.memory_space<vmem>>, vector<256x2xf32>
    tpu.vector_store %arg18[%c0_51, %c0_52], %62 {strides = array<i32>} : memref<256x2xf32, #tpu.memory_space<vmem>>, vector<256x2xf32>,
    %c24_53 = arith.constant 24 : index
    %c0_54 = arith.constant 0 : index
    %64 = vector.load %arg17[%c24_53, %c0_54] : memref<304x2xf32, #tpu.memory_space<vmem>>, vector<256x2xf32>
    %65 = arith.truncf %64 : vector<256x2xf32> to vector<256x2xbf16>
    %c8_55 = arith.constant 8 : index
    %c0_56 = arith.constant 0 : index
    %66 = vector.load %arg8[%c8_55, %c0_56] : memref<18x2xbf16, #tpu.memory_space<vmem>>, vector<2x2xbf16>
    %cst_57 = arith.constant dense<0.000000e+00> : vector<256x2xf32>
    %67 = tpu.matmul %65, %66, %cst_57 {dimension_numbers = #tpu.dot_dimension_numbers<[1], [0], [0], [1], [0, 0, 1, 1], [], []>} : vector<256x2xbf16>, vector<2x2xbf16>, vector<256x2xf32> -> vector<256x2xf32>
    %c0_58 = arith.constant 0 : index
    %c0_59 = arith.constant 0 : index
    %68 = vector.load %arg18[%c0_58, %c0_59] : memref<256x2xf32, #tpu.memory_space<vmem>>, vector<256x2xf32>
    %69 = arith.addf %68, %67 : vector<256x2xf32>
    %c0_60 = arith.constant 0 : index
    %c0_61 = arith.constant 0 : index
    %70 = vector.load %arg18[%c0_60, %c0_61] : memref<256x2xf32, #tpu.memory_space<vmem>>, vector<256x2xf32>
    tpu.vector_store %arg18[%c0_60, %c0_61], %69 {strides = array<i32>} : memref<256x2xf32, #tpu.memory_space<vmem>>, vector<256x2xf32>,
    %c25 = arith.constant 25 : index
    %c0_62 = arith.constant 0 : index
    %71 = vector.load %arg17[%c25, %c0_62] : memref<304x2xf32, #tpu.memory_space<vmem>>, vector<256x2xf32>
    %72 = vector.broadcast %31 : vector<256x1xf32> to vector<256x2xf32>
    %73 = arith.mulf %71, %72 : vector<256x2xf32>
    %74 = arith.truncf %73 : vector<256x2xf32> to vector<256x2xbf16>
    %c10 = arith.constant 10 : index
    %c0_63 = arith.constant 0 : index
    %75 = vector.load %arg8[%c10, %c0_63] : memref<18x2xbf16, #tpu.memory_space<vmem>>, vector<2x2xbf16>
    %cst_64 = arith.constant dense<0.000000e+00> : vector<256x2xf32>
    %76 = tpu.matmul %74, %75, %cst_64 {dimension_numbers = #tpu.dot_dimension_numbers<[1], [0], [0], [1], [0, 0, 1, 1], [], []>} : vector<256x2xbf16>, vector<2x2xbf16>, vector<256x2xf32> -> vector<256x2xf32>
    %c0_65 = arith.constant 0 : index
    %c0_66 = arith.constant 0 : index
    %77 = vector.load %arg18[%c0_65, %c0_66] : memref<256x2xf32, #tpu.memory_space<vmem>>, vector<256x2xf32>
    %78 = arith.addf %77, %76 : vector<256x2xf32>
    %c0_67 = arith.constant 0 : index
    %c0_68 = arith.constant 0 : index
    %79 = vector.load %arg18[%c0_67, %c0_68] : memref<256x2xf32, #tpu.memory_space<vmem>>, vector<256x2xf32>
    tpu.vector_store %arg18[%c0_67, %c0_68], %78 {strides = array<i32>} : memref<256x2xf32, #tpu.memory_space<vmem>>, vector<256x2xf32>,
    %c39 = arith.constant 39 : index
    %c0_69 = arith.constant 0 : index
    %80 = vector.load %arg17[%c39, %c0_69] : memref<304x2xf32, #tpu.memory_space<vmem>>, vector<256x2xf32>
    %81 = vector.broadcast %30 : vector<256x1xf32> to vector<256x2xf32>
    %82 = arith.mulf %80, %81 : vector<256x2xf32>
    %83 = arith.truncf %82 : vector<256x2xf32> to vector<256x2xbf16>
    %c12 = arith.constant 12 : index
    %c0_70 = arith.constant 0 : index
    %84 = vector.load %arg8[%c12, %c0_70] : memref<18x2xbf16, #tpu.memory_space<vmem>>, vector<2x2xbf16>
    %cst_71 = arith.constant dense<0.000000e+00> : vector<256x2xf32>
    %85 = tpu.matmul %83, %84, %cst_71 {dimension_numbers = #tpu.dot_dimension_numbers<[1], [0], [0], [1], [0, 0, 1, 1], [], []>} : vector<256x2xbf16>, vector<2x2xbf16>, vector<256x2xf32> -> vector<256x2xf32>
    %c0_72 = arith.constant 0 : index
    %c0_73 = arith.constant 0 : index
    %86 = vector.load %arg18[%c0_72, %c0_73] : memref<256x2xf32, #tpu.memory_space<vmem>>, vector<256x2xf32>
    %87 = arith.addf %86, %85 : vector<256x2xf32>
    %c0_74 = arith.constant 0 : index
    %c0_75 = arith.constant 0 : index
    %88 = vector.load %arg18[%c0_74, %c0_75] : memref<256x2xf32, #tpu.memory_space<vmem>>, vector<256x2xf32>
    tpu.vector_store %arg18[%c0_74, %c0_75], %87 {strides = array<i32>} : memref<256x2xf32, #tpu.memory_space<vmem>>, vector<256x2xf32>,
    %c40 = arith.constant 40 : index
    %c0_76 = arith.constant 0 : index
    %89 = vector.load %arg17[%c40, %c0_76] : memref<304x2xf32, #tpu.memory_space<vmem>>, vector<256x2xf32>
    %90 = arith.truncf %89 : vector<256x2xf32> to vector<256x2xbf16>
    %c14 = arith.constant 14 : index
    %c0_77 = arith.constant 0 : index
    %91 = vector.load %arg8[%c14, %c0_77] : memref<18x2xbf16, #tpu.memory_space<vmem>>, vector<2x2xbf16>
    %cst_78 = arith.constant dense<0.000000e+00> : vector<256x2xf32>
    %92 = tpu.matmul %90, %91, %cst_78 {dimension_numbers = #tpu.dot_dimension_numbers<[1], [0], [0], [1], [0, 0, 1, 1], [], []>} : vector<256x2xbf16>, vector<2x2xbf16>, vector<256x2xf32> -> vector<256x2xf32>
    %c0_79 = arith.constant 0 : index
    %c0_80 = arith.constant 0 : index
    %93 = vector.load %arg18[%c0_79, %c0_80] : memref<256x2xf32, #tpu.memory_space<vmem>>, vector<256x2xf32>
    %94 = arith.addf %93, %92 : vector<256x2xf32>
    %c0_81 = arith.constant 0 : index
    %c0_82 = arith.constant 0 : index
    %95 = vector.load %arg18[%c0_81, %c0_82] : memref<256x2xf32, #tpu.memory_space<vmem>>, vector<256x2xf32>
    tpu.vector_store %arg18[%c0_81, %c0_82], %94 {strides = array<i32>} : memref<256x2xf32, #tpu.memory_space<vmem>>, vector<256x2xf32>,
    %c41 = arith.constant 41 : index
    %c0_83 = arith.constant 0 : index
    %96 = vector.load %arg17[%c41, %c0_83] : memref<304x2xf32, #tpu.memory_space<vmem>>, vector<256x2xf32>
    %97 = vector.broadcast %31 : vector<256x1xf32> to vector<256x2xf32>
    %98 = arith.mulf %96, %97 : vector<256x2xf32>
    %99 = arith.truncf %98 : vector<256x2xf32> to vector<256x2xbf16>
    %c16 = arith.constant 16 : index
    %c0_84 = arith.constant 0 : index
    %100 = vector.load %arg8[%c16, %c0_84] : memref<18x2xbf16, #tpu.memory_space<vmem>>, vector<2x2xbf16>
    %cst_85 = arith.constant dense<0.000000e+00> : vector<256x2xf32>
    %101 = tpu.matmul %99, %100, %cst_85 {dimension_numbers = #tpu.dot_dimension_numbers<[1], [0], [0], [1], [0, 0, 1, 1], [], []>} : vector<256x2xbf16>, vector<2x2xbf16>, vector<256x2xf32> -> vector<256x2xf32>
    %c0_86 = arith.constant 0 : index
    %c0_87 = arith.constant 0 : index
    %102 = vector.load %arg18[%c0_86, %c0_87] : memref<256x2xf32, #tpu.memory_space<vmem>>, vector<256x2xf32>
    %103 = arith.addf %102, %101 : vector<256x2xf32>
    %c0_88 = arith.constant 0 : index
    %c0_89 = arith.constant 0 : index
    %104 = vector.load %arg18[%c0_88, %c0_89] : memref<256x2xf32, #tpu.memory_space<vmem>>, vector<256x2xf32>
    tpu.vector_store %arg18[%c0_88, %c0_89], %103 {strides = array<i32>} : memref<256x2xf32, #tpu.memory_space<vmem>>, vector<256x2xf32>,
    %c0_90 = arith.constant 0 : index
    %c0_91 = arith.constant 0 : index
    %105 = vector.load %arg18[%c0_90, %c0_91] : memref<256x2xf32, #tpu.memory_space<vmem>>, vector<256x2xf32>
    %c0_92 = arith.constant 0 : index
    %c0_93 = arith.constant 0 : index
    %106 = vector.load %arg9[%c0_92, %c0_93] : memref<1x2xf32, #tpu.memory_space<vmem>>, vector<1x2xf32>
    %107 = vector.broadcast %106 : vector<1x2xf32> to vector<256x2xf32>
    %108 = arith.addf %105, %107 : vector<256x2xf32>
    %c0_94 = arith.constant 0 : index
    %c0_95 = arith.constant 0 : index
    %109 = vector.load %arg10[%c0_94, %c0_95] : memref<1x2xf32, #tpu.memory_space<vmem>>, vector<1x2xf32>
    %110 = vector.broadcast %109 : vector<1x2xf32> to vector<256x2xf32>
    %111 = arith.mulf %108, %110 : vector<256x2xf32>
    %c0_96 = arith.constant 0 : index
    %c0_97 = arith.constant 0 : index
    %112 = vector.load %arg11[%c0_96, %c0_97] : memref<1x2xf32, #tpu.memory_space<vmem>>, vector<1x2xf32>
    %113 = vector.broadcast %112 : vector<1x2xf32> to vector<256x2xf32>
    %114 = arith.addf %111, %113 : vector<256x2xf32>
    %cst_98 = arith.constant 0.000000e+00 : f32
    %115 = vector.broadcast %cst_98 : f32 to vector<256x2xf32>
    %116 = arith.maximumf %114, %115 : vector<256x2xf32>
    %117 = arith.truncf %116 : vector<256x2xf32> to vector<256x2xbf16>
    %c0_99 = arith.constant 0 : index
    %c0_100 = arith.constant 0 : index
    %118 = vector.load %arg12[%c0_99, %c0_100] : memref<2x4xbf16, #tpu.memory_space<vmem>>, vector<2x4xbf16>
    %cst_101 = arith.constant dense<0.000000e+00> : vector<256x4xf32>
    %119 = tpu.matmul %117, %118, %cst_101 {dimension_numbers = #tpu.dot_dimension_numbers<[1], [0], [0], [1], [0, 0, 1, 1], [], []>} : vector<256x2xbf16>, vector<2x4xbf16>, vector<256x4xf32> -> vector<256x4xf32>
    %c0_102 = arith.constant 0 : index
    %c0_103 = arith.constant 0 : index
    %120 = vector.load %arg13[%c0_102, %c0_103] : memref<1x4xf32, #tpu.memory_space<vmem>>, vector<1x4xf32>
    %121 = vector.broadcast %120 : vector<1x4xf32> to vector<256x4xf32>
    %122 = arith.addf %119, %121 : vector<256x4xf32>
    %123 = arith.truncf %122 : vector<256x4xf32> to vector<256x4xbf16>
    %c0_104 = arith.constant 0 : index
    %c0_105 = arith.constant 0 : index
    %c0_106 = arith.constant 0 : index
    %124 = vector.load %arg16[%c0_104, %c0_105, %c0_106] : memref<1x256x4xbf16, #tpu.memory_space<vmem>>, vector<1x256x4xbf16>
    %125 = vector.shape_cast %124 : vector<1x256x4xbf16> to vector<256x4xbf16>
    %126 = vector.shape_cast %123 : vector<256x4xbf16> to vector<1x256x4xbf16>
    tpu.vector_store %arg16[%c0_104, %c0_105, %c0_106], %126 {strides = array<i32>} : memref<1x256x4xbf16, #tpu.memory_space<vmem>>, vector<1x256x4xbf16>,
    return
  }
  func.func @transform_0(%arg0: i32) -> (i32, i32, i32) {
    %c0_i32 = arith.constant 0 : i32
    %c0_i32_0 = arith.constant 0 : i32
    %c0_i32_1 = arith.constant 0 : i32
    return %arg0, %c0_i32, %c0_i32_0 : i32, i32, i32
  }
  func.func @transform_1(%arg0: i32) -> (i32, i32) {
    %c0_i32 = arith.constant 0 : i32
    %c0_i32_0 = arith.constant 0 : i32
    %c0_i32_1 = arith.constant 0 : i32
    return %c0_i32, %c0_i32_0 : i32, i32
  }
  func.func @transform_2(%arg0: i32) -> (i32, i32) {
    %c0_i32 = arith.constant 0 : i32
    %c0_i32_0 = arith.constant 0 : i32
    %c0_i32_1 = arith.constant 0 : i32
    return %c0_i32, %c0_i32_0 : i32, i32
  }
  func.func @transform_3(%arg0: i32) -> (i32, i32) {
    %c0_i32 = arith.constant 0 : i32
    %c0_i32_0 = arith.constant 0 : i32
    %c0_i32_1 = arith.constant 0 : i32
    return %c0_i32, %c0_i32_0 : i32, i32
  }
  func.func @transform_4(%arg0: i32) -> (i32, i32) {
    %c0_i32 = arith.constant 0 : i32
    %c0_i32_0 = arith.constant 0 : i32
    %c0_i32_1 = arith.constant 0 : i32
    return %c0_i32, %c0_i32_0 : i32, i32
  }
  func.func @transform_5(%arg0: i32) -> (i32, i32) {
    %c0_i32 = arith.constant 0 : i32
    %c0_i32_0 = arith.constant 0 : i32
    %c0_i32_1 = arith.constant 0 : i32
    return %c0_i32, %c0_i32_0 : i32, i32
  }
  func.func @transform_6(%arg0: i32) -> (i32, i32) {
    %c0_i32 = arith.constant 0 : i32
    %c0_i32_0 = arith.constant 0 : i32
    %c0_i32_1 = arith.constant 0 : i32
    return %c0_i32, %c0_i32_0 : i32, i32
  }
  func.func @transform_7(%arg0: i32) -> (i32, i32) {
    %c0_i32 = arith.constant 0 : i32
    %c0_i32_0 = arith.constant 0 : i32
    %c0_i32_1 = arith.constant 0 : i32
    return %c0_i32, %c0_i32_0 : i32, i32
  }
  func.func @transform_8(%arg0: i32) -> (i32, i32) {
    %c0_i32 = arith.constant 0 : i32
    %c0_i32_0 = arith.constant 0 : i32
    %c0_i32_1 = arith.constant 0 : i32
    return %c0_i32, %c0_i32_0 : i32, i32
  }
  func.func @transform_9(%arg0: i32) -> (i32, i32) {
    %c0_i32 = arith.constant 0 : i32
    %c0_i32_0 = arith.constant 0 : i32
    %c0_i32_1 = arith.constant 0 : i32
    return %c0_i32, %c0_i32_0 : i32, i32
  }
  func.func @transform_10(%arg0: i32) -> (i32, i32) {
    %c0_i32 = arith.constant 0 : i32
    %c0_i32_0 = arith.constant 0 : i32
    %c0_i32_1 = arith.constant 0 : i32
    return %c0_i32, %c0_i32_0 : i32, i32
  }
  func.func @transform_11(%arg0: i32) -> (i32, i32) {
    %c0_i32 = arith.constant 0 : i32
    %c0_i32_0 = arith.constant 0 : i32
    %c0_i32_1 = arith.constant 0 : i32
    return %c0_i32, %c0_i32_0 : i32, i32
  }
  func.func @transform_12(%arg0: i32) -> (i32, i32) {
    %c0_i32 = arith.constant 0 : i32
    %c0_i32_0 = arith.constant 0 : i32
    %c0_i32_1 = arith.constant 0 : i32
    return %c0_i32, %c0_i32_0 : i32, i32
  }
  func.func @transform_13(%arg0: i32) -> (i32, i32) {
    %c0_i32 = arith.constant 0 : i32
    %c0_i32_0 = arith.constant 0 : i32
    %c0_i32_1 = arith.constant 0 : i32
    return %c0_i32, %c0_i32_0 : i32, i32
  }
  func.func @transform_14(%arg0: i32) -> (i32, i32) {
    %c0_i32 = arith.constant 0 : i32
    %c0_i32_0 = arith.constant 0 : i32
    %c0_i32_1 = arith.constant 0 : i32
    return %c0_i32, %c0_i32_0 : i32, i32
  }
  func.func @transform_15(%arg0: i32) -> (i32, i32, i32) {
    %c0_i32 = arith.constant 0 : i32
    %c0_i32_0 = arith.constant 0 : i32
    %c0_i32_1 = arith.constant 0 : i32
    return %arg0, %c0_i32, %c0_i32_0 : i32, i32, i32
  }
}

module attributes {stable_mosaic.version = 11 : i64} {
  func.func @_upsample_cat_conv_kernel(%arg0: i32, %arg1: memref<1x64x4xbf16, #tpu.memory_space<vmem>>, %arg2: memref<1x16x4xbf16, #tpu.memory_space<vmem>>, %arg3: memref<64x16xbf16, #tpu.memory_space<vmem>>, %arg4: memref<4x4xbf16, #tpu.memory_space<vmem>>, %arg5: memref<4x4xbf16, #tpu.memory_space<vmem>>, %arg6: memref<1x64x4xbf16, #tpu.memory_space<vmem>>) attributes {dimension_semantics = [#tpu.dimension_semantics<parallel>], iteration_bounds = array<i64: 2>, scalar_prefetch = 0 : i64, scratch_operands = 0 : i64, tpu.core_type = #tpu.core_type<tc>, window_params = [{transform_indices = @transform_0, window_bounds = array<i64: 1, 64, 4>}, {transform_indices = @transform_1, window_bounds = array<i64: 1, 16, 4>}, {pipeline_mode = #tpu.pipeline_mode<synchronous>, transform_indices = @transform_2, window_bounds = array<i64: 64, 16>}, {pipeline_mode = #tpu.pipeline_mode<synchronous>, transform_indices = @transform_3, window_bounds = array<i64: 4, 4>}, {pipeline_mode = #tpu.pipeline_mode<synchronous>, transform_indices = @transform_4, window_bounds = array<i64: 4, 4>}, {transform_indices = @transform_5, window_bounds = array<i64: 1, 64, 4>}]} {
    %c0 = arith.constant 0 : index
    %c0_0 = arith.constant 0 : index
    %c0_1 = arith.constant 0 : index
    %0 = vector.load %arg2[%c0, %c0_0, %c0_1] : memref<1x16x4xbf16, #tpu.memory_space<vmem>>, vector<1x16x4xbf16>
    %1 = vector.shape_cast %0 : vector<1x16x4xbf16> to vector<16x4xbf16>
    %c0_2 = arith.constant 0 : index
    %c0_3 = arith.constant 0 : index
    %2 = vector.load %arg5[%c0_2, %c0_3] : memref<4x4xbf16, #tpu.memory_space<vmem>>, vector<4x4xbf16>
    %cst = arith.constant dense<0.000000e+00> : vector<16x4xf32>
    %3 = tpu.matmul %1, %2, %cst {dimension_numbers = #tpu.dot_dimension_numbers<[1], [0], [0], [1], [0, 0, 1, 1], [], []>} : vector<16x4xbf16>, vector<4x4xbf16>, vector<16x4xf32> -> vector<16x4xf32>
    %c0_4 = arith.constant 0 : index
    %c0_5 = arith.constant 0 : index
    %4 = vector.load %arg3[%c0_4, %c0_5] : memref<64x16xbf16, #tpu.memory_space<vmem>>, vector<64x16xbf16>
    %5 = arith.truncf %3 : vector<16x4xf32> to vector<16x4xbf16>
    %cst_6 = arith.constant dense<0.000000e+00> : vector<64x4xf32>
    %6 = tpu.matmul %4, %5, %cst_6 {dimension_numbers = #tpu.dot_dimension_numbers<[1], [0], [0], [1], [0, 0, 1, 1], [], []>} : vector<64x16xbf16>, vector<16x4xbf16>, vector<64x4xf32> -> vector<64x4xf32>
    %c0_7 = arith.constant 0 : index
    %c0_8 = arith.constant 0 : index
    %c0_9 = arith.constant 0 : index
    %7 = vector.load %arg1[%c0_7, %c0_8, %c0_9] : memref<1x64x4xbf16, #tpu.memory_space<vmem>>, vector<1x64x4xbf16>
    %8 = vector.shape_cast %7 : vector<1x64x4xbf16> to vector<64x4xbf16>
    %c0_10 = arith.constant 0 : index
    %c0_11 = arith.constant 0 : index
    %9 = vector.load %arg4[%c0_10, %c0_11] : memref<4x4xbf16, #tpu.memory_space<vmem>>, vector<4x4xbf16>
    %cst_12 = arith.constant dense<0.000000e+00> : vector<64x4xf32>
    %10 = tpu.matmul %8, %9, %cst_12 {dimension_numbers = #tpu.dot_dimension_numbers<[1], [0], [0], [1], [0, 0, 1, 1], [], []>} : vector<64x4xbf16>, vector<4x4xbf16>, vector<64x4xf32> -> vector<64x4xf32>
    %11 = arith.addf %10, %6 : vector<64x4xf32>
    %12 = arith.truncf %11 : vector<64x4xf32> to vector<64x4xbf16>
    %c0_13 = arith.constant 0 : index
    %c0_14 = arith.constant 0 : index
    %c0_15 = arith.constant 0 : index
    %13 = vector.load %arg6[%c0_13, %c0_14, %c0_15] : memref<1x64x4xbf16, #tpu.memory_space<vmem>>, vector<1x64x4xbf16>
    %14 = vector.shape_cast %13 : vector<1x64x4xbf16> to vector<64x4xbf16>
    %15 = vector.shape_cast %12 : vector<64x4xbf16> to vector<1x64x4xbf16>
    tpu.vector_store %arg6[%c0_13, %c0_14, %c0_15], %15 {strides = array<i32>} : memref<1x64x4xbf16, #tpu.memory_space<vmem>>, vector<1x64x4xbf16>,
    return
  }
  func.func @transform_0(%arg0: i32) -> (i32, i32, i32) {
    %c0_i32 = arith.constant 0 : i32
    %c0_i32_0 = arith.constant 0 : i32
    %c0_i32_1 = arith.constant 0 : i32
    return %arg0, %c0_i32, %c0_i32_0 : i32, i32, i32
  }
  func.func @transform_1(%arg0: i32) -> (i32, i32, i32) {
    %c0_i32 = arith.constant 0 : i32
    %c0_i32_0 = arith.constant 0 : i32
    %c0_i32_1 = arith.constant 0 : i32
    return %arg0, %c0_i32, %c0_i32_0 : i32, i32, i32
  }
  func.func @transform_2(%arg0: i32) -> (i32, i32) {
    %c0_i32 = arith.constant 0 : i32
    %c0_i32_0 = arith.constant 0 : i32
    %c0_i32_1 = arith.constant 0 : i32
    return %c0_i32, %c0_i32_0 : i32, i32
  }
  func.func @transform_3(%arg0: i32) -> (i32, i32) {
    %c0_i32 = arith.constant 0 : i32
    %c0_i32_0 = arith.constant 0 : i32
    %c0_i32_1 = arith.constant 0 : i32
    return %c0_i32, %c0_i32_0 : i32, i32
  }
  func.func @transform_4(%arg0: i32) -> (i32, i32) {
    %c0_i32 = arith.constant 0 : i32
    %c0_i32_0 = arith.constant 0 : i32
    %c0_i32_1 = arith.constant 0 : i32
    return %c0_i32, %c0_i32_0 : i32, i32
  }
  func.func @transform_5(%arg0: i32) -> (i32, i32, i32) {
    %c0_i32 = arith.constant 0 : i32
    %c0_i32_0 = arith.constant 0 : i32
    %c0_i32_1 = arith.constant 0 : i32
    return %arg0, %c0_i32, %c0_i32_0 : i32, i32, i32
  }
}

module attributes {stable_mosaic.version = 11 : i64} {
  func.func @_residual_block_kernel(%arg0: i32, %arg1: memref<1x16x4xbf16, #tpu.memory_space<vmem>>, %arg2: memref<1x4xf32, #tpu.memory_space<vmem>>, %arg3: memref<1x4xf32, #tpu.memory_space<vmem>>, %arg4: memref<4x2xbf16, #tpu.memory_space<vmem>>, %arg5: memref<1x2xf32, #tpu.memory_space<vmem>>, %arg6: memref<1x2xf32, #tpu.memory_space<vmem>>, %arg7: memref<1x2xf32, #tpu.memory_space<vmem>>, %arg8: memref<18x2xbf16, #tpu.memory_space<vmem>>, %arg9: memref<1x2xf32, #tpu.memory_space<vmem>>, %arg10: memref<1x2xf32, #tpu.memory_space<vmem>>, %arg11: memref<1x2xf32, #tpu.memory_space<vmem>>, %arg12: memref<2x4xbf16, #tpu.memory_space<vmem>>, %arg13: memref<1x4xf32, #tpu.memory_space<vmem>>, %arg14: memref<16x1xf32, #tpu.memory_space<vmem>>, %arg15: memref<16x1xf32, #tpu.memory_space<vmem>>, %arg16: memref<1x16x4xbf16, #tpu.memory_space<vmem>>, %arg17: memref<32x2xf32, #tpu.memory_space<vmem>>, %arg18: memref<16x2xf32, #tpu.memory_space<vmem>>) attributes {dimension_semantics = [#tpu.dimension_semantics<parallel>], iteration_bounds = array<i64: 2>, scalar_prefetch = 0 : i64, scratch_operands = 2 : i64, tpu.core_type = #tpu.core_type<tc>, window_params = [{transform_indices = @transform_0, window_bounds = array<i64: 1, 16, 4>}, {pipeline_mode = #tpu.pipeline_mode<synchronous>, transform_indices = @transform_1, window_bounds = array<i64: 1, 4>}, {pipeline_mode = #tpu.pipeline_mode<synchronous>, transform_indices = @transform_2, window_bounds = array<i64: 1, 4>}, {pipeline_mode = #tpu.pipeline_mode<synchronous>, transform_indices = @transform_3, window_bounds = array<i64: 4, 2>}, {pipeline_mode = #tpu.pipeline_mode<synchronous>, transform_indices = @transform_4, window_bounds = array<i64: 1, 2>}, {pipeline_mode = #tpu.pipeline_mode<synchronous>, transform_indices = @transform_5, window_bounds = array<i64: 1, 2>}, {pipeline_mode = #tpu.pipeline_mode<synchronous>, transform_indices = @transform_6, window_bounds = array<i64: 1, 2>}, {pipeline_mode = #tpu.pipeline_mode<synchronous>, transform_indices = @transform_7, window_bounds = array<i64: 18, 2>}, {pipeline_mode = #tpu.pipeline_mode<synchronous>, transform_indices = @transform_8, window_bounds = array<i64: 1, 2>}, {pipeline_mode = #tpu.pipeline_mode<synchronous>, transform_indices = @transform_9, window_bounds = array<i64: 1, 2>}, {pipeline_mode = #tpu.pipeline_mode<synchronous>, transform_indices = @transform_10, window_bounds = array<i64: 1, 2>}, {pipeline_mode = #tpu.pipeline_mode<synchronous>, transform_indices = @transform_11, window_bounds = array<i64: 2, 4>}, {pipeline_mode = #tpu.pipeline_mode<synchronous>, transform_indices = @transform_12, window_bounds = array<i64: 1, 4>}, {pipeline_mode = #tpu.pipeline_mode<synchronous>, transform_indices = @transform_13, window_bounds = array<i64: 16, 1>}, {pipeline_mode = #tpu.pipeline_mode<synchronous>, transform_indices = @transform_14, window_bounds = array<i64: 16, 1>}, {transform_indices = @transform_15, window_bounds = array<i64: 1, 16, 4>}]} {
    %c0 = arith.constant 0 : index
    %c0_0 = arith.constant 0 : index
    %c0_1 = arith.constant 0 : index
    %0 = vector.load %arg1[%c0, %c0_0, %c0_1] : memref<1x16x4xbf16, #tpu.memory_space<vmem>>, vector<1x16x4xbf16>
    %1 = vector.shape_cast %0 : vector<1x16x4xbf16> to vector<16x4xbf16>
    %2 = arith.extf %1 : vector<16x4xbf16> to vector<16x4xf32>
    %c0_2 = arith.constant 0 : index
    %c0_3 = arith.constant 0 : index
    %3 = vector.load %arg2[%c0_2, %c0_3] : memref<1x4xf32, #tpu.memory_space<vmem>>, vector<1x4xf32>
    %4 = vector.broadcast %3 : vector<1x4xf32> to vector<16x4xf32>
    %5 = arith.mulf %2, %4 : vector<16x4xf32>
    %c0_4 = arith.constant 0 : index
    %c0_5 = arith.constant 0 : index
    %6 = vector.load %arg3[%c0_4, %c0_5] : memref<1x4xf32, #tpu.memory_space<vmem>>, vector<1x4xf32>
    %7 = vector.broadcast %6 : vector<1x4xf32> to vector<16x4xf32>
    %8 = arith.addf %5, %7 : vector<16x4xf32>
    %cst = arith.constant 0.000000e+00 : f32
    %9 = vector.broadcast %cst : f32 to vector<16x4xf32>
    %10 = arith.maximumf %8, %9 : vector<16x4xf32>
    %11 = arith.truncf %10 : vector<16x4xf32> to vector<16x4xbf16>
    %c0_6 = arith.constant 0 : index
    %c0_7 = arith.constant 0 : index
    %12 = vector.load %arg4[%c0_6, %c0_7] : memref<4x2xbf16, #tpu.memory_space<vmem>>, vector<4x2xbf16>
    %cst_8 = arith.constant dense<0.000000e+00> : vector<16x2xf32>
    %13 = tpu.matmul %11, %12, %cst_8 {dimension_numbers = #tpu.dot_dimension_numbers<[1], [0], [0], [1], [0, 0, 1, 1], [], []>} : vector<16x4xbf16>, vector<4x2xbf16>, vector<16x2xf32> -> vector<16x2xf32>
    %c0_9 = arith.constant 0 : index
    %c0_10 = arith.constant 0 : index
    %14 = vector.load %arg5[%c0_9, %c0_10] : memref<1x2xf32, #tpu.memory_space<vmem>>, vector<1x2xf32>
    %15 = vector.broadcast %14 : vector<1x2xf32> to vector<16x2xf32>
    %16 = arith.addf %13, %15 : vector<16x2xf32>
    %c0_11 = arith.constant 0 : index
    %c0_12 = arith.constant 0 : index
    %17 = vector.load %arg6[%c0_11, %c0_12] : memref<1x2xf32, #tpu.memory_space<vmem>>, vector<1x2xf32>
    %18 = vector.broadcast %17 : vector<1x2xf32> to vector<16x2xf32>
    %19 = arith.mulf %16, %18 : vector<16x2xf32>
    %c0_13 = arith.constant 0 : index
    %c0_14 = arith.constant 0 : index
    %20 = vector.load %arg7[%c0_13, %c0_14] : memref<1x2xf32, #tpu.memory_space<vmem>>, vector<1x2xf32>
    %21 = vector.broadcast %20 : vector<1x2xf32> to vector<16x2xf32>
    %22 = arith.addf %19, %21 : vector<16x2xf32>
    %cst_15 = arith.constant 0.000000e+00 : f32
    %23 = vector.broadcast %cst_15 : f32 to vector<16x2xf32>
    %24 = arith.maximumf %22, %23 : vector<16x2xf32>
    %cst_16 = arith.constant 0.000000e+00 : f32
    %25 = vector.broadcast %cst_16 : f32 to vector<8x2xf32>
    %c0_17 = arith.constant 0 : index
    %c0_18 = arith.constant 0 : index
    %26 = vector.load %arg17[%c0_17, %c0_18] : memref<32x2xf32, #tpu.memory_space<vmem>>, vector<8x2xf32>
    tpu.vector_store %arg17[%c0_17, %c0_18], %25 {strides = array<i32>} : memref<32x2xf32, #tpu.memory_space<vmem>>, vector<8x2xf32>,
    %cst_19 = arith.constant 0.000000e+00 : f32
    %27 = vector.broadcast %cst_19 : f32 to vector<8x2xf32>
    %c24 = arith.constant 24 : index
    %c0_20 = arith.constant 0 : index
    %28 = vector.load %arg17[%c24, %c0_20] : memref<32x2xf32, #tpu.memory_space<vmem>>, vector<8x2xf32>
    tpu.vector_store %arg17[%c24, %c0_20], %27 {strides = array<i32>} : memref<32x2xf32, #tpu.memory_space<vmem>>, vector<8x2xf32>,
    %c8 = arith.constant 8 : index
    %c0_21 = arith.constant 0 : index
    %29 = vector.load %arg17[%c8, %c0_21] : memref<32x2xf32, #tpu.memory_space<vmem>>, vector<16x2xf32>
    tpu.vector_store %arg17[%c8, %c0_21], %24 {strides = array<i32>} : memref<32x2xf32, #tpu.memory_space<vmem>>, vector<16x2xf32>,
    %c0_22 = arith.constant 0 : index
    %c0_23 = arith.constant 0 : index
    %30 = vector.load %arg14[%c0_22, %c0_23] : memref<16x1xf32, #tpu.memory_space<vmem>>, vector<16x1xf32>
    %c0_24 = arith.constant 0 : index
    %c0_25 = arith.constant 0 : index
    %31 = vector.load %arg15[%c0_24, %c0_25] : memref<16x1xf32, #tpu.memory_space<vmem>>, vector<16x1xf32>
    %c3 = arith.constant 3 : index
    %c0_26 = arith.constant 0 : index
    %32 = vector.load %arg17[%c3, %c0_26] : memref<32x2xf32, #tpu.memory_space<vmem>>, vector<16x2xf32>
    %33 = vector.broadcast %30 : vector<16x1xf32> to vector<16x2xf32>
    %34 = arith.mulf %32, %33 : vector<16x2xf32>
    %35 = arith.truncf %34 : vector<16x2xf32> to vector<16x2xbf16>
    %c0_27 = arith.constant 0 : index
    %c0_28 = arith.constant 0 : index
    %36 = vector.load %arg8[%c0_27, %c0_28] : memref<18x2xbf16, #tpu.memory_space<vmem>>, vector<2x2xbf16>
    %cst_29 = arith.constant dense<0.000000e+00> : vector<16x2xf32>
    %37 = tpu.matmul %35, %36, %cst_29 {dimension_numbers = #tpu.dot_dimension_numbers<[1], [0], [0], [1], [0, 0, 1, 1], [], []>} : vector<16x2xbf16>, vector<2x2xbf16>, vector<16x2xf32> -> vector<16x2xf32>
    %c0_30 = arith.constant 0 : index
    %c0_31 = arith.constant 0 : index
    %38 = vector.load %arg18[%c0_30, %c0_31] : memref<16x2xf32, #tpu.memory_space<vmem>>, vector<16x2xf32>
    tpu.vector_store %arg18[%c0_30, %c0_31], %37 {strides = array<i32>} : memref<16x2xf32, #tpu.memory_space<vmem>>, vector<16x2xf32>,
    %c4 = arith.constant 4 : index
    %c0_32 = arith.constant 0 : index
    %39 = vector.load %arg17[%c4, %c0_32] : memref<32x2xf32, #tpu.memory_space<vmem>>, vector<16x2xf32>
    %40 = arith.truncf %39 : vector<16x2xf32> to vector<16x2xbf16>
    %c2 = arith.constant 2 : index
    %c0_33 = arith.constant 0 : index
    %41 = vector.load %arg8[%c2, %c0_33] : memref<18x2xbf16, #tpu.memory_space<vmem>>, vector<2x2xbf16>
    %cst_34 = arith.constant dense<0.000000e+00> : vector<16x2xf32>
    %42 = tpu.matmul %40, %41, %cst_34 {dimension_numbers = #tpu.dot_dimension_numbers<[1], [0], [0], [1], [0, 0, 1, 1], [], []>} : vector<16x2xbf16>, vector<2x2xbf16>, vector<16x2xf32> -> vector<16x2xf32>
    %c0_35 = arith.constant 0 : index
    %c0_36 = arith.constant 0 : index
    %43 = vector.load %arg18[%c0_35, %c0_36] : memref<16x2xf32, #tpu.memory_space<vmem>>, vector<16x2xf32>
    %44 = arith.addf %43, %42 : vector<16x2xf32>
    %c0_37 = arith.constant 0 : index
    %c0_38 = arith.constant 0 : index
    %45 = vector.load %arg18[%c0_37, %c0_38] : memref<16x2xf32, #tpu.memory_space<vmem>>, vector<16x2xf32>
    tpu.vector_store %arg18[%c0_37, %c0_38], %44 {strides = array<i32>} : memref<16x2xf32, #tpu.memory_space<vmem>>, vector<16x2xf32>,
    %c5 = arith.constant 5 : index
    %c0_39 = arith.constant 0 : index
    %46 = vector.load %arg17[%c5, %c0_39] : memref<32x2xf32, #tpu.memory_space<vmem>>, vector<16x2xf32>
    %47 = vector.broadcast %31 : vector<16x1xf32> to vector<16x2xf32>
    %48 = arith.mulf %46, %47 : vector<16x2xf32>
    %49 = arith.truncf %48 : vector<16x2xf32> to vector<16x2xbf16>
    %c4_40 = arith.constant 4 : index
    %c0_41 = arith.constant 0 : index
    %50 = vector.load %arg8[%c4_40, %c0_41] : memref<18x2xbf16, #tpu.memory_space<vmem>>, vector<2x2xbf16>
    %cst_42 = arith.constant dense<0.000000e+00> : vector<16x2xf32>
    %51 = tpu.matmul %49, %50, %cst_42 {dimension_numbers = #tpu.dot_dimension_numbers<[1], [0], [0], [1], [0, 0, 1, 1], [], []>} : vector<16x2xbf16>, vector<2x2xbf16>, vector<16x2xf32> -> vector<16x2xf32>
    %c0_43 = arith.constant 0 : index
    %c0_44 = arith.constant 0 : index
    %52 = vector.load %arg18[%c0_43, %c0_44] : memref<16x2xf32, #tpu.memory_space<vmem>>, vector<16x2xf32>
    %53 = arith.addf %52, %51 : vector<16x2xf32>
    %c0_45 = arith.constant 0 : index
    %c0_46 = arith.constant 0 : index
    %54 = vector.load %arg18[%c0_45, %c0_46] : memref<16x2xf32, #tpu.memory_space<vmem>>, vector<16x2xf32>
    tpu.vector_store %arg18[%c0_45, %c0_46], %53 {strides = array<i32>} : memref<16x2xf32, #tpu.memory_space<vmem>>, vector<16x2xf32>,
    %c7 = arith.constant 7 : index
    %c0_47 = arith.constant 0 : index
    %55 = vector.load %arg17[%c7, %c0_47] : memref<32x2xf32, #tpu.memory_space<vmem>>, vector<16x2xf32>
    %56 = vector.broadcast %30 : vector<16x1xf32> to vector<16x2xf32>
    %57 = arith.mulf %55, %56 : vector<16x2xf32>
    %58 = arith.truncf %57 : vector<16x2xf32> to vector<16x2xbf16>
    %c6 = arith.constant 6 : index
    %c0_48 = arith.constant 0 : index
    %59 = vector.load %arg8[%c6, %c0_48] : memref<18x2xbf16, #tpu.memory_space<vmem>>, vector<2x2xbf16>
    %cst_49 = arith.constant dense<0.000000e+00> : vector<16x2xf32>
    %60 = tpu.matmul %58, %59, %cst_49 {dimension_numbers = #tpu.dot_dimension_numbers<[1], [0], [0], [1], [0, 0, 1, 1], [], []>} : vector<16x2xbf16>, vector<2x2xbf16>, vector<16x2xf32> -> vector<16x2xf32>
    %c0_50 = arith.constant 0 : index
    %c0_51 = arith.constant 0 : index
    %61 = vector.load %arg18[%c0_50, %c0_51] : memref<16x2xf32, #tpu.memory_space<vmem>>, vector<16x2xf32>
    %62 = arith.addf %61, %60 : vector<16x2xf32>
    %c0_52 = arith.constant 0 : index
    %c0_53 = arith.constant 0 : index
    %63 = vector.load %arg18[%c0_52, %c0_53] : memref<16x2xf32, #tpu.memory_space<vmem>>, vector<16x2xf32>
    tpu.vector_store %arg18[%c0_52, %c0_53], %62 {strides = array<i32>} : memref<16x2xf32, #tpu.memory_space<vmem>>, vector<16x2xf32>,
    %c8_54 = arith.constant 8 : index
    %c0_55 = arith.constant 0 : index
    %64 = vector.load %arg17[%c8_54, %c0_55] : memref<32x2xf32, #tpu.memory_space<vmem>>, vector<16x2xf32>
    %65 = arith.truncf %64 : vector<16x2xf32> to vector<16x2xbf16>
    %c8_56 = arith.constant 8 : index
    %c0_57 = arith.constant 0 : index
    %66 = vector.load %arg8[%c8_56, %c0_57] : memref<18x2xbf16, #tpu.memory_space<vmem>>, vector<2x2xbf16>
    %cst_58 = arith.constant dense<0.000000e+00> : vector<16x2xf32>
    %67 = tpu.matmul %65, %66, %cst_58 {dimension_numbers = #tpu.dot_dimension_numbers<[1], [0], [0], [1], [0, 0, 1, 1], [], []>} : vector<16x2xbf16>, vector<2x2xbf16>, vector<16x2xf32> -> vector<16x2xf32>
    %c0_59 = arith.constant 0 : index
    %c0_60 = arith.constant 0 : index
    %68 = vector.load %arg18[%c0_59, %c0_60] : memref<16x2xf32, #tpu.memory_space<vmem>>, vector<16x2xf32>
    %69 = arith.addf %68, %67 : vector<16x2xf32>
    %c0_61 = arith.constant 0 : index
    %c0_62 = arith.constant 0 : index
    %70 = vector.load %arg18[%c0_61, %c0_62] : memref<16x2xf32, #tpu.memory_space<vmem>>, vector<16x2xf32>
    tpu.vector_store %arg18[%c0_61, %c0_62], %69 {strides = array<i32>} : memref<16x2xf32, #tpu.memory_space<vmem>>, vector<16x2xf32>,
    %c9 = arith.constant 9 : index
    %c0_63 = arith.constant 0 : index
    %71 = vector.load %arg17[%c9, %c0_63] : memref<32x2xf32, #tpu.memory_space<vmem>>, vector<16x2xf32>
    %72 = vector.broadcast %31 : vector<16x1xf32> to vector<16x2xf32>
    %73 = arith.mulf %71, %72 : vector<16x2xf32>
    %74 = arith.truncf %73 : vector<16x2xf32> to vector<16x2xbf16>
    %c10 = arith.constant 10 : index
    %c0_64 = arith.constant 0 : index
    %75 = vector.load %arg8[%c10, %c0_64] : memref<18x2xbf16, #tpu.memory_space<vmem>>, vector<2x2xbf16>
    %cst_65 = arith.constant dense<0.000000e+00> : vector<16x2xf32>
    %76 = tpu.matmul %74, %75, %cst_65 {dimension_numbers = #tpu.dot_dimension_numbers<[1], [0], [0], [1], [0, 0, 1, 1], [], []>} : vector<16x2xbf16>, vector<2x2xbf16>, vector<16x2xf32> -> vector<16x2xf32>
    %c0_66 = arith.constant 0 : index
    %c0_67 = arith.constant 0 : index
    %77 = vector.load %arg18[%c0_66, %c0_67] : memref<16x2xf32, #tpu.memory_space<vmem>>, vector<16x2xf32>
    %78 = arith.addf %77, %76 : vector<16x2xf32>
    %c0_68 = arith.constant 0 : index
    %c0_69 = arith.constant 0 : index
    %79 = vector.load %arg18[%c0_68, %c0_69] : memref<16x2xf32, #tpu.memory_space<vmem>>, vector<16x2xf32>
    tpu.vector_store %arg18[%c0_68, %c0_69], %78 {strides = array<i32>} : memref<16x2xf32, #tpu.memory_space<vmem>>, vector<16x2xf32>,
    %c11 = arith.constant 11 : index
    %c0_70 = arith.constant 0 : index
    %80 = vector.load %arg17[%c11, %c0_70] : memref<32x2xf32, #tpu.memory_space<vmem>>, vector<16x2xf32>
    %81 = vector.broadcast %30 : vector<16x1xf32> to vector<16x2xf32>
    %82 = arith.mulf %80, %81 : vector<16x2xf32>
    %83 = arith.truncf %82 : vector<16x2xf32> to vector<16x2xbf16>
    %c12 = arith.constant 12 : index
    %c0_71 = arith.constant 0 : index
    %84 = vector.load %arg8[%c12, %c0_71] : memref<18x2xbf16, #tpu.memory_space<vmem>>, vector<2x2xbf16>
    %cst_72 = arith.constant dense<0.000000e+00> : vector<16x2xf32>
    %85 = tpu.matmul %83, %84, %cst_72 {dimension_numbers = #tpu.dot_dimension_numbers<[1], [0], [0], [1], [0, 0, 1, 1], [], []>} : vector<16x2xbf16>, vector<2x2xbf16>, vector<16x2xf32> -> vector<16x2xf32>
    %c0_73 = arith.constant 0 : index
    %c0_74 = arith.constant 0 : index
    %86 = vector.load %arg18[%c0_73, %c0_74] : memref<16x2xf32, #tpu.memory_space<vmem>>, vector<16x2xf32>
    %87 = arith.addf %86, %85 : vector<16x2xf32>
    %c0_75 = arith.constant 0 : index
    %c0_76 = arith.constant 0 : index
    %88 = vector.load %arg18[%c0_75, %c0_76] : memref<16x2xf32, #tpu.memory_space<vmem>>, vector<16x2xf32>
    tpu.vector_store %arg18[%c0_75, %c0_76], %87 {strides = array<i32>} : memref<16x2xf32, #tpu.memory_space<vmem>>, vector<16x2xf32>,
    %c12_77 = arith.constant 12 : index
    %c0_78 = arith.constant 0 : index
    %89 = vector.load %arg17[%c12_77, %c0_78] : memref<32x2xf32, #tpu.memory_space<vmem>>, vector<16x2xf32>
    %90 = arith.truncf %89 : vector<16x2xf32> to vector<16x2xbf16>
    %c14 = arith.constant 14 : index
    %c0_79 = arith.constant 0 : index
    %91 = vector.load %arg8[%c14, %c0_79] : memref<18x2xbf16, #tpu.memory_space<vmem>>, vector<2x2xbf16>
    %cst_80 = arith.constant dense<0.000000e+00> : vector<16x2xf32>
    %92 = tpu.matmul %90, %91, %cst_80 {dimension_numbers = #tpu.dot_dimension_numbers<[1], [0], [0], [1], [0, 0, 1, 1], [], []>} : vector<16x2xbf16>, vector<2x2xbf16>, vector<16x2xf32> -> vector<16x2xf32>
    %c0_81 = arith.constant 0 : index
    %c0_82 = arith.constant 0 : index
    %93 = vector.load %arg18[%c0_81, %c0_82] : memref<16x2xf32, #tpu.memory_space<vmem>>, vector<16x2xf32>
    %94 = arith.addf %93, %92 : vector<16x2xf32>
    %c0_83 = arith.constant 0 : index
    %c0_84 = arith.constant 0 : index
    %95 = vector.load %arg18[%c0_83, %c0_84] : memref<16x2xf32, #tpu.memory_space<vmem>>, vector<16x2xf32>
    tpu.vector_store %arg18[%c0_83, %c0_84], %94 {strides = array<i32>} : memref<16x2xf32, #tpu.memory_space<vmem>>, vector<16x2xf32>,
    %c13 = arith.constant 13 : index
    %c0_85 = arith.constant 0 : index
    %96 = vector.load %arg17[%c13, %c0_85] : memref<32x2xf32, #tpu.memory_space<vmem>>, vector<16x2xf32>
    %97 = vector.broadcast %31 : vector<16x1xf32> to vector<16x2xf32>
    %98 = arith.mulf %96, %97 : vector<16x2xf32>
    %99 = arith.truncf %98 : vector<16x2xf32> to vector<16x2xbf16>
    %c16 = arith.constant 16 : index
    %c0_86 = arith.constant 0 : index
    %100 = vector.load %arg8[%c16, %c0_86] : memref<18x2xbf16, #tpu.memory_space<vmem>>, vector<2x2xbf16>
    %cst_87 = arith.constant dense<0.000000e+00> : vector<16x2xf32>
    %101 = tpu.matmul %99, %100, %cst_87 {dimension_numbers = #tpu.dot_dimension_numbers<[1], [0], [0], [1], [0, 0, 1, 1], [], []>} : vector<16x2xbf16>, vector<2x2xbf16>, vector<16x2xf32> -> vector<16x2xf32>
    %c0_88 = arith.constant 0 : index
    %c0_89 = arith.constant 0 : index
    %102 = vector.load %arg18[%c0_88, %c0_89] : memref<16x2xf32, #tpu.memory_space<vmem>>, vector<16x2xf32>
    %103 = arith.addf %102, %101 : vector<16x2xf32>
    %c0_90 = arith.constant 0 : index
    %c0_91 = arith.constant 0 : index
    %104 = vector.load %arg18[%c0_90, %c0_91] : memref<16x2xf32, #tpu.memory_space<vmem>>, vector<16x2xf32>
    tpu.vector_store %arg18[%c0_90, %c0_91], %103 {strides = array<i32>} : memref<16x2xf32, #tpu.memory_space<vmem>>, vector<16x2xf32>,
    %c0_92 = arith.constant 0 : index
    %c0_93 = arith.constant 0 : index
    %105 = vector.load %arg18[%c0_92, %c0_93] : memref<16x2xf32, #tpu.memory_space<vmem>>, vector<16x2xf32>
    %c0_94 = arith.constant 0 : index
    %c0_95 = arith.constant 0 : index
    %106 = vector.load %arg9[%c0_94, %c0_95] : memref<1x2xf32, #tpu.memory_space<vmem>>, vector<1x2xf32>
    %107 = vector.broadcast %106 : vector<1x2xf32> to vector<16x2xf32>
    %108 = arith.addf %105, %107 : vector<16x2xf32>
    %c0_96 = arith.constant 0 : index
    %c0_97 = arith.constant 0 : index
    %109 = vector.load %arg10[%c0_96, %c0_97] : memref<1x2xf32, #tpu.memory_space<vmem>>, vector<1x2xf32>
    %110 = vector.broadcast %109 : vector<1x2xf32> to vector<16x2xf32>
    %111 = arith.mulf %108, %110 : vector<16x2xf32>
    %c0_98 = arith.constant 0 : index
    %c0_99 = arith.constant 0 : index
    %112 = vector.load %arg11[%c0_98, %c0_99] : memref<1x2xf32, #tpu.memory_space<vmem>>, vector<1x2xf32>
    %113 = vector.broadcast %112 : vector<1x2xf32> to vector<16x2xf32>
    %114 = arith.addf %111, %113 : vector<16x2xf32>
    %cst_100 = arith.constant 0.000000e+00 : f32
    %115 = vector.broadcast %cst_100 : f32 to vector<16x2xf32>
    %116 = arith.maximumf %114, %115 : vector<16x2xf32>
    %117 = arith.truncf %116 : vector<16x2xf32> to vector<16x2xbf16>
    %c0_101 = arith.constant 0 : index
    %c0_102 = arith.constant 0 : index
    %118 = vector.load %arg12[%c0_101, %c0_102] : memref<2x4xbf16, #tpu.memory_space<vmem>>, vector<2x4xbf16>
    %cst_103 = arith.constant dense<0.000000e+00> : vector<16x4xf32>
    %119 = tpu.matmul %117, %118, %cst_103 {dimension_numbers = #tpu.dot_dimension_numbers<[1], [0], [0], [1], [0, 0, 1, 1], [], []>} : vector<16x2xbf16>, vector<2x4xbf16>, vector<16x4xf32> -> vector<16x4xf32>
    %c0_104 = arith.constant 0 : index
    %c0_105 = arith.constant 0 : index
    %120 = vector.load %arg13[%c0_104, %c0_105] : memref<1x4xf32, #tpu.memory_space<vmem>>, vector<1x4xf32>
    %121 = vector.broadcast %120 : vector<1x4xf32> to vector<16x4xf32>
    %122 = arith.addf %119, %121 : vector<16x4xf32>
    %123 = arith.truncf %122 : vector<16x4xf32> to vector<16x4xbf16>
    %c0_106 = arith.constant 0 : index
    %c0_107 = arith.constant 0 : index
    %c0_108 = arith.constant 0 : index
    %124 = vector.load %arg16[%c0_106, %c0_107, %c0_108] : memref<1x16x4xbf16, #tpu.memory_space<vmem>>, vector<1x16x4xbf16>
    %125 = vector.shape_cast %124 : vector<1x16x4xbf16> to vector<16x4xbf16>
    %126 = vector.shape_cast %123 : vector<16x4xbf16> to vector<1x16x4xbf16>
    tpu.vector_store %arg16[%c0_106, %c0_107, %c0_108], %126 {strides = array<i32>} : memref<1x16x4xbf16, #tpu.memory_space<vmem>>, vector<1x16x4xbf16>,
    return
  }
  func.func @transform_0(%arg0: i32) -> (i32, i32, i32) {
    %c0_i32 = arith.constant 0 : i32
    %c0_i32_0 = arith.constant 0 : i32
    %c0_i32_1 = arith.constant 0 : i32
    return %arg0, %c0_i32, %c0_i32_0 : i32, i32, i32
  }
  func.func @transform_1(%arg0: i32) -> (i32, i32) {
    %c0_i32 = arith.constant 0 : i32
    %c0_i32_0 = arith.constant 0 : i32
    %c0_i32_1 = arith.constant 0 : i32
    return %c0_i32, %c0_i32_0 : i32, i32
  }
  func.func @transform_2(%arg0: i32) -> (i32, i32) {
    %c0_i32 = arith.constant 0 : i32
    %c0_i32_0 = arith.constant 0 : i32
    %c0_i32_1 = arith.constant 0 : i32
    return %c0_i32, %c0_i32_0 : i32, i32
  }
  func.func @transform_3(%arg0: i32) -> (i32, i32) {
    %c0_i32 = arith.constant 0 : i32
    %c0_i32_0 = arith.constant 0 : i32
    %c0_i32_1 = arith.constant 0 : i32
    return %c0_i32, %c0_i32_0 : i32, i32
  }
  func.func @transform_4(%arg0: i32) -> (i32, i32) {
    %c0_i32 = arith.constant 0 : i32
    %c0_i32_0 = arith.constant 0 : i32
    %c0_i32_1 = arith.constant 0 : i32
    return %c0_i32, %c0_i32_0 : i32, i32
  }
  func.func @transform_5(%arg0: i32) -> (i32, i32) {
    %c0_i32 = arith.constant 0 : i32
    %c0_i32_0 = arith.constant 0 : i32
    %c0_i32_1 = arith.constant 0 : i32
    return %c0_i32, %c0_i32_0 : i32, i32
  }
  func.func @transform_6(%arg0: i32) -> (i32, i32) {
    %c0_i32 = arith.constant 0 : i32
    %c0_i32_0 = arith.constant 0 : i32
    %c0_i32_1 = arith.constant 0 : i32
    return %c0_i32, %c0_i32_0 : i32, i32
  }
  func.func @transform_7(%arg0: i32) -> (i32, i32) {
    %c0_i32 = arith.constant 0 : i32
    %c0_i32_0 = arith.constant 0 : i32
    %c0_i32_1 = arith.constant 0 : i32
    return %c0_i32, %c0_i32_0 : i32, i32
  }
  func.func @transform_8(%arg0: i32) -> (i32, i32) {
    %c0_i32 = arith.constant 0 : i32
    %c0_i32_0 = arith.constant 0 : i32
    %c0_i32_1 = arith.constant 0 : i32
    return %c0_i32, %c0_i32_0 : i32, i32
  }
  func.func @transform_9(%arg0: i32) -> (i32, i32) {
    %c0_i32 = arith.constant 0 : i32
    %c0_i32_0 = arith.constant 0 : i32
    %c0_i32_1 = arith.constant 0 : i32
    return %c0_i32, %c0_i32_0 : i32, i32
  }
  func.func @transform_10(%arg0: i32) -> (i32, i32) {
    %c0_i32 = arith.constant 0 : i32
    %c0_i32_0 = arith.constant 0 : i32
    %c0_i32_1 = arith.constant 0 : i32
    return %c0_i32, %c0_i32_0 : i32, i32
  }
  func.func @transform_11(%arg0: i32) -> (i32, i32) {
    %c0_i32 = arith.constant 0 : i32
    %c0_i32_0 = arith.constant 0 : i32
    %c0_i32_1 = arith.constant 0 : i32
    return %c0_i32, %c0_i32_0 : i32, i32
  }
  func.func @transform_12(%arg0: i32) -> (i32, i32) {
    %c0_i32 = arith.constant 0 : i32
    %c0_i32_0 = arith.constant 0 : i32
    %c0_i32_1 = arith.constant 0 : i32
    return %c0_i32, %c0_i32_0 : i32, i32
  }
  func.func @transform_13(%arg0: i32) -> (i32, i32) {
    %c0_i32 = arith.constant 0 : i32
    %c0_i32_0 = arith.constant 0 : i32
    %c0_i32_1 = arith.constant 0 : i32
    return %c0_i32, %c0_i32_0 : i32, i32
  }
  func.func @transform_14(%arg0: i32) -> (i32, i32) {
    %c0_i32 = arith.constant 0 : i32
    %c0_i32_0 = arith.constant 0 : i32
    %c0_i32_1 = arith.constant 0 : i32
    return %c0_i32, %c0_i32_0 : i32, i32
  }
  func.func @transform_15(%arg0: i32) -> (i32, i32, i32) {
    %c0_i32 = arith.constant 0 : i32
    %c0_i32_0 = arith.constant 0 : i32
    %c0_i32_1 = arith.constant 0 : i32
    return %arg0, %c0_i32, %c0_i32_0 : i32, i32, i32
  }
}

module attributes {stable_mosaic.version = 11 : i64} {
  func.func @_upsample_cat_conv_kernel(%arg0: i32, %arg1: memref<1x256x4xbf16, #tpu.memory_space<vmem>>, %arg2: memref<1x64x4xbf16, #tpu.memory_space<vmem>>, %arg3: memref<256x64xbf16, #tpu.memory_space<vmem>>, %arg4: memref<4x4xbf16, #tpu.memory_space<vmem>>, %arg5: memref<4x4xbf16, #tpu.memory_space<vmem>>, %arg6: memref<1x256x4xbf16, #tpu.memory_space<vmem>>) attributes {dimension_semantics = [#tpu.dimension_semantics<parallel>], iteration_bounds = array<i64: 2>, scalar_prefetch = 0 : i64, scratch_operands = 0 : i64, tpu.core_type = #tpu.core_type<tc>, window_params = [{transform_indices = @transform_0, window_bounds = array<i64: 1, 256, 4>}, {transform_indices = @transform_1, window_bounds = array<i64: 1, 64, 4>}, {pipeline_mode = #tpu.pipeline_mode<synchronous>, transform_indices = @transform_2, window_bounds = array<i64: 256, 64>}, {pipeline_mode = #tpu.pipeline_mode<synchronous>, transform_indices = @transform_3, window_bounds = array<i64: 4, 4>}, {pipeline_mode = #tpu.pipeline_mode<synchronous>, transform_indices = @transform_4, window_bounds = array<i64: 4, 4>}, {transform_indices = @transform_5, window_bounds = array<i64: 1, 256, 4>}]} {
    %c0 = arith.constant 0 : index
    %c0_0 = arith.constant 0 : index
    %c0_1 = arith.constant 0 : index
    %0 = vector.load %arg2[%c0, %c0_0, %c0_1] : memref<1x64x4xbf16, #tpu.memory_space<vmem>>, vector<1x64x4xbf16>
    %1 = vector.shape_cast %0 : vector<1x64x4xbf16> to vector<64x4xbf16>
    %c0_2 = arith.constant 0 : index
    %c0_3 = arith.constant 0 : index
    %2 = vector.load %arg5[%c0_2, %c0_3] : memref<4x4xbf16, #tpu.memory_space<vmem>>, vector<4x4xbf16>
    %cst = arith.constant dense<0.000000e+00> : vector<64x4xf32>
    %3 = tpu.matmul %1, %2, %cst {dimension_numbers = #tpu.dot_dimension_numbers<[1], [0], [0], [1], [0, 0, 1, 1], [], []>} : vector<64x4xbf16>, vector<4x4xbf16>, vector<64x4xf32> -> vector<64x4xf32>
    %c0_4 = arith.constant 0 : index
    %c0_5 = arith.constant 0 : index
    %4 = vector.load %arg3[%c0_4, %c0_5] : memref<256x64xbf16, #tpu.memory_space<vmem>>, vector<256x64xbf16>
    %5 = arith.truncf %3 : vector<64x4xf32> to vector<64x4xbf16>
    %cst_6 = arith.constant dense<0.000000e+00> : vector<256x4xf32>
    %6 = tpu.matmul %4, %5, %cst_6 {dimension_numbers = #tpu.dot_dimension_numbers<[1], [0], [0], [1], [0, 0, 1, 1], [], []>} : vector<256x64xbf16>, vector<64x4xbf16>, vector<256x4xf32> -> vector<256x4xf32>
    %c0_7 = arith.constant 0 : index
    %c0_8 = arith.constant 0 : index
    %c0_9 = arith.constant 0 : index
    %7 = vector.load %arg1[%c0_7, %c0_8, %c0_9] : memref<1x256x4xbf16, #tpu.memory_space<vmem>>, vector<1x256x4xbf16>
    %8 = vector.shape_cast %7 : vector<1x256x4xbf16> to vector<256x4xbf16>
    %c0_10 = arith.constant 0 : index
    %c0_11 = arith.constant 0 : index
    %9 = vector.load %arg4[%c0_10, %c0_11] : memref<4x4xbf16, #tpu.memory_space<vmem>>, vector<4x4xbf16>
    %cst_12 = arith.constant dense<0.000000e+00> : vector<256x4xf32>
    %10 = tpu.matmul %8, %9, %cst_12 {dimension_numbers = #tpu.dot_dimension_numbers<[1], [0], [0], [1], [0, 0, 1, 1], [], []>} : vector<256x4xbf16>, vector<4x4xbf16>, vector<256x4xf32> -> vector<256x4xf32>
    %11 = arith.addf %10, %6 : vector<256x4xf32>
    %12 = arith.truncf %11 : vector<256x4xf32> to vector<256x4xbf16>
    %c0_13 = arith.constant 0 : index
    %c0_14 = arith.constant 0 : index
    %c0_15 = arith.constant 0 : index
    %13 = vector.load %arg6[%c0_13, %c0_14, %c0_15] : memref<1x256x4xbf16, #tpu.memory_space<vmem>>, vector<1x256x4xbf16>
    %14 = vector.shape_cast %13 : vector<1x256x4xbf16> to vector<256x4xbf16>
    %15 = vector.shape_cast %12 : vector<256x4xbf16> to vector<1x256x4xbf16>
    tpu.vector_store %arg6[%c0_13, %c0_14, %c0_15], %15 {strides = array<i32>} : memref<1x256x4xbf16, #tpu.memory_space<vmem>>, vector<1x256x4xbf16>,
    return
  }
  func.func @transform_0(%arg0: i32) -> (i32, i32, i32) {
    %c0_i32 = arith.constant 0 : i32
    %c0_i32_0 = arith.constant 0 : i32
    %c0_i32_1 = arith.constant 0 : i32
    return %arg0, %c0_i32, %c0_i32_0 : i32, i32, i32
  }
  func.func @transform_1(%arg0: i32) -> (i32, i32, i32) {
    %c0_i32 = arith.constant 0 : i32
    %c0_i32_0 = arith.constant 0 : i32
    %c0_i32_1 = arith.constant 0 : i32
    return %arg0, %c0_i32, %c0_i32_0 : i32, i32, i32
  }
  func.func @transform_2(%arg0: i32) -> (i32, i32) {
    %c0_i32 = arith.constant 0 : i32
    %c0_i32_0 = arith.constant 0 : i32
    %c0_i32_1 = arith.constant 0 : i32
    return %c0_i32, %c0_i32_0 : i32, i32
  }
  func.func @transform_3(%arg0: i32) -> (i32, i32) {
    %c0_i32 = arith.constant 0 : i32
    %c0_i32_0 = arith.constant 0 : i32
    %c0_i32_1 = arith.constant 0 : i32
    return %c0_i32, %c0_i32_0 : i32, i32
  }
  func.func @transform_4(%arg0: i32) -> (i32, i32) {
    %c0_i32 = arith.constant 0 : i32
    %c0_i32_0 = arith.constant 0 : i32
    %c0_i32_1 = arith.constant 0 : i32
    return %c0_i32, %c0_i32_0 : i32, i32
  }
  func.func @transform_5(%arg0: i32) -> (i32, i32, i32) {
    %c0_i32 = arith.constant 0 : i32
    %c0_i32_0 = arith.constant 0 : i32
    %c0_i32_1 = arith.constant 0 : i32
    return %arg0, %c0_i32, %c0_i32_0 : i32, i32, i32
  }
}

</mosaic_0001>

<bundles_post_ra>
// kernel: hourglass_apply.13
= control target key start
LH: loop header
LB: loop body
LE: loop exit
PB: predicated region body
PF: predicated region fallthrough
CT: control target
= control target key end

     0   :  { %s783_s18 = smov 0   ;;  %s849_s0 = inlined_call_operand.vmem [shape: bf16[2,64,4], index: 0, kind: input, shape index: {}]   ;;  %s850_s1 = inlined_call_operand.vmem [shape: bf16[2,16,4], index: 1, kind: input, shape index: {}]   ;;  %s851_s2 = inlined_call_operand.vmem [shape: bf16[64,16], index: 2, kind: input, shape index: {}]   ;;  %s852_s3 = inlined_call_operand.vmem [shape: bf16[4,4], index: 3, kind: input, shape index: {}]   ;;  %s853_s4 = inlined_call_operand.vmem [shape: bf16[4,4], index: 4, kind: input, shape index: {}]   ;;  %s854_s5 = inlined_call_operand.vmem [shape: bf16[2,64,4], index: 5, kind: output, shape index: {}]  }
   0x1 LB: > { %s627_s19 = sadd.s32 4294967295, %s749_s18   ;;  %p631_p0 = scmp.ge.s32.totalorder %s749_s18, 1  ;;  %s749_s18 = sphi %s783_s18, %s15_s18  }
   0x2   : > { %p197_p1 = scmp.lt.s32.totalorder %s749_s18, 3 }
   0x4   : > { %p198_p2 = pnand %p631_p0, %p197_p1 }
   0x5   : > { %v248_v0 = vld [vmem:[%s853_s4] sm:$0x3] (!%p198_p2)  ;;  %vm258_vm0 = vcmask (!%p198_p2), 1041408   ;;  %p230_p3 = scmp.lt.s32.totalorder (!%p198_p2), %s627_s19, 1  ;;  %v751_v1 = vmov (!%p198_p2), 0.0   ;;  %vm752_vm1 = vmmov (!%p198_p2), 0  }
   0x6   : > { %201 = sbr.rel (%p198_p2) target bundleno = 465 (0x1d1), region = 40  ;;  %689 = vmatprep.subr.bf16.mxu0 (!%p198_p2), %v751_v1  ;;  %v260_v2 = vsel (!%p198_p2), %vm258_vm0, %v248_v0, 0  ;;  %691 = vmatprep.mubr.msk.bf16.mxu0 (!%p198_p2), %vm752_vm1, %v751_v1  ;;  %vm254_vm2 = vcmask (!%p198_p2), 31744   ;;  %v418_v4 = vld [vmem:[%s852_s3] sm:$0x3] (!%p198_p2)  ;;  %vm332_vm3 = vcmask (!%p198_p2), 130048  }
   0x7   : > { %690 = vmatpush3.bf16.msra.mxu0 (!%p198_p2), %v260_v2  ;;  %723 = vmatprep.subr.msk.bf16.mxu1 (!%p198_p2), %vm258_vm0, %v418_v4  ;;  %v452_v5 = vsel (!%p198_p2), %vm258_vm0, %v418_v4, 0  ;;  %v735_v8 = vld [vmem:[%s851_s2] sm:$0xff] (!%p198_p2)   ;;  %v737_v16 = vld [vmem:[%s851_s2 + $0x8] sm:$0xff] (!%p198_p2)   ;;  %v739_v17 = vld [vmem:[%s851_s2 + $0x10] sm:$0xff] (!%p198_p2)   ;;  %vm551_vm4 = vcmask (!%p198_p2), 27648  }
   0x8   : > { %706 = vmatpush3.bf16.msra.mxu1 (!%p198_p2), %v452_v5  ;;  %v741_v18 = vld [vmem:[%s851_s2 + $0x18] sm:$0xff] (!%p198_p2)  }
   0xd   : > { %s856_s19 = smov (!%p230_p3, %s627_s19), 1 }
   0xe   : > { %s666_s22 = sshll.u32 %s856_s19, 5  ;;  %s667_s23 = sshll.u32 %s856_s19, 3 }
   0xf   : > { %s239_s26 = scalar_lea.vmem %s850_s1, %s667_s23  ;;  %s234_s29 = scalar_lea.vmem %s849_s0, %s666_s22 }
  0x10   : > { %v734_v3 = vld [vmem:[%s239_s26] sm:$0xff]   ;;  %v738_v7 = vld [vmem:[%s234_s29 + $0x8] sm:$0xff]   ;;  %v740_v9 = vld [vmem:[%s234_s29 + $0x10] sm:$0xff]   ;;  %s244_s17 = scalar_lea.vmem %s854_s5, %s666_s22 }
  0x11   : > { %692 = vmatmul.mubr.msk.bf16.vlgmr.msra.gmra.mrb[0].mxu0 %vm254_vm2, %v734_v3  ;;  %v736_v6 = vld [vmem:[%s234_s29] sm:$0xff]   ;;  %v742_v10 = vld [vmem:[%s234_s29 + $0x18] sm:$0xff]  }
  0x12   : > { %707 = vmatprep.mubr.msk.bf16.mxu1 %vm254_vm2, %v736_v6  ;;  %697 = vmatprep.mubr.msk.bf16.mxu0 %vm332_vm3, %v735_v8 }
  0x13   : > { %708 = vmatmul.mubr.msk.bf16.vlgmr.msra.gmra.mrb[0].mxu1 %vm254_vm2, %v738_v7 }
  0x14   : > { %711 = vmatprep.mubr.msk.bf16.mxu1 %vm254_vm2, %v740_v9 }
  0x1b   : > { %712 = vmatmul.mubr.msk.bf16.gmra.mrb[4].mxu1 %vm254_vm2, %v742_v10 }
  0xe4   : > { %v296_v11 = vpop.f32.mrb[0].mxu0 }
  0xe5   : > { %v693_v12 = vpop.f32.mrb[1].mxu0 }
  0xe6   : > { %v299_v13 = vpop.f32.mrb[2].mxu0  ;;  %v709_v19 = vpop.f32.mrb[0].mxu1 }
  0xe7   : > { %v311_v14 = vpack.c.bf16 %v299_v13, %v296_v11  ;;  %v694_v15 = vpop.f32.mrb[3].mxu0  ;;  %v488_v20 = vpop.f32.mrb[1].mxu1 }
  0xe8   : > { %v710_v21 = vpop.f32.mrb[2].mxu1 }
  0xe9   : > { %695 = vmatprep.subr.bf16.mxu0 %v311_v14  ;;  %v491_v22 = vpop.f32.mrb[3].mxu1 }
  0xea   : > { %696 = vmatpush3.bf16.msra.mxu0 %v311_v14 }
  0xed   : > { %698 = vmatmul.mubr.msk.bf16.vlgmr.msra.gmra.mrb[4].mxu0 %vm332_vm3, %v737_v16 }
  0xee   : > { %701 = vmatprep.mubr.msk.bf16.mxu0 %vm332_vm3, %v739_v17  ;;  %v713_v23 = vpop.f32.mrb[4].mxu1 }
  0xef   : > { %v504_v24 = vpop.f32.mrb[5].mxu1 }
  0xf0   : > { %v714_v25 = vpop.f32.mrb[6].mxu1 }
  0xf1   : > { %v507_v26 = vpop.f32.mrb[7].mxu1 }
  0xf5   : > { %702 = vmatmul.mubr.msk.bf16.gmra.mrb[8].mxu0 %vm332_vm3, %v741_v18 }
 0x1c0   : > { %v699_v27 = vpop.f32.mrb[4].mxu0 }
 0x1c1   : > { %v497_v28 = vadd.f32 %v709_v19, %v699_v27  ;;  %v379_v29 = vpop.f32.mrb[5].mxu0 }
 0x1c2   : > { %v489_v30 = vadd.f32 %v488_v20, %v379_v29  ;;  %v700_v31 = vpop.f32.mrb[6].mxu0 }
 0x1c3   : > { %v671_v32 = vpack.c.bf16 %v497_v28, %v497_v28  ;;  %v500_v33 = vadd.f32 %v710_v21, %v700_v31  ;;  %v382_v34 = vpop.f32.mrb[7].mxu0 }
 0x1c4   : > { %v669_v35 = vpack.c.bf16 %v489_v30, %v489_v30  ;;  %v492_v36 = vadd.f32 %v491_v22, %v382_v34 }
 0x1c5   : > { %554 = vst.msk [vmem:[%s244_s17 + $0x8] sm:$0xf] %vm551_vm4, %v671_v32  ;;  %v672_v37 = vpack.c.bf16 %v500_v33, %v500_v33 }
 0x1c6   : > { %552 = vst.msk [vmem:[%s244_s17] sm:$0xf] %vm551_vm4, %v669_v35  ;;  %v670_v38 = vpack.c.bf16 %v492_v36, %v492_v36 }
 0x1c7   : > { %555 = vst.msk [vmem:[%s244_s17 + $0xc] sm:$0xf] %vm551_vm4, %v672_v37 }
 0x1c8   : > { %553 = vst.msk [vmem:[%s244_s17 + $0x4] sm:$0xf] %vm551_vm4, %v670_v38  ;;  %v703_v39 = vpop.f32.mrb[8].mxu0 }
 0x1c9   : > { %v513_v40 = vadd.f32 %v713_v23, %v703_v39  ;;  %v395_v41 = vpop.f32.mrb[9].mxu0 }
 0x1ca   : > { %v505_v42 = vadd.f32 %v504_v24, %v395_v41  ;;  %v704_v43 = vpop.f32.mrb[10].mxu0 }
 0x1cb   : > { %v675_v44 = vpack.c.bf16 %v513_v40, %v513_v40  ;;  %v516_v45 = vadd.f32 %v714_v25, %v704_v43  ;;  %v398_v46 = vpop.f32.mrb[11].mxu0 }
 0x1cc   : > { %v673_v47 = vpack.c.bf16 %v505_v42, %v505_v42  ;;  %v508_v48 = vadd.f32 %v507_v26, %v398_v46 }
 0x1cd   : > { %558 = vst.msk [vmem:[%s244_s17 + $0x18] sm:$0xf] %vm551_vm4, %v675_v44  ;;  %v676_v49 = vpack.c.bf16 %v516_v45, %v516_v45 }
 0x1ce   : > { %556 = vst.msk [vmem:[%s244_s17 + $0x10] sm:$0xf] %vm551_vm4, %v673_v47  ;;  %v674_v50 = vpack.c.bf16 %v508_v48, %v508_v48 }
 0x1cf   : > { %559 = vst.msk [vmem:[%s244_s17 + $0x1c] sm:$0xf] %vm551_vm4, %v676_v49 }
 0x1d0   : > { %557 = vst.msk [vmem:[%s244_s17 + $0x14] sm:$0xf] %vm551_vm4, %v674_v50 }
 0x1d1 PF: > { %s15_s18 = sadd.s32 1, %s749_s18  }
 0x1d2   : > { %p12_p4 = scmp.ge.s32.totalorder %s15_s18, 4  }
 0x1d4   :  { %14 = sbr.rel (!%p12_p4) target bundleno = 1 (0x1), region = 73 }

// kernel: hourglass_apply.12
= control target key start
LH: loop header
LB: loop body
LE: loop exit
PB: predicated region body
PF: predicated region fallthrough
CT: control target
= control target key end

     0   :  { %s1571_s18 = smov 0   ;;  %s1767_s0 = inlined_call_operand.vmem [shape: bf16[2,16,4], index: 0, kind: input, shape index: {}]   ;;  %s1768_s1 = inlined_call_operand.vmem [shape: f32[1,4], index: 1, kind: input, shape index: {}]   ;;  %s1769_s2 = inlined_call_operand.vmem [shape: f32[1,4], index: 2, kind: input, shape index: {}]   ;;  %s1770_s3 = inlined_call_operand.vmem [shape: bf16[4,2], index: 3, kind: input, shape index: {}]   ;;  %s1771_s4 = inlined_call_operand.vmem [shape: f32[1,2], index: 4, kind: input, shape index: {}]   ;;  %s1772_s5 = inlined_call_operand.vmem [shape: f32[1,2], index: 5, kind: input, shape index: {}]   ;;  %s1773_s6 = inlined_call_operand.vmem [shape: f32[1,2], index: 6, kind: input, shape index: {}]   ;;  %s1774_s7 = inlined_call_operand.vmem [shape: bf16[18,2], index: 7, kind: input, shape index: {}]   ;;  %s1775_s8 = inlined_call_operand.vmem [shape: f32[1,2], index: 8, kind: input, shape index: {}]   ;;  %s1776_s9 = inlined_call_operand.vmem [shape: f32[1,2], index: 9, kind: input, shape index: {}]   ;;  %s1777_s10 = inlined_call_operand.vmem [shape: f32[1,2], index: 10, kind: input, shape index: {}]   ;;  %s1778_s11 = inlined_call_operand.vmem [shape: bf16[2,4], index: 11, kind: input, shape index: {}]   ;;  %s1779_s12 = inlined_call_operand.vmem [shape: f32[1,4], index: 12, kind: input, shape index: {}]   ;;  %s1780_s13 = inlined_call_operand.vmem [shape: f32[16,1], index: 13, kind: input, shape index: {}]   ;;  %s1781_s14 = inlined_call_operand.vmem [shape: f32[16,1], index: 14, kind: input, shape index: {}]   ;;  %s1782_s15 = inlined_call_operand.vmem [shape: bf16[2,16,4], index: 15, kind: output, shape index: {}]  }
   0x1 LB: > { %s1326_s19 = sadd.s32 4294967295, %s1486_s18   ;;  %p1330_p0 = scmp.ge.s32.totalorder %s1486_s18, 1  ;;  %s1486_s18 = sphi %s1571_s18, %s25_s18  }
   0x2   : > { %p437_p1 = scmp.lt.s32.totalorder %s1486_s18, 3 }
   0x4   : > { %p438_p2 = pnand %p1330_p0, %p437_p1 }
   0x5   : > { %v521_v0 = vld [vmem:[%s1770_s3] sm:$0x3] (!%p438_p2)  ;;  %vm533_vm0 = vcmask (!%p438_p2), 1041408   ;;  %p485_p3 = scmp.lt.s32.totalorder (!%p438_p2), %s1326_s19, 1  ;;  %v1488_v1 = vmov (!%p438_p2), 0.0   ;;  %vm1489_vm1 = vmmov (!%p438_p2), 0  }
   0x6   : > { %441 = sbr.rel (%p438_p2) target bundleno = 792 (0x318), region = 80  ;;  %1395 = vmatprep.subr.bf16.mxu0 (!%p438_p2), %v1488_v1  ;;  %v535_v2 = vsel (!%p438_p2), %vm533_vm0, %v521_v0, 0  ;;  %1397 = vmatprep.mubr.msk.bf16.mxu0 (!%p438_p2), %vm1489_vm1, %v1488_v1  ;;  %v603_v3 = vld [vmem:[%s1780_s13] sm:$0xff] (!%p438_p2)  ;;  %v1490_v5 = vmov (!%p438_p2), 0   ;;  %v604_v6 = vld [vmem:[%s1780_s13 + $0x8] sm:$0xff] (!%p438_p2)  ;;  %vm529_vm2 = vcmask (!%p438_p2), 31744  }
   0x7   : > { %1396 = vmatpush3.bf16.msra.mxu0 (!%p438_p2), %v535_v2  ;;  %v605_v4 = vld [vmem:[%s1781_s14] sm:$0xff] (!%p438_p2)  ;;  %1401 = vmatprep.subr.bf16.mxu1 (!%p438_p2), %v1488_v1  ;;  %v606_v7 = vld [vmem:[%s1781_s14 + $0x8] sm:$0xff] (!%p438_p2)  ;;  %vm598_vm3 = vcmask (!%p438_p2), 15360   ;;  %vm626_vm4 = vcmask (!%p438_p2), 1040384   ;;  %vm1268_vm5 = vcmask (!%p438_p2), 27648  }
   0x8   : > { %1472 = vset.pattern.permute.xlu0 (!%p438_p2), %v1490_v5  ;;  %1473 = vset.pattern.permute.xlu1 (!%p438_p2), %v1490_v5  ;;  %v1335_v9 = vld [vmem:[%s1768_s1] ss:$0 sm:$0xff] (!%p438_p2)  ;;  %599 = vst.msk [vmem:[#allocation2] sm:$0xff] (!%p438_p2), %vm598_vm3, %v1488_v1  ;;  %600 = vst.msk [vmem:[#allocation2 + $0x18] sm:$0xff] (!%p438_p2), %vm598_vm3, %v1488_v1 }
   0x9   : > { %611 = vperm.xlu0 (!%p438_p2), %1472, %v603_v3   ;;  %738 = vperm.xlu1 (!%p438_p2), %1473, %v605_v4   ;;  %v1336_v12 = vld [vmem:[%s1769_s2] ss:$0 sm:$0xff] (!%p438_p2)  ;;  %v1477_v53 = vld [vmem:[%s1774_s7 + $0x4] ss:$0 sps:$4 sm:$0x22] (!%p438_p2)  }
   0xa   : > { %1407 = vmatprep.subr.bf16.mxu0 (!%p438_p2), %v1488_v1  ;;  %1403 = vmatprep.mubr.msk.bf16.mxu1 (!%p438_p2), %vm1489_vm1, %v1488_v1  ;;  %v1474_v20 = vld [vmem:[%s1774_s7] ss:$0 sps:$4 sm:$0x22] (!%p438_p2)   ;;  %v936_v63 = vrot.slane (!%p438_p2), %v1477_v53, 1  ;;  %v873_v3 = vld [vmem:[%s1774_s7 + $0x4] sm:$0x1] (!%p438_p2) }
   0xb   : > { %v680_v21 = vrot.slane (!%p438_p2), %v1474_v20, 1  ;;  %v622_v23 = vld [vmem:[%s1774_s7] sm:$0x1] (!%p438_p2) }
   0xc   : > { %v628_v24 = vsel (!%p438_p2), %vm626_vm4, %v622_v23, 0  ;;  %v1337_v25 = vld [vmem:[%s1771_s4] ss:$0 sm:$0xff] (!%p438_p2) }
   0xd   : > { %s1784_s19 = smov (!%p485_p3, %s1326_s19), 1  ;;  %616 = vperm.xlu0 %1472, %v604_v6   ;;  %743 = vperm.xlu1 %1473, %v606_v7   ;;  %v685_v22 = vsel %vm626_vm4, %v680_v21, 0  ;;  %v1339_v27 = vld [vmem:[%s1772_s5] ss:$0 sm:$0xff]  ;;  %v941_v6 = vsel %vm626_vm4, %v936_v63, 0  ;;  %v878_v7 = vsel %vm626_vm4, %v873_v3, 0 }
   0xe   : > { %s1365_s28 = sshll.u32 %s1784_s19, 3  ;;  %1402 = vmatpush3.bf16.msra.mxu1 %v628_v24  ;;  %v1340_v30 = vld [vmem:[%s1773_s6] ss:$0 sm:$0xff] }
   0xf   : > { %s489_s20 = scalar_lea.vmem %s1767_s0, %s1365_s28  ;;  %1413 = vmatprep.subr.bf16.mxu1 %v1488_v1  ;;  %v1475_v41 = vld [vmem:[%s1774_s7] ss:$0 sps:$4 sm:$0x88]   ;;  %s494_s25 = scalar_lea.vmem %s1782_s15, %s1365_s28 }
  0x10   : > { %v1370_v8 = vld [vmem:[%s489_s20] sm:$0xff]   ;;  %v816_v45 = vrot.slane %v1475_v41, 3 }
  0x11   : > { %v1371_v10 = vunpack.c.l.bf16 %v1370_v8  ;;  %v1372_v11 = vunpack.c.h.bf16 %v1370_v8  ;;  %v1476_v42 = vld [vmem:[%s1774_s7] ss:$0 sps:$4 sm:$0x44]  }
  0x12   : > { %v753_v46 = vrot.slane %v1476_v42, 2  ;;  %v821_v56 = vsel %vm626_vm4, %v816_v45, 0 }
  0x13   : > { %v507_v13 = vmul.f32 %v1371_v10, %v1335_v9  ;;  %v508_v14 = vmul.f32 %v1372_v11, %v1335_v9  ;;  %v1478_v10 = vld [vmem:[%s1774_s7 + $0x4] ss:$0 sps:$4 sm:$0x88]  }
  0x14   : > { %v758_v57 = vsel %vm626_vm4, %v753_v46, 0  ;;  %v1479_v11 = vld [vmem:[%s1774_s7 + $0x4] ss:$0 sps:$4 sm:$0x44]  }
  0x15   : > { %v516_v15 = vadd.f32 %v1336_v12, %v507_v13  ;;  %v517_v16 = vadd.f32 %v1336_v12, %v508_v14 }
  0x17   : > { %v518_v17 = vmax.f32 %v516_v15, 0.0  ;;  %v519_v18 = vmax.f32 %v517_v16, 0.0  ;;  %v1060_v16 = vrot.slane %v1478_v10, 3 }
  0x19   : > { %v520_v19 = vpack.c.bf16 %v519_v18, %v518_v17  ;;  %v999_v17 = vrot.slane %v1479_v11, 2 }
  0x1b   : > { %1398 = vmatmul.mubr.msk.bf16.vlgmr.msra.gmra.mrb[0].mxu0 %vm529_vm2, %v520_v19  ;;  %v1004_v23 = vsel %vm626_vm4, %v999_v17, 0 }
  0x1c   : > { %1409 = vmatprep.mubr.msk.bf16.mxu0 %vm1489_vm1, %v1488_v1  ;;  %1408 = vmatpush3.bf16.msra.mxu0 %v685_v22  ;;  %v1065_v22 = vsel %vm626_vm4, %v1060_v16, 0 }
  0x1d   : > { %1419 = vmatprep.subr.bf16.mxu0 %v1488_v1 }
  0x88   : > { %v1642_v40 = vpop.permute.xlu0 %611  ;;  %v1650_v44 = vpop.permute.xlu1 %738 }
  0x8c   : > { %v617_v48 = vpop.permute.xlu0 %616  ;;  %v1663_v60 = vpop.permute.xlu1 %743 }
  0xee   : > { %v571_v26 = vpop.f32.mrb[0].mxu0 }
  0xef   : > { %v572_v28 = vadd.f32 %v1337_v25, %v571_v26  ;;  %v1399_v29 = vpop.f32.mrb[1].mxu0 }
  0xf0   : > { %v574_v31 = vpop.f32.mrb[2].mxu0 }
  0xf1   : > { %v585_v32 = vmul.f32 %v1339_v27, %v572_v28  ;;  %v575_v33 = vadd.f32 %v1337_v25, %v574_v31  ;;  %v1400_v34 = vpop.f32.mrb[3].mxu0  ;;  %v1119_v28 = vld [vmem:[%s1774_s7 + $0x8] sm:$0x1] }
  0xf2   : > { %v1124_v31 = vsel %vm626_vm4, %v1119_v28, 0 }
  0xf3   : > { %v594_v35 = vadd.f32 %v1340_v30, %v585_v32  ;;  %v586_v36 = vmul.f32 %v1339_v27, %v575_v33 }
  0xf5   : > { %v596_v37 = vmax.f32 %v594_v35, 0.0  ;;  %v595_v38 = vadd.f32 %v1340_v30, %v586_v36  ;;  %v1205_v36 = vld [vmem:[%s1778_s11] sm:$0x1] }
  0xf7   : > { %601 = vst.msk [vmem:[#allocation2 + $0x8] sm:$0xff] %vm598_vm3, %v596_v37  ;;  %v597_v39 = vmax.f32 %v595_v38, 0.0  ;;  %v1217_v37 = vsel %vm626_vm4, %v1205_v36, 0 }
  0xf9   : > { %602 = vst.msk [vmem:[#allocation2 + $0x10] sm:$0xff] %vm598_vm3, %v597_v39 }
  0xfe   : > { %v607_v43 = vld [vmem:[#allocation2 + $0x3] sm:$0xff] }
  0xff   : > { %v619_v49 = vmul.f32 %v1642_v40, %v607_v43  ;;  %v673_v51 = vld [vmem:[#allocation2 + $0x4] sm:$0xff] }
 0x100   : > { %v990_v47 = vld [vmem:[#allocation2 + $0xb] sm:$0xff]  ;;  %v991_v24 = vld [vmem:[#allocation2 + $0x13] sm:$0xff] }
 0x101   : > { %v620_v50 = vmul.f32 %v990_v47, %v617_v48  ;;  %v1653_v52 = vld [vmem:[#allocation2 + $0xc] sm:$0xff]  ;;  %v992_v25 = vmul.f32 %v990_v47, %v1642_v40  ;;  %v993_v26 = vmul.f32 %v991_v24, %v617_v48  ;;  %v1054_v27 = vld [vmem:[#allocation2 + $0x14] sm:$0xff] }
 0x102   : > { %v675_v55 = vpack.c.bf16 %v1653_v52, %v673_v51  ;;  %v1661_v58 = vld [vmem:[#allocation2 + $0xd] sm:$0xff]  ;;  %v734_v62 = vld [vmem:[#allocation2 + $0x5] sm:$0xff]  ;;  %v1055_v30 = vpack.c.bf16 %v1054_v27, %v1653_v52  ;;  %v1115_v32 = vld [vmem:[#allocation2 + $0x15] sm:$0xff] }
 0x103   : > { %v621_v54 = vpack.c.bf16 %v620_v50, %v619_v49  ;;  %v808_v59 = vld [vmem:[#allocation2 + $0xf] sm:$0xff]  ;;  %v807_v61 = vld [vmem:[#allocation2 + $0x7] sm:$0xff]  ;;  %v747_v2 = vmul.f32 %v1661_v58, %v1663_v60  ;;  %v746_v5 = vmul.f32 %v1650_v44, %v734_v62  ;;  %v994_v29 = vpack.c.bf16 %v993_v26, %v992_v25 }
 0x104   : > { %1410 = vmatmul.mubr.msk.bf16.vlgmr.msra.gmra.mrb[4].mxu0 %vm598_vm3, %v675_v55  ;;  %v810_v0 = vmul.f32 %v808_v59, %v617_v48  ;;  %v809_v4 = vmul.f32 %v807_v61, %v1642_v40  ;;  %v927_v12 = vld [vmem:[#allocation2 + $0x9] sm:$0xff]  ;;  %v928_v13 = vld [vmem:[#allocation2 + $0x11] sm:$0xff]  ;;  %v1116_v33 = vmul.f32 %v1661_v58, %v1650_v44  ;;  %v1117_v34 = vmul.f32 %v1115_v32, %v1663_v60 }
 0x105   : > { %1404 = vmatmul.mubr.msk.bf16.vlgmr.msra.gmra.mrb[0].mxu1 %vm598_vm3, %v621_v54  ;;  %1420 = vmatpush3.bf16.msra.mxu0 %v821_v56  ;;  %v748_v9 = vpack.c.bf16 %v747_v2, %v746_v5  ;;  %v929_v14 = vmul.f32 %v927_v12, %v1650_v44  ;;  %v930_v15 = vmul.f32 %v928_v13, %v1663_v60  ;;  %v871_v18 = vld [vmem:[#allocation2 + $0x10] sm:$0xff]  ;;  %v870_v19 = vld [vmem:[#allocation2 + $0x8] sm:$0xff] }
 0x106   : > { %1414 = vmatpush3.bf16.msra.mxu1 %v758_v57  ;;  %1421 = vmatprep.mubr.msk.bf16.mxu0 %vm1489_vm1, %v1488_v1  ;;  %v811_v8 = vpack.c.bf16 %v810_v0, %v809_v4  ;;  %v872_v21 = vpack.c.bf16 %v871_v18, %v870_v19  ;;  %v1118_v35 = vpack.c.bf16 %v1117_v34, %v1116_v33 }
 0x107   : > { %1415 = vmatprep.mubr.msk.bf16.mxu1 %vm1489_vm1, %v1488_v1  ;;  %1431 = vmatprep.subr.bf16.mxu0 %v1488_v1  ;;  %v931_v20 = vpack.c.bf16 %v930_v15, %v929_v14 }
 0x108   : > { %1425 = vmatprep.subr.bf16.mxu1 %v1488_v1 }
 0x10c   : > { %1422 = vmatmul.mubr.msk.bf16.vlgmr.msra.gmra.mrb[8].mxu0 %vm598_vm3, %v811_v8 }
 0x10d   : > { %1416 = vmatmul.mubr.msk.bf16.vlgmr.msra.gmra.mrb[4].mxu1 %vm598_vm3, %v748_v9  ;;  %1432 = vmatpush3.bf16.msra.mxu0 %v941_v6 }
 0x10e   : > { %1426 = vmatpush3.bf16.msra.mxu1 %v878_v7  ;;  %1433 = vmatprep.mubr.msk.bf16.mxu0 %vm1489_vm1, %v1488_v1 }
 0x10f   : > { %1427 = vmatprep.mubr.msk.bf16.mxu1 %vm1489_vm1, %v1488_v1  ;;  %1443 = vmatprep.subr.bf16.mxu0 %v1488_v1 }
 0x110   : > { %1437 = vmatprep.subr.bf16.mxu1 %v1488_v1 }
 0x114   : > { %1434 = vmatmul.mubr.msk.bf16.vlgmr.msra.gmra.mrb[12].mxu0 %vm598_vm3, %v931_v20 }
 0x115   : > { %1428 = vmatmul.mubr.msk.bf16.vlgmr.msra.gmra.mrb[8].mxu1 %vm598_vm3, %v872_v21  ;;  %1444 = vmatpush3.bf16.msra.mxu0 %v1065_v22 }
 0x116   : > { %1438 = vmatpush3.bf16.msra.mxu1 %v1004_v23  ;;  %1445 = vmatprep.mubr.msk.bf16.mxu0 %vm1489_vm1, %v1488_v1 }
 0x117   : > { %1439 = vmatprep.mubr.msk.bf16.mxu1 %vm1489_vm1, %v1488_v1  ;;  %1449 = vmatprep.subr.bf16.mxu1 %v1488_v1 }
 0x118   : > { %1455 = vmatprep.subr.bf16.mxu0 %v1488_v1 }
 0x11c   : > { %1446 = vmatmul.mubr.msk.bf16.vlgmr.msra.gmra.mrb[16].mxu0 %vm598_vm3, %v1055_v30 }
 0x11d   : > { %1440 = vmatmul.mubr.msk.bf16.vlgmr.msra.gmra.mrb[12].mxu1 %vm598_vm3, %v994_v29  ;;  %1457 = vmatprep.mubr.msk.bf16.mxu0 %vm1489_vm1, %v1488_v1 }
 0x11e   : > { %1450 = vmatpush3.bf16.msra.mxu1 %v1124_v31  ;;  %1451 = vmatprep.mubr.msk.bf16.mxu1 %vm1489_vm1, %v1488_v1 }
 0x11f   : > { %1456 = vmatpush3.bf16.msra.mxu0 %v1217_v37 }
 0x125   : > { %1452 = vmatmul.mubr.msk.bf16.vlgmr.msra.gmra.mrb[16].mxu1 %vm598_vm3, %v1118_v35 }
 0x1d7   : > { %v721_v38 = vpop.f32.mrb[4].mxu0 }
 0x1d8   : > { %v664_v39 = vpop.f32.mrb[0].mxu1  ;;  %v1411_v40 = vpop.f32.mrb[5].mxu0 }
 0x1d9   : > { %671 = vst.msk [vmem:[#allocation3] sm:$0xff] %vm598_vm3, %v664_v39  ;;  %v1405_v41 = vpop.f32.mrb[1].mxu1  ;;  %v724_v42 = vpop.f32.mrb[6].mxu0 }
 0x1da   : > { %v667_v43 = vpop.f32.mrb[2].mxu1  ;;  %v1412_v44 = vpop.f32.mrb[7].mxu0 }
 0x1db   : > { %672 = vst.msk [vmem:[#allocation3 + $0x8] sm:$0xff] %vm598_vm3, %v667_v43  ;;  %v1406_v1 = vpop.f32.mrb[3].mxu1  ;;  %v1357_v44 = vld [vmem:[%s1776_s9] ss:$0 sm:$0xff] }
 0x1df   : > { %v857_v46 = vpop.f32.mrb[8].mxu0 }
 0x1e0   : > { %v728_v45 = vld [vmem:[#allocation3] sm:$0xff]  ;;  %v794_v47 = vpop.f32.mrb[4].mxu1  ;;  %v1423_v49 = vpop.f32.mrb[9].mxu0 }
 0x1e1   : > { %v730_v48 = vadd.f32 %v728_v45, %v721_v38  ;;  %v1417_v50 = vpop.f32.mrb[5].mxu1  ;;  %v860_v52 = vpop.f32.mrb[10].mxu0 }
 0x1e2   : > { %v729_v51 = vld [vmem:[#allocation3 + $0x8] sm:$0xff]  ;;  %v797_v53 = vpop.f32.mrb[6].mxu1  ;;  %v1424_v55 = vpop.f32.mrb[11].mxu0 }
 0x1e3   : > { %732 = vst.msk [vmem:[#allocation3] sm:$0xff] %vm598_vm3, %v730_v48  ;;  %v731_v54 = vadd.f32 %v729_v51, %v724_v42  ;;  %v1418_v56 = vpop.f32.mrb[7].mxu1  ;;  %v1356_v42 = vld [vmem:[%s1775_s8] ss:$0 sm:$0xff] }
 0x1e4   : > { %v1359_v55 = vld [vmem:[%s1779_s12] ss:$0 sm:$0xff] }
 0x1e5   : > { %733 = vst.msk [vmem:[#allocation3 + $0x8] sm:$0xff] %vm598_vm3, %v731_v54 }
 0x1e7   : > { %v977_v57 = vpop.f32.mrb[12].mxu0 }
 0x1e8   : > { %v914_v58 = vpop.f32.mrb[8].mxu1  ;;  %v1435_v59 = vpop.f32.mrb[13].mxu0 }
 0x1e9   : > { %v1429_v60 = vpop.f32.mrb[9].mxu1  ;;  %v980_v62 = vpop.f32.mrb[14].mxu0 }
 0x1ea   : > { %v801_v61 = vld [vmem:[#allocation3] sm:$0xff]  ;;  %v917_v63 = vpop.f32.mrb[10].mxu1  ;;  %v1436_v2 = vpop.f32.mrb[15].mxu0 }
 0x1eb   : > { %v803_v0 = vadd.f32 %v801_v61, %v794_v47  ;;  %v1430_v3 = vpop.f32.mrb[11].mxu1 }
 0x1ec   : > { %v802_v4 = vld [vmem:[#allocation3 + $0x8] sm:$0xff] }
 0x1ed   : > { %805 = vst.msk [vmem:[#allocation3] sm:$0xff] %vm598_vm3, %v803_v0  ;;  %v804_v5 = vadd.f32 %v802_v4, %v797_v53 }
 0x1ef   : > { %806 = vst.msk [vmem:[#allocation3 + $0x8] sm:$0xff] %vm598_vm3, %v804_v5  ;;  %v1101_v6 = vpop.f32.mrb[16].mxu0 }
 0x1f0   : > { %v1040_v7 = vpop.f32.mrb[12].mxu1  ;;  %v1447_v8 = vpop.f32.mrb[17].mxu0 }
 0x1f1   : > { %v1441_v9 = vpop.f32.mrb[13].mxu1  ;;  %v1104_v10 = vpop.f32.mrb[18].mxu0 }
 0x1f2   : > { %v1043_v11 = vpop.f32.mrb[14].mxu1  ;;  %v1448_v12 = vpop.f32.mrb[19].mxu0 }
 0x1f3   : > { %v1442_v13 = vpop.f32.mrb[15].mxu1 }
 0x1f4   : > { %v864_v14 = vld [vmem:[#allocation3] sm:$0xff] }
 0x1f5   : > { %v866_v15 = vadd.f32 %v864_v14, %v857_v46  ;;  %v1358_v46 = vld [vmem:[%s1777_s10] ss:$0 sm:$0xff] }
 0x1f6   : > { %v865_v16 = vld [vmem:[#allocation3 + $0x8] sm:$0xff] }
 0x1f7   : > { %868 = vst.msk [vmem:[#allocation3] sm:$0xff] %vm598_vm3, %v866_v15  ;;  %v867_v17 = vadd.f32 %v865_v16, %v860_v52 }
 0x1f8   : > { %v1160_v18 = vpop.f32.mrb[16].mxu1 }
 0x1f9   : > { %869 = vst.msk [vmem:[#allocation3 + $0x8] sm:$0xff] %vm598_vm3, %v867_v17  ;;  %v1453_v19 = vpop.f32.mrb[17].mxu1 }
 0x1fa   : > { %v1163_v20 = vpop.f32.mrb[18].mxu1 }
 0x1fb   : > { %v1454_v21 = vpop.f32.mrb[19].mxu1 }
 0x1fe   : > { %v921_v22 = vld [vmem:[#allocation3] sm:$0xff] }
 0x1ff   : > { %v923_v23 = vadd.f32 %v921_v22, %v914_v58 }
 0x200   : > { %v922_v24 = vld [vmem:[#allocation3 + $0x8] sm:$0xff] }
 0x201   : > { %925 = vst.msk [vmem:[#allocation3] sm:$0xff] %vm598_vm3, %v923_v23  ;;  %v924_v25 = vadd.f32 %v922_v24, %v917_v63 }
 0x203   : > { %926 = vst.msk [vmem:[#allocation3 + $0x8] sm:$0xff] %vm598_vm3, %v924_v25 }
 0x208   : > { %v984_v26 = vld [vmem:[#allocation3] sm:$0xff] }
 0x209   : > { %v986_v27 = vadd.f32 %v984_v26, %v977_v57 }
 0x20a   : > { %v985_v28 = vld [vmem:[#allocation3 + $0x8] sm:$0xff] }
 0x20b   : > { %988 = vst.msk [vmem:[#allocation3] sm:$0xff] %vm598_vm3, %v986_v27  ;;  %v987_v29 = vadd.f32 %v985_v28, %v980_v62 }
 0x20d   : > { %989 = vst.msk [vmem:[#allocation3 + $0x8] sm:$0xff] %vm598_vm3, %v987_v29 }
 0x212   : > { %v1047_v30 = vld [vmem:[#allocation3] sm:$0xff] }
 0x213   : > { %v1049_v31 = vadd.f32 %v1047_v30, %v1040_v7 }
 0x214   : > { %v1048_v32 = vld [vmem:[#allocation3 + $0x8] sm:$0xff] }
 0x215   : > { %1051 = vst.msk [vmem:[#allocation3] sm:$0xff] %vm598_vm3, %v1049_v31  ;;  %v1050_v33 = vadd.f32 %v1048_v32, %v1043_v11 }
 0x217   : > { %1052 = vst.msk [vmem:[#allocation3 + $0x8] sm:$0xff] %vm598_vm3, %v1050_v33 }
 0x21c   : > { %v1108_v34 = vld [vmem:[#allocation3] sm:$0xff] }
 0x21d   : > { %v1110_v35 = vadd.f32 %v1108_v34, %v1101_v6 }
 0x21e   : > { %v1109_v36 = vld [vmem:[#allocation3 + $0x8] sm:$0xff] }
 0x21f   : > { %1112 = vst.msk [vmem:[#allocation3] sm:$0xff] %vm598_vm3, %v1110_v35  ;;  %v1111_v37 = vadd.f32 %v1109_v36, %v1104_v10 }
 0x221   : > { %1113 = vst.msk [vmem:[#allocation3 + $0x8] sm:$0xff] %vm598_vm3, %v1111_v37 }
 0x226   : > { %v1167_v38 = vld [vmem:[#allocation3] sm:$0xff] }
 0x227   : > { %v1169_v39 = vadd.f32 %v1167_v38, %v1160_v18 }
 0x228   : > { %v1168_v40 = vld [vmem:[#allocation3 + $0x8] sm:$0xff] }
 0x229   : > { %1171 = vst.msk [vmem:[#allocation3] sm:$0xff] %vm598_vm3, %v1169_v39  ;;  %v1170_v41 = vadd.f32 %v1168_v40, %v1163_v20 }
 0x22b   : > { %1172 = vst.msk [vmem:[#allocation3 + $0x8] sm:$0xff] %vm598_vm3, %v1170_v41 }
 0x230   : > { %v1173_v43 = vld [vmem:[#allocation3] sm:$0xff] }
 0x231   : > { %v1182_v1 = vadd.f32 %v1356_v42, %v1173_v43 }
 0x232   : > { %v1174_v45 = vld [vmem:[#allocation3 + $0x8] sm:$0xff] }
 0x233   : > { %v1183_v47 = vadd.f32 %v1356_v42, %v1174_v45  ;;  %v1191_v48 = vmul.f32 %v1357_v44, %v1182_v1 }
 0x235   : > { %v1192_v49 = vmul.f32 %v1357_v44, %v1183_v47  ;;  %v1200_v50 = vadd.f32 %v1358_v46, %v1191_v48 }
 0x237   : > { %v1201_v51 = vadd.f32 %v1358_v46, %v1192_v49  ;;  %v1202_v52 = vmax.f32 %v1200_v50, 0.0 }
 0x239   : > { %v1203_v53 = vmax.f32 %v1201_v51, 0.0 }
 0x23b   : > { %v1204_v54 = vpack.c.bf16 %v1203_v53, %v1202_v52 }
 0x23d   : > { %1458 = vmatmul.mubr.msk.bf16.vlgmr.msra.gmra.mrb[20].mxu0 %vm598_vm3, %v1204_v54 }
 0x310   : > { %v1253_v56 = vpop.f32.mrb[20].mxu0 }
 0x311   : > { %v1254_v57 = vadd.f32 %v1359_v55, %v1253_v56  ;;  %v1459_v58 = vpop.f32.mrb[21].mxu0 }
 0x312   : > { %v1256_v59 = vpop.f32.mrb[22].mxu0 }
 0x313   : > { %v1367_v60 = vpack.c.bf16 %v1254_v57, %v1254_v57  ;;  %v1257_v61 = vadd.f32 %v1359_v55, %v1256_v59  ;;  %v1460_v62 = vpop.f32.mrb[23].mxu0 }
 0x315   : > { %1269 = vst.msk [vmem:[%s494_s25] sm:$0xf] %vm1268_vm5, %v1367_v60  ;;  %v1368_v63 = vpack.c.bf16 %v1257_v61, %v1257_v61 }
 0x317   : > { %1270 = vst.msk [vmem:[%s494_s25 + $0x4] sm:$0xf] %vm1268_vm5, %v1368_v63 }
 0x318 PF: > { %s25_s18 = sadd.s32 1, %s1486_s18  }
 0x319   : > { %p22_p4 = scmp.ge.s32.totalorder %s25_s18, 4  }
 0x31b   :  { %24 = sbr.rel (!%p22_p4) target bundleno = 1 (0x1), region = 110 }

// kernel: hourglass_apply.11
= control target key start
LH: loop header
LB: loop body
LE: loop exit
PB: predicated region body
PF: predicated region fallthrough
CT: control target
= control target key end

     0   :  { %s2544_s18 = smov 0   ;;  %s3078_s0 = inlined_call_operand.vmem [shape: bf16[2,64,4], index: 0, kind: input, shape index: {}]   ;;  %s3079_s1 = inlined_call_operand.vmem [shape: f32[1,4], index: 1, kind: input, shape index: {}]   ;;  %s3080_s2 = inlined_call_operand.vmem [shape: f32[1,4], index: 2, kind: input, shape index: {}]   ;;  %s3081_s3 = inlined_call_operand.vmem [shape: bf16[4,2], index: 3, kind: input, shape index: {}]   ;;  %s3082_s4 = inlined_call_operand.vmem [shape: f32[1,2], index: 4, kind: input, shape index: {}]   ;;  %s3083_s5 = inlined_call_operand.vmem [shape: f32[1,2], index: 5, kind: input, shape index: {}]   ;;  %s3084_s6 = inlined_call_operand.vmem [shape: f32[1,2], index: 6, kind: input, shape index: {}]   ;;  %s3085_s7 = inlined_call_operand.vmem [shape: bf16[18,2], index: 7, kind: input, shape index: {}]   ;;  %s3086_s8 = inlined_call_operand.vmem [shape: f32[1,2], index: 8, kind: input, shape index: {}]   ;;  %s3087_s9 = inlined_call_operand.vmem [shape: f32[1,2], index: 9, kind: input, shape index: {}]   ;;  %s3088_s10 = inlined_call_operand.vmem [shape: f32[1,2], index: 10, kind: input, shape index: {}]   ;;  %s3089_s11 = inlined_call_operand.vmem [shape: bf16[2,4], index: 11, kind: input, shape index: {}]   ;;  %s3090_s12 = inlined_call_operand.vmem [shape: f32[1,4], index: 12, kind: input, shape index: {}]   ;;  %s3091_s13 = inlined_call_operand.vmem [shape: f32[64,1], index: 13, kind: input, shape index: {}]   ;;  %s3092_s14 = inlined_call_operand.vmem [shape: f32[64,1], index: 14, kind: input, shape index: {}]   ;;  %s3093_s15 = inlined_call_operand.vmem [shape: bf16[2,64,4], index: 15, kind: output, shape index: {}]  }
   0x1 LB: > { %s2150_s19 = sadd.s32 4294967295, %s2460_s18   ;;  %p2154_p0 = scmp.ge.s32.totalorder %s2460_s18, 1  ;;  %s2460_s18 = sphi %s2544_s18, %s25_s18  }
   0x2   : > { %p437_p1 = scmp.lt.s32.totalorder %s2460_s18, 3 }
   0x4   : > { %p438_p2 = pnand %p2154_p0, %p437_p1 }
   0x5   : > { %v554_v0 = vld [vmem:[%s3081_s3] sm:$0x3] (!%p438_p2)  ;;  %vm575_vm0 = vcmask (!%p438_p2), 1041408   ;;  %p485_p3 = scmp.lt.s32.totalorder (!%p438_p2), %s2150_s19, 1  ;;  %v697_v3 = vld [vmem:[%s3091_s13 + $0x10] sm:$0xff] (!%p438_p2)  ;;  %v2462_v4 = vmov (!%p438_p2), 0  }
   0x6   : > { %441 = sbr.rel (%p438_p2) target bundleno = 806 (0x326), region = 80  ;;  %2424 = vmatprep.subr.msk.bf16.mxu0 (!%p438_p2), %vm575_vm0, %v554_v0  ;;  %2425 = vmatprep.subr.msk.bf16.mxu1 (!%p438_p2), %vm575_vm0, %v554_v0  ;;  %v577_v1 = vsel (!%p438_p2), %vm575_vm0, %v554_v0, 0  ;;  %v695_v2 = vld [vmem:[%s3091_s13] sm:$0xff] (!%p438_p2)  ;;  %vm682_vm1 = vcmask (!%p438_p2), 15360   ;;  %v2463_v5 = vmov (!%p438_p2), 0.0   ;;  %v696_v7 = vld [vmem:[%s3091_s13 + $0x8] sm:$0xff] (!%p438_p2) }
   0x7   : > { %2313 = vmatpush3.bf16.msra.mxu0 (!%p438_p2), %v577_v1  ;;  %2423 = vmatpush3.bf16.msra.mxu1 (!%p438_p2), %v577_v1  ;;  %683 = vst.msk [vmem:[#allocation2] sm:$0xff] (!%p438_p2), %vm682_vm1, %v2463_v5  ;;  %684 = vst.msk [vmem:[#allocation2 + $0x8] sm:$0xff] (!%p438_p2), %vm682_vm1, %v2463_v5  ;;  %v2159_v6 = vld [vmem:[%s3079_s1] ss:$0 sm:$0xff] (!%p438_p2)  ;;  %v698_v8 = vld [vmem:[%s3091_s13 + $0x18] sm:$0xff] (!%p438_p2)  ;;  %vm562_vm2 = vcmask (!%p438_p2), 31744  }
   0x8   : > { %2446 = vset.pattern.permute.xlu0 (!%p438_p2), %v2462_v4  ;;  %2447 = vset.pattern.permute.xlu1 (!%p438_p2), %v2462_v4  ;;  %685 = vst.msk [vmem:[#allocation2 + $0x50] sm:$0xff] (!%p438_p2), %vm682_vm1, %v2463_v5  ;;  %686 = vst.msk [vmem:[#allocation2 + $0x58] sm:$0xff] (!%p438_p2), %vm682_vm1, %v2463_v5  ;;  %v2160_v14 = vld [vmem:[%s3080_s2] ss:$0 sm:$0xff] (!%p438_p2)  ;;  %v700_v31 = vld [vmem:[%s3091_s13 + $0x28] sm:$0xff] (!%p438_p2)  ;;  %vm784_vm3 = vcmask (!%p438_p2), 1040384  }
   0x9   : > { %721 = vperm.xlu0 (!%p438_p2), %2446, %v695_v2   ;;  %731 = vperm.xlu1 (!%p438_p2), %2447, %v697_v3   ;;  %v699_v22 = vld [vmem:[%s3091_s13 + $0x20] sm:$0xff] (!%p438_p2)  ;;  %v701_v44 = vld [vmem:[%s3091_s13 + $0x30] sm:$0xff] (!%p438_p2)  ;;  %v702_v53 = vld [vmem:[%s3091_s13 + $0x38] sm:$0xff] (!%p438_p2)  ;;  %vm2086_vm4 = vcmask (!%p438_p2), 27648  }
   0xa   : > { %v703_v54 = vld [vmem:[%s3092_s14] sm:$0xff] (!%p438_p2)  ;;  %v704_v55 = vld [vmem:[%s3092_s14 + $0x8] sm:$0xff] (!%p438_p2)  ;;  %v705_v56 = vld [vmem:[%s3092_s14 + $0x10] sm:$0xff] (!%p438_p2) }
   0xb   : > { %v706_v57 = vld [vmem:[%s3092_s14 + $0x18] sm:$0xff] (!%p438_p2)  ;;  %v707_v58 = vld [vmem:[%s3092_s14 + $0x20] sm:$0xff] (!%p438_p2)  ;;  %v708_v59 = vld [vmem:[%s3092_s14 + $0x28] sm:$0xff] (!%p438_p2) }
   0xc   : > { %v709_v60 = vld [vmem:[%s3092_s14 + $0x30] sm:$0xff] (!%p438_p2)  ;;  %v710_v61 = vld [vmem:[%s3092_s14 + $0x38] sm:$0xff] (!%p438_p2)  ;;  %v2448_v62 = vld [vmem:[%s3085_s7] ss:$0 sps:$4 sm:$0x22] (!%p438_p2)  }
   0xd   : > { %s3095_s19 = smov (!%p485_p3, %s2150_s19), 1  ;;  %726 = vperm.xlu0 %2446, %v696_v7   ;;  %736 = vperm.xlu1 %2447, %v698_v8   ;;  %v877_v63 = vrot.slane %v2448_v62, 1  ;;  %v771_v1 = vld [vmem:[%s3085_s7] sm:$0x1] }
   0xe   : > { %s2228_s26 = sshll.u32 %s3095_s19, 5  ;;  %2426 = vmatprep.subr.msk.bf16.mxu1 %vm784_vm3, %v771_v1  ;;  %v786_v2 = vsel %vm784_vm3, %v771_v1, 0  ;;  %v2638_v3 = vld [vmem:[%s3085_s7] ss:$0 sps:$4 sm:$0x44]  }
   0xf   : > { %s489_s29 = scalar_lea.vmem %s3078_s0, %s2228_s26  ;;  %2427 = vmatprep.subr.msk.bf16.mxu0 %vm784_vm3, %v877_v63  ;;  %v891_v0 = vsel %vm784_vm3, %v877_v63, 0  ;;  %v1046_v4 = vrot.slane %v2638_v3, 2  ;;  %v2647_v5 = vld [vmem:[%s3085_s7] ss:$0 sps:$4 sm:$0x88]   ;;  %s494_s25 = scalar_lea.vmem %s3093_s15, %s2228_s26 }
  0x10   : > { %v2239_v9 = vld [vmem:[%s489_s29] sm:$0xff]   ;;  %v2255_v10 = vld [vmem:[%s489_s29 + $0x10] sm:$0xff]   ;;  %v2254_v11 = vld [vmem:[%s489_s29 + $0x8] sm:$0xff]  }
  0x11   : > { %v2240_v12 = vunpack.c.l.bf16 %v2239_v9  ;;  %v2241_v13 = vunpack.c.h.bf16 %v2239_v9  ;;  %v2248_v15 = vunpack.c.l.bf16 %v2255_v10  ;;  %v2249_v16 = vunpack.c.h.bf16 %v2255_v10  ;;  %v2256_v17 = vld [vmem:[%s489_s29 + $0x18] sm:$0xff]   ;;  %741 = vperm.xlu0 %2446, %v699_v22   ;;  %746 = vperm.xlu1 %2447, %v700_v31   ;;  %v2161_v7 = vld [vmem:[%s3082_s4] ss:$0 sm:$0xff] }
  0x12   : > { %v2244_v18 = vunpack.c.l.bf16 %v2254_v11  ;;  %v2245_v19 = vunpack.c.h.bf16 %v2254_v11  ;;  %v2252_v20 = vunpack.c.l.bf16 %v2256_v17  ;;  %v2253_v21 = vunpack.c.h.bf16 %v2256_v17  ;;  %v2166_v9 = vld [vmem:[%s3083_s5] ss:$0 sm:$0xff] }
  0x13   : > { %v519_v23 = vmul.f32 %v2240_v12, %v2159_v6  ;;  %v520_v24 = vmul.f32 %v2241_v13, %v2159_v6  ;;  %v523_v25 = vmul.f32 %v2248_v15, %v2159_v6  ;;  %v524_v26 = vmul.f32 %v2249_v16, %v2159_v6  ;;  %v2167_v15 = vld [vmem:[%s3084_s6] ss:$0 sm:$0xff] }
  0x14   : > { %v521_v27 = vmul.f32 %v2244_v18, %v2159_v6  ;;  %v522_v28 = vmul.f32 %v2245_v19, %v2159_v6  ;;  %v525_v29 = vmul.f32 %v2252_v20, %v2159_v6  ;;  %v526_v30 = vmul.f32 %v2253_v21, %v2159_v6 }
  0x15   : > { %v534_v32 = vadd.f32 %v2160_v14, %v519_v23  ;;  %v535_v33 = vadd.f32 %v2160_v14, %v520_v24  ;;  %v538_v34 = vadd.f32 %v2160_v14, %v523_v25  ;;  %v539_v35 = vadd.f32 %v2160_v14, %v524_v26  ;;  %751 = vperm.xlu0 %2446, %v701_v44  }
  0x16   : > { %v536_v36 = vadd.f32 %v2160_v14, %v521_v27  ;;  %v537_v37 = vadd.f32 %v2160_v14, %v522_v28  ;;  %v540_v38 = vadd.f32 %v2160_v14, %v525_v29  ;;  %v541_v39 = vadd.f32 %v2160_v14, %v526_v30  ;;  %756 = vperm.xlu1 %2447, %v702_v53  }
  0x17   : > { %v542_v40 = vmax.f32 %v534_v32, 0.0  ;;  %v543_v41 = vmax.f32 %v535_v33, 0.0  ;;  %v546_v42 = vmax.f32 %v538_v34, 0.0  ;;  %v547_v43 = vmax.f32 %v539_v35, 0.0 }
  0x18   : > { %v544_v45 = vmax.f32 %v536_v36, 0.0  ;;  %v545_v46 = vmax.f32 %v537_v37, 0.0  ;;  %v548_v47 = vmax.f32 %v540_v38, 0.0  ;;  %v549_v48 = vmax.f32 %v541_v39, 0.0 }
  0x19   : > { %v550_v49 = vpack.c.bf16 %v543_v41, %v542_v40  ;;  %v552_v50 = vpack.c.bf16 %v547_v43, %v546_v42  ;;  %992 = vperm.xlu0 %2446, %v703_v54   ;;  %v1175_v6 = vrot.slane %v2647_v5, 3  ;;  %v861_v54 = vld [vmem:[#allocation2 + $0x8] sm:$0xff] }
  0x1a   : > { %v551_v51 = vpack.c.bf16 %v545_v46, %v544_v45  ;;  %v553_v52 = vpack.c.bf16 %v549_v48, %v548_v47  ;;  %997 = vperm.xlu1 %2447, %v704_v55  }
  0x1b   : > { %2314 = vmatprep.mubr.msk.bf16.mxu0 %vm562_vm2, %v550_v49  ;;  %2318 = vmatprep.mubr.msk.bf16.mxu1 %vm562_vm2, %v552_v50 }
  0x1c   : > { %2315 = vmatmul.mubr.msk.bf16.vlgmr.msra.gmra.mrb[0].mxu0 %vm562_vm2, %v551_v51  ;;  %2319 = vmatmul.mubr.msk.bf16.vlgmr.msra.gmra.mrb[0].mxu1 %vm562_vm2, %v553_v52 }
  0x1d   : > { %1002 = vperm.xlu0 %2446, %v705_v56   ;;  %2333 = vmatpush3.bf16.msra.mxu0 %v891_v0 }
  0x1e   : > { %1007 = vperm.xlu1 %2447, %v706_v57   ;;  %2323 = vmatpush3.bf16.msra.mxu1 %v786_v2 }
  0x1f   : > { %2428 = vmatprep.subr.msk.bf16.mxu1 %vm784_vm3, %v1046_v4  ;;  %2429 = vmatprep.subr.msk.bf16.mxu0 %vm784_vm3, %v1175_v6 }
  0x21   : > { %1012 = vperm.xlu0 %2446, %v707_v58  }
  0x22   : > { %1017 = vperm.xlu1 %2447, %v708_v59  }
  0x25   : > { %1022 = vperm.xlu0 %2446, %v709_v60   ;;  %v711_v60 = vld [vmem:[#allocation2 + $0x7] sm:$0xff] }
  0x26   : > { %1027 = vperm.xlu1 %2447, %v710_v61  }
  0x88   : > { %v2662_v26 = vpop.permute.xlu0 %721  ;;  %v2664_v27 = vpop.permute.xlu1 %731 }
  0x89   : > { %v759_v2 = vmul.f32 %v2662_v26, %v711_v60 }
  0x8c   : > { %v2668_v50 = vpop.permute.xlu0 %726  ;;  %v2670_v51 = vpop.permute.xlu1 %736 }
  0x90   : > { %v2678_v55 = vpop.permute.xlu0 %741  ;;  %v2680_v56 = vpop.permute.xlu1 %746 }
  0x94   : > { %v2687_v62 = vpop.permute.xlu0 %751 }
  0x95   : > { %v2689_v63 = vpop.permute.xlu1 %756 }
  0xef   : > { %v2316_v8 = vpop.f32.mrb[0].mxu0  ;;  %v2320_v10 = vpop.f32.mrb[0].mxu1 }
  0xf0   : > { %v622_v11 = vadd.f32 %v2316_v8, %v2161_v7  ;;  %v638_v12 = vadd.f32 %v2320_v10, %v2161_v7  ;;  %v613_v13 = vpop.f32.mrb[1].mxu0  ;;  %v629_v14 = vpop.f32.mrb[1].mxu1 }
  0xf1   : > { %v614_v16 = vadd.f32 %v2161_v7, %v613_v13  ;;  %v630_v17 = vadd.f32 %v2161_v7, %v629_v14  ;;  %v2317_v18 = vpop.f32.mrb[2].mxu0  ;;  %v2321_v19 = vpop.f32.mrb[2].mxu1 }
  0xf2   : > { %v653_v20 = vmul.f32 %v2166_v9, %v622_v11  ;;  %v657_v21 = vmul.f32 %v2166_v9, %v638_v12  ;;  %v625_v22 = vadd.f32 %v2317_v18, %v2161_v7  ;;  %v641_v23 = vadd.f32 %v2321_v19, %v2161_v7  ;;  %v616_v24 = vpop.f32.mrb[3].mxu0  ;;  %v632_v25 = vpop.f32.mrb[3].mxu1 }
  0xf3   : > { %v651_v28 = vmul.f32 %v2166_v9, %v614_v16  ;;  %v655_v29 = vmul.f32 %v2166_v9, %v630_v17  ;;  %v617_v30 = vadd.f32 %v2161_v7, %v616_v24  ;;  %v633_v31 = vadd.f32 %v2161_v7, %v632_v25  ;;  %v2451_v16 = vld [vmem:[%s3085_s7 + $0x4] ss:$0 sps:$4 sm:$0x22]  }
  0xf4   : > { %v668_v32 = vadd.f32 %v2167_v15, %v653_v20  ;;  %v672_v33 = vadd.f32 %v2167_v15, %v657_v21  ;;  %v654_v34 = vmul.f32 %v2166_v9, %v625_v22  ;;  %v658_v35 = vmul.f32 %v2166_v9, %v641_v23  ;;  %v2733_v22 = vpop.permute.xlu0 %992  ;;  %v2735_v23 = vpop.permute.xlu1 %997 }
  0xf5   : > { %v666_v36 = vadd.f32 %v2167_v15, %v651_v28  ;;  %v670_v37 = vadd.f32 %v2167_v15, %v655_v29  ;;  %v652_v38 = vmul.f32 %v2166_v9, %v617_v30  ;;  %v656_v39 = vmul.f32 %v2166_v9, %v633_v31  ;;  %v1292_v29 = vld [vmem:[%s3085_s7 + $0x4] sm:$0x1] }
  0xf6   : > { %v676_v40 = vmax.f32 %v668_v32, 0.0  ;;  %v680_v41 = vmax.f32 %v672_v33, 0.0  ;;  %v669_v42 = vadd.f32 %v2167_v15, %v654_v34  ;;  %v673_v43 = vadd.f32 %v2167_v15, %v658_v35 }
  0xf7   : > { %v674_v44 = vmax.f32 %v666_v36, 0.0  ;;  %v678_v45 = vmax.f32 %v670_v37, 0.0  ;;  %v667_v46 = vadd.f32 %v2167_v15, %v652_v38  ;;  %v671_v47 = vadd.f32 %v2167_v15, %v656_v39 }
  0xf8   : > { %689 = vst.msk [vmem:[#allocation2 + $0x20] sm:$0xff] %vm682_vm1, %v676_v40  ;;  %693 = vst.msk [vmem:[#allocation2 + $0x40] sm:$0xff] %vm682_vm1, %v680_v41  ;;  %v677_v48 = vmax.f32 %v669_v42, 0.0  ;;  %v681_v49 = vmax.f32 %v673_v43, 0.0  ;;  %v1189_v19 = vsel %vm784_vm3, %v1175_v6, 0  ;;  %v1060_v6 = vsel %vm784_vm3, %v1046_v4, 0  ;;  %v2769_v39 = vpop.permute.xlu0 %1002  ;;  %v2771_v40 = vpop.permute.xlu1 %1007 }
  0xf9   : > { %687 = vst.msk [vmem:[#allocation2 + $0x10] sm:$0xff] %vm682_vm1, %v674_v44  ;;  %691 = vst.msk [vmem:[#allocation2 + $0x30] sm:$0xff] %vm682_vm1, %v678_v45  ;;  %v675_v52 = vmax.f32 %v667_v46, 0.0  ;;  %v679_v53 = vmax.f32 %v671_v47, 0.0  ;;  %v1421_v30 = vrot.slane %v2451_v16, 1 }
  0xfa   : > { %690 = vst.msk [vmem:[#allocation2 + $0x28] sm:$0xff] %vm682_vm1, %v677_v48  ;;  %694 = vst.msk [vmem:[#allocation2 + $0x48] sm:$0xff] %vm682_vm1, %v681_v49  ;;  %v2453_v49 = vld [vmem:[%s3085_s7 + $0x4] ss:$0 sps:$4 sm:$0x88]  }
  0xfb   : > { %688 = vst.msk [vmem:[#allocation2 + $0x18] sm:$0xff] %vm682_vm1, %v675_v52  ;;  %692 = vst.msk [vmem:[#allocation2 + $0x38] sm:$0xff] %vm682_vm1, %v679_v53 }
  0xff   : > { %v2702_v10 = vld [vmem:[#allocation2 + $0x20] sm:$0xff] }
 0x100   : > { %v2682_v57 = vld [vmem:[#allocation2 + $0x10] sm:$0xff]  ;;  %v2752_v32 = vld [vmem:[#allocation2 + $0x40] sm:$0xff] }
 0x101   : > { %v869_v58 = vpack.c.bf16 %v2682_v57, %v861_v54  ;;  %v712_v59 = vld [vmem:[#allocation2 + $0xf] sm:$0xff]  ;;  %v2704_v11 = vld [vmem:[#allocation2 + $0x27] sm:$0xff] }
 0x102   : > { %v760_v61 = vmul.f32 %v2668_v50, %v712_v59  ;;  %v2691_v0 = vld [vmem:[#allocation2 + $0x18] sm:$0xff]  ;;  %v2696_v7 = vld [vmem:[#allocation2 + $0x28] sm:$0xff]  ;;  %v2698_v8 = vld [vmem:[#allocation2 + $0x30] sm:$0xff]  ;;  %v763_v20 = vmul.f32 %v2678_v55, %v2704_v11  ;;  %v1159_v34 = vmul.f32 %v2662_v26, %v712_v59  ;;  %v1162_v48 = vmul.f32 %v2670_v51, %v2704_v11 }
 0x103   : > { %2334 = vmatprep.mubr.msk.bf16.mxu0 %vm682_vm1, %v869_v58  ;;  %v2693_v1 = vld [vmem:[#allocation2 + $0x17] sm:$0xff]  ;;  %v2700_v9 = vld [vmem:[#allocation2 + $0x1f] sm:$0xff]  ;;  %v2706_v12 = vld [vmem:[#allocation2 + $0x2f] sm:$0xff]  ;;  %v2710_v14 = vpack.c.bf16 %v2702_v10, %v2691_v0  ;;  %v2719_v17 = vpack.c.bf16 %v2698_v8, %v2696_v7 }
 0x104   : > { %v767_v13 = vpack.c.bf16 %v760_v61, %v759_v2  ;;  %v761_v15 = vmul.f32 %v2664_v27, %v2693_v1  ;;  %v762_v18 = vmul.f32 %v2670_v51, %v2700_v9  ;;  %v764_v21 = vmul.f32 %v2680_v56, %v2706_v12  ;;  %v2742_v25 = vld [vmem:[#allocation2 + $0x37] sm:$0xff]  ;;  %v2744_v28 = vld [vmem:[#allocation2 + $0x3f] sm:$0xff]  ;;  %v982_v33 = vld [vmem:[#allocation2 + $0x9] sm:$0xff]  ;;  %v2802_v61 = vpop.permute.xlu0 %1012  ;;  %v2804_v2 = vpop.permute.xlu1 %1017 }
 0x105   : > { %2335 = vmatmul.mubr.msk.bf16.vlgmr.msra.gmra.mrb[4].mxu0 %vm682_vm1, %v2710_v14  ;;  %v2750_v31 = vld [vmem:[#allocation2 + $0x38] sm:$0xff]  ;;  %v1160_v3 = vmul.f32 %v2668_v50, %v2693_v1  ;;  %v765_v35 = vmul.f32 %v2687_v62, %v2742_v25  ;;  %v766_v36 = vmul.f32 %v2689_v63, %v2744_v28  ;;  %v1030_v42 = vmul.f32 %v2733_v22, %v982_v33  ;;  %v2777_v44 = vld [vmem:[#allocation2 + $0x21] sm:$0xff]  ;;  %v2788_v52 = vld [vmem:[#allocation2 + $0x29] sm:$0xff] }
 0x106   : > { %2324 = vmatprep.mubr.msk.bf16.mxu1 %vm682_vm1, %v767_v13  ;;  %2338 = vmatprep.mubr.msk.bf16.mxu0 %vm682_vm1, %v2719_v17  ;;  %v768_v5 = vpack.c.bf16 %v762_v18, %v761_v15  ;;  %v769_v24 = vpack.c.bf16 %v764_v21, %v763_v20  ;;  %v983_v4 = vld [vmem:[#allocation2 + $0x11] sm:$0xff]  ;;  %v2765_v37 = vpack.c.bf16 %v2752_v32, %v2750_v31  ;;  %v2779_v45 = vld [vmem:[#allocation2 + $0x19] sm:$0xff]  ;;  %v1435_v13 = vsel %vm784_vm3, %v1421_v30, 0  ;;  %v2452_v15 = vld [vmem:[%s3085_s7 + $0x4] ss:$0 sps:$4 sm:$0x44]  }
 0x107   : > { %2353 = vmatpush3.bf16.msra.mxu0 %v1189_v19  ;;  %v1031_v38 = vmul.f32 %v2735_v23, %v983_v4  ;;  %v1167_v41 = vpack.c.bf16 %v1160_v3, %v1159_v34  ;;  %v770_v43 = vpack.c.bf16 %v766_v36, %v765_v35  ;;  %v1161_v47 = vmul.f32 %v2664_v27, %v2700_v9  ;;  %v2790_v53 = vld [vmem:[#allocation2 + $0x31] sm:$0xff]  ;;  %v2819_v3 = vld [vmem:[#allocation2 + $0x39] sm:$0xff]  ;;  %v2821_v34 = vld [vmem:[#allocation2 + $0x41] sm:$0xff] }
 0x108   : > { %2325 = vmatmul.mubr.msk.bf16.vlgmr.msra.gmra.mrb[4].mxu1 %vm682_vm1, %v768_v5  ;;  %2431 = vmatprep.subr.msk.bf16.mxu0 %vm784_vm3, %v1421_v30  ;;  %v1163_v54 = vmul.f32 %v2678_v55, %v2706_v12  ;;  %v1164_v58 = vmul.f32 %v2680_v56, %v2742_v25  ;;  %v1032_v59 = vmul.f32 %v2769_v39, %v2779_v45  ;;  %v1671_v20 = vrot.slane %v2453_v49, 3  ;;  %v2814_v5 = vld [vmem:[#allocation2 + $0x47] sm:$0xff] }
 0x109   : > { %2328 = vmatprep.mubr.msk.bf16.mxu1 %vm682_vm1, %v769_v24  ;;  %2343 = vmatpush3.bf16.msra.mxu1 %v1060_v6  ;;  %v1038_v46 = vpack.c.bf16 %v1031_v38, %v1030_v42  ;;  %v1033_v60 = vmul.f32 %v2777_v44, %v2771_v40  ;;  %v1034_v16 = vmul.f32 %v2788_v52, %v2802_v61  ;;  %v1306_v24 = vsel %vm784_vm3, %v1292_v29, 0  ;;  %v2834_v42 = vpop.permute.xlu1 %1027 }
 0x10a   : > { %2430 = vmatprep.subr.msk.bf16.mxu1 %vm784_vm3, %v1292_v29  ;;  %v1035_v18 = vmul.f32 %v2790_v53, %v2804_v2  ;;  %v1168_v19 = vpack.c.bf16 %v1162_v48, %v1161_v47  ;;  %v1169_v21 = vpack.c.bf16 %v1164_v58, %v1163_v54  ;;  %v1550_v30 = vrot.slane %v2452_v15, 2 }
 0x10b   : > { %v1039_v6 = vpack.c.bf16 %v1033_v60, %v1032_v59  ;;  %v1165_v35 = vmul.f32 %v2687_v62, %v2744_v28  ;;  %v1166_v36 = vmul.f32 %v2814_v5, %v2689_v63  ;;  %v1405_v38 = vmul.f32 %v2733_v22, %v983_v4 }
 0x10c   : > { %v1040_v33 = vpack.c.bf16 %v1035_v18, %v1034_v16  ;;  %v1406_v29 = vmul.f32 %v2735_v23, %v2779_v45  ;;  %v1407_v49 = vmul.f32 %v2777_v44, %v2769_v39  ;;  %v1408_v54 = vmul.f32 %v2788_v52, %v2771_v40  ;;  %v1782_v18 = vld [vmem:[#allocation2 + $0x49] sm:$0xff] }
 0x10d   : > { %2339 = vmatmul.mubr.msk.bf16.gmra.mrb[8].mxu0 %vm682_vm1, %v2765_v37  ;;  %v1170_v47 = vpack.c.bf16 %v1166_v36, %v1165_v35  ;;  %v1288_v58 = vpack.c.bf16 %v2691_v0, %v2682_v57  ;;  %v1409_v59 = vmul.f32 %v2790_v53, %v2802_v61  ;;  %v1410_v60 = vmul.f32 %v2819_v3, %v2804_v2 }
 0x10e   : > { %2354 = vmatprep.mubr.msk.bf16.mxu0 %vm682_vm1, %v1167_v41  ;;  %v2832_v41 = vpop.permute.xlu0 %1022  ;;  %v1413_v4 = vpack.c.bf16 %v1406_v29, %v1405_v38  ;;  %v1685_v15 = vsel %vm784_vm3, %v1671_v20, 0  ;;  %v1289_v57 = vpack.c.bf16 %v2696_v7, %v2702_v10  ;;  %v1564_v0 = vsel %vm784_vm3, %v1550_v30, 0  ;;  %v1287_v10 = vld [vmem:[#allocation2 + $0x48] sm:$0xff] }
 0x10f   : > { %v1415_v16 = vpack.c.bf16 %v1410_v60, %v1409_v59 }
 0x110   : > { %2329 = vmatmul.mubr.msk.bf16.gmra.mrb[8].mxu1 %vm682_vm1, %v770_v43  ;;  %v1036_v43 = vmul.f32 %v2819_v3, %v2832_v41 }
 0x111   : > { %2344 = vmatprep.mubr.msk.bf16.mxu1 %vm682_vm1, %v1038_v46  ;;  %v1037_v46 = vmul.f32 %v2821_v34, %v2834_v42 }
 0x113   : > { %v1041_v48 = vpack.c.bf16 %v1037_v46, %v1036_v43 }
 0x115   : > { %2355 = vmatmul.mubr.msk.bf16.vlgmr.msra.gmra.mrb[12].mxu0 %vm682_vm1, %v1168_v19  ;;  %v1411_v19 = vmul.f32 %v2821_v34, %v2832_v41 }
 0x116   : > { %2358 = vmatprep.mubr.msk.bf16.mxu0 %vm682_vm1, %v1169_v21  ;;  %2373 = vmatpush3.bf16.msra.mxu0 %v1435_v13  ;;  %v1414_v13 = vpack.c.bf16 %v1408_v54, %v1407_v49  ;;  %v1412_v21 = vmul.f32 %v1782_v18, %v2834_v42 }
 0x117   : > { %2433 = vmatprep.subr.msk.bf16.mxu0 %vm784_vm3, %v1671_v20  ;;  %v1290_v20 = vpack.c.bf16 %v2750_v31, %v2698_v8  ;;  %v1291_v8 = vpack.c.bf16 %v1287_v10, %v2752_v32 }
 0x118   : > { %2345 = vmatmul.mubr.msk.bf16.vlgmr.msra.gmra.mrb[12].mxu1 %vm682_vm1, %v1039_v6  ;;  %v1796_v6 = vld [vmem:[%s3085_s7 + $0x8] sm:$0x1]  ;;  %v1416_v7 = vpack.c.bf16 %v1412_v21, %v1411_v19 }
 0x119   : > { %2348 = vmatprep.mubr.msk.bf16.mxu1 %vm682_vm1, %v1040_v33  ;;  %2363 = vmatpush3.bf16.msra.mxu1 %v1306_v24  ;;  %v1534_v24 = vmul.f32 %v2662_v26, %v2693_v1  ;;  %v1536_v33 = vmul.f32 %v2664_v27, %v2704_v11  ;;  %v1537_v26 = vmul.f32 %v2670_v51, %v2706_v12  ;;  %v1533_v27 = vld [vmem:[#allocation2 + $0x4f] sm:$0xff] }
 0x11a   : > { %2432 = vmatprep.subr.msk.bf16.mxu1 %vm784_vm3, %v1550_v30  ;;  %v1535_v30 = vmul.f32 %v2668_v50, %v2700_v9  ;;  %v1538_v50 = vmul.f32 %v2678_v55, %v2742_v25  ;;  %v1539_v1 = vmul.f32 %v2680_v56, %v2744_v28  ;;  %v1662_v51 = vld [vmem:[#allocation2 + $0x50] sm:$0xff]  ;;  %v1540_v55 = vmul.f32 %v2814_v5, %v2687_v62 }
 0x11b   : > { %v1543_v9 = vpack.c.bf16 %v1537_v26, %v1536_v33  ;;  %v1541_v56 = vmul.f32 %v1533_v27, %v2689_v63  ;;  %v1785_v11 = vmul.f32 %v2777_v44, %v2735_v23  ;;  %v1666_v12 = vpack.c.bf16 %v1662_v51, %v1287_v10 }
 0x11c   : > { %v1542_v31 = vpack.c.bf16 %v1535_v30, %v1534_v24  ;;  %v1544_v32 = vpack.c.bf16 %v1539_v1, %v1538_v50  ;;  %v1786_v62 = vmul.f32 %v2788_v52, %v2769_v39  ;;  %v1787_v63 = vmul.f32 %v2790_v53, %v2771_v40  ;;  %v1966_v40 = vld [vmem:[%s3089_s11] sm:$0x1] }
 0x11d   : > { %2359 = vmatmul.mubr.msk.bf16.gmra.mrb[16].mxu0 %vm682_vm1, %v1170_v47  ;;  %v1545_v25 = vpack.c.bf16 %v1541_v56, %v1540_v55  ;;  %v1788_v23 = vmul.f32 %v2819_v3, %v2802_v61  ;;  %v1790_v5 = vmul.f32 %v1782_v18, %v2832_v41  ;;  %v1987_v53 = vsel %vm784_vm3, %v1966_v40, 0 }
 0x11e   : > { %2374 = vmatprep.mubr.msk.bf16.mxu0 %vm682_vm1, %v1413_v4 }
 0x120   : > { %2349 = vmatmul.mubr.msk.bf16.gmra.mrb[16].mxu1 %vm682_vm1, %v1041_v48 }
 0x121   : > { %2364 = vmatprep.mubr.msk.bf16.mxu1 %vm682_vm1, %v1288_v58 }
 0x125   : > { %2375 = vmatmul.mubr.msk.bf16.vlgmr.msra.gmra.mrb[20].mxu0 %vm682_vm1, %v1414_v13 }
 0x126   : > { %2378 = vmatprep.mubr.msk.bf16.mxu0 %vm682_vm1, %v1415_v16  ;;  %2393 = vmatpush3.bf16.msra.mxu0 %v1685_v15 }
 0x127   : > { %2435 = vmatprep.subr.msk.bf16.mxu0 %vm784_vm3, %v1966_v40 }
 0x128   : > { %2365 = vmatmul.mubr.msk.bf16.vlgmr.msra.gmra.mrb[20].mxu1 %vm682_vm1, %v1289_v57 }
 0x129   : > { %2368 = vmatprep.mubr.msk.bf16.mxu1 %vm682_vm1, %v1290_v20  ;;  %2383 = vmatpush3.bf16.msra.mxu1 %v1564_v0 }
 0x12a   : > { %2434 = vmatprep.subr.msk.bf16.mxu1 %vm784_vm3, %v1796_v6 }
 0x12d   : > { %2379 = vmatmul.mubr.msk.bf16.gmra.mrb[24].mxu0 %vm682_vm1, %v1416_v7 }
 0x12e   : > { %2394 = vmatprep.mubr.msk.bf16.mxu0 %vm682_vm1, %v2710_v14  ;;  %v1810_v14 = vsel %vm784_vm3, %v1796_v6, 0 }
 0x130   : > { %2369 = vmatmul.mubr.msk.bf16.gmra.mrb[24].mxu1 %vm682_vm1, %v1291_v8 }
 0x131   : > { %2384 = vmatprep.mubr.msk.bf16.mxu1 %vm682_vm1, %v1542_v31 }
 0x135   : > { %2395 = vmatmul.mubr.msk.bf16.vlgmr.msra.gmra.mrb[28].mxu0 %vm682_vm1, %v2719_v17  ;;  %v1784_v17 = vmul.f32 %v2733_v22, %v2779_v45  ;;  %v1789_v22 = vmul.f32 %v2821_v34, %v2804_v2  ;;  %v1783_v45 = vld [vmem:[#allocation2 + $0x51] sm:$0xff] }
 0x136   : > { %2398 = vmatprep.mubr.msk.bf16.mxu0 %vm682_vm1, %v2765_v37  ;;  %v1793_v37 = vpack.c.bf16 %v1787_v63, %v1786_v62  ;;  %v1791_v39 = vmul.f32 %v1783_v45, %v2834_v42  ;;  %2413 = vmatpush3.bf16.msra.mxu0 %v1987_v53 }
 0x137   : > { %v1792_v28 = vpack.c.bf16 %v1785_v11, %v1784_v17  ;;  %v1794_v44 = vpack.c.bf16 %v1789_v22, %v1788_v23 }
 0x138   : > { %2385 = vmatmul.mubr.msk.bf16.vlgmr.msra.gmra.mrb[28].mxu1 %vm682_vm1, %v1543_v9  ;;  %v1795_v52 = vpack.c.bf16 %v1791_v39, %v1790_v5 }
 0x139   : > { %2388 = vmatprep.mubr.msk.bf16.mxu1 %vm682_vm1, %v1544_v32  ;;  %2403 = vmatpush3.bf16.msra.mxu1 %v1810_v14 }
 0x13d   : > { %2399 = vmatmul.mubr.msk.bf16.gmra.mrb[32].mxu0 %vm682_vm1, %v1666_v12 }
 0x140   : > { %2389 = vmatmul.mubr.msk.bf16.gmra.mrb[32].mxu1 %vm682_vm1, %v1545_v25 }
 0x141   : > { %2404 = vmatprep.mubr.msk.bf16.mxu1 %vm682_vm1, %v1792_v28 }
 0x148   : > { %2405 = vmatmul.mubr.msk.bf16.vlgmr.msra.gmra.mrb[36].mxu1 %vm682_vm1, %v1793_v37 }
 0x149   : > { %2408 = vmatprep.mubr.msk.bf16.mxu1 %vm682_vm1, %v1794_v44 }
 0x150   : > { %2409 = vmatmul.mubr.msk.bf16.gmra.mrb[40].mxu1 %vm682_vm1, %v1795_v52 }
 0x1d8   : > { %v2336_v61 = vpop.f32.mrb[4].mxu0 }
 0x1d9   : > { %v927_v2 = vpop.f32.mrb[5].mxu0 }
 0x1da   : > { %v2337_v3 = vpop.f32.mrb[6].mxu0 }
 0x1db   : > { %v2326_v34 = vpop.f32.mrb[4].mxu1  ;;  %v930_v35 = vpop.f32.mrb[7].mxu0 }
 0x1dc   : > { %855 = vst.msk [vmem:[#allocation3 + $0x10] sm:$0xff] %vm682_vm1, %v2326_v34  ;;  %v822_v36 = vpop.f32.mrb[5].mxu1 }
 0x1dd   : > { %853 = vst.msk [vmem:[#allocation3] sm:$0xff] %vm682_vm1, %v822_v36  ;;  %v2327_v38 = vpop.f32.mrb[6].mxu1 }
 0x1de   : > { %856 = vst.msk [vmem:[#allocation3 + $0x18] sm:$0xff] %vm682_vm1, %v2327_v38  ;;  %v825_v29 = vpop.f32.mrb[7].mxu1 }
 0x1df   : > { %854 = vst.msk [vmem:[#allocation3 + $0x8] sm:$0xff] %vm682_vm1, %v825_v29 }
 0x1e0   : > { %v2340_v41 = vpop.f32.mrb[8].mxu0 }
 0x1e1   : > { %v943_v42 = vpop.f32.mrb[9].mxu0 }
 0x1e2   : > { %v2341_v43 = vpop.f32.mrb[10].mxu0 }
 0x1e3   : > { %v960_v46 = vld [vmem:[#allocation3 + $0x10] sm:$0xff]  ;;  %v2330_v47 = vpop.f32.mrb[8].mxu1  ;;  %v946_v4 = vpop.f32.mrb[11].mxu0 }
 0x1e4   : > { %v968_v48 = vadd.f32 %v2336_v61, %v960_v46  ;;  %v958_v49 = vld [vmem:[#allocation3] sm:$0xff]  ;;  %859 = vst.msk [vmem:[#allocation3 + $0x30] sm:$0xff] %vm682_vm1, %v2330_v47  ;;  %v838_v54 = vpop.f32.mrb[9].mxu1 }
 0x1e5   : > { %v966_v58 = vadd.f32 %v958_v49, %v927_v2  ;;  %v961_v59 = vld [vmem:[#allocation3 + $0x18] sm:$0xff]  ;;  %857 = vst.msk [vmem:[#allocation3 + $0x20] sm:$0xff] %vm682_vm1, %v838_v54  ;;  %v2331_v60 = vpop.f32.mrb[10].mxu1 }
 0x1e6   : > { %976 = vst.msk [vmem:[#allocation3 + $0x10] sm:$0xff] %vm682_vm1, %v968_v48  ;;  %v969_v13 = vadd.f32 %v2337_v3, %v961_v59  ;;  %v959_v15 = vld [vmem:[#allocation3 + $0x8] sm:$0xff]  ;;  %860 = vst.msk [vmem:[#allocation3 + $0x38] sm:$0xff] %vm682_vm1, %v2331_v60  ;;  %v841_v16 = vpop.f32.mrb[11].mxu1 }
 0x1e7   : > { %974 = vst.msk [vmem:[#allocation3] sm:$0xff] %vm682_vm1, %v966_v58  ;;  %v967_v18 = vadd.f32 %v959_v15, %v930_v35  ;;  %858 = vst.msk [vmem:[#allocation3 + $0x28] sm:$0xff] %vm682_vm1, %v841_v16 }
 0x1e8   : > { %977 = vst.msk [vmem:[#allocation3 + $0x18] sm:$0xff] %vm682_vm1, %v969_v13  ;;  %v2356_v57 = vpop.f32.mrb[12].mxu0 }
 0x1e9   : > { %975 = vst.msk [vmem:[#allocation3 + $0x8] sm:$0xff] %vm682_vm1, %v967_v18  ;;  %v1225_v0 = vpop.f32.mrb[13].mxu0 }
 0x1ea   : > { %v2357_v19 = vpop.f32.mrb[14].mxu0 }
 0x1eb   : > { %v964_v21 = vld [vmem:[#allocation3 + $0x30] sm:$0xff]  ;;  %v2346_v20 = vpop.f32.mrb[12].mxu1  ;;  %v1228_v6 = vpop.f32.mrb[15].mxu0 }
 0x1ec   : > { %v972_v7 = vadd.f32 %v2340_v41, %v964_v21  ;;  %v962_v10 = vld [vmem:[#allocation3 + $0x20] sm:$0xff]  ;;  %v1096_v24 = vpop.f32.mrb[13].mxu1 }
 0x1ed   : > { %v970_v30 = vadd.f32 %v962_v10, %v943_v42  ;;  %v965_v8 = vld [vmem:[#allocation3 + $0x38] sm:$0xff]  ;;  %v1129_v31 = vld [vmem:[#allocation3 + $0x10] sm:$0xff]  ;;  %v2347_v33 = vpop.f32.mrb[14].mxu1 }
 0x1ee   : > { %980 = vst.msk [vmem:[#allocation3 + $0x30] sm:$0xff] %vm682_vm1, %v972_v7  ;;  %v973_v26 = vadd.f32 %v2341_v43, %v965_v8  ;;  %v963_v50 = vld [vmem:[#allocation3 + $0x28] sm:$0xff]  ;;  %v1137_v1 = vadd.f32 %v2346_v20, %v1129_v31  ;;  %v1127_v9 = vld [vmem:[#allocation3] sm:$0xff]  ;;  %v1099_v14 = vpop.f32.mrb[15].mxu1 }
 0x1ef   : > { %978 = vst.msk [vmem:[#allocation3 + $0x20] sm:$0xff] %vm682_vm1, %v970_v30  ;;  %v971_v32 = vadd.f32 %v963_v50, %v946_v4  ;;  %v1135_v27 = vadd.f32 %v1127_v9, %v1096_v24  ;;  %v1130_v51 = vld [vmem:[#allocation3 + $0x18] sm:$0xff] }
 0x1f0   : > { %981 = vst.msk [vmem:[#allocation3 + $0x38] sm:$0xff] %vm682_vm1, %v973_v26  ;;  %1145 = vst.msk [vmem:[#allocation3 + $0x10] sm:$0xff] %vm682_vm1, %v1137_v1  ;;  %v1138_v55 = vadd.f32 %v2347_v33, %v1130_v51  ;;  %v1128_v56 = vld [vmem:[#allocation3 + $0x8] sm:$0xff]  ;;  %v2360_v11 = vpop.f32.mrb[16].mxu0 }
 0x1f1   : > { %979 = vst.msk [vmem:[#allocation3 + $0x28] sm:$0xff] %vm682_vm1, %v971_v32  ;;  %1143 = vst.msk [vmem:[#allocation3] sm:$0xff] %vm682_vm1, %v1135_v27  ;;  %v1136_v12 = vadd.f32 %v1128_v56, %v1099_v14  ;;  %v1241_v17 = vpop.f32.mrb[17].mxu0 }
 0x1f2   : > { %1146 = vst.msk [vmem:[#allocation3 + $0x18] sm:$0xff] %vm682_vm1, %v1138_v55  ;;  %v2361_v25 = vpop.f32.mrb[18].mxu0 }
 0x1f3   : > { %1144 = vst.msk [vmem:[#allocation3 + $0x8] sm:$0xff] %vm682_vm1, %v1136_v12  ;;  %v2350_v28 = vpop.f32.mrb[16].mxu1  ;;  %v1244_v62 = vpop.f32.mrb[19].mxu0 }
 0x1f4   : > { %v1112_v63 = vpop.f32.mrb[17].mxu1 }
 0x1f5   : > { %v1133_v23 = vld [vmem:[#allocation3 + $0x30] sm:$0xff]  ;;  %v2351_v22 = vpop.f32.mrb[18].mxu1 }
 0x1f6   : > { %v1141_v37 = vadd.f32 %v2350_v28, %v1133_v23  ;;  %v1131_v44 = vld [vmem:[#allocation3 + $0x20] sm:$0xff]  ;;  %v1115_v45 = vpop.f32.mrb[19].mxu1 }
 0x1f7   : > { %v1139_v5 = vadd.f32 %v1131_v44, %v1112_v63  ;;  %v1134_v39 = vld [vmem:[#allocation3 + $0x38] sm:$0xff]  ;;  %v1258_v52 = vld [vmem:[#allocation3 + $0x10] sm:$0xff] }
 0x1f8   : > { %1149 = vst.msk [vmem:[#allocation3 + $0x30] sm:$0xff] %vm682_vm1, %v1141_v37  ;;  %v1142_v40 = vadd.f32 %v2351_v22, %v1134_v39  ;;  %v1132_v53 = vld [vmem:[#allocation3 + $0x28] sm:$0xff]  ;;  %v2947_v61 = vpop.f32.mrb[20].mxu0  ;;  %v1266_v2 = vadd.f32 %v2356_v57, %v1258_v52  ;;  %v1256_v3 = vld [vmem:[#allocation3] sm:$0xff] }
 0x1f9   : > { %1147 = vst.msk [vmem:[#allocation3 + $0x20] sm:$0xff] %vm682_vm1, %v1139_v5  ;;  %v1140_v34 = vadd.f32 %v1132_v53, %v1115_v45  ;;  %v2950_v35 = vpop.f32.mrb[21].mxu0  ;;  %v1264_v36 = vadd.f32 %v1256_v3, %v1225_v0  ;;  %v1259_v38 = vld [vmem:[#allocation3 + $0x18] sm:$0xff] }
 0x1fa   : > { %1150 = vst.msk [vmem:[#allocation3 + $0x38] sm:$0xff] %vm682_vm1, %v1142_v40  ;;  %1274 = vst.msk [vmem:[#allocation3 + $0x10] sm:$0xff] %vm682_vm1, %v1266_v2  ;;  %v2954_v29 = vpop.f32.mrb[22].mxu0  ;;  %v1267_v41 = vadd.f32 %v2357_v19, %v1259_v38  ;;  %v1257_v42 = vld [vmem:[#allocation3 + $0x8] sm:$0xff] }
 0x1fb   : > { %1148 = vst.msk [vmem:[#allocation3 + $0x28] sm:$0xff] %vm682_vm1, %v1140_v34  ;;  %v2366_v43 = vpop.f32.mrb[20].mxu1  ;;  %1272 = vst.msk [vmem:[#allocation3] sm:$0xff] %vm682_vm1, %v1264_v36  ;;  %v2958_v46 = vpop.f32.mrb[23].mxu0  ;;  %v1265_v47 = vadd.f32 %v1257_v42, %v1228_v6 }
 0x1fc   : > { %v1342_v4 = vpop.f32.mrb[21].mxu1  ;;  %1275 = vst.msk [vmem:[#allocation3 + $0x18] sm:$0xff] %vm682_vm1, %v1267_v41 }
 0x1fd   : > { %v2367_v48 = vpop.f32.mrb[22].mxu1  ;;  %1273 = vst.msk [vmem:[#allocation3 + $0x8] sm:$0xff] %vm682_vm1, %v1265_v47 }
 0x1fe   : > { %v1345_v49 = vpop.f32.mrb[23].mxu1 }
 0x1ff   : > { %v1262_v54 = vld [vmem:[#allocation3 + $0x30] sm:$0xff] }
 0x200   : > { %v2962_v58 = vpop.f32.mrb[24].mxu0  ;;  %v1270_v59 = vadd.f32 %v2360_v11, %v1262_v54  ;;  %v1260_v60 = vld [vmem:[#allocation3 + $0x20] sm:$0xff] }
 0x201   : > { %v1375_v13 = vld [vmem:[#allocation3 + $0x10] sm:$0xff]  ;;  %v2964_v15 = vpop.f32.mrb[25].mxu0  ;;  %v1268_v16 = vadd.f32 %v1260_v60, %v1241_v17  ;;  %v1263_v18 = vld [vmem:[#allocation3 + $0x38] sm:$0xff] }
 0x202   : > { %v1383_v57 = vadd.f32 %v2366_v43, %v1375_v13  ;;  %v1373_v0 = vld [vmem:[#allocation3] sm:$0xff]  ;;  %1278 = vst.msk [vmem:[#allocation3 + $0x30] sm:$0xff] %vm682_vm1, %v1270_v59  ;;  %v2967_v19 = vpop.f32.mrb[26].mxu0  ;;  %v1271_v21 = vadd.f32 %v2361_v25, %v1263_v18  ;;  %v1261_v20 = vld [vmem:[#allocation3 + $0x28] sm:$0xff] }
 0x203   : > { %v1381_v6 = vadd.f32 %v1373_v0, %v1342_v4  ;;  %v1376_v7 = vld [vmem:[#allocation3 + $0x18] sm:$0xff]  ;;  %v2370_v10 = vpop.f32.mrb[24].mxu1  ;;  %1276 = vst.msk [vmem:[#allocation3 + $0x20] sm:$0xff] %vm682_vm1, %v1268_v16  ;;  %v2970_v24 = vpop.f32.mrb[27].mxu0  ;;  %v1269_v30 = vadd.f32 %v1261_v20, %v1244_v62 }
 0x204   : > { %1391 = vst.msk [vmem:[#allocation3 + $0x10] sm:$0xff] %vm682_vm1, %v1383_v57  ;;  %v1384_v8 = vadd.f32 %v2367_v48, %v1376_v7  ;;  %v1374_v31 = vld [vmem:[#allocation3 + $0x8] sm:$0xff]  ;;  %v1358_v33 = vpop.f32.mrb[25].mxu1  ;;  %1279 = vst.msk [vmem:[#allocation3 + $0x38] sm:$0xff] %vm682_vm1, %v1271_v21 }
 0x205   : > { %1389 = vst.msk [vmem:[#allocation3] sm:$0xff] %vm682_vm1, %v1381_v6  ;;  %v1382_v26 = vadd.f32 %v1374_v31, %v1345_v49  ;;  %v2371_v50 = vpop.f32.mrb[26].mxu1  ;;  %1277 = vst.msk [vmem:[#allocation3 + $0x28] sm:$0xff] %vm682_vm1, %v1269_v30 }
 0x206   : > { %1392 = vst.msk [vmem:[#allocation3 + $0x18] sm:$0xff] %vm682_vm1, %v1384_v8  ;;  %v1361_v1 = vpop.f32.mrb[27].mxu1 }
 0x207   : > { %1390 = vst.msk [vmem:[#allocation3 + $0x8] sm:$0xff] %vm682_vm1, %v1382_v26 }
 0x208   : > { %v2978_v9 = vpop.f32.mrb[28].mxu0 }
 0x209   : > { %v1379_v14 = vld [vmem:[#allocation3 + $0x30] sm:$0xff]  ;;  %v2980_v32 = vpop.f32.mrb[29].mxu0 }
 0x20a   : > { %v1387_v27 = vadd.f32 %v2370_v10, %v1379_v14  ;;  %v1377_v51 = vld [vmem:[#allocation3 + $0x20] sm:$0xff]  ;;  %v2982_v55 = vpop.f32.mrb[30].mxu0 }
 0x20b   : > { %v1385_v56 = vadd.f32 %v1377_v51, %v1358_v33  ;;  %v1380_v11 = vld [vmem:[#allocation3 + $0x38] sm:$0xff]  ;;  %v1504_v12 = vld [vmem:[#allocation3 + $0x10] sm:$0xff]  ;;  %v2386_v17 = vpop.f32.mrb[28].mxu1  ;;  %v2984_v25 = vpop.f32.mrb[31].mxu0 }
 0x20c   : > { %1395 = vst.msk [vmem:[#allocation3 + $0x30] sm:$0xff] %vm682_vm1, %v1387_v27  ;;  %v1388_v28 = vadd.f32 %v2371_v50, %v1380_v11  ;;  %v1378_v62 = vld [vmem:[#allocation3 + $0x28] sm:$0xff]  ;;  %v1512_v63 = vadd.f32 %v2947_v61, %v1504_v12  ;;  %v1502_v23 = vld [vmem:[#allocation3] sm:$0xff]  ;;  %v1600_v22 = vpop.f32.mrb[29].mxu1 }
 0x20d   : > { %1393 = vst.msk [vmem:[#allocation3 + $0x20] sm:$0xff] %vm682_vm1, %v1385_v56  ;;  %v1386_v37 = vadd.f32 %v1378_v62, %v1361_v1  ;;  %v1510_v44 = vadd.f32 %v1502_v23, %v2950_v35  ;;  %v1505_v45 = vld [vmem:[#allocation3 + $0x18] sm:$0xff]  ;;  %v2387_v5 = vpop.f32.mrb[30].mxu1 }
 0x20e   : > { %1396 = vst.msk [vmem:[#allocation3 + $0x38] sm:$0xff] %vm682_vm1, %v1388_v28  ;;  %1520 = vst.msk [vmem:[#allocation3 + $0x10] sm:$0xff] %vm682_vm1, %v1512_v63  ;;  %v1513_v39 = vadd.f32 %v2954_v29, %v1505_v45  ;;  %v1503_v52 = vld [vmem:[#allocation3 + $0x8] sm:$0xff]  ;;  %v1603_v40 = vpop.f32.mrb[31].mxu1 }
 0x20f   : > { %1394 = vst.msk [vmem:[#allocation3 + $0x28] sm:$0xff] %vm682_vm1, %v1386_v37  ;;  %1518 = vst.msk [vmem:[#allocation3] sm:$0xff] %vm682_vm1, %v1510_v44  ;;  %v1511_v53 = vadd.f32 %v1503_v52, %v2958_v46 }
 0x210   : > { %1521 = vst.msk [vmem:[#allocation3 + $0x18] sm:$0xff] %vm682_vm1, %v1513_v39  ;;  %v2997_v61 = vpop.f32.mrb[32].mxu0 }
 0x211   : > { %1519 = vst.msk [vmem:[#allocation3 + $0x8] sm:$0xff] %vm682_vm1, %v1511_v53  ;;  %v3000_v2 = vpop.f32.mrb[33].mxu0 }
 0x212   : > { %v3002_v3 = vpop.f32.mrb[34].mxu0 }
 0x213   : > { %v1508_v34 = vld [vmem:[#allocation3 + $0x30] sm:$0xff]  ;;  %v2390_v35 = vpop.f32.mrb[32].mxu1  ;;  %v3004_v36 = vpop.f32.mrb[35].mxu0 }
 0x214   : > { %v1516_v38 = vadd.f32 %v2962_v58, %v1508_v34  ;;  %v1506_v29 = vld [vmem:[#allocation3 + $0x20] sm:$0xff]  ;;  %v1616_v41 = vpop.f32.mrb[33].mxu1 }
 0x215   : > { %v1633_v42 = vld [vmem:[#allocation3 + $0x10] sm:$0xff]  ;;  %v1514_v43 = vadd.f32 %v1506_v29, %v2964_v15  ;;  %v1509_v46 = vld [vmem:[#allocation3 + $0x38] sm:$0xff]  ;;  %v2391_v47 = vpop.f32.mrb[34].mxu1 }
 0x216   : > { %v1641_v4 = vadd.f32 %v2386_v17, %v1633_v42  ;;  %v1631_v48 = vld [vmem:[#allocation3] sm:$0xff]  ;;  %1524 = vst.msk [vmem:[#allocation3 + $0x30] sm:$0xff] %vm682_vm1, %v1516_v38  ;;  %v1517_v49 = vadd.f32 %v2967_v19, %v1509_v46  ;;  %v1507_v54 = vld [vmem:[#allocation3 + $0x28] sm:$0xff]  ;;  %v1619_v59 = vpop.f32.mrb[35].mxu1 }
 0x217   : > { %v1639_v60 = vadd.f32 %v1631_v48, %v1600_v22  ;;  %v1634_v13 = vld [vmem:[#allocation3 + $0x18] sm:$0xff]  ;;  %1522 = vst.msk [vmem:[#allocation3 + $0x20] sm:$0xff] %vm682_vm1, %v1514_v43  ;;  %v1515_v58 = vadd.f32 %v1507_v54, %v2970_v24  ;;  %v2211_v38 = vld [vmem:[%s3087_s9] ss:$0 sm:$0xff] }
 0x218   : > { %1649 = vst.msk [vmem:[#allocation3 + $0x10] sm:$0xff] %vm682_vm1, %v1641_v4  ;;  %v1642_v16 = vadd.f32 %v2387_v5, %v1634_v13  ;;  %v1632_v15 = vld [vmem:[#allocation3 + $0x8] sm:$0xff]  ;;  %1525 = vst.msk [vmem:[#allocation3 + $0x38] sm:$0xff] %vm682_vm1, %v1517_v49  ;;  %v2212_v54 = vld [vmem:[%s3088_s10] ss:$0 sm:$0xff] }
 0x219   : > { %1647 = vst.msk [vmem:[#allocation3] sm:$0xff] %vm682_vm1, %v1639_v60  ;;  %v1640_v18 = vadd.f32 %v1632_v15, %v1603_v40  ;;  %1523 = vst.msk [vmem:[#allocation3 + $0x28] sm:$0xff] %vm682_vm1, %v1515_v58 }
 0x21a   : > { %1650 = vst.msk [vmem:[#allocation3 + $0x18] sm:$0xff] %vm682_vm1, %v1642_v16 }
 0x21b   : > { %1648 = vst.msk [vmem:[#allocation3 + $0x8] sm:$0xff] %vm682_vm1, %v1640_v18  ;;  %v2406_v57 = vpop.f32.mrb[36].mxu1 }
 0x21c   : > { %v1846_v0 = vpop.f32.mrb[37].mxu1 }
 0x21d   : > { %v1637_v19 = vld [vmem:[#allocation3 + $0x30] sm:$0xff]  ;;  %v2407_v21 = vpop.f32.mrb[38].mxu1 }
 0x21e   : > { %v1645_v20 = vadd.f32 %v2390_v35, %v1637_v19  ;;  %v1635_v6 = vld [vmem:[#allocation3 + $0x20] sm:$0xff]  ;;  %v1849_v7 = vpop.f32.mrb[39].mxu1 }
 0x21f   : > { %v1643_v10 = vadd.f32 %v1635_v6, %v1616_v41  ;;  %v1638_v24 = vld [vmem:[#allocation3 + $0x38] sm:$0xff]  ;;  %v1754_v30 = vld [vmem:[#allocation3 + $0x10] sm:$0xff] }
 0x220   : > { %1653 = vst.msk [vmem:[#allocation3 + $0x30] sm:$0xff] %vm682_vm1, %v1645_v20  ;;  %v1646_v8 = vadd.f32 %v2391_v47, %v1638_v24  ;;  %v1636_v31 = vld [vmem:[#allocation3 + $0x28] sm:$0xff]  ;;  %v1762_v33 = vadd.f32 %v2978_v9, %v1754_v30  ;;  %v1752_v26 = vld [vmem:[#allocation3] sm:$0xff] }
 0x221   : > { %1651 = vst.msk [vmem:[#allocation3 + $0x20] sm:$0xff] %vm682_vm1, %v1643_v10  ;;  %v1644_v50 = vadd.f32 %v1636_v31, %v1619_v59  ;;  %v1760_v1 = vadd.f32 %v1752_v26, %v2980_v32  ;;  %v1755_v14 = vld [vmem:[#allocation3 + $0x18] sm:$0xff] }
 0x222   : > { %1654 = vst.msk [vmem:[#allocation3 + $0x38] sm:$0xff] %vm682_vm1, %v1646_v8  ;;  %1770 = vst.msk [vmem:[#allocation3 + $0x10] sm:$0xff] %vm682_vm1, %v1762_v33  ;;  %v1763_v27 = vadd.f32 %v2982_v55, %v1755_v14  ;;  %v1753_v51 = vld [vmem:[#allocation3 + $0x8] sm:$0xff] }
 0x223   : > { %1652 = vst.msk [vmem:[#allocation3 + $0x28] sm:$0xff] %vm682_vm1, %v1644_v50  ;;  %1768 = vst.msk [vmem:[#allocation3] sm:$0xff] %vm682_vm1, %v1760_v1  ;;  %v1761_v9 = vadd.f32 %v1753_v51, %v2984_v25  ;;  %v2410_v56 = vpop.f32.mrb[40].mxu1 }
 0x224   : > { %1771 = vst.msk [vmem:[#allocation3 + $0x18] sm:$0xff] %vm682_vm1, %v1763_v27  ;;  %v1862_v11 = vpop.f32.mrb[41].mxu1 }
 0x225   : > { %1769 = vst.msk [vmem:[#allocation3 + $0x8] sm:$0xff] %vm682_vm1, %v1761_v9  ;;  %v2411_v32 = vpop.f32.mrb[42].mxu1 }
 0x226   : > { %v1865_v12 = vpop.f32.mrb[43].mxu1 }
 0x227   : > { %v1758_v17 = vld [vmem:[#allocation3 + $0x30] sm:$0xff] }
 0x228   : > { %v1766_v28 = vadd.f32 %v2997_v61, %v1758_v17  ;;  %v1756_v62 = vld [vmem:[#allocation3 + $0x20] sm:$0xff] }
 0x229   : > { %v1879_v55 = vld [vmem:[#allocation3 + $0x10] sm:$0xff]  ;;  %v1764_v63 = vadd.f32 %v1756_v62, %v3000_v2  ;;  %v1759_v23 = vld [vmem:[#allocation3 + $0x38] sm:$0xff]  ;;  %v2210_v2 = vld [vmem:[%s3086_s8] ss:$0 sm:$0xff] }
 0x22a   : > { %v1887_v22 = vadd.f32 %v2406_v57, %v1879_v55  ;;  %v1877_v37 = vld [vmem:[#allocation3] sm:$0xff]  ;;  %1774 = vst.msk [vmem:[#allocation3 + $0x30] sm:$0xff] %vm682_vm1, %v1766_v28  ;;  %v1767_v25 = vadd.f32 %v3002_v3, %v1759_v23  ;;  %v1757_v44 = vld [vmem:[#allocation3 + $0x28] sm:$0xff] }
 0x22b   : > { %v1885_v45 = vadd.f32 %v1877_v37, %v1846_v0  ;;  %v1880_v5 = vld [vmem:[#allocation3 + $0x18] sm:$0xff]  ;;  %1772 = vst.msk [vmem:[#allocation3 + $0x20] sm:$0xff] %vm682_vm1, %v1764_v63  ;;  %v1765_v39 = vadd.f32 %v1757_v44, %v3004_v36  ;;  %v2213_v37 = vld [vmem:[%s3090_s12] ss:$0 sm:$0xff] }
 0x22c   : > { %1895 = vst.msk [vmem:[#allocation3 + $0x10] sm:$0xff] %vm682_vm1, %v1887_v22  ;;  %v1888_v52 = vadd.f32 %v2407_v21, %v1880_v5  ;;  %v1878_v40 = vld [vmem:[#allocation3 + $0x8] sm:$0xff]  ;;  %1775 = vst.msk [vmem:[#allocation3 + $0x38] sm:$0xff] %vm682_vm1, %v1767_v25 }
 0x22d   : > { %1893 = vst.msk [vmem:[#allocation3] sm:$0xff] %vm682_vm1, %v1885_v45  ;;  %v1886_v53 = vadd.f32 %v1878_v40, %v1849_v7  ;;  %1773 = vst.msk [vmem:[#allocation3 + $0x28] sm:$0xff] %vm682_vm1, %v1765_v39 }
 0x22e   : > { %1896 = vst.msk [vmem:[#allocation3 + $0x18] sm:$0xff] %vm682_vm1, %v1888_v52 }
 0x22f   : > { %1894 = vst.msk [vmem:[#allocation3 + $0x8] sm:$0xff] %vm682_vm1, %v1886_v53 }
 0x231   : > { %v1883_v61 = vld [vmem:[#allocation3 + $0x30] sm:$0xff] }
 0x232   : > { %v1891_v3 = vadd.f32 %v2410_v56, %v1883_v61  ;;  %v1881_v34 = vld [vmem:[#allocation3 + $0x20] sm:$0xff] }
 0x233   : > { %v1889_v35 = vadd.f32 %v1881_v34, %v1862_v11  ;;  %v1884_v36 = vld [vmem:[#allocation3 + $0x38] sm:$0xff]  ;;  %v1903_v29 = vld [vmem:[#allocation3 + $0x10] sm:$0xff] }
 0x234   : > { %1899 = vst.msk [vmem:[#allocation3 + $0x30] sm:$0xff] %vm682_vm1, %v1891_v3  ;;  %v1892_v41 = vadd.f32 %v2411_v32, %v1884_v36  ;;  %v1882_v42 = vld [vmem:[#allocation3 + $0x28] sm:$0xff]  ;;  %v1901_v43 = vld [vmem:[#allocation3] sm:$0xff]  ;;  %v1918_v46 = vadd.f32 %v2210_v2, %v1903_v29 }
 0x235   : > { %1897 = vst.msk [vmem:[#allocation3 + $0x20] sm:$0xff] %vm682_vm1, %v1889_v35  ;;  %v1890_v47 = vadd.f32 %v1882_v42, %v1865_v12  ;;  %v1916_v4 = vadd.f32 %v2210_v2, %v1901_v43  ;;  %v1904_v48 = vld [vmem:[#allocation3 + $0x18] sm:$0xff] }
 0x236   : > { %1900 = vst.msk [vmem:[#allocation3 + $0x38] sm:$0xff] %vm682_vm1, %v1892_v41  ;;  %v1902_v49 = vld [vmem:[#allocation3 + $0x8] sm:$0xff]  ;;  %v1919_v59 = vadd.f32 %v2210_v2, %v1904_v48  ;;  %v1933_v60 = vmul.f32 %v2211_v38, %v1918_v46 }
 0x237   : > { %1898 = vst.msk [vmem:[#allocation3 + $0x28] sm:$0xff] %vm682_vm1, %v1890_v47  ;;  %v1917_v13 = vadd.f32 %v2210_v2, %v1902_v49  ;;  %v1931_v58 = vmul.f32 %v2211_v38, %v1916_v4 }
 0x238   : > { %v1934_v16 = vmul.f32 %v2211_v38, %v1919_v59  ;;  %v1948_v57 = vadd.f32 %v2212_v54, %v1933_v60 }
 0x239   : > { %v1932_v15 = vmul.f32 %v2211_v38, %v1917_v13  ;;  %v1946_v18 = vadd.f32 %v2212_v54, %v1931_v58 }
 0x23a   : > { %v1949_v0 = vadd.f32 %v2212_v54, %v1934_v16  ;;  %v1956_v31 = vmax.f32 %v1948_v57, 0.0 }
 0x23b   : > { %v1947_v19 = vadd.f32 %v2212_v54, %v1932_v15  ;;  %v1907_v21 = vld [vmem:[#allocation3 + $0x30] sm:$0xff]  ;;  %v1954_v10 = vmax.f32 %v1946_v18, 0.0 }
 0x23c   : > { %v1957_v20 = vmax.f32 %v1949_v0, 0.0  ;;  %v1905_v6 = vld [vmem:[#allocation3 + $0x20] sm:$0xff]  ;;  %v1922_v7 = vadd.f32 %v2210_v2, %v1907_v21 }
 0x23d   : > { %v1955_v24 = vmax.f32 %v1947_v19, 0.0  ;;  %v1920_v30 = vadd.f32 %v2210_v2, %v1905_v6  ;;  %v1908_v8 = vld [vmem:[#allocation3 + $0x38] sm:$0xff] }
 0x23e   : > { %v1906_v33 = vld [vmem:[#allocation3 + $0x28] sm:$0xff]  ;;  %v1923_v26 = vadd.f32 %v2210_v2, %v1908_v8  ;;  %v1937_v50 = vmul.f32 %v2211_v38, %v1922_v7  ;;  %v1963_v51 = vpack.c.bf16 %v1957_v20, %v1956_v31 }
 0x23f   : > { %v1962_v1 = vpack.c.bf16 %v1955_v24, %v1954_v10  ;;  %v1921_v14 = vadd.f32 %v2210_v2, %v1906_v33  ;;  %v1935_v27 = vmul.f32 %v2211_v38, %v1920_v30 }
 0x240   : > { %v1938_v9 = vmul.f32 %v2211_v38, %v1923_v26  ;;  %v1952_v32 = vadd.f32 %v2212_v54, %v1937_v50 }
 0x241   : > { %2414 = vmatprep.mubr.msk.bf16.mxu0 %vm682_vm1, %v1962_v1  ;;  %v1936_v56 = vmul.f32 %v2211_v38, %v1921_v14  ;;  %v1950_v11 = vadd.f32 %v2212_v54, %v1935_v27 }
 0x242   : > { %2415 = vmatmul.mubr.msk.bf16.vlgmr.msra.gmra.mrb[36].mxu0 %vm682_vm1, %v1963_v51  ;;  %v1953_v12 = vadd.f32 %v2212_v54, %v1938_v9  ;;  %v1960_v63 = vmax.f32 %v1952_v32, 0.0 }
 0x243   : > { %v1951_v17 = vadd.f32 %v2212_v54, %v1936_v56  ;;  %v1958_v62 = vmax.f32 %v1950_v11, 0.0 }
 0x244   : > { %v1961_v28 = vmax.f32 %v1953_v12, 0.0 }
 0x245   : > { %v1959_v55 = vmax.f32 %v1951_v17, 0.0 }
 0x246   : > { %v1965_v22 = vpack.c.bf16 %v1961_v28, %v1960_v63 }
 0x247   : > { %v1964_v23 = vpack.c.bf16 %v1959_v55, %v1958_v62 }
 0x249   : > { %2418 = vmatprep.mubr.msk.bf16.mxu0 %vm682_vm1, %v1964_v23 }
 0x24a   : > { %2419 = vmatmul.mubr.msk.bf16.gmra.mrb[40].mxu0 %vm682_vm1, %v1965_v22 }
 0x315   : > { %v2416_v25 = vpop.f32.mrb[36].mxu0 }
 0x316   : > { %v2032_v44 = vadd.f32 %v2416_v25, %v2213_v37  ;;  %v2023_v45 = vpop.f32.mrb[37].mxu0 }
 0x317   : > { %v2024_v5 = vadd.f32 %v2213_v37, %v2023_v45  ;;  %v2417_v39 = vpop.f32.mrb[38].mxu0 }
 0x318   : > { %v2232_v52 = vpack.c.bf16 %v2032_v44, %v2032_v44  ;;  %v2035_v40 = vadd.f32 %v2417_v39, %v2213_v37  ;;  %v2026_v53 = vpop.f32.mrb[39].mxu0 }
 0x319   : > { %v2230_v61 = vpack.c.bf16 %v2024_v5, %v2024_v5  ;;  %v2027_v2 = vadd.f32 %v2213_v37, %v2026_v53 }
 0x31a   : > { %2089 = vst.msk [vmem:[%s494_s25 + $0x8] sm:$0xf] %vm2086_vm4, %v2232_v52  ;;  %v2233_v3 = vpack.c.bf16 %v2035_v40, %v2035_v40 }
 0x31b   : > { %2087 = vst.msk [vmem:[%s494_s25] sm:$0xf] %vm2086_vm4, %v2230_v61  ;;  %v2231_v34 = vpack.c.bf16 %v2027_v2, %v2027_v2 }
 0x31c   : > { %2090 = vst.msk [vmem:[%s494_s25 + $0xc] sm:$0xf] %vm2086_vm4, %v2233_v3 }
 0x31d   : > { %2088 = vst.msk [vmem:[%s494_s25 + $0x4] sm:$0xf] %vm2086_vm4, %v2231_v34  ;;  %v2420_v35 = vpop.f32.mrb[40].mxu0 }
 0x31e   : > { %v2048_v36 = vadd.f32 %v2420_v35, %v2213_v37  ;;  %v2039_v38 = vpop.f32.mrb[41].mxu0 }
 0x31f   : > { %v2040_v29 = vadd.f32 %v2213_v37, %v2039_v38  ;;  %v2421_v41 = vpop.f32.mrb[42].mxu0 }
 0x320   : > { %v2236_v42 = vpack.c.bf16 %v2048_v36, %v2048_v36  ;;  %v2051_v43 = vadd.f32 %v2421_v41, %v2213_v37  ;;  %v2042_v46 = vpop.f32.mrb[43].mxu0 }
 0x321   : > { %v2234_v47 = vpack.c.bf16 %v2040_v29, %v2040_v29  ;;  %v2043_v4 = vadd.f32 %v2213_v37, %v2042_v46 }
 0x322   : > { %2093 = vst.msk [vmem:[%s494_s25 + $0x18] sm:$0xf] %vm2086_vm4, %v2236_v42  ;;  %v2237_v48 = vpack.c.bf16 %v2051_v43, %v2051_v43 }
 0x323   : > { %2091 = vst.msk [vmem:[%s494_s25 + $0x10] sm:$0xf] %vm2086_vm4, %v2234_v47  ;;  %v2235_v49 = vpack.c.bf16 %v2043_v4, %v2043_v4 }
 0x324   : > { %2094 = vst.msk [vmem:[%s494_s25 + $0x1c] sm:$0xf] %vm2086_vm4, %v2237_v48 }
 0x325   : > { %2092 = vst.msk [vmem:[%s494_s25 + $0x14] sm:$0xf] %vm2086_vm4, %v2235_v49 }
 0x326 PF: > { %s25_s18 = sadd.s32 1, %s2460_s18  }
 0x327   : > { %p22_p4 = scmp.ge.s32.totalorder %s25_s18, 4  }
 0x329   :  { %24 = sbr.rel (!%p22_p4) target bundleno = 1 (0x1), region = 110 }

// kernel: hourglass_apply.15
= control target key start
LH: loop header
LB: loop body
LE: loop exit
PB: predicated region body
PF: predicated region fallthrough
CT: control target
= control target key end

     0   :  { %s1630_s18 = smov 0   ;;  %s1899_s0 = inlined_call_operand.vmem [shape: bf16[2,256,4], index: 0, kind: input, shape index: {}]   ;;  %s1900_s1 = inlined_call_operand.vmem [shape: bf16[2,64,4], index: 1, kind: input, shape index: {}]   ;;  %s1901_s2 = inlined_call_operand.vmem [shape: bf16[256,64], index: 2, kind: input, shape index: {}]   ;;  %s1902_s3 = inlined_call_operand.vmem [shape: bf16[4,4], index: 3, kind: input, shape index: {}]   ;;  %s1903_s4 = inlined_call_operand.vmem [shape: bf16[4,4], index: 4, kind: input, shape index: {}]   ;;  %s1904_s5 = inlined_call_operand.vmem [shape: bf16[2,256,4], index: 5, kind: output, shape index: {}]  }
   0x1 LB: > { %s1236_s19 = sadd.s32 4294967295, %s1598_s18   ;;  %p1240_p0 = scmp.ge.s32.totalorder %s1598_s18, 1  ;;  %s1598_s18 = sphi %s1630_s18, %s15_s18  }
   0x2   : > { %p197_p1 = scmp.lt.s32.totalorder %s1598_s18, 3 }
   0x4   : > { %p198_p2 = pnand %p1240_p0, %p197_p1 }
   0x5   : > { %v254_v0 = vld [vmem:[%s1903_s4] sm:$0x3] (!%p198_p2)  ;;  %vm288_vm0 = vcmask (!%p198_p2), 1041408   ;;  %p230_p3 = scmp.lt.s32.totalorder (!%p198_p2), %s1236_s19, 1  ;;  %vm275_vm1 = vcmask (!%p198_p2), 31744   ;;  %vm473_vm2 = vcmask (!%p198_p2), 523264  }
   0x6   : > { %201 = sbr.rel (%p198_p2) target bundleno = 527 (0x20f), region = 40  ;;  %1546 = vmatprep.subr.msk.bf16.mxu0 (!%p198_p2), %vm288_vm0, %v254_v0  ;;  %v290_v1 = vsel (!%p198_p2), %vm288_vm0, %v254_v0, 0  ;;  %v715_v6 = vld [vmem:[%s1902_s3] sm:$0x3] (!%p198_p2)  ;;  %v1563_v37 = vld [vmem:[%s1901_s2 + $0x8] sm:$0xff] (!%p198_p2)   ;;  %v1566_v38 = vld [vmem:[%s1901_s2 + $0x10] sm:$0xff] (!%p198_p2)  }
   0x7   : > { %1431 = vmatpush3.bf16.msra.mxu0 (!%p198_p2), %v290_v1  ;;  %1547 = vmatprep.subr.msk.bf16.mxu1 (!%p198_p2), %vm288_vm0, %v715_v6  ;;  %v845_v7 = vsel (!%p198_p2), %vm288_vm0, %v715_v6, 0  ;;  %v1562_v10 = vld [vmem:[%s1901_s2] sm:$0xff] (!%p198_p2)   ;;  %v1567_v39 = vld [vmem:[%s1901_s2 + $0x18] sm:$0xff] (!%p198_p2)   ;;  %v1571_v41 = vld [vmem:[%s1901_s2 + $0x28] sm:$0xff] (!%p198_p2)   ;;  %vm1136_vm3 = vcmask (!%p198_p2), 27648  }
   0x8   : > { %1481 = vmatpush3.bf16.msra.mxu1 (!%p198_p2), %v845_v7  ;;  %v1570_v40 = vld [vmem:[%s1901_s2 + $0x20] sm:$0xff] (!%p198_p2)   ;;  %v1574_v42 = vld [vmem:[%s1901_s2 + $0x30] sm:$0xff] (!%p198_p2)   ;;  %v1575_v43 = vld [vmem:[%s1901_s2 + $0x38] sm:$0xff] (!%p198_p2)  }
   0x9   : > { %v1578_v44 = vld [vmem:[%s1901_s2 + $0x40] sm:$0xff] (!%p198_p2)   ;;  %v1579_v45 = vld [vmem:[%s1901_s2 + $0x48] sm:$0xff] (!%p198_p2)   ;;  %v1582_v46 = vld [vmem:[%s1901_s2 + $0x50] sm:$0xff] (!%p198_p2)  }
   0xa   : > { %v1583_v47 = vld [vmem:[%s1901_s2 + $0x58] sm:$0xff] (!%p198_p2)   ;;  %v1586_v48 = vld [vmem:[%s1901_s2 + $0x60] sm:$0xff] (!%p198_p2)   ;;  %v1587_v49 = vld [vmem:[%s1901_s2 + $0x68] sm:$0xff] (!%p198_p2)  }
   0xb   : > { %v1590_v50 = vld [vmem:[%s1901_s2 + $0x70] sm:$0xff] (!%p198_p2)   ;;  %v1591_v51 = vld [vmem:[%s1901_s2 + $0x78] sm:$0xff] (!%p198_p2)  }
   0xd   : > { %s1906_s19 = smov (!%p230_p3, %s1236_s19), 1 }
   0xe   : > { %s1354_s22 = sshll.u32 %s1906_s19, 5  ;;  %s1353_s26 = sshll.u32 %s1906_s19, 7 }
   0xf   : > { %s239_s25 = scalar_lea.vmem %s1900_s1, %s1354_s22  ;;  %s1656_s29 = scalar_lea.vmem %s1899_s0, %s1353_s26 }
  0x10   : > { %v1556_v2 = vld [vmem:[%s239_s25] sm:$0xff]   ;;  %v1557_v3 = vld [vmem:[%s239_s25 + $0x8] sm:$0xff]   ;;  %v1558_v4 = vld [vmem:[%s239_s25 + $0x10] sm:$0xff]   ;;  %s1809_s21 = scalar_lea.vmem %s1904_s5, %s1353_s26 }
  0x11   : > { %1432 = vmatprep.mubr.msk.bf16.mxu0 %vm275_vm1, %v1556_v2  ;;  %v1559_v5 = vld [vmem:[%s239_s25 + $0x18] sm:$0xff]   ;;  %v1560_v8 = vld [vmem:[%s1656_s29] sm:$0xff]   ;;  %v1561_v9 = vld [vmem:[%s1656_s29 + $0x8] sm:$0xff]  }
  0x12   : > { %1433 = vmatmul.mubr.msk.bf16.vlgmr.msra.gmra.mrb[0].mxu0 %vm275_vm1, %v1557_v3  ;;  %1482 = vmatprep.mubr.msk.bf16.mxu1 %vm275_vm1, %v1560_v8  ;;  %v1564_v11 = vld [vmem:[%s1656_s29 + $0x10] sm:$0xff]   ;;  %v1565_v12 = vld [vmem:[%s1656_s29 + $0x18] sm:$0xff]   ;;  %v1568_v13 = vld [vmem:[%s1656_s29 + $0x20] sm:$0xff]  }
  0x13   : > { %1436 = vmatprep.mubr.msk.bf16.mxu0 %vm275_vm1, %v1558_v4  ;;  %1483 = vmatmul.mubr.msk.bf16.vlgmr.msra.gmra.mrb[0].mxu1 %vm275_vm1, %v1561_v9  ;;  %v1569_v14 = vld [vmem:[%s1656_s29 + $0x28] sm:$0xff]   ;;  %v1572_v15 = vld [vmem:[%s1656_s29 + $0x30] sm:$0xff]   ;;  %v1573_v16 = vld [vmem:[%s1656_s29 + $0x38] sm:$0xff]  }
  0x14   : > { %1486 = vmatprep.mubr.msk.bf16.mxu1 %vm275_vm1, %v1564_v11  ;;  %v1576_v17 = vld [vmem:[%s1656_s29 + $0x40] sm:$0xff]   ;;  %v1577_v18 = vld [vmem:[%s1656_s29 + $0x48] sm:$0xff]   ;;  %v1580_v19 = vld [vmem:[%s1656_s29 + $0x50] sm:$0xff]  }
  0x15   : > { %v1581_v20 = vld [vmem:[%s1656_s29 + $0x58] sm:$0xff]   ;;  %v1584_v21 = vld [vmem:[%s1656_s29 + $0x60] sm:$0xff]   ;;  %v1585_v22 = vld [vmem:[%s1656_s29 + $0x68] sm:$0xff]  }
  0x16   : > { %v1588_v23 = vld [vmem:[%s1656_s29 + $0x70] sm:$0xff]   ;;  %v1589_v24 = vld [vmem:[%s1656_s29 + $0x78] sm:$0xff]  }
  0x1a   : > { %1437 = vmatmul.mubr.msk.bf16.gmra.mrb[4].mxu0 %vm275_vm1, %v1559_v5 }
  0x1b   : > { %1448 = vmatprep.mubr.msk.bf16.mxu0 %vm473_vm2, %v1562_v10  ;;  %1487 = vmatmul.mubr.msk.bf16.gmra.mrb[4].mxu1 %vm275_vm1, %v1565_v12 }
  0x1c   : > { %1490 = vmatprep.mubr.msk.bf16.mxu1 %vm275_vm1, %v1568_v13 }
  0x23   : > { %1491 = vmatmul.mubr.msk.bf16.gmra.mrb[8].mxu1 %vm275_vm1, %v1569_v14 }
  0x24   : > { %1494 = vmatprep.mubr.msk.bf16.mxu1 %vm275_vm1, %v1572_v15 }
  0x2b   : > { %1495 = vmatmul.mubr.msk.bf16.gmra.mrb[12].mxu1 %vm275_vm1, %v1573_v16 }
  0x2c   : > { %1498 = vmatprep.mubr.msk.bf16.mxu1 %vm275_vm1, %v1576_v17 }
  0x33   : > { %1499 = vmatmul.mubr.msk.bf16.gmra.mrb[16].mxu1 %vm275_vm1, %v1577_v18 }
  0x34   : > { %1502 = vmatprep.mubr.msk.bf16.mxu1 %vm275_vm1, %v1580_v19 }
  0x3b   : > { %1503 = vmatmul.mubr.msk.bf16.gmra.mrb[20].mxu1 %vm275_vm1, %v1581_v20 }
  0x3c   : > { %1506 = vmatprep.mubr.msk.bf16.mxu1 %vm275_vm1, %v1584_v21 }
  0x43   : > { %1507 = vmatmul.mubr.msk.bf16.gmra.mrb[24].mxu1 %vm275_vm1, %v1585_v22 }
  0x44   : > { %1510 = vmatprep.mubr.msk.bf16.mxu1 %vm275_vm1, %v1588_v23 }
  0x4b   : > { %1511 = vmatmul.mubr.msk.bf16.gmra.mrb[28].mxu1 %vm275_vm1, %v1589_v24 }
  0xe5   : > { %v1434_v25 = vpop.f32.mrb[0].mxu0 }
  0xe6   : > { %v326_v26 = vpop.f32.mrb[1].mxu0  ;;  %v1484_v52 = vpop.f32.mrb[0].mxu1 }
  0xe7   : > { %v1435_v27 = vpop.f32.mrb[2].mxu0  ;;  %v881_v53 = vpop.f32.mrb[1].mxu1 }
  0xe8   : > { %v390_v28 = vpack.c.bf16 %v1435_v27, %v1434_v25  ;;  %v329_v29 = vpop.f32.mrb[3].mxu0  ;;  %v1485_v54 = vpop.f32.mrb[2].mxu1 }
  0xe9   : > { %v389_v30 = vpack.c.bf16 %v329_v29, %v326_v26  ;;  %v884_v55 = vpop.f32.mrb[3].mxu1 }
  0xeb   : > { %1440 = vmatprep.subr.bf16.mxu0 %v389_v30 }
  0xec   : > { %1441 = vmatpush3.bf16.msra.mxu0 %v389_v30 }
  0xed   : > { %v1438_v31 = vpop.f32.mrb[4].mxu0  ;;  %1442 = vmatprep.subr.bf16.mxu0 %v390_v28 }
  0xee   : > { %v342_v32 = vpop.f32.mrb[5].mxu0  ;;  %v1488_v56 = vpop.f32.mrb[4].mxu1 }
  0xef   : > { %v1439_v33 = vpop.f32.mrb[6].mxu0  ;;  %v897_v57 = vpop.f32.mrb[5].mxu1 }
  0xf0   : > { %v392_v34 = vpack.c.bf16 %v1439_v33, %v1438_v31  ;;  %v345_v35 = vpop.f32.mrb[7].mxu0  ;;  %1443 = vmatpush3.bf16.msra.mxu0 %v390_v28  ;;  %v1489_v58 = vpop.f32.mrb[6].mxu1 }
  0xf1   : > { %v391_v36 = vpack.c.bf16 %v345_v35, %v342_v32  ;;  %v900_v59 = vpop.f32.mrb[7].mxu1 }
  0xf3   : > { %1444 = vmatprep.subr.bf16.mxu0 %v391_v36 }
  0xf4   : > { %1445 = vmatpush3.bf16.msra.mxu0 %v391_v36 }
  0xf5   : > { %1446 = vmatprep.subr.bf16.mxu0 %v392_v34 }
  0xf6   : > { %v1492_v60 = vpop.f32.mrb[8].mxu1 }
  0xf7   : > { %v913_v61 = vpop.f32.mrb[9].mxu1 }
  0xf8   : > { %1447 = vmatpush3.bf16.msra.mxu0 %v392_v34  ;;  %v1493_v62 = vpop.f32.mrb[10].mxu1 }
  0xf9   : > { %v1762_v63 = vpop.f32.mrb[11].mxu1 }
  0xfb   : > { %1449 = vmatmul.mubr.msk.bf16.vlgmr.msra.gmra.mrb[8].mxu0 %vm473_vm2, %v1563_v37 }
  0xfc   : > { %1452 = vmatprep.mubr.msk.bf16.mxu0 %vm473_vm2, %v1566_v38 }
  0xfe   : > { %v1764_v0 = vpop.f32.mrb[12].mxu1 }
  0xff   : > { %v1766_v1 = vpop.f32.mrb[13].mxu1 }
 0x100   : > { %v1768_v2 = vpop.f32.mrb[14].mxu1 }
 0x101   : > { %v1770_v3 = vpop.f32.mrb[15].mxu1 }
 0x103   : > { %1453 = vmatmul.mubr.msk.bf16.gmra.mrb[12].mxu0 %vm473_vm2, %v1567_v39 }
 0x104   : > { %1456 = vmatprep.mubr.msk.bf16.mxu0 %vm473_vm2, %v1570_v40 }
 0x106   : > { %v1772_v4 = vpop.f32.mrb[16].mxu1 }
 0x107   : > { %v1774_v5 = vpop.f32.mrb[17].mxu1 }
 0x108   : > { %v1776_v6 = vpop.f32.mrb[18].mxu1 }
 0x109   : > { %v1778_v7 = vpop.f32.mrb[19].mxu1 }
 0x10b   : > { %1457 = vmatmul.mubr.msk.bf16.gmra.mrb[16].mxu0 %vm473_vm2, %v1571_v41 }
 0x10c   : > { %1460 = vmatprep.mubr.msk.bf16.mxu0 %vm473_vm2, %v1574_v42 }
 0x10e   : > { %v1780_v8 = vpop.f32.mrb[20].mxu1 }
 0x10f   : > { %v1782_v9 = vpop.f32.mrb[21].mxu1 }
 0x110   : > { %v1784_v10 = vpop.f32.mrb[22].mxu1 }
 0x111   : > { %v1786_v11 = vpop.f32.mrb[23].mxu1 }
 0x113   : > { %1461 = vmatmul.mubr.msk.bf16.gmra.mrb[20].mxu0 %vm473_vm2, %v1575_v43 }
 0x114   : > { %1464 = vmatprep.mubr.msk.bf16.mxu0 %vm473_vm2, %v1578_v44 }
 0x116   : > { %v1788_v12 = vpop.f32.mrb[24].mxu1 }
 0x117   : > { %v1790_v13 = vpop.f32.mrb[25].mxu1 }
 0x118   : > { %v1792_v14 = vpop.f32.mrb[26].mxu1 }
 0x119   : > { %v1794_v15 = vpop.f32.mrb[27].mxu1 }
 0x11b   : > { %1465 = vmatmul.mubr.msk.bf16.gmra.mrb[24].mxu0 %vm473_vm2, %v1579_v45 }
 0x11c   : > { %1468 = vmatprep.mubr.msk.bf16.mxu0 %vm473_vm2, %v1582_v46 }
 0x11e   : > { %v1796_v16 = vpop.f32.mrb[28].mxu1 }
 0x11f   : > { %v1798_v17 = vpop.f32.mrb[29].mxu1 }
 0x120   : > { %v1800_v18 = vpop.f32.mrb[30].mxu1 }
 0x121   : > { %v1802_v19 = vpop.f32.mrb[31].mxu1 }
 0x123   : > { %1469 = vmatmul.mubr.msk.bf16.gmra.mrb[28].mxu0 %vm473_vm2, %v1583_v47 }
 0x124   : > { %1472 = vmatprep.mubr.msk.bf16.mxu0 %vm473_vm2, %v1586_v48 }
 0x12b   : > { %1473 = vmatmul.mubr.msk.bf16.gmra.mrb[32].mxu0 %vm473_vm2, %v1587_v49 }
 0x12c   : > { %1476 = vmatprep.mubr.msk.bf16.mxu0 %vm473_vm2, %v1590_v50 }
 0x133   : > { %1477 = vmatmul.mubr.msk.bf16.gmra.mrb[36].mxu0 %vm473_vm2, %v1591_v51 }
 0x1ce   : > { %v1450_v20 = vpop.f32.mrb[8].mxu0 }
 0x1cf   : > { %v890_v21 = vadd.f32 %v1484_v52, %v1450_v20  ;;  %v556_v22 = vpop.f32.mrb[9].mxu0 }
 0x1d0   : > { %v882_v23 = vadd.f32 %v881_v53, %v556_v22  ;;  %v1451_v24 = vpop.f32.mrb[10].mxu0 }
 0x1d1   : > { %v1358_v25 = vpack.c.bf16 %v890_v21, %v890_v21  ;;  %v893_v26 = vadd.f32 %v1485_v54, %v1451_v24  ;;  %v559_v27 = vpop.f32.mrb[11].mxu0 }
 0x1d2   : > { %v1356_v28 = vpack.c.bf16 %v882_v23, %v882_v23  ;;  %v885_v29 = vadd.f32 %v884_v55, %v559_v27 }
 0x1d3   : > { %1139 = vst.msk [vmem:[%s1809_s21 + $0x8] sm:$0xf] %vm1136_vm3, %v1358_v25  ;;  %v1359_v30 = vpack.c.bf16 %v893_v26, %v893_v26 }
 0x1d4   : > { %1137 = vst.msk [vmem:[%s1809_s21] sm:$0xf] %vm1136_vm3, %v1356_v28  ;;  %v1357_v31 = vpack.c.bf16 %v885_v29, %v885_v29 }
 0x1d5   : > { %1140 = vst.msk [vmem:[%s1809_s21 + $0xc] sm:$0xf] %vm1136_vm3, %v1359_v30 }
 0x1d6   : > { %1138 = vst.msk [vmem:[%s1809_s21 + $0x4] sm:$0xf] %vm1136_vm3, %v1357_v31  ;;  %v1454_v32 = vpop.f32.mrb[12].mxu0 }
 0x1d7   : > { %v906_v33 = vadd.f32 %v1488_v56, %v1454_v32  ;;  %v572_v34 = vpop.f32.mrb[13].mxu0 }
 0x1d8   : > { %v898_v35 = vadd.f32 %v897_v57, %v572_v34  ;;  %v1455_v36 = vpop.f32.mrb[14].mxu0 }
 0x1d9   : > { %v1362_v37 = vpack.c.bf16 %v906_v33, %v906_v33  ;;  %v909_v38 = vadd.f32 %v1489_v58, %v1455_v36  ;;  %v575_v39 = vpop.f32.mrb[15].mxu0 }
 0x1da   : > { %v1360_v40 = vpack.c.bf16 %v898_v35, %v898_v35  ;;  %v901_v41 = vadd.f32 %v900_v59, %v575_v39 }
 0x1db   : > { %1143 = vst.msk [vmem:[%s1809_s21 + $0x18] sm:$0xf] %vm1136_vm3, %v1362_v37  ;;  %v1363_v42 = vpack.c.bf16 %v909_v38, %v909_v38 }
 0x1dc   : > { %1141 = vst.msk [vmem:[%s1809_s21 + $0x10] sm:$0xf] %vm1136_vm3, %v1360_v40  ;;  %v1361_v43 = vpack.c.bf16 %v901_v41, %v901_v41 }
 0x1dd   : > { %1144 = vst.msk [vmem:[%s1809_s21 + $0x1c] sm:$0xf] %vm1136_vm3, %v1363_v42 }
 0x1de   : > { %1142 = vst.msk [vmem:[%s1809_s21 + $0x14] sm:$0xf] %vm1136_vm3, %v1361_v43  ;;  %v1458_v44 = vpop.f32.mrb[16].mxu0 }
 0x1df   : > { %v922_v45 = vadd.f32 %v1492_v60, %v1458_v44  ;;  %v588_v46 = vpop.f32.mrb[17].mxu0 }
 0x1e0   : > { %v914_v47 = vadd.f32 %v913_v61, %v588_v46  ;;  %v1459_v48 = vpop.f32.mrb[18].mxu0 }
 0x1e1   : > { %v1366_v49 = vpack.c.bf16 %v922_v45, %v922_v45  ;;  %v925_v50 = vadd.f32 %v1493_v62, %v1459_v48  ;;  %v591_v51 = vpop.f32.mrb[19].mxu0 }
 0x1e2   : > { %v1364_v52 = vpack.c.bf16 %v914_v47, %v914_v47  ;;  %v917_v53 = vadd.f32 %v1762_v63, %v591_v51 }
 0x1e3   : > { %1147 = vst.msk [vmem:[%s1809_s21 + $0x28] sm:$0xf] %vm1136_vm3, %v1366_v49  ;;  %v1367_v54 = vpack.c.bf16 %v925_v50, %v925_v50 }
 0x1e4   : > { %1145 = vst.msk [vmem:[%s1809_s21 + $0x20] sm:$0xf] %vm1136_vm3, %v1364_v52  ;;  %v1365_v55 = vpack.c.bf16 %v917_v53, %v917_v53 }
 0x1e5   : > { %1148 = vst.msk [vmem:[%s1809_s21 + $0x2c] sm:$0xf] %vm1136_vm3, %v1367_v54 }
 0x1e6   : > { %1146 = vst.msk [vmem:[%s1809_s21 + $0x24] sm:$0xf] %vm1136_vm3, %v1365_v55  ;;  %v1462_v56 = vpop.f32.mrb[20].mxu0 }
 0x1e7   : > { %v938_v57 = vadd.f32 %v1764_v0, %v1462_v56  ;;  %v604_v58 = vpop.f32.mrb[21].mxu0 }
 0x1e8   : > { %v930_v59 = vadd.f32 %v1766_v1, %v604_v58  ;;  %v1463_v60 = vpop.f32.mrb[22].mxu0 }
 0x1e9   : > { %v1370_v61 = vpack.c.bf16 %v938_v57, %v938_v57  ;;  %v941_v62 = vadd.f32 %v1768_v2, %v1463_v60  ;;  %v607_v63 = vpop.f32.mrb[23].mxu0 }
 0x1ea   : > { %v1368_v20 = vpack.c.bf16 %v930_v59, %v930_v59  ;;  %v933_v21 = vadd.f32 %v1770_v3, %v607_v63 }
 0x1eb   : > { %1151 = vst.msk [vmem:[%s1809_s21 + $0x38] sm:$0xf] %vm1136_vm3, %v1370_v61  ;;  %v1371_v22 = vpack.c.bf16 %v941_v62, %v941_v62 }
 0x1ec   : > { %1149 = vst.msk [vmem:[%s1809_s21 + $0x30] sm:$0xf] %vm1136_vm3, %v1368_v20  ;;  %v1369_v23 = vpack.c.bf16 %v933_v21, %v933_v21 }
 0x1ed   : > { %1152 = vst.msk [vmem:[%s1809_s21 + $0x3c] sm:$0xf] %vm1136_vm3, %v1371_v22 }
 0x1ee   : > { %1150 = vst.msk [vmem:[%s1809_s21 + $0x34] sm:$0xf] %vm1136_vm3, %v1369_v23  ;;  %v1466_v0 = vpop.f32.mrb[24].mxu0 }
 0x1ef   : > { %v954_v1 = vadd.f32 %v1772_v4, %v1466_v0  ;;  %v620_v2 = vpop.f32.mrb[25].mxu0 }
 0x1f0   : > { %v946_v3 = vadd.f32 %v1774_v5, %v620_v2  ;;  %v1467_v24 = vpop.f32.mrb[26].mxu0 }
 0x1f1   : > { %v1374_v25 = vpack.c.bf16 %v954_v1, %v954_v1  ;;  %v957_v26 = vadd.f32 %v1776_v6, %v1467_v24  ;;  %v623_v27 = vpop.f32.mrb[27].mxu0 }
 0x1f2   : > { %v1372_v28 = vpack.c.bf16 %v946_v3, %v946_v3  ;;  %v949_v29 = vadd.f32 %v1778_v7, %v623_v27 }
 0x1f3   : > { %1155 = vst.msk [vmem:[%s1809_s21 + $0x48] sm:$0xf] %vm1136_vm3, %v1374_v25  ;;  %v1375_v30 = vpack.c.bf16 %v957_v26, %v957_v26 }
 0x1f4   : > { %1153 = vst.msk [vmem:[%s1809_s21 + $0x40] sm:$0xf] %vm1136_vm3, %v1372_v28  ;;  %v1373_v31 = vpack.c.bf16 %v949_v29, %v949_v29 }
 0x1f5   : > { %1156 = vst.msk [vmem:[%s1809_s21 + $0x4c] sm:$0xf] %vm1136_vm3, %v1375_v30 }
 0x1f6   : > { %1154 = vst.msk [vmem:[%s1809_s21 + $0x44] sm:$0xf] %vm1136_vm3, %v1373_v31  ;;  %v1470_v4 = vpop.f32.mrb[28].mxu0 }
 0x1f7   : > { %v970_v5 = vadd.f32 %v1780_v8, %v1470_v4  ;;  %v636_v6 = vpop.f32.mrb[29].mxu0 }
 0x1f8   : > { %v962_v7 = vadd.f32 %v1782_v9, %v636_v6  ;;  %v1471_v32 = vpop.f32.mrb[30].mxu0 }
 0x1f9   : > { %v1378_v33 = vpack.c.bf16 %v970_v5, %v970_v5  ;;  %v973_v34 = vadd.f32 %v1784_v10, %v1471_v32  ;;  %v639_v35 = vpop.f32.mrb[31].mxu0 }
 0x1fa   : > { %v1376_v36 = vpack.c.bf16 %v962_v7, %v962_v7  ;;  %v965_v37 = vadd.f32 %v1786_v11, %v639_v35 }
 0x1fb   : > { %1159 = vst.msk [vmem:[%s1809_s21 + $0x58] sm:$0xf] %vm1136_vm3, %v1378_v33  ;;  %v1379_v38 = vpack.c.bf16 %v973_v34, %v973_v34 }
 0x1fc   : > { %1157 = vst.msk [vmem:[%s1809_s21 + $0x50] sm:$0xf] %vm1136_vm3, %v1376_v36  ;;  %v1377_v39 = vpack.c.bf16 %v965_v37, %v965_v37 }
 0x1fd   : > { %1160 = vst.msk [vmem:[%s1809_s21 + $0x5c] sm:$0xf] %vm1136_vm3, %v1379_v38 }
 0x1fe   : > { %1158 = vst.msk [vmem:[%s1809_s21 + $0x54] sm:$0xf] %vm1136_vm3, %v1377_v39  ;;  %v1474_v8 = vpop.f32.mrb[32].mxu0 }
 0x1ff   : > { %v986_v9 = vadd.f32 %v1788_v12, %v1474_v8  ;;  %v652_v10 = vpop.f32.mrb[33].mxu0 }
 0x200   : > { %v978_v11 = vadd.f32 %v1790_v13, %v652_v10  ;;  %v1475_v40 = vpop.f32.mrb[34].mxu0 }
 0x201   : > { %v1382_v41 = vpack.c.bf16 %v986_v9, %v986_v9  ;;  %v989_v42 = vadd.f32 %v1792_v14, %v1475_v40  ;;  %v655_v43 = vpop.f32.mrb[35].mxu0 }
 0x202   : > { %v1380_v44 = vpack.c.bf16 %v978_v11, %v978_v11  ;;  %v981_v45 = vadd.f32 %v1794_v15, %v655_v43 }
 0x203   : > { %1163 = vst.msk [vmem:[%s1809_s21 + $0x68] sm:$0xf] %vm1136_vm3, %v1382_v41  ;;  %v1383_v46 = vpack.c.bf16 %v989_v42, %v989_v42 }
 0x204   : > { %1161 = vst.msk [vmem:[%s1809_s21 + $0x60] sm:$0xf] %vm1136_vm3, %v1380_v44  ;;  %v1381_v47 = vpack.c.bf16 %v981_v45, %v981_v45 }
 0x205   : > { %1164 = vst.msk [vmem:[%s1809_s21 + $0x6c] sm:$0xf] %vm1136_vm3, %v1383_v46 }
 0x206   : > { %1162 = vst.msk [vmem:[%s1809_s21 + $0x64] sm:$0xf] %vm1136_vm3, %v1381_v47  ;;  %v1478_v12 = vpop.f32.mrb[36].mxu0 }
 0x207   : > { %v1002_v13 = vadd.f32 %v1796_v16, %v1478_v12  ;;  %v668_v14 = vpop.f32.mrb[37].mxu0 }
 0x208   : > { %v994_v15 = vadd.f32 %v1798_v17, %v668_v14  ;;  %v1479_v48 = vpop.f32.mrb[38].mxu0 }
 0x209   : > { %v1386_v49 = vpack.c.bf16 %v1002_v13, %v1002_v13  ;;  %v1005_v50 = vadd.f32 %v1800_v18, %v1479_v48  ;;  %v671_v51 = vpop.f32.mrb[39].mxu0 }
 0x20a   : > { %v1384_v52 = vpack.c.bf16 %v994_v15, %v994_v15  ;;  %v997_v53 = vadd.f32 %v1802_v19, %v671_v51 }
 0x20b   : > { %1167 = vst.msk [vmem:[%s1809_s21 + $0x78] sm:$0xf] %vm1136_vm3, %v1386_v49  ;;  %v1387_v54 = vpack.c.bf16 %v1005_v50, %v1005_v50 }
 0x20c   : > { %1165 = vst.msk [vmem:[%s1809_s21 + $0x70] sm:$0xf] %vm1136_vm3, %v1384_v52  ;;  %v1385_v55 = vpack.c.bf16 %v997_v53, %v997_v53 }
 0x20d   : > { %1168 = vst.msk [vmem:[%s1809_s21 + $0x7c] sm:$0xf] %vm1136_vm3, %v1387_v54 }
 0x20e   : > { %1166 = vst.msk [vmem:[%s1809_s21 + $0x74] sm:$0xf] %vm1136_vm3, %v1385_v55 }
 0x20f PF: > { %s15_s18 = sadd.s32 1, %s1598_s18  }
 0x210   : > { %p12_p4 = scmp.ge.s32.totalorder %s15_s18, 4  }
 0x212   :  { %14 = sbr.rel (!%p12_p4) target bundleno = 1 (0x1), region = 73 }

// kernel: hourglass_apply.9
= control target key start
LH: loop header
LB: loop body
LE: loop exit
PB: predicated region body
PF: predicated region fallthrough
CT: control target
= control target key end

     0   :  { %s6470_s18 = smov 0   ;;  %s8477_s0 = inlined_call_operand.vmem [shape: bf16[2,256,4], index: 0, kind: input, shape index: {}]   ;;  %s8478_s1 = inlined_call_operand.vmem [shape: f32[1,4], index: 1, kind: input, shape index: {}]   ;;  %s8479_s2 = inlined_call_operand.vmem [shape: f32[1,4], index: 2, kind: input, shape index: {}]   ;;  %s8480_s3 = inlined_call_operand.vmem [shape: bf16[4,2], index: 3, kind: input, shape index: {}]   ;;  %s8481_s4 = inlined_call_operand.vmem [shape: f32[1,2], index: 4, kind: input, shape index: {}]   ;;  %s8482_s5 = inlined_call_operand.vmem [shape: f32[1,2], index: 5, kind: input, shape index: {}]   ;;  %s8483_s6 = inlined_call_operand.vmem [shape: f32[1,2], index: 6, kind: input, shape index: {}]   ;;  %s8484_s7 = inlined_call_operand.vmem [shape: bf16[18,2], index: 7, kind: input, shape index: {}]   ;;  %s8485_s8 = inlined_call_operand.vmem [shape: f32[1,2], index: 8, kind: input, shape index: {}]   ;;  %s8486_s9 = inlined_call_operand.vmem [shape: f32[1,2], index: 9, kind: input, shape index: {}]   ;;  %s8487_s10 = inlined_call_operand.vmem [shape: f32[1,2], index: 10, kind: input, shape index: {}]   ;;  %s8488_s11 = inlined_call_operand.vmem [shape: bf16[2,4], index: 11, kind: input, shape index: {}]   ;;  %s8489_s12 = inlined_call_operand.vmem [shape: f32[1,4], index: 12, kind: input, shape index: {}]   ;;  %s8490_s13 = inlined_call_operand.vmem [shape: f32[256,1], index: 13, kind: input, shape index: {}]   ;;  %s8491_s14 = inlined_call_operand.vmem [shape: f32[256,1], index: 14, kind: input, shape index: {}]   ;;  %s8492_s15 = inlined_call_operand.vmem [shape: bf16[2,256,4], index: 15, kind: output, shape index: {}]  }
   0x1 LB: > { %s5440_s19 = sadd.s32 4294967295, %s6386_s18   ;;  %p5444_p0 = scmp.ge.s32.totalorder %s6386_s18, 1  ;;  %s6386_s18 = sphi %s6470_s18, %s25_s18  }
   0x2   : > { %p437_p1 = scmp.lt.s32.totalorder %s6386_s18, 3 }
   0x4   : > { %p438_p2 = pnand %p5444_p0, %p437_p1 }
   0x6   : > { %441 = sbr.rel (%p438_p2) target bundleno = 1046 (0x416), region = 80 }
   0xd   : > { %v1059_v0 = vld [vmem:[%s8490_s13 + $0x10] sm:$0xff]  ;;  %v1057_v1 = vld [vmem:[%s8490_s13] sm:$0xff]  ;;  %vm743_vm0 = vcmask 1041408   ;;  %p485_p3 = scmp.lt.s32.totalorder %s5440_s19, 1  ;;  %v6388_v2 = vmov 0   ;;  %vm1018_vm1 = vcmask 15360  }
   0xe   : > { %6373 = vset.pattern.permute.xlu1 %v6388_v2  ;;  %6372 = vset.pattern.permute.xlu0 %v6388_v2  ;;  %v686_v3 = vld [vmem:[%s8480_s3] sm:$0x3]  ;;  %v6389_v4 = vmov 0.0   ;;  %v1060_v5 = vld [vmem:[%s8490_s13 + $0x18] sm:$0xff]  ;;  %v1058_v6 = vld [vmem:[%s8490_s13 + $0x8] sm:$0xff]  ;;  %vm694_vm2 = vcmask 31744  }
   0xf   : > { %1165 = vperm.xlu1 %6373, %v1059_v0   ;;  %1155 = vperm.xlu0 %6372, %v1057_v1   ;;  %s8795_s19 = smov (!%p485_p3, %s5440_s19), 1  ;;  %1019 = vst.msk [vmem:[#allocation2] sm:$0xff] %vm1018_vm1, %v6389_v4  ;;  %1020 = vst.msk [vmem:[#allocation2 + $0x8] sm:$0xff] %vm1018_vm1, %v6389_v4  ;;  %v745_v7 = vsel %vm743_vm0, %v686_v3, 0  ;;  %v1062_v8 = vld [vmem:[%s8490_s13 + $0x28] sm:$0xff]  ;;  %v1061_v13 = vld [vmem:[%s8490_s13 + $0x20] sm:$0xff] }
  0x10   : > { %1021 = vst.msk [vmem:[#allocation2 + $0x10] sm:$0xff] %vm1018_vm1, %v6389_v4  ;;  %1022 = vst.msk [vmem:[#allocation2 + $0x118] sm:$0xff] %vm1018_vm1, %v6389_v4  ;;  %6350 = vmatprep.subr.msk.bf16.mxu0 %vm743_vm0, %v686_v3  ;;  %6351 = vmatprep.subr.msk.bf16.mxu1 %vm743_vm0, %v686_v3  ;;  %s5674_s30 = sshll.u32 %s8795_s19, 7  ;;  %v6518_v9 = vld [vmem:[%s8478_s1] ss:$0 sm:$0xff]  ;;  %v1064_v33 = vld [vmem:[%s8490_s13 + $0x38] sm:$0xff] }
  0x11   : > { %1023 = vst.msk [vmem:[#allocation2 + $0x120] sm:$0xff] %vm1018_vm1, %v6389_v4  ;;  %1024 = vst.msk [vmem:[#allocation2 + $0x128] sm:$0xff] %vm1018_vm1, %v6389_v4  ;;  %5975 = vmatpush3.bf16.msra.mxu0 %v745_v7  ;;  %6349 = vmatpush3.bf16.msra.mxu1 %v745_v7  ;;  %s6513_s22 = scalar_lea.vmem %s8477_s0, %s5674_s30  ;;  %v6531_v20 = vld [vmem:[%s8479_s2] ss:$0 sm:$0xff]  ;;  %v1063_v34 = vld [vmem:[%s8490_s13 + $0x30] sm:$0xff]  ;;  %vm1410_vm3 = vcmask 1040384   ;;  %s8377_s27 = scalar_lea.vmem %s8492_s15, %s5674_s30 }
  0x12   : > { %v5709_v10 = vld [vmem:[%s6513_s22] sm:$0xff]   ;;  %v5772_v12 = vld [vmem:[%s6513_s22 + $0x8] sm:$0xff]   ;;  %v5773_v19 = vld [vmem:[%s6513_s22 + $0x10] sm:$0xff]   ;;  %vm5352_vm4 = vcmask 27648  }
  0x13   : > { %1170 = vperm.xlu1 %6373, %v1060_v5   ;;  %1160 = vperm.xlu0 %6372, %v1058_v6   ;;  %v5779_v11 = vld [vmem:[%s6513_s22 + $0x40] sm:$0xff]   ;;  %v5710_v14 = vunpack.c.l.bf16 %v5709_v10  ;;  %v5711_v15 = vunpack.c.h.bf16 %v5709_v10  ;;  %v5780_v18 = vld [vmem:[%s6513_s22 + $0x48] sm:$0xff]   ;;  %v5714_v21 = vunpack.c.l.bf16 %v5772_v12  ;;  %v5715_v22 = vunpack.c.h.bf16 %v5772_v12  ;;  %v5781_v47 = vld [vmem:[%s6513_s22 + $0x50] sm:$0xff]  }
  0x14   : > { %v5742_v16 = vunpack.c.l.bf16 %v5779_v11  ;;  %v5743_v17 = vunpack.c.h.bf16 %v5779_v11  ;;  %v5746_v23 = vunpack.c.l.bf16 %v5780_v18  ;;  %v5747_v24 = vunpack.c.h.bf16 %v5780_v18  ;;  %v5774_v52 = vld [vmem:[%s6513_s22 + $0x18] sm:$0xff]   ;;  %v1066_v55 = vld [vmem:[%s8490_s13 + $0x48] sm:$0xff]  ;;  %v1065_v56 = vld [vmem:[%s8490_s13 + $0x40] sm:$0xff] }
  0x15   : > { %v567_v25 = vmul.f32 %v5710_v14, %v6518_v9  ;;  %v568_v26 = vmul.f32 %v5711_v15, %v6518_v9  ;;  %v569_v29 = vmul.f32 %v5714_v21, %v6518_v9  ;;  %v570_v30 = vmul.f32 %v5715_v22, %v6518_v9  ;;  %v5782_v59 = vld [vmem:[%s6513_s22 + $0x58] sm:$0xff]   ;;  %v1067_v11 = vld [vmem:[%s8490_s13 + $0x50] sm:$0xff] }
  0x16   : > { %v583_v27 = vmul.f32 %v5742_v16, %v6518_v9  ;;  %v584_v28 = vmul.f32 %v5743_v17, %v6518_v9  ;;  %v585_v31 = vmul.f32 %v5746_v23, %v6518_v9  ;;  %v5718_v32 = vunpack.c.l.bf16 %v5773_v19  ;;  %v1068_v10 = vld [vmem:[%s8490_s13 + $0x58] sm:$0xff] }
  0x17   : > { %1180 = vperm.xlu1 %6373, %v1062_v8   ;;  %1175 = vperm.xlu0 %6372, %v1061_v13   ;;  %v606_v35 = vadd.f32 %v6531_v20, %v567_v25  ;;  %v607_v36 = vadd.f32 %v6531_v20, %v568_v26  ;;  %v608_v39 = vadd.f32 %v6531_v20, %v569_v29  ;;  %v5719_v57 = vunpack.c.h.bf16 %v5773_v19  ;;  %v5775_v8 = vld [vmem:[%s6513_s22 + $0x20] sm:$0xff]  }
  0x18   : > { %v622_v37 = vadd.f32 %v6531_v20, %v583_v27  ;;  %v623_v38 = vadd.f32 %v6531_v20, %v584_v28  ;;  %v609_v40 = vadd.f32 %v6531_v20, %v570_v30  ;;  %v586_v41 = vmul.f32 %v5747_v24, %v6518_v9  ;;  %v5783_v29 = vld [vmem:[%s6513_s22 + $0x60] sm:$0xff]  }
  0x19   : > { %v624_v42 = vadd.f32 %v6531_v20, %v585_v31  ;;  %v638_v43 = vmax.f32 %v606_v35, 0.0  ;;  %v639_v44 = vmax.f32 %v607_v36, 0.0  ;;  %v640_v48 = vmax.f32 %v608_v39, 0.0  ;;  %v1070_v31 = vld [vmem:[%s8490_s13 + $0x68] sm:$0xff] }
  0x1a   : > { %v654_v45 = vmax.f32 %v622_v37, 0.0  ;;  %v655_v46 = vmax.f32 %v623_v38, 0.0  ;;  %v641_v49 = vmax.f32 %v609_v40, 0.0  ;;  %v625_v50 = vadd.f32 %v6531_v20, %v586_v41  ;;  %v5776_v35 = vld [vmem:[%s6513_s22 + $0x28] sm:$0xff]   ;;  %v1069_v37 = vld [vmem:[%s8490_s13 + $0x60] sm:$0xff] }
  0x1b   : > { %1190 = vperm.xlu1 %6373, %v1064_v33   ;;  %1185 = vperm.xlu0 %6372, %v1063_v34   ;;  %v656_v51 = vmax.f32 %v624_v42, 0.0  ;;  %v670_v53 = vpack.c.bf16 %v639_v44, %v638_v43  ;;  %v571_v58 = vmul.f32 %v5718_v32, %v6518_v9  ;;  %v5750_v62 = vunpack.c.l.bf16 %v5781_v47  ;;  %v5784_v41 = vld [vmem:[%s6513_s22 + $0x68] sm:$0xff]  }
  0x1c   : > { %v678_v54 = vpack.c.bf16 %v655_v46, %v654_v45  ;;  %v671_v60 = vpack.c.bf16 %v641_v49, %v640_v48  ;;  %v657_v61 = vmax.f32 %v625_v50, 0.0  ;;  %v5751_v63 = vunpack.c.h.bf16 %v5781_v47  ;;  %v1072_v50 = vld [vmem:[%s8490_s13 + $0x78] sm:$0xff] }
  0x1d   : > { %5976 = vmatprep.mubr.msk.bf16.mxu0 %vm694_vm2, %v670_v53  ;;  %v572_v0 = vmul.f32 %v5719_v57, %v6518_v9  ;;  %v610_v1 = vadd.f32 %v6531_v20, %v571_v58  ;;  %v5722_v2 = vunpack.c.l.bf16 %v5774_v52  ;;  %v5723_v3 = vunpack.c.h.bf16 %v5774_v52  ;;  %v1071_v57 = vld [vmem:[%s8490_s13 + $0x70] sm:$0xff] }
  0x1e   : > { %5992 = vmatprep.mubr.msk.bf16.mxu1 %vm694_vm2, %v678_v54  ;;  %v679_v4 = vpack.c.bf16 %v657_v61, %v656_v51  ;;  %v587_v5 = vmul.f32 %v5750_v62, %v6518_v9  ;;  %v588_v6 = vmul.f32 %v5751_v63, %v6518_v9  ;;  %v5754_v7 = vunpack.c.l.bf16 %v5782_v59  ;;  %5977 = vmatmul.mubr.msk.bf16.vlgmr.msra.gmra.mrb[0].mxu0 %vm694_vm2, %v671_v60 }
  0x1f   : > { %1200 = vperm.xlu1 %6373, %v1066_v55   ;;  %1195 = vperm.xlu0 %6372, %v1065_v56   ;;  %v611_v12 = vadd.f32 %v6531_v20, %v572_v0  ;;  %v642_v13 = vmax.f32 %v610_v1, 0.0  ;;  %v573_v14 = vmul.f32 %v5722_v2, %v6518_v9  ;;  %v574_v15 = vmul.f32 %v5723_v3, %v6518_v9  ;;  %v5777_v55 = vld [vmem:[%s6513_s22 + $0x30] sm:$0xff]  }
  0x20   : > { %5993 = vmatmul.mubr.msk.bf16.vlgmr.msra.gmra.mrb[0].mxu1 %vm694_vm2, %v679_v4  ;;  %v626_v16 = vadd.f32 %v6531_v20, %v587_v5  ;;  %v627_v17 = vadd.f32 %v6531_v20, %v588_v6  ;;  %v5755_v18 = vunpack.c.h.bf16 %v5782_v59  ;;  %v589_v19 = vmul.f32 %v5754_v7, %v6518_v9  ;;  %v5785_v1 = vld [vmem:[%s6513_s22 + $0x70] sm:$0xff]  }
  0x21   : > { %v643_v21 = vmax.f32 %v611_v12, 0.0  ;;  %v612_v22 = vadd.f32 %v6531_v20, %v573_v14  ;;  %v613_v23 = vadd.f32 %v6531_v20, %v574_v15  ;;  %v5726_v24 = vunpack.c.l.bf16 %v5775_v8  ;;  %v1073_v12 = vld [vmem:[%s8490_s13 + $0x80] sm:$0xff] }
  0x22   : > { %v658_v25 = vmax.f32 %v626_v16, 0.0  ;;  %v659_v26 = vmax.f32 %v627_v17, 0.0  ;;  %v590_v27 = vmul.f32 %v5755_v18, %v6518_v9  ;;  %v628_v28 = vadd.f32 %v6531_v20, %v589_v19  ;;  %v5778_v17 = vld [vmem:[%s6513_s22 + $0x38] sm:$0xff]  }
  0x23   : > { %1210 = vperm.xlu1 %6373, %v1068_v10   ;;  %1205 = vperm.xlu0 %6372, %v1067_v11   ;;  %v672_v30 = vpack.c.bf16 %v643_v21, %v642_v13  ;;  %v644_v32 = vmax.f32 %v612_v22, 0.0  ;;  %v645_v33 = vmax.f32 %v613_v23, 0.0  ;;  %v5727_v34 = vunpack.c.h.bf16 %v5775_v8  ;;  %v1074_v10 = vld [vmem:[%s8490_s13 + $0x88] sm:$0xff]  ;;  %v5786_v23 = vld [vmem:[%s6513_s22 + $0x78] sm:$0xff]  }
  0x24   : > { %v680_v36 = vpack.c.bf16 %v659_v26, %v658_v25  ;;  %v629_v38 = vadd.f32 %v6531_v20, %v590_v27  ;;  %v660_v39 = vmax.f32 %v628_v28, 0.0  ;;  %v575_v40 = vmul.f32 %v5726_v24, %v6518_v9 }
  0x25   : > { %5980 = vmatprep.mubr.msk.bf16.mxu0 %vm694_vm2, %v672_v30  ;;  %v673_v42 = vpack.c.bf16 %v645_v33, %v644_v32  ;;  %v576_v43 = vmul.f32 %v5727_v34, %v6518_v9  ;;  %v5758_v44 = vunpack.c.l.bf16 %v5783_v29  ;;  %v5759_v45 = vunpack.c.h.bf16 %v5783_v29  ;;  %v1076_v29 = vld [vmem:[%s8490_s13 + $0x98] sm:$0xff]  ;;  %v1075_v33 = vld [vmem:[%s8490_s13 + $0x90] sm:$0xff] }
  0x26   : > { %5996 = vmatprep.mubr.msk.bf16.mxu1 %vm694_vm2, %v680_v36  ;;  %v661_v46 = vmax.f32 %v629_v38, 0.0  ;;  %v614_v47 = vadd.f32 %v6531_v20, %v575_v40  ;;  %v5730_v48 = vunpack.c.l.bf16 %v5776_v35  ;;  %v5731_v49 = vunpack.c.h.bf16 %v5776_v35 }
  0x27   : > { %1220 = vperm.xlu1 %6373, %v1070_v31   ;;  %1215 = vperm.xlu0 %6372, %v1069_v37   ;;  %v615_v51 = vadd.f32 %v6531_v20, %v576_v43  ;;  %v591_v52 = vmul.f32 %v5758_v44, %v6518_v9  ;;  %v592_v53 = vmul.f32 %v5759_v45, %v6518_v9  ;;  %v5762_v54 = vunpack.c.l.bf16 %v5784_v41 }
  0x28   : > { %5981 = vmatmul.mubr.msk.bf16.gmra.mrb[4].mxu0 %vm694_vm2, %v673_v42  ;;  %v681_v56 = vpack.c.bf16 %v661_v46, %v660_v39  ;;  %v646_v58 = vmax.f32 %v614_v47, 0.0  ;;  %v577_v59 = vmul.f32 %v5730_v48, %v6518_v9  ;;  %v578_v60 = vmul.f32 %v5731_v49, %v6518_v9  ;;  %v1078_v47 = vld [vmem:[%s8490_s13 + $0xa8] sm:$0xff] }
  0x29   : > { %v647_v61 = vmax.f32 %v615_v51, 0.0  ;;  %v630_v62 = vadd.f32 %v6531_v20, %v591_v52  ;;  %v631_v63 = vadd.f32 %v6531_v20, %v592_v53  ;;  %v5763_v0 = vunpack.c.h.bf16 %v5784_v41  ;;  %v1077_v52 = vld [vmem:[%s8490_s13 + $0xa0] sm:$0xff] }
  0x2a   : > { %5997 = vmatmul.mubr.msk.bf16.gmra.mrb[4].mxu1 %vm694_vm2, %v681_v56  ;;  %v616_v2 = vadd.f32 %v6531_v20, %v577_v59  ;;  %v617_v3 = vadd.f32 %v6531_v20, %v578_v60  ;;  %v593_v4 = vmul.f32 %v5762_v54, %v6518_v9  ;;  %v5734_v5 = vunpack.c.l.bf16 %v5777_v55 }
  0x2b   : > { %1230 = vperm.xlu1 %6373, %v1072_v50   ;;  %1225 = vperm.xlu0 %6372, %v1071_v57   ;;  %v674_v6 = vpack.c.bf16 %v647_v61, %v646_v58  ;;  %v662_v7 = vmax.f32 %v630_v62, 0.0  ;;  %v663_v8 = vmax.f32 %v631_v63, 0.0  ;;  %v594_v11 = vmul.f32 %v5763_v0, %v6518_v9  ;;  %v1080_v61 = vld [vmem:[%s8490_s13 + $0xb8] sm:$0xff]  ;;  %v1079_v63 = vld [vmem:[%s8490_s13 + $0xb0] sm:$0xff] }
  0x2c   : > { %v648_v13 = vmax.f32 %v616_v2, 0.0  ;;  %v649_v14 = vmax.f32 %v617_v3, 0.0  ;;  %v632_v15 = vadd.f32 %v6531_v20, %v593_v4  ;;  %v5735_v16 = vunpack.c.h.bf16 %v5777_v55  ;;  %v1084_v2 = vld [vmem:[%s8490_s13 + $0xd8] sm:$0xff]  ;;  %v1083_v3 = vld [vmem:[%s8490_s13 + $0xd0] sm:$0xff]  ;;  %v1086_v4 = vld [vmem:[%s8490_s13 + $0xe8] sm:$0xff] }
  0x2d   : > { %5984 = vmatprep.mubr.msk.bf16.mxu0 %vm694_vm2, %v674_v6  ;;  %v682_v18 = vpack.c.bf16 %v663_v8, %v662_v7  ;;  %v633_v19 = vadd.f32 %v6531_v20, %v594_v11  ;;  %v579_v21 = vmul.f32 %v5734_v5, %v6518_v9  ;;  %v5766_v22 = vunpack.c.l.bf16 %v5785_v1  ;;  %v1085_v5 = vld [vmem:[%s8490_s13 + $0xe0] sm:$0xff]  ;;  %v1088_v6 = vld [vmem:[%s8490_s13 + $0xf8] sm:$0xff]  ;;  %v1087_v7 = vld [vmem:[%s8490_s13 + $0xf0] sm:$0xff] }
  0x2e   : > { %v675_v24 = vpack.c.bf16 %v649_v14, %v648_v13  ;;  %v664_v25 = vmax.f32 %v632_v15, 0.0  ;;  %v580_v26 = vmul.f32 %v5735_v16, %v6518_v9  ;;  %v5767_v27 = vunpack.c.h.bf16 %v5785_v1  ;;  %v1081_v1 = vld [vmem:[%s8490_s13 + $0xc0] sm:$0xff]  ;;  %v1090_v8 = vld [vmem:[%s8491_s14 + $0x8] sm:$0xff]  ;;  %v1092_v11 = vld [vmem:[%s8491_s14 + $0x18] sm:$0xff] }
  0x2f   : > { %1240 = vperm.xlu1 %6373, %v1074_v10   ;;  %6000 = vmatprep.mubr.msk.bf16.mxu1 %vm694_vm2, %v682_v18  ;;  %v665_v28 = vmax.f32 %v633_v19, 0.0  ;;  %v618_v30 = vadd.f32 %v6531_v20, %v579_v21  ;;  %v595_v31 = vmul.f32 %v5766_v22, %v6518_v9  ;;  %v5738_v32 = vunpack.c.l.bf16 %v5778_v17  ;;  %v1089_v10 = vld [vmem:[%s8491_s14] sm:$0xff]  ;;  %v1094_v13 = vld [vmem:[%s8491_s14 + $0x28] sm:$0xff]  ;;  %v1096_v15 = vld [vmem:[%s8491_s14 + $0x38] sm:$0xff] }
  0x30   : > { %1235 = vperm.xlu0 %6372, %v1073_v12   ;;  %5985 = vmatmul.mubr.msk.bf16.gmra.mrb[8].mxu0 %vm694_vm2, %v675_v24  ;;  %v619_v34 = vadd.f32 %v6531_v20, %v580_v26  ;;  %v596_v35 = vmul.f32 %v5767_v27, %v6518_v9  ;;  %v5739_v36 = vunpack.c.h.bf16 %v5778_v17  ;;  %v5770_v37 = vunpack.c.l.bf16 %v5786_v23  ;;  %v1091_v12 = vld [vmem:[%s8491_s14 + $0x10] sm:$0xff]  ;;  %v1093_v14 = vld [vmem:[%s8491_s14 + $0x20] sm:$0xff]  ;;  %v1098_v17 = vld [vmem:[%s8491_s14 + $0x48] sm:$0xff] }
  0x31   : > { %v683_v38 = vpack.c.bf16 %v665_v28, %v664_v25  ;;  %v650_v39 = vmax.f32 %v618_v30, 0.0  ;;  %v634_v40 = vadd.f32 %v6531_v20, %v595_v31  ;;  %v581_v41 = vmul.f32 %v5738_v32, %v6518_v9  ;;  %v1095_v16 = vld [vmem:[%s8491_s14 + $0x30] sm:$0xff]  ;;  %v1097_v18 = vld [vmem:[%s8491_s14 + $0x40] sm:$0xff]  ;;  %v1100_v19 = vld [vmem:[%s8491_s14 + $0x58] sm:$0xff] }
  0x32   : > { %v651_v42 = vmax.f32 %v619_v34, 0.0  ;;  %v635_v43 = vadd.f32 %v6531_v20, %v596_v35  ;;  %v582_v44 = vmul.f32 %v5739_v36, %v6518_v9  ;;  %v5771_v45 = vunpack.c.h.bf16 %v5786_v23  ;;  %v1099_v21 = vld [vmem:[%s8491_s14 + $0x50] sm:$0xff]  ;;  %v1102_v22 = vld [vmem:[%s8491_s14 + $0x68] sm:$0xff]  ;;  %v1101_v23 = vld [vmem:[%s8491_s14 + $0x60] sm:$0xff] }
  0x33   : > { %1250 = vperm.xlu1 %6373, %v1076_v29   ;;  %6001 = vmatmul.mubr.msk.bf16.gmra.mrb[8].mxu1 %vm694_vm2, %v683_v38  ;;  %v666_v46 = vmax.f32 %v634_v40, 0.0  ;;  %v620_v48 = vadd.f32 %v6531_v20, %v581_v41  ;;  %v597_v49 = vmul.f32 %v5770_v37, %v6518_v9  ;;  %v1361_v24 = vld [vmem:[%s8484_s7] sm:$0x1]  ;;  %v1104_v25 = vld [vmem:[%s8491_s14 + $0x78] sm:$0xff]  ;;  %v1103_v26 = vld [vmem:[%s8491_s14 + $0x70] sm:$0xff] }
  0x34   : > { %1245 = vperm.xlu0 %6372, %v1075_v33   ;;  %v676_v50 = vpack.c.bf16 %v651_v42, %v650_v39  ;;  %v667_v51 = vmax.f32 %v635_v43, 0.0  ;;  %v621_v53 = vadd.f32 %v6531_v20, %v582_v44  ;;  %v598_v54 = vmul.f32 %v5771_v45, %v6518_v9  ;;  %6352 = vmatprep.subr.msk.bf16.mxu1 %vm1410_vm3, %v1361_v24  ;;  %v1106_v28 = vld [vmem:[%s8491_s14 + $0x88] sm:$0xff]  ;;  %v1105_v29 = vld [vmem:[%s8491_s14 + $0x80] sm:$0xff]  ;;  %v1108_v30 = vld [vmem:[%s8491_s14 + $0x98] sm:$0xff] }
  0x35   : > { %v652_v55 = vmax.f32 %v620_v48, 0.0  ;;  %v636_v56 = vadd.f32 %v6531_v20, %v597_v49  ;;  %v1412_v27 = vsel %vm1410_vm3, %v1361_v24, 0  ;;  %v1107_v31 = vld [vmem:[%s8491_s14 + $0x90] sm:$0xff]  ;;  %v1110_v32 = vld [vmem:[%s8491_s14 + $0xa8] sm:$0xff]  ;;  %v1109_v33 = vld [vmem:[%s8491_s14 + $0xa0] sm:$0xff] }
  0x36   : > { %5988 = vmatprep.mubr.msk.bf16.mxu0 %vm694_vm2, %v676_v50  ;;  %v684_v57 = vpack.c.bf16 %v667_v51, %v666_v46  ;;  %v653_v58 = vmax.f32 %v621_v53, 0.0  ;;  %v637_v59 = vadd.f32 %v6531_v20, %v598_v54  ;;  %v1082_v20 = vld [vmem:[%s8490_s13 + $0xc8] sm:$0xff]  ;;  %6009 = vmatpush3.bf16.msra.mxu1 %v1412_v27  ;;  %v1112_v34 = vld [vmem:[%s8491_s14 + $0xb8] sm:$0xff]  ;;  %v1111_v35 = vld [vmem:[%s8491_s14 + $0xb0] sm:$0xff] }
  0x37   : > { %1260 = vperm.xlu1 %6373, %v1078_v47   ;;  %v668_v60 = vmax.f32 %v636_v56, 0.0  ;;  %v1114_v36 = vld [vmem:[%s8491_s14 + $0xc8] sm:$0xff]  ;;  %v1113_v37 = vld [vmem:[%s8491_s14 + $0xc0] sm:$0xff]  ;;  %v1116_v38 = vld [vmem:[%s8491_s14 + $0xd8] sm:$0xff] }
  0x38   : > { %1255 = vperm.xlu0 %6372, %v1077_v52   ;;  %6004 = vmatprep.mubr.msk.bf16.mxu1 %vm694_vm2, %v684_v57  ;;  %v677_v62 = vpack.c.bf16 %v653_v58, %v652_v55  ;;  %v669_v9 = vmax.f32 %v637_v59, 0.0  ;;  %v1115_v39 = vld [vmem:[%s8491_s14 + $0xd0] sm:$0xff]  ;;  %v1118_v40 = vld [vmem:[%s8491_s14 + $0xe8] sm:$0xff]  ;;  %v1117_v41 = vld [vmem:[%s8491_s14 + $0xe0] sm:$0xff] }
  0x39   : > { %v6374_v42 = vld [vmem:[%s8484_s7] ss:$0 sps:$4 sm:$0x22]   ;;  %v1120_v43 = vld [vmem:[%s8491_s14 + $0xf8] sm:$0xff]  ;;  %v1119_v45 = vld [vmem:[%s8491_s14 + $0xf0] sm:$0xff] }
  0x3a   : > { %5989 = vmatmul.mubr.msk.bf16.gmra.mrb[12].mxu0 %vm694_vm2, %v677_v62  ;;  %v685_v0 = vpack.c.bf16 %v669_v9, %v668_v60  ;;  %v1659_v44 = vrot.slane %v6374_v42, 1  ;;  %v1607_v47 = vld [vmem:[#allocation2 + $0x8] sm:$0xff]  ;;  %v1608_v48 = vld [vmem:[#allocation2 + $0x10] sm:$0xff]  ;;  %v6831_v9 = vld [vmem:[%s8484_s7] ss:$0 sps:$4 sm:$0x44]  }
  0x3b   : > { %1270 = vperm.xlu1 %6373, %v1080_v61   ;;  %v1639_v49 = vpack.c.bf16 %v1608_v48, %v1607_v47  ;;  %v1121_v52 = vld [vmem:[#allocation2 + $0x7] sm:$0xff]  ;;  %v1122_v53 = vld [vmem:[#allocation2 + $0xf] sm:$0xff] }
  0x3c   : > { %1265 = vperm.xlu0 %6372, %v1079_v63   ;;  %6005 = vmatmul.mubr.msk.bf16.gmra.mrb[12].mxu1 %vm694_vm2, %v685_v0  ;;  %v1709_v46 = vsel %vm1410_vm3, %v1659_v44, 0  ;;  %v8493_v63 = vrot.slane %v6831_v9, 2 }
  0x3d   : > { %6353 = vmatprep.subr.msk.bf16.mxu0 %vm1410_vm3, %v1659_v44  ;;  %6044 = vmatprep.mubr.msk.bf16.mxu0 %vm1018_vm1, %v1639_v49  ;;  %v6942_v49 = vld [vmem:[%s8482_s5] ss:$0 sm:$0xff] }
  0x3e   : > { %6043 = vmatpush3.bf16.msra.mxu0 %v1709_v46  ;;  %6354 = vmatprep.subr.msk.bf16.mxu1 %vm1410_vm3, %v8493_v63 }
  0x3f   : > { %1280 = vperm.xlu1 %6373, %v1082_v20  }
  0x40   : > { %1275 = vperm.xlu0 %6372, %v1081_v1  }
  0x43   : > { %1290 = vperm.xlu1 %6373, %v1084_v2  }
  0x44   : > { %1285 = vperm.xlu0 %6372, %v1083_v3  }
  0x47   : > { %1300 = vperm.xlu1 %6373, %v1086_v4  }
  0x48   : > { %1295 = vperm.xlu0 %6372, %v1085_v5  }
  0x4b   : > { %1310 = vperm.xlu1 %6373, %v1088_v6  }
  0x4c   : > { %1305 = vperm.xlu0 %6372, %v1087_v7  }
  0x4f   : > { %2007 = vperm.xlu1 %6373, %v1090_v8  }
  0x50   : > { %2002 = vperm.xlu0 %6372, %v1089_v10  }
  0x53   : > { %2017 = vperm.xlu1 %6373, %v1092_v11  }
  0x54   : > { %2012 = vperm.xlu0 %6372, %v1091_v12  }
  0x57   : > { %2027 = vperm.xlu1 %6373, %v1094_v13  }
  0x58   : > { %2022 = vperm.xlu0 %6372, %v1093_v14  }
  0x5b   : > { %2037 = vperm.xlu1 %6373, %v1096_v15  }
  0x5c   : > { %2032 = vperm.xlu0 %6372, %v1095_v16  }
  0x5f   : > { %2047 = vperm.xlu1 %6373, %v1098_v17  }
  0x60   : > { %2042 = vperm.xlu0 %6372, %v1097_v18  }
  0x63   : > { %2057 = vperm.xlu1 %6373, %v1100_v19  }
  0x64   : > { %2052 = vperm.xlu0 %6372, %v1099_v21  }
  0x67   : > { %2067 = vperm.xlu1 %6373, %v1102_v22   ;;  %v6882_v22 = vld [vmem:[%s8484_s7] ss:$0 sps:$4 sm:$0x88]  }
  0x68   : > { %2062 = vperm.xlu0 %6372, %v1101_v23   ;;  %v8494_v24 = vrot.slane %v6882_v22, 3 }
  0x6a   : > { %6355 = vmatprep.subr.msk.bf16.mxu0 %vm1410_vm3, %v8494_v24 }
  0x6b   : > { %2077 = vperm.xlu1 %6373, %v1104_v25  }
  0x6c   : > { %2072 = vperm.xlu0 %6372, %v1103_v26  }
  0x6f   : > { %2087 = vperm.xlu1 %6373, %v1106_v28  }
  0x70   : > { %2082 = vperm.xlu0 %6372, %v1105_v29  }
  0x73   : > { %2097 = vperm.xlu1 %6373, %v1108_v30  }
  0x74   : > { %2092 = vperm.xlu0 %6372, %v1107_v31  }
  0x77   : > { %2107 = vperm.xlu1 %6373, %v1110_v32  }
  0x78   : > { %2102 = vperm.xlu0 %6372, %v1109_v33  }
  0x7b   : > { %2117 = vperm.xlu1 %6373, %v1112_v34  }
  0x7c   : > { %2112 = vperm.xlu0 %6372, %v1111_v35  }
  0x7f   : > { %2127 = vperm.xlu1 %6373, %v1114_v36  }
  0x80   : > { %2122 = vperm.xlu0 %6372, %v1113_v37  }
  0x83   : > { %2137 = vperm.xlu1 %6373, %v1116_v38  }
  0x84   : > { %2132 = vperm.xlu0 %6372, %v1115_v39  }
  0x87   : > { %2147 = vperm.xlu1 %6373, %v1118_v40  }
  0x88   : > { %2142 = vperm.xlu0 %6372, %v1117_v41  }
  0x8b   : > { %2157 = vperm.xlu1 %6373, %v1120_v43  }
  0x8c   : > { %2152 = vperm.xlu0 %6372, %v1119_v45   ;;  %v6933_v45 = vld [vmem:[%s8481_s4] ss:$0 sm:$0xff] }
  0x8e   : > { %v6809_v50 = vpop.permute.xlu1 %1165  ;;  %v6811_v51 = vpop.permute.xlu0 %1155 }
  0x8f   : > { %8598 = vst [vmem:[#allocation4_spill] sm:$0xff] %v6809_v50  ;;  %8599 = vst [vmem:[#allocation5_spill] sm:$0xff] %v6811_v51  ;;  %v1313_v54 = vmul.f32 %v6811_v51, %v1121_v52 }
  0x92   : > { %v6814_v55 = vpop.permute.xlu1 %1170  ;;  %v6816_v56 = vpop.permute.xlu0 %1160 }
  0x93   : > { %8600 = vst [vmem:[#allocation6_spill] sm:$0xff] %v6814_v55  ;;  %8601 = vst [vmem:[#allocation7_spill] sm:$0xff] %v6816_v56  ;;  %v1314_v57 = vmul.f32 %v6816_v56, %v1122_v53 }
  0x95   : > { %v1345_v58 = vpack.c.bf16 %v1314_v57, %v1313_v54  ;;  %v6948_v57 = vld [vmem:[%s8483_s6] ss:$0 sm:$0xff] }
  0x96   : > { %v6819_v59 = vpop.permute.xlu1 %1180  ;;  %v6821_v60 = vpop.permute.xlu0 %1175 }
  0x97   : > { %8602 = vst [vmem:[#allocation8_spill] sm:$0xff] %v6819_v59  ;;  %8603 = vst [vmem:[#allocation9_spill] sm:$0xff] %v6821_v60  ;;  %6010 = vmatprep.mubr.msk.bf16.mxu1 %vm1018_vm1, %v1345_v58 }
  0x9a   : > { %v6824_v61 = vpop.permute.xlu1 %1190  ;;  %v6826_v62 = vpop.permute.xlu0 %1185 }
  0x9b   : > { %8604 = vst [vmem:[#allocation10_spill] sm:$0xff] %v6824_v61  ;;  %8605 = vst [vmem:[#allocation11_spill] sm:$0xff] %v6826_v62 }
  0x9e   : > { %v6834_v0 = vpop.permute.xlu1 %1200  ;;  %v6836_v20 = vpop.permute.xlu0 %1195 }
  0x9f   : > { %8606 = vst [vmem:[#allocation12_spill] sm:$0xff] %v6834_v0  ;;  %8607 = vst [vmem:[#allocation13_spill] sm:$0xff] %v6836_v20 }
  0xa2   : > { %v6841_v1 = vpop.permute.xlu1 %1210  ;;  %v6843_v2 = vpop.permute.xlu0 %1205 }
  0xa3   : > { %8608 = vst [vmem:[#allocation14_spill] sm:$0xff] %v6841_v1  ;;  %8609 = vst [vmem:[#allocation15_spill] sm:$0xff] %v6843_v2 }
  0xa6   : > { %v6845_v3 = vpop.permute.xlu1 %1220  ;;  %v6847_v4 = vpop.permute.xlu0 %1215 }
  0xa7   : > { %8610 = vst [vmem:[#allocation16_spill] sm:$0xff] %v6845_v3  ;;  %8611 = vst [vmem:[#allocation17_spill] sm:$0xff] %v6847_v4 }
  0xaa   : > { %v6849_v5 = vpop.permute.xlu1 %1230  ;;  %v6851_v6 = vpop.permute.xlu0 %1225 }
  0xab   : > { %8612 = vst [vmem:[#allocation18_spill] sm:$0xff] %v6849_v5  ;;  %8613 = vst [vmem:[#allocation19_spill] sm:$0xff] %v6851_v6 }
  0xae   : > { %v6853_v7 = vpop.permute.xlu1 %1240 }
  0xaf   : > { %8614 = vst [vmem:[#allocation20_spill] sm:$0xff] %v6853_v7  ;;  %v6855_v8 = vpop.permute.xlu0 %1235 }
  0xb0   : > { %8615 = vst [vmem:[#allocation21_spill] sm:$0xff] %v6855_v8 }
  0xb2   : > { %v6857_v10 = vpop.permute.xlu1 %1250 }
  0xb3   : > { %8616 = vst [vmem:[#allocation22_spill] sm:$0xff] %v6857_v10  ;;  %v6859_v11 = vpop.permute.xlu0 %1245 }
  0xb4   : > { %8617 = vst [vmem:[#allocation23_spill] sm:$0xff] %v6859_v11 }
  0xb6   : > { %v6861_v12 = vpop.permute.xlu1 %1260 }
  0xb7   : > { %8618 = vst [vmem:[#allocation24_spill] sm:$0xff] %v6861_v12  ;;  %v6863_v13 = vpop.permute.xlu0 %1255 }
  0xb8   : > { %8619 = vst [vmem:[#allocation25_spill] sm:$0xff] %v6863_v13 }
  0xba   : > { %v6865_v14 = vpop.permute.xlu1 %1270 }
  0xbb   : > { %8620 = vst [vmem:[#allocation26_spill] sm:$0xff] %v6865_v14  ;;  %v6867_v15 = vpop.permute.xlu0 %1265 }
  0xbc   : > { %8621 = vst [vmem:[#allocation27_spill] sm:$0xff] %v6867_v15 }
  0xbe   : > { %v6869_v16 = vpop.permute.xlu1 %1280 }
  0xbf   : > { %8622 = vst [vmem:[#allocation28_spill] sm:$0xff] %v6869_v16  ;;  %v6871_v17 = vpop.permute.xlu0 %1275 }
  0xc0   : > { %8623 = vst [vmem:[#allocation29_spill] sm:$0xff] %v6871_v17 }
  0xc2   : > { %v6873_v18 = vpop.permute.xlu1 %1290 }
  0xc3   : > { %8624 = vst [vmem:[#allocation30_spill] sm:$0xff] %v6873_v18  ;;  %v6875_v19 = vpop.permute.xlu0 %1285 }
  0xc4   : > { %8625 = vst [vmem:[#allocation31_spill] sm:$0xff] %v6875_v19 }
  0xc6   : > { %v6877_v21 = vpop.permute.xlu1 %1300 }
  0xc7   : > { %v6884_v23 = vpop.permute.xlu0 %1295 }
  0xca   : > { %v6887_v25 = vpop.permute.xlu1 %1310 }
  0xcb   : > { %v6892_v26 = vpop.permute.xlu0 %1305 }
  0xce   : > { %v6894_v27 = vpop.permute.xlu1 %2007 }
  0xcf   : > { %v6896_v28 = vpop.permute.xlu0 %2002 }
  0xd2   : > { %v6898_v29 = vpop.permute.xlu1 %2017 }
  0xd3   : > { %8626 = vst [vmem:[#allocation32_spill] sm:$0xff] %v6898_v29  ;;  %v6900_v30 = vpop.permute.xlu0 %2012 }
  0xd4   : > { %8627 = vst [vmem:[#allocation33_spill] sm:$0xff] %v6900_v30 }
  0xd6   : > { %v6902_v31 = vpop.permute.xlu1 %2027 }
  0xd7   : > { %8628 = vst [vmem:[#allocation34_spill] sm:$0xff] %v6902_v31  ;;  %v6904_v32 = vpop.permute.xlu0 %2022 }
  0xd8   : > { %8629 = vst [vmem:[#allocation35_spill] sm:$0xff] %v6904_v32 }
  0xda   : > { %v6906_v33 = vpop.permute.xlu1 %2037 }
  0xdb   : > { %8630 = vst [vmem:[#allocation36_spill] sm:$0xff] %v6906_v33  ;;  %v6908_v34 = vpop.permute.xlu0 %2032 }
  0xdc   : > { %8631 = vst [vmem:[#allocation37_spill] sm:$0xff] %v6908_v34 }
  0xde   : > { %v6910_v35 = vpop.permute.xlu1 %2047 }
  0xdf   : > { %8632 = vst [vmem:[#allocation38_spill] sm:$0xff] %v6910_v35  ;;  %v6912_v36 = vpop.permute.xlu0 %2042 }
  0xe0   : > { %8633 = vst [vmem:[#allocation39_spill] sm:$0xff] %v6912_v36 }
  0xe2   : > { %v6914_v37 = vpop.permute.xlu1 %2057 }
  0xe3   : > { %8634 = vst [vmem:[#allocation40_spill] sm:$0xff] %v6914_v37  ;;  %v6916_v38 = vpop.permute.xlu0 %2052 }
  0xe4   : > { %8635 = vst [vmem:[#allocation41_spill] sm:$0xff] %v6916_v38 }
  0xe6   : > { %v6918_v39 = vpop.permute.xlu1 %2067 }
  0xe7   : > { %8636 = vst [vmem:[#allocation42_spill] sm:$0xff] %v6918_v39  ;;  %v6920_v40 = vpop.permute.xlu0 %2062 }
  0xe8   : > { %8637 = vst [vmem:[#allocation43_spill] sm:$0xff] %v6920_v40 }
  0xea   : > { %v6922_v41 = vpop.permute.xlu1 %2077 }
  0xeb   : > { %8638 = vst [vmem:[#allocation44_spill] sm:$0xff] %v6922_v41  ;;  %v6924_v42 = vpop.permute.xlu0 %2072 }
  0xec   : > { %8639 = vst [vmem:[#allocation45_spill] sm:$0xff] %v6924_v42 }
  0xee   : > { %v6926_v43 = vpop.permute.xlu1 %2087 }
  0xef   : > { %8640 = vst [vmem:[#allocation46_spill] sm:$0xff] %v6926_v43  ;;  %v6928_v44 = vpop.permute.xlu0 %2082 }
  0xf0   : > { %8641 = vst [vmem:[#allocation47_spill] sm:$0xff] %v6928_v44 }
  0xf1   : > { %v5978_v48 = vpop.f32.mrb[0].mxu0 }
  0xf2   : > { %v6935_v46 = vpop.permute.xlu1 %2097  ;;  %v790_v52 = vadd.f32 %v5978_v48, %v6933_v45  ;;  %v781_v54 = vpop.f32.mrb[1].mxu0 }
  0xf3   : > { %8642 = vst [vmem:[#allocation48_spill] sm:$0xff] %v6935_v46  ;;  %v6937_v47 = vpop.permute.xlu0 %2092  ;;  %v5994_v53 = vpop.f32.mrb[0].mxu1  ;;  %v782_v63 = vadd.f32 %v6933_v45, %v781_v54 }
  0xf4   : > { %8643 = vst [vmem:[#allocation49_spill] sm:$0xff] %v6937_v47  ;;  %v854_v58 = vadd.f32 %v5994_v53, %v6933_v45  ;;  %v845_v24 = vpop.f32.mrb[1].mxu1  ;;  %v5979_v46 = vpop.f32.mrb[2].mxu0  ;;  %v917_v47 = vmul.f32 %v6942_v49, %v790_v52 }
  0xf5   : > { %v846_v43 = vadd.f32 %v6933_v45, %v845_v24  ;;  %v793_v44 = vadd.f32 %v5979_v46, %v6933_v45  ;;  %v5995_v48 = vpop.f32.mrb[2].mxu1  ;;  %v784_v41 = vpop.f32.mrb[3].mxu0  ;;  %v915_v40 = vmul.f32 %v6942_v49, %v782_v63 }
  0xf6   : > { %v933_v42 = vmul.f32 %v6942_v49, %v854_v58  ;;  %v857_v39 = vadd.f32 %v5995_v48, %v6933_v45  ;;  %v785_v53 = vadd.f32 %v6933_v45, %v784_v41  ;;  %v848_v37 = vpop.f32.mrb[3].mxu1  ;;  %v6959_v54 = vpop.permute.xlu1 %2107  ;;  %v956_v38 = vadd.f32 %v6948_v57, %v917_v47 }
  0xf7   : > { %8644 = vst [vmem:[#allocation50_spill] sm:$0xff] %v6959_v54  ;;  %v931_v52 = vmul.f32 %v6942_v49, %v846_v43  ;;  %v918_v24 = vmul.f32 %v6942_v49, %v793_v44  ;;  %v849_v46 = vadd.f32 %v6933_v45, %v848_v37  ;;  %v6965_v36 = vpop.permute.xlu0 %2102  ;;  %v954_v63 = vadd.f32 %v6948_v57, %v915_v40 }
  0xf8   : > { %8645 = vst [vmem:[#allocation51_spill] sm:$0xff] %v6965_v36  ;;  %v972_v58 = vadd.f32 %v6948_v57, %v933_v42  ;;  %v934_v48 = vmul.f32 %v6942_v49, %v857_v39  ;;  %v916_v41 = vmul.f32 %v6942_v49, %v785_v53  ;;  %v988_v35 = vmax.f32 %v956_v38, 0.0 }
  0xf9   : > { %v970_v54 = vadd.f32 %v6948_v57, %v931_v52  ;;  %v957_v47 = vadd.f32 %v6948_v57, %v918_v24  ;;  %v932_v43 = vmul.f32 %v6942_v49, %v849_v46  ;;  %v986_v33 = vmax.f32 %v954_v63, 0.0 }
  0xfa   : > { %v1004_v44 = vmax.f32 %v972_v58, 0.0  ;;  %v973_v37 = vadd.f32 %v6948_v57, %v934_v48  ;;  %v955_v36 = vadd.f32 %v6948_v57, %v916_v41  ;;  %v6976_v42 = vpop.permute.xlu1 %2117  ;;  %1027 = vst.msk [vmem:[#allocation2 + $0x28] sm:$0xff] %vm1018_vm1, %v988_v35 }
  0xfb   : > { %8646 = vst [vmem:[#allocation52_spill] sm:$0xff] %v6976_v42  ;;  %v5982_v40 = vpop.f32.mrb[4].mxu0  ;;  %v1002_v39 = vmax.f32 %v970_v54, 0.0  ;;  %v989_v53 = vmax.f32 %v957_v47, 0.0  ;;  %v971_v38 = vadd.f32 %v6948_v57, %v932_v43  ;;  %v6980_v52 = vpop.permute.xlu0 %2112  ;;  %1025 = vst.msk [vmem:[#allocation2 + $0x18] sm:$0xff] %vm1018_vm1, %v986_v33 }
  0xfc   : > { %8647 = vst [vmem:[#allocation53_spill] sm:$0xff] %v6980_v52  ;;  %v806_v24 = vadd.f32 %v5982_v40, %v6933_v45  ;;  %v797_v46 = vpop.f32.mrb[5].mxu0  ;;  %1043 = vst.msk [vmem:[#allocation2 + $0xa8] sm:$0xff] %vm1018_vm1, %v1004_v44  ;;  %v1005_v58 = vmax.f32 %v973_v37, 0.0  ;;  %v987_v63 = vmax.f32 %v955_v36, 0.0 }
  0xfd   : > { %v798_v48 = vadd.f32 %v6933_v45, %v797_v46  ;;  %v5983_v41 = vpop.f32.mrb[6].mxu0  ;;  %1041 = vst.msk [vmem:[#allocation2 + $0x98] sm:$0xff] %vm1018_vm1, %v1002_v39  ;;  %1028 = vst.msk [vmem:[#allocation2 + $0x30] sm:$0xff] %vm1018_vm1, %v989_v53  ;;  %v1003_v35 = vmax.f32 %v971_v38, 0.0  ;;  %v5998_v47 = vpop.f32.mrb[4].mxu1 }
  0xfe   : > { %v921_v54 = vmul.f32 %v6942_v49, %v806_v24  ;;  %v809_v43 = vadd.f32 %v5983_v41, %v6933_v45  ;;  %v800_v40 = vpop.f32.mrb[7].mxu0  ;;  %1044 = vst.msk [vmem:[#allocation2 + $0xb0] sm:$0xff] %vm1018_vm1, %v1005_v58  ;;  %1026 = vst.msk [vmem:[#allocation2 + $0x20] sm:$0xff] %vm1018_vm1, %v987_v63  ;;  %v870_v33 = vadd.f32 %v5998_v47, %v6933_v45  ;;  %v861_v44 = vpop.f32.mrb[5].mxu1 }
  0xff   : > { %v919_v36 = vmul.f32 %v6942_v49, %v798_v48  ;;  %v801_v37 = vadd.f32 %v6933_v45, %v800_v40  ;;  %v6995_v39 = vpop.permute.xlu1 %2127  ;;  %1042 = vst.msk [vmem:[#allocation2 + $0xa0] sm:$0xff] %vm1018_vm1, %v1003_v35  ;;  %v862_v38 = vadd.f32 %v6933_v45, %v861_v44  ;;  %v5999_v46 = vpop.f32.mrb[6].mxu1 }
 0x100   : > { %8648 = vst [vmem:[#allocation54_spill] sm:$0xff] %v6995_v39  ;;  %v960_v53 = vadd.f32 %v6948_v57, %v921_v54  ;;  %v922_v24 = vmul.f32 %v6942_v49, %v809_v43  ;;  %v7001_v58 = vpop.permute.xlu0 %2122  ;;  %v937_v63 = vmul.f32 %v6942_v49, %v870_v33  ;;  %v873_v41 = vadd.f32 %v5999_v46, %v6933_v45  ;;  %v864_v40 = vpop.f32.mrb[7].mxu1 }
 0x101   : > { %8649 = vst [vmem:[#allocation55_spill] sm:$0xff] %v7001_v58  ;;  %v958_v48 = vadd.f32 %v6948_v57, %v919_v36  ;;  %v920_v47 = vmul.f32 %v6942_v49, %v801_v37  ;;  %v935_v35 = vmul.f32 %v6942_v49, %v862_v38  ;;  %v865_v44 = vadd.f32 %v6933_v45, %v864_v40 }
 0x102   : > { %v992_v39 = vmax.f32 %v960_v53, 0.0  ;;  %v961_v54 = vadd.f32 %v6948_v57, %v922_v24  ;;  %v976_v43 = vadd.f32 %v6948_v57, %v937_v63  ;;  %v938_v58 = vmul.f32 %v6942_v49, %v873_v41 }
 0x103   : > { %v990_v42 = vmax.f32 %v958_v48, 0.0  ;;  %v959_v33 = vadd.f32 %v6948_v57, %v920_v47  ;;  %v7013_v36 = vpop.permute.xlu1 %2137  ;;  %v974_v37 = vadd.f32 %v6948_v57, %v935_v35  ;;  %v936_v38 = vmul.f32 %v6942_v49, %v865_v44  ;;  %v5986_v24 = vpop.f32.mrb[8].mxu0 }
 0x104   : > { %8650 = vst [vmem:[#allocation56_spill] sm:$0xff] %v7013_v36  ;;  %1031 = vst.msk [vmem:[#allocation2 + $0x48] sm:$0xff] %vm1018_vm1, %v992_v39  ;;  %v993_v53 = vmax.f32 %v961_v54, 0.0  ;;  %v7018_v46 = vpop.permute.xlu0 %2132  ;;  %v1008_v40 = vmax.f32 %v976_v43, 0.0  ;;  %v977_v63 = vadd.f32 %v6948_v57, %v938_v58  ;;  %v822_v41 = vadd.f32 %v5986_v24, %v6933_v45  ;;  %v813_v47 = vpop.f32.mrb[9].mxu0  ;;  %v1612_v36 = vld [vmem:[#allocation2 + $0x30] sm:$0xff] }
 0x105   : > { %8651 = vst [vmem:[#allocation57_spill] sm:$0xff] %v7018_v46  ;;  %1029 = vst.msk [vmem:[#allocation2 + $0x38] sm:$0xff] %vm1018_vm1, %v990_v42  ;;  %v991_v48 = vmax.f32 %v959_v33, 0.0  ;;  %v1006_v52 = vmax.f32 %v974_v37, 0.0  ;;  %v975_v39 = vadd.f32 %v6948_v57, %v936_v38  ;;  %v814_v35 = vadd.f32 %v6933_v45, %v813_v47  ;;  %v5987_v54 = vpop.f32.mrb[10].mxu0  ;;  %v1610_v44 = vld [vmem:[#allocation2 + $0x20] sm:$0xff] }
 0x106   : > { %1032 = vst.msk [vmem:[#allocation2 + $0x50] sm:$0xff] %vm1018_vm1, %v993_v53  ;;  %v1611_v46 = vld [vmem:[#allocation2 + $0x28] sm:$0xff]  ;;  %v8652_v43 = vrot.slane %v6882_v22, 3  ;;  %1047 = vst.msk [vmem:[#allocation2 + $0xc8] sm:$0xff] %vm1018_vm1, %v1008_v40  ;;  %v1009_v58 = vmax.f32 %v977_v63, 0.0  ;;  %v925_v33 = vmul.f32 %v6942_v49, %v822_v41  ;;  %v6002_v37 = vpop.f32.mrb[8].mxu1  ;;  %v825_v53 = vadd.f32 %v5987_v54, %v6933_v45 }
 0x107   : > { %1030 = vst.msk [vmem:[#allocation2 + $0x40] sm:$0xff] %vm1018_vm1, %v991_v48  ;;  %v816_v38 = vpop.f32.mrb[11].mxu0  ;;  %v7033_v24 = vpack.c.bf16 %v1612_v36, %v1611_v46  ;;  %1045 = vst.msk [vmem:[#allocation2 + $0xb8] sm:$0xff] %vm1018_vm1, %v1006_v52  ;;  %v1007_v47 = vmax.f32 %v975_v39, 0.0  ;;  %v886_v22 = vadd.f32 %v6002_v37, %v6933_v45  ;;  %v877_v34 = vpop.f32.mrb[9].mxu1  ;;  %v1609_v48 = vld [vmem:[#allocation2 + $0x18] sm:$0xff] }
 0x108   : > { %v2655_v42 = vsel %vm1410_vm3, %v8652_v43, 0  ;;  %v923_v43 = vmul.f32 %v6942_v49, %v814_v35  ;;  %v817_v40 = vadd.f32 %v6933_v45, %v816_v38  ;;  %v7039_v63 = vpop.permute.xlu1 %2147  ;;  %1048 = vst.msk [vmem:[#allocation2 + $0xd0] sm:$0xff] %vm1018_vm1, %v1009_v58  ;;  %v964_v41 = vadd.f32 %v6948_v57, %v925_v33  ;;  %v6003_v52 = vpop.f32.mrb[10].mxu1 }
 0x109   : > { %8653 = vst [vmem:[#allocation58_spill] sm:$0xff] %v7033_v24  ;;  %8654 = vst [vmem:[#allocation59_spill] sm:$0xff] %v7039_v63  ;;  %v878_v36 = vadd.f32 %v6933_v45, %v877_v34  ;;  %v926_v46 = vmul.f32 %v6942_v49, %v825_v53  ;;  %v7045_v39 = vpop.permute.xlu0 %2142  ;;  %v7047_v54 = vpack.c.bf16 %v1610_v44, %v1609_v48  ;;  %v880_v33 = vpop.f32.mrb[11].mxu1  ;;  %v4449_v63 = vld [vmem:[#allocation2 + $0x121] sm:$0xff] }
 0x10a   : > { %8655 = vst [vmem:[#allocation60_spill] sm:$0xff] %v7045_v39  ;;  %1046 = vst.msk [vmem:[#allocation2 + $0xc0] sm:$0xff] %vm1018_vm1, %v1007_v47  ;;  %v941_v35 = vmul.f32 %v6942_v49, %v886_v22  ;;  %v962_v37 = vadd.f32 %v6948_v57, %v923_v43  ;;  %v889_v38 = vadd.f32 %v6003_v52, %v6933_v45  ;;  %v996_v34 = vmax.f32 %v964_v41, 0.0  ;;  %v4448_v47 = vld [vmem:[#allocation2 + $0x119] sm:$0xff] }
 0x10b   : > { %8656 = vst [vmem:[#allocation61_spill] sm:$0xff] %v7047_v54  ;;  %v924_v58 = vmul.f32 %v6942_v49, %v817_v40  ;;  %v939_v53 = vmul.f32 %v6942_v49, %v878_v36  ;;  %v965_v32 = vadd.f32 %v6948_v57, %v926_v46  ;;  %v881_v44 = vadd.f32 %v6933_v45, %v880_v33  ;;  %v7066_v36 = vld [vmem:[#allocation2 + $0x17] sm:$0xff] }
 0x10c   : > { %6045 = vmatmul.mubr.msk.bf16.vlgmr.msra.gmra.mrb[16].mxu0 %vm1018_vm1, %v7047_v54  ;;  %v980_v22 = vadd.f32 %v6948_v57, %v941_v35  ;;  %v994_v43 = vmax.f32 %v962_v37, 0.0  ;;  %v942_v48 = vmul.f32 %v6942_v49, %v889_v38  ;;  %v7064_v41 = vpop.permute.xlu1 %2157  ;;  %1035 = vst.msk [vmem:[#allocation2 + $0x68] sm:$0xff] %vm1018_vm1, %v996_v34  ;;  %v1315_v54 = vmul.f32 %v6809_v50, %v7066_v36 }
 0x10d   : > { %v963_v40 = vadd.f32 %v6948_v57, %v924_v58  ;;  %6048 = vmatprep.mubr.msk.bf16.mxu0 %vm1018_vm1, %v7033_v24  ;;  %8657 = vst [vmem:[#allocation62_spill] sm:$0xff] %v7064_v41  ;;  %6111 = vmatpush3.bf16.msra.mxu0 %v2655_v42  ;;  %v978_v46 = vadd.f32 %v6948_v57, %v939_v53  ;;  %v997_v52 = vmax.f32 %v965_v32, 0.0  ;;  %v7074_v38 = vpop.permute.xlu0 %2152  ;;  %v7076_v58 = vld [vmem:[#allocation2 + $0x1f] sm:$0xff]  ;;  %v5990_v53 = vpop.f32.mrb[12].mxu0  ;;  %v1616_v30 = vld [vmem:[#allocation2 + $0x50] sm:$0xff] }
 0x10e   : > { %v940_v35 = vmul.f32 %v6942_v49, %v881_v44  ;;  %v7072_v37 = vmul.f32 %v4449_v63, %v7064_v41  ;;  %8659 = vst [vmem:[#allocation64_spill] sm:$0xff] %v7074_v38  ;;  %v1012_v33 = vmax.f32 %v980_v22, 0.0  ;;  %1033 = vst.msk [vmem:[#allocation2 + $0x58] sm:$0xff] %vm1018_vm1, %v994_v43  ;;  %v981_v24 = vadd.f32 %v6948_v57, %v942_v48  ;;  %v829_v22 = vpop.f32.mrb[13].mxu0  ;;  %v7088_v41 = vld [vmem:[#allocation2 + $0x27] sm:$0xff] }
 0x10f   : > { %v995_v42 = vmax.f32 %v963_v40, 0.0  ;;  %v7081_v34 = vmul.f32 %v4448_v47, %v7074_v38  ;;  %v1010_v32 = vmax.f32 %v978_v46, 0.0  ;;  %1036 = vst.msk [vmem:[#allocation2 + $0x70] sm:$0xff] %vm1018_vm1, %v997_v52  ;;  %v838_v44 = vadd.f32 %v5990_v53, %v6933_v45  ;;  %v6006_v48 = vpop.f32.mrb[12].mxu1  ;;  %v7097_v52 = vld [vmem:[#allocation2 + $0x2f] sm:$0xff] }
 0x110   : > { %8658 = vst [vmem:[#allocation63_spill] sm:$0xff] %v7072_v37  ;;  %v979_v63 = vadd.f32 %v6948_v57, %v940_v35  ;;  %1051 = vst.msk [vmem:[#allocation2 + $0xe8] sm:$0xff] %vm1018_vm1, %v1012_v33  ;;  %v1013_v43 = vmax.f32 %v981_v24, 0.0  ;;  %v1316_v40 = vmul.f32 %v6814_v55, %v7076_v58  ;;  %v830_v46 = vadd.f32 %v6933_v45, %v829_v22  ;;  %v5991_v35 = vpop.f32.mrb[14].mxu0 }
 0x111   : > { %8660 = vst [vmem:[#allocation65_spill] sm:$0xff] %v7081_v34  ;;  %1034 = vst.msk [vmem:[#allocation2 + $0x60] sm:$0xff] %vm1018_vm1, %v995_v42  ;;  %v929_v33 = vmul.f32 %v6942_v49, %v838_v44  ;;  %v902_v24 = vadd.f32 %v6006_v48, %v6933_v45  ;;  %v8661_v42 = vrot.slane %v6831_v9, 2  ;;  %v893_v34 = vpop.f32.mrb[13].mxu1  ;;  %v832_v37 = vpop.f32.mrb[15].mxu0  ;;  %v1318_v48 = vmul.f32 %v6819_v59, %v7097_v52  ;;  %v1613_v59 = vld [vmem:[#allocation2 + $0x38] sm:$0xff] }
 0x112   : > { %1049 = vst.msk [vmem:[#allocation2 + $0xd8] sm:$0xff] %vm1018_vm1, %v1010_v32  ;;  %v1011_v53 = vmax.f32 %v979_v63, 0.0  ;;  %1052 = vst.msk [vmem:[#allocation2 + $0xf0] sm:$0xff] %vm1018_vm1, %v1013_v43  ;;  %v1346_v38 = vpack.c.bf16 %v1316_v40, %v1315_v54  ;;  %v927_v22 = vmul.f32 %v6942_v49, %v830_v46  ;;  %v894_v39 = vadd.f32 %v6933_v45, %v893_v34  ;;  %v6007_v63 = vpop.f32.mrb[14].mxu1  ;;  %v7119_v34 = vld [vmem:[%s8484_s7 + $0x4] sm:$0x1] }
 0x113   : > { %v2262_v47 = vsel %vm1410_vm3, %v8661_v42, 0  ;;  %v1317_v32 = vmul.f32 %v6821_v60, %v7088_v41  ;;  %v968_v44 = vadd.f32 %v6948_v57, %v929_v33  ;;  %v945_v9 = vmul.f32 %v6942_v49, %v902_v24  ;;  %v896_v54 = vpop.f32.mrb[15].mxu1  ;;  %v1614_v24 = vld [vmem:[#allocation2 + $0x40] sm:$0xff] }
 0x114   : > { %1050 = vst.msk [vmem:[#allocation2 + $0xe0] sm:$0xff] %vm1018_vm1, %v1011_v53  ;;  %v841_v43 = vadd.f32 %v5991_v35, %v6933_v45  ;;  %6011 = vmatmul.mubr.msk.bf16.vlgmr.msra.gmra.mrb[16].mxu1 %vm1018_vm1, %v1346_v38  ;;  %v966_v40 = vadd.f32 %v6948_v57, %v927_v22  ;;  %v943_v46 = vmul.f32 %v6942_v49, %v894_v39 }
 0x115   : > { %v905_v53 = vadd.f32 %v6007_v63, %v6933_v45  ;;  %v833_v33 = vadd.f32 %v6933_v45, %v832_v37  ;;  %v1000_v42 = vmax.f32 %v968_v44, 0.0  ;;  %v984_v35 = vadd.f32 %v6948_v57, %v945_v9  ;;  %6077 = vmatpush3.bf16.msra.mxu1 %v2262_v47  ;;  %v7131_v63 = vld [vmem:[#allocation2 + $0x37] sm:$0xff]  ;;  %v7133_v37 = vld [vmem:[#allocation2 + $0x3f] sm:$0xff] }
 0x116   : > { %v1347_v31 = vpack.c.bf16 %v1318_v48, %v1317_v32  ;;  %v930_v29 = vmul.f32 %v6942_v49, %v841_v43  ;;  %v998_v60 = vmax.f32 %v966_v40, 0.0  ;;  %v982_v38 = vadd.f32 %v6948_v57, %v943_v46  ;;  %6356 = vmatprep.subr.msk.bf16.mxu1 %vm1410_vm3, %v7119_v34  ;;  %v1615_v48 = vld [vmem:[#allocation2 + $0x48] sm:$0xff] }
 0x117   : > { %v946_v22 = vmul.f32 %v6942_v49, %v905_v53  ;;  %v928_v39 = vmul.f32 %v6942_v49, %v833_v33  ;;  %1039 = vst.msk [vmem:[#allocation2 + $0x88] sm:$0xff] %vm1018_vm1, %v1000_v42  ;;  %v1016_v47 = vmax.f32 %v984_v35, 0.0  ;;  %v897_v44 = vadd.f32 %v6933_v45, %v896_v54  ;;  %v7143_v43 = vld [vmem:[#allocation2 + $0x47] sm:$0xff]  ;;  %v7150_v42 = vld [vmem:[#allocation2 + $0x4f] sm:$0xff] }
 0x118   : > { %6014 = vmatprep.mubr.msk.bf16.mxu1 %vm1018_vm1, %v1347_v31  ;;  %v969_v32 = vadd.f32 %v6948_v57, %v930_v29  ;;  %v7141_v9 = vpack.c.bf16 %v1614_v24, %v1613_v59  ;;  %1037 = vst.msk [vmem:[#allocation2 + $0x78] sm:$0xff] %vm1018_vm1, %v998_v60  ;;  %v1014_v40 = vmax.f32 %v982_v38, 0.0  ;;  %v7148_v33 = vpack.c.bf16 %v1616_v30, %v1615_v48  ;;  %v7165_v24 = vld [vmem:[#allocation2 + $0x5f] sm:$0xff] }
 0x119   : > { %v985_v46 = vadd.f32 %v6948_v57, %v946_v22  ;;  %v967_v53 = vadd.f32 %v6948_v57, %v928_v39  ;;  %1055 = vst.msk [vmem:[#allocation2 + $0x108] sm:$0xff] %vm1018_vm1, %v1016_v47  ;;  %v944_v59 = vmul.f32 %v6942_v49, %v897_v44  ;;  %v1319_v60 = vmul.f32 %v6826_v62, %v7131_v63  ;;  %v1618_v49 = vld [vmem:[#allocation2 + $0x60] sm:$0xff]  ;;  %v7173_v47 = vld [vmem:[#allocation2 + $0x6f] sm:$0xff]  ;;  %v7177_v44 = vld [vmem:[#allocation2 + $0x57] sm:$0xff] }
 0x11a   : > { %8662 = vst [vmem:[#allocation66_spill] sm:$0xff] %v7141_v9  ;;  %8663 = vst [vmem:[#allocation67_spill] sm:$0xff] %v7148_v33  ;;  %v1001_v29 = vmax.f32 %v969_v32, 0.0  ;;  %6049 = vmatmul.mubr.msk.bf16.gmra.mrb[20].mxu0 %vm1018_vm1, %v7141_v9  ;;  %v1320_v31 = vmul.f32 %v6824_v61, %v7133_v37  ;;  %v1321_v54 = vmul.f32 %v6836_v20, %v7143_v43  ;;  %v7171_v39 = vld [vmem:[#allocation2 + $0x67] sm:$0xff]  ;;  %v1617_v32 = vld [vmem:[#allocation2 + $0x58] sm:$0xff] }
 0x11b   : > { %1053 = vst.msk [vmem:[#allocation2 + $0xf8] sm:$0xff] %vm1018_vm1, %v1014_v40  ;;  %v1017_v30 = vmax.f32 %v985_v46, 0.0  ;;  %v999_v45 = vmax.f32 %v967_v53, 0.0  ;;  %6052 = vmatprep.mubr.msk.bf16.mxu0 %vm1018_vm1, %v7148_v33  ;;  %v983_v35 = vadd.f32 %v6948_v57, %v944_v59  ;;  %v1322_v22 = vmul.f32 %v6834_v0, %v7150_v42  ;;  %v1620_v46 = vld [vmem:[#allocation2 + $0x70] sm:$0xff] }
 0x11c   : > { %1040 = vst.msk [vmem:[#allocation2 + $0x90] sm:$0xff] %vm1018_vm1, %v1001_v29  ;;  %v1348_v38 = vpack.c.bf16 %v1320_v31, %v1319_v60  ;;  %v7180_v57 = vpack.c.bf16 %v1618_v49, %v1617_v32  ;;  %v1324_v53 = vmul.f32 %v6841_v1, %v7165_v24  ;;  %v1325_v29 = vmul.f32 %v6847_v4, %v7171_v39  ;;  %v1619_v60 = vld [vmem:[#allocation2 + $0x68] sm:$0xff]  ;;  %v1628_v9 = vld [vmem:[#allocation2 + $0xb0] sm:$0xff] }
 0x11d   : > { %1056 = vst.msk [vmem:[#allocation2 + $0x110] sm:$0xff] %vm1018_vm1, %v1017_v30  ;;  %1038 = vst.msk [vmem:[#allocation2 + $0x80] sm:$0xff] %vm1018_vm1, %v999_v45  ;;  %v1015_v48 = vmax.f32 %v983_v35, 0.0  ;;  %v1349_v40 = vpack.c.bf16 %v1322_v22, %v1321_v54  ;;  %v1326_v59 = vmul.f32 %v6845_v3, %v7173_v47  ;;  %v1323_v31 = vmul.f32 %v6843_v2, %v7177_v44 }
 0x11e   : > { %6015 = vmatmul.mubr.msk.bf16.gmra.mrb[20].mxu1 %vm1018_vm1, %v1348_v38  ;;  %8664 = vst [vmem:[#allocation68_spill] sm:$0xff] %v7180_v57  ;;  %v7192_v30 = vpack.c.bf16 %v1620_v46, %v1619_v60  ;;  %v1623_v60 = vld [vmem:[#allocation2 + $0x88] sm:$0xff] }
 0x11f   : > { %1054 = vst.msk [vmem:[#allocation2 + $0x100] sm:$0xff] %vm1018_vm1, %v1015_v48  ;;  %6018 = vmatprep.mubr.msk.bf16.mxu1 %vm1018_vm1, %v1349_v40  ;;  %v1350_v45 = vpack.c.bf16 %v1324_v53, %v1323_v31  ;;  %v1351_v54 = vpack.c.bf16 %v1326_v59, %v1325_v29  ;;  %v1621_v32 = vld [vmem:[#allocation2 + $0x78] sm:$0xff] }
 0x120   : > { %8665 = vst [vmem:[#allocation69_spill] sm:$0xff] %v7192_v30  ;;  %v7204_v48 = vld [vmem:[#allocation2 + $0x77] sm:$0xff] }
 0x121   : > { %v1327_v31 = vmul.f32 %v6851_v6, %v7204_v48 }
 0x122   : > { %6053 = vmatmul.mubr.msk.bf16.gmra.mrb[24].mxu0 %vm1018_vm1, %v7180_v57  ;;  %v1626_v57 = vld [vmem:[#allocation2 + $0xa0] sm:$0xff] }
 0x123   : > { %6056 = vmatprep.mubr.msk.bf16.mxu0 %vm1018_vm1, %v7192_v30  ;;  %v7198_v49 = vld [vmem:[#allocation2 + $0x8f] sm:$0xff]  ;;  %v7224_v33 = vld [vmem:[#allocation2 + $0x97] sm:$0xff] }
 0x124   : > { %v1622_v35 = vld [vmem:[#allocation2 + $0x80] sm:$0xff]  ;;  %v1624_v46 = vld [vmem:[#allocation2 + $0x90] sm:$0xff]  ;;  %v1330_v59 = vmul.f32 %v6853_v7, %v7198_v49 }
 0x125   : > { %v7200_v38 = vld [vmem:[#allocation2 + $0x7f] sm:$0xff]  ;;  %v7202_v22 = vld [vmem:[#allocation2 + $0x87] sm:$0xff]  ;;  %v7207_v40 = vpack.c.bf16 %v1622_v35, %v1621_v32  ;;  %v7218_v30 = vpack.c.bf16 %v1624_v46, %v1623_v60  ;;  %v7229_v46 = vld [vmem:[#allocation2 + $0xaf] sm:$0xff] }
 0x126   : > { %6019 = vmatmul.mubr.msk.bf16.gmra.mrb[24].mxu1 %vm1018_vm1, %v1350_v45  ;;  %v1328_v53 = vmul.f32 %v6849_v5, %v7200_v38  ;;  %v1329_v29 = vmul.f32 %v6855_v8, %v7202_v22  ;;  %v1627_v35 = vld [vmem:[#allocation2 + $0xa8] sm:$0xff]  ;;  %v1625_v32 = vld [vmem:[#allocation2 + $0x98] sm:$0xff]  ;;  %8668 = vst [vmem:[#allocation72_spill] sm:$0xff] %v7229_v46 }
 0x127   : > { %8666 = vst [vmem:[#allocation70_spill] sm:$0xff] %v7207_v40  ;;  %6022 = vmatprep.mubr.msk.bf16.mxu1 %vm1018_vm1, %v1351_v54  ;;  %8667 = vst [vmem:[#allocation71_spill] sm:$0xff] %v7218_v30  ;;  %v7227_v7 = vld [vmem:[#allocation2 + $0xa7] sm:$0xff]  ;;  %v7232_v60 = vld [vmem:[#allocation2 + $0x9f] sm:$0xff] }
 0x128   : > { %v1352_v45 = vpack.c.bf16 %v1328_v53, %v1327_v31  ;;  %v1353_v54 = vpack.c.bf16 %v1330_v59, %v1329_v29  ;;  %v7234_v53 = vpack.c.bf16 %v1626_v57, %v1625_v32  ;;  %v1331_v29 = vmul.f32 %v6859_v11, %v7224_v33  ;;  %v1629_v32 = vld [vmem:[#allocation2 + $0xb8] sm:$0xff] }
 0x129   : > { %v7238_v59 = vpack.c.bf16 %v1628_v9, %v1627_v35  ;;  %v1333_v31 = vmul.f32 %v6863_v13, %v7227_v7  ;;  %v1630_v9 = vld [vmem:[#allocation2 + $0xc0] sm:$0xff]  ;;  %v1631_v35 = vld [vmem:[#allocation2 + $0xc8] sm:$0xff]  ;;  %v1632_v13 = vld [vmem:[#allocation2 + $0xd0] sm:$0xff] }
 0x12a   : > { %6057 = vmatmul.mubr.msk.bf16.gmra.mrb[28].mxu0 %vm1018_vm1, %v7207_v40  ;;  %8669 = vst [vmem:[#allocation73_spill] sm:$0xff] %v7234_v53  ;;  %v7250_v40 = vld [vmem:[#allocation2 + $0xbf] sm:$0xff] }
 0x12b   : > { %6060 = vmatprep.mubr.msk.bf16.mxu0 %vm1018_vm1, %v7218_v30  ;;  %8670 = vst [vmem:[#allocation74_spill] sm:$0xff] %v7238_v59 }
 0x12e   : > { %6023 = vmatmul.mubr.msk.bf16.gmra.mrb[28].mxu1 %vm1018_vm1, %v1352_v45  ;;  %v1334_v45 = vmul.f32 %v6861_v12, %v7229_v46  ;;  %v7253_v12 = vld [vmem:[#allocation2 + $0xc7] sm:$0xff]  ;;  %v7255_v46 = vld [vmem:[#allocation2 + $0xcf] sm:$0xff] }
 0x12f   : > { %6026 = vmatprep.mubr.msk.bf16.mxu1 %vm1018_vm1, %v1353_v54  ;;  %v1332_v54 = vmul.f32 %v6857_v10, %v7232_v60  ;;  %8671 = vst [vmem:[#allocation75_spill] sm:$0xff] %v7255_v46  ;;  %v7260_v10 = vpack.c.bf16 %v1630_v9, %v1629_v32  ;;  %v1633_v32 = vld [vmem:[#allocation2 + $0xd8] sm:$0xff] }
 0x130   : > { %v1355_v30 = vpack.c.bf16 %v1334_v45, %v1333_v31  ;;  %v7264_v31 = vpack.c.bf16 %v1632_v13, %v1631_v35  ;;  %v1337_v45 = vmul.f32 %v6871_v17, %v7253_v12  ;;  %v1634_v35 = vld [vmem:[#allocation2 + $0xe0] sm:$0xff] }
 0x131   : > { %v1354_v57 = vpack.c.bf16 %v1332_v54, %v1331_v29  ;;  %8672 = vst [vmem:[#allocation76_spill] sm:$0xff] %v7260_v10  ;;  %v1336_v29 = vmul.f32 %v6865_v14, %v7250_v40  ;;  %v1338_v54 = vmul.f32 %v6869_v16, %v7255_v46  ;;  %v7281_v17 = vld [vmem:[#allocation2 + $0xdf] sm:$0xff]  ;;  %v1636_v14 = vld [vmem:[#allocation2 + $0xf0] sm:$0xff]  ;;  %v7285_v46 = vld [vmem:[#allocation2 + $0xe7] sm:$0xff] }
 0x132   : > { %6061 = vmatmul.mubr.msk.bf16.gmra.mrb[32].mxu0 %vm1018_vm1, %v7234_v53  ;;  %v7258_v53 = vld [vmem:[#allocation2 + $0xb7] sm:$0xff]  ;;  %8673 = vst [vmem:[#allocation77_spill] sm:$0xff] %v7264_v31 }
 0x133   : > { %6064 = vmatprep.mubr.msk.bf16.mxu0 %vm1018_vm1, %v7238_v59  ;;  %v1357_v9 = vpack.c.bf16 %v1338_v54, %v1337_v45  ;;  %v1635_v59 = vld [vmem:[#allocation2 + $0xe8] sm:$0xff]  ;;  %v1340_v45 = vmul.f32 %v6873_v18, %v7281_v17  ;;  %v1969_v18 = vld [vmem:[#allocation2 + $0x11] sm:$0xff] }
 0x134   : > { %v7297_v54 = vpack.c.bf16 %v1636_v14, %v1635_v59  ;;  %v1638_v14 = vld [vmem:[#allocation2 + $0x100] sm:$0xff]  ;;  %v2554_v59 = vmul.f32 %v6816_v56, %v7076_v58  ;;  %v2161_v58 = vmul.f32 %v6894_v27, %v1969_v18 }
 0x135   : > { %v7339_v18 = vld [vmem:[%s8484_s7 + $0x4] ss:$0 sps:$4 sm:$0x88]  }
 0x136   : > { %6027 = vmatmul.mubr.msk.bf16.gmra.mrb[32].mxu1 %vm1018_vm1, %v1354_v57  ;;  %v7273_v57 = vld [vmem:[%s8484_s7 + $0x4] ss:$0 sps:$4 sm:$0x22]   ;;  %8676 = vst [vmem:[#allocation80_spill] sm:$0xff] %v7297_v54 }
 0x137   : > { %6030 = vmatprep.mubr.msk.bf16.mxu1 %vm1018_vm1, %v1355_v30  ;;  %v1335_v30 = vmul.f32 %v6867_v15, %v7258_v53  ;;  %v3355_v16 = vrot.slane %v7273_v57, 1  ;;  %v7290_v15 = vld [vmem:[#allocation2 + $0xd7] sm:$0xff]  ;;  %v1341_v57 = vmul.f32 %v6884_v23, %v7285_v46  ;;  %v7343_v56 = vld [vmem:[#allocation2 + $0x21] sm:$0xff] }
 0x139   : > { %v1356_v13 = vpack.c.bf16 %v1336_v29, %v1335_v30  ;;  %6357 = vmatprep.subr.msk.bf16.mxu0 %vm1410_vm3, %v3355_v16  ;;  %v7293_v29 = vpack.c.bf16 %v1634_v35, %v1633_v32  ;;  %v1637_v35 = vld [vmem:[#allocation2 + $0xf8] sm:$0xff] }
 0x13a   : > { %6065 = vmatmul.mubr.msk.bf16.gmra.mrb[36].mxu0 %vm1018_vm1, %v7260_v10  ;;  %v7287_v10 = vld [vmem:[#allocation2 + $0xef] sm:$0xff] }
 0x13b   : > { %6068 = vmatprep.mubr.msk.bf16.mxu0 %vm1018_vm1, %v7264_v31  ;;  %8674 = vst [vmem:[#allocation78_spill] sm:$0xff] %v7287_v10  ;;  %8675 = vst [vmem:[#allocation79_spill] sm:$0xff] %v7293_v29  ;;  %v1342_v30 = vmul.f32 %v6877_v21, %v7287_v10  ;;  %v7311_v31 = vld [vmem:[#allocation2 + $0xff] sm:$0xff]  ;;  %v7317_v10 = vld [vmem:[#allocation2 + $0xf7] sm:$0xff] }
 0x13e   : > { %6031 = vmatmul.mubr.msk.bf16.gmra.mrb[36].mxu1 %vm1018_vm1, %v1356_v13  ;;  %v1339_v13 = vmul.f32 %v6875_v19, %v7290_v15 }
 0x13f   : > { %6034 = vmatprep.mubr.msk.bf16.mxu1 %vm1018_vm1, %v1357_v9  ;;  %v1359_v9 = vpack.c.bf16 %v1342_v30, %v1341_v57  ;;  %v1344_v57 = vmul.f32 %v6887_v25, %v7311_v31 }
 0x140   : > { %v1358_v32 = vpack.c.bf16 %v1340_v45, %v1339_v13  ;;  %v7319_v45 = vpack.c.bf16 %v1638_v14, %v1637_v35  ;;  %v1343_v13 = vmul.f32 %v6892_v26, %v7317_v10  ;;  %v2556_v35 = vmul.f32 %v6814_v55, %v7097_v52  ;;  %v7355_v55 = vld [vmem:[#allocation2 + $0x29] sm:$0xff] }
 0x142   : > { %6069 = vmatmul.mubr.msk.bf16.gmra.mrb[40].mxu0 %vm1018_vm1, %v7293_v29  ;;  %v2553_v29 = vmul.f32 %v6811_v51, %v7066_v36  ;;  %8677 = vst [vmem:[#allocation81_spill] sm:$0xff] %v7319_v45  ;;  %v1360_v36 = vpack.c.bf16 %v1344_v57, %v1343_v13  ;;  %v7346_v57 = vld [vmem:[#allocation2 + $0x31] sm:$0xff] }
 0x143   : > { %6072 = vmatprep.mubr.msk.bf16.mxu0 %vm1018_vm1, %v7297_v54  ;;  %v1968_v54 = vld [vmem:[#allocation2 + $0x9] sm:$0xff] }
 0x144   : > { %v2585_v30 = vpack.c.bf16 %v2554_v59, %v2553_v29  ;;  %v7334_v29 = vld [vmem:[#allocation2 + $0x19] sm:$0xff]  ;;  %v8678_v59 = vld [vmem:[#allocation8_spill] sm:$0xff] }
 0x146   : > { %6035 = vmatmul.mubr.msk.bf16.gmra.mrb[40].mxu1 %vm1018_vm1, %v1358_v32  ;;  %v2160_v32 = vmul.f32 %v6896_v28, %v1968_v54  ;;  %v2558_v54 = vmul.f32 %v8678_v59, %v7133_v37  ;;  %v3405_v37 = vsel %vm1410_vm3, %v3355_v16, 0  ;;  %v8683_v16 = vld [vmem:[#allocation35_spill] sm:$0xff] }
 0x147   : > { %6038 = vmatprep.mubr.msk.bf16.mxu1 %vm1018_vm1, %v1359_v9  ;;  %v2555_v9 = vmul.f32 %v6809_v50, %v7088_v41  ;;  %v8679_v41 = vld [vmem:[#allocation9_spill] sm:$0xff] }
 0x148   : > { %v2192_v14 = vpack.c.bf16 %v2161_v58, %v2160_v32  ;;  %v2557_v52 = vmul.f32 %v8679_v41, %v7131_v63  ;;  %v8681_v58 = vld [vmem:[#allocation32_spill] sm:$0xff]  ;;  %v8682_v63 = vld [vmem:[#allocation34_spill] sm:$0xff] }
 0x149   : > { %v2586_v50 = vpack.c.bf16 %v2556_v35, %v2555_v9  ;;  %v2163_v32 = vmul.f32 %v8681_v58, %v7343_v56  ;;  %v2165_v41 = vmul.f32 %v8682_v63, %v7346_v57  ;;  %v3012_v9 = vsel %vm1410_vm3, %v7119_v34, 0 }
 0x14a   : > { %6073 = vmatmul.mubr.msk.bf16.gmra.mrb[44].mxu0 %vm1018_vm1, %v7319_v45  ;;  %v2587_v59 = vpack.c.bf16 %v2558_v54, %v2557_v52  ;;  %v2164_v35 = vmul.f32 %v8683_v16, %v7355_v55  ;;  %v2559_v45 = vmul.f32 %v6826_v62, %v7143_v43  ;;  %v2560_v54 = vmul.f32 %v6824_v61, %v7150_v42  ;;  %v7387_v43 = vld [vmem:[#allocation2 + $0x51] sm:$0xff]  ;;  %v7398_v52 = vld [vmem:[#allocation2 + $0x49] sm:$0xff] }
 0x14b   : > { %6112 = vmatprep.mubr.msk.bf16.mxu0 %vm1018_vm1, %v2585_v30  ;;  %v8680_v30 = vld [vmem:[#allocation33_spill] sm:$0xff]  ;;  %v2562_v34 = vmul.f32 %v6834_v0, %v7165_v24  ;;  %v2561_v42 = vmul.f32 %v6836_v20, %v7177_v44  ;;  %v8688_v44 = vld [vmem:[#allocation38_spill] sm:$0xff]  ;;  %v2566_v61 = vmul.f32 %v6845_v3, %v7200_v38  ;;  %v8693_v38 = vld [vmem:[#allocation40_spill] sm:$0xff] }
 0x14c   : > { %v2162_v13 = vmul.f32 %v8680_v30, %v7334_v29  ;;  %8686 = vst [vmem:[#allocation33_spill] sm:$0xff] %v7398_v52  ;;  %v2169_v62 = vmul.f32 %v8688_v44, %v7387_v43 }
 0x14e   : > { %6039 = vmatmul.mubr.msk.bf16.gmra.mrb[44].mxu1 %vm1018_vm1, %v1360_v36  ;;  %v7361_v36 = vld [vmem:[%s8484_s7 + $0x4] ss:$0 sps:$4 sm:$0x44]   ;;  %v2193_v51 = vpack.c.bf16 %v2163_v32, %v2162_v13  ;;  %v7392_v13 = vld [vmem:[#allocation2 + $0x107] sm:$0xff]  ;;  %v8684_v32 = vld [vmem:[#allocation37_spill] sm:$0xff] }
 0x14f   : > { %6078 = vmatprep.mubr.msk.bf16.mxu1 %vm1018_vm1, %v2192_v14  ;;  %v8575_v14 = vrot.slane %v7339_v18, 3 }
 0x152   : > { %6113 = vmatmul.mubr.msk.bf16.vlgmr.msra.gmra.mrb[48].mxu0 %vm1018_vm1, %v2586_v50  ;;  %v2194_v50 = vpack.c.bf16 %v2165_v41, %v2164_v35  ;;  %v2588_v41 = vpack.c.bf16 %v2560_v54, %v2559_v45  ;;  %v8685_v35 = vld [vmem:[#allocation36_spill] sm:$0xff]  ;;  %v7410_v45 = vmul.f32 %v7392_v13, %v6884_v23  ;;  %v8690_v54 = vld [vmem:[#allocation39_spill] sm:$0xff] }
 0x153   : > { %6116 = vmatprep.mubr.msk.bf16.mxu0 %vm1018_vm1, %v2587_v59  ;;  %6179 = vmatpush3.bf16.msra.mxu0 %v3405_v37  ;;  %v7382_v59 = vld [vmem:[#allocation2 + $0x39] sm:$0xff]  ;;  %v7384_v37 = vld [vmem:[#allocation2 + $0x41] sm:$0xff]  ;;  %v2168_v0 = vmul.f32 %v8690_v54, %v7398_v52 }
 0x154   : > { %6359 = vmatprep.subr.msk.bf16.mxu0 %vm1410_vm3, %v8575_v14  ;;  %v2166_v24 = vmul.f32 %v8684_v32, %v7382_v59  ;;  %v2167_v14 = vmul.f32 %v8685_v35, %v7384_v37  ;;  %8689 = vst [vmem:[#allocation32_spill] sm:$0xff] %v7410_v45  ;;  %v7425_v32 = vld [vmem:[#allocation2 + $0x59] sm:$0xff]  ;;  %v2568_v45 = vmul.f32 %v6849_v5, %v7198_v49 }
 0x155   : > { %v8694_v52 = vld [vmem:[#allocation42_spill] sm:$0xff] }
 0x156   : > { %6079 = vmatmul.mubr.msk.bf16.vlgmr.msra.gmra.mrb[48].mxu1 %vm1018_vm1, %v2193_v51  ;;  %v7400_v51 = vld [vmem:[#allocation2 + $0x10f] sm:$0xff] }
 0x157   : > { %6145 = vmatpush3.bf16.msra.mxu1 %v3012_v9  ;;  %6082 = vmatprep.mubr.msk.bf16.mxu1 %vm1018_vm1, %v2194_v50  ;;  %v8687_v9 = vrot.slane %v7361_v36, 2  ;;  %v2589_v50 = vpack.c.bf16 %v2562_v34, %v2561_v42  ;;  %v7417_v20 = vmul.f32 %v7400_v51, %v6877_v21  ;;  %v2563_v34 = vmul.f32 %v6843_v2, %v7171_v39  ;;  %v7441_v2 = vld [vmem:[#allocation2 + $0x69] sm:$0xff] }
 0x158   : > { %v2564_v42 = vmul.f32 %v6841_v1, %v7173_v47  ;;  %v2565_v39 = vmul.f32 %v6847_v4, %v7204_v48  ;;  %v7457_v4 = vld [vmem:[#allocation2 + $0x81] sm:$0xff] }
 0x159   : > { %6358 = vmatprep.subr.msk.bf16.mxu1 %vm1410_vm3, %v8687_v9  ;;  %8691 = vst [vmem:[#allocation34_spill] sm:$0xff] %v7417_v20  ;;  %v2195_v9 = vpack.c.bf16 %v2167_v14, %v2166_v24  ;;  %v7432_v14 = vld [vmem:[#allocation2 + $0x71] sm:$0xff] }
 0x15a   : > { %6117 = vmatmul.mubr.msk.bf16.gmra.mrb[52].mxu0 %vm1018_vm1, %v2588_v41  ;;  %v2196_v41 = vpack.c.bf16 %v2169_v62, %v2168_v0  ;;  %v2590_v62 = vpack.c.bf16 %v2564_v42, %v2563_v34  ;;  %v8692_v0 = vld [vmem:[#allocation41_spill] sm:$0xff]  ;;  %v2591_v3 = vpack.c.bf16 %v2566_v61, %v2565_v39  ;;  %v2567_v42 = vmul.f32 %v6851_v6, %v7202_v22  ;;  %v8696_v22 = vld [vmem:[#allocation20_spill] sm:$0xff]  ;;  %v8700_v6 = vld [vmem:[#allocation46_spill] sm:$0xff] }
 0x15b   : > { %6120 = vmatprep.mubr.msk.bf16.mxu0 %vm1018_vm1, %v2589_v50  ;;  %v7427_v50 = vld [vmem:[#allocation2 + $0x61] sm:$0xff]  ;;  %v2170_v47 = vmul.f32 %v8692_v0, %v7425_v32  ;;  %v2569_v61 = vmul.f32 %v6855_v8, %v7224_v33  ;;  %v7455_v39 = vld [vmem:[#allocation2 + $0x79] sm:$0xff]  ;;  %v8698_v33 = vld [vmem:[#allocation44_spill] sm:$0xff] }
 0x15c   : > { %v2171_v24 = vmul.f32 %v8693_v38, %v7427_v50  ;;  %v2592_v49 = vpack.c.bf16 %v2568_v45, %v2567_v42  ;;  %v8699_v8 = vld [vmem:[#allocation47_spill] sm:$0xff]  ;;  %v8701_v45 = vld [vmem:[#allocation72_spill] sm:$0xff]  ;;  %v8702_v42 = vld [vmem:[#allocation22_spill] sm:$0xff] }
 0x15e   : > { %6083 = vmatmul.mubr.msk.bf16.gmra.mrb[52].mxu1 %vm1018_vm1, %v2195_v9  ;;  %v2173_v9 = vmul.f32 %v8694_v52, %v7432_v14  ;;  %v2197_v34 = vpack.c.bf16 %v2171_v24, %v2170_v47  ;;  %v2570_v47 = vmul.f32 %v8696_v22, %v7232_v60  ;;  %v8697_v24 = vld [vmem:[#allocation45_spill] sm:$0xff]  ;;  %v2571_v60 = vmul.f32 %v6859_v11, %v7227_v7 }
 0x15f   : > { %6086 = vmatprep.mubr.msk.bf16.mxu1 %vm1018_vm1, %v2196_v41  ;;  %v8695_v41 = vld [vmem:[#allocation43_spill] sm:$0xff]  ;;  %v2572_v22 = vmul.f32 %v8702_v42, %v8701_v45 }
 0x160   : > { %v2172_v48 = vmul.f32 %v8695_v41, %v7441_v2  ;;  %v2593_v5 = vpack.c.bf16 %v2570_v47, %v2569_v61  ;;  %v8703_v61 = vld [vmem:[#allocation24_spill] sm:$0xff] }
 0x161   : > { %v2574_v47 = vmul.f32 %v8703_v61, %v7250_v40  ;;  %v8707_v40 = vld [vmem:[#allocation48_spill] sm:$0xff]  ;;  %v8708_v61 = vld [vmem:[#allocation50_spill] sm:$0xff] }
 0x162   : > { %6121 = vmatmul.mubr.msk.bf16.gmra.mrb[56].mxu0 %vm1018_vm1, %v2590_v62  ;;  %v2198_v20 = vpack.c.bf16 %v2173_v9, %v2172_v48  ;;  %v7462_v62 = vld [vmem:[#allocation2 + $0x91] sm:$0xff]  ;;  %v2174_v9 = vmul.f32 %v8697_v24, %v7455_v39  ;;  %v2175_v48 = vmul.f32 %v8698_v33, %v7457_v4  ;;  %v7483_v33 = vld [vmem:[#allocation2 + $0x99] sm:$0xff] }
 0x163   : > { %6124 = vmatprep.mubr.msk.bf16.mxu0 %vm1018_vm1, %v2591_v3  ;;  %v7460_v3 = vld [vmem:[#allocation2 + $0x89] sm:$0xff]  ;;  %v2177_v1 = vmul.f32 %v8700_v6, %v7462_v62  ;;  %8704 = vst [vmem:[#allocation35_spill] sm:$0xff] %v7483_v33 }
 0x166   : > { %6087 = vmatmul.mubr.msk.bf16.gmra.mrb[56].mxu1 %vm1018_vm1, %v2197_v34  ;;  %v2176_v34 = vmul.f32 %v8699_v8, %v7460_v3  ;;  %v7485_v8 = vld [vmem:[#allocation2 + $0xa1] sm:$0xff] }
 0x167   : > { %6090 = vmatprep.mubr.msk.bf16.mxu1 %vm1018_vm1, %v2198_v20  ;;  %v2199_v20 = vpack.c.bf16 %v2175_v48, %v2174_v9  ;;  %v1988_v9 = vld [vmem:[#allocation2 + $0xa9] sm:$0xff]  ;;  %v2594_v48 = vpack.c.bf16 %v2572_v22, %v2571_v60  ;;  %v2179_v45 = vmul.f32 %v8707_v40, %v7485_v8 }
 0x168   : > { %v2200_v24 = vpack.c.bf16 %v2177_v1, %v2176_v34  ;;  %v8706_v1 = vld [vmem:[#allocation49_spill] sm:$0xff]  ;;  %v8711_v60 = vld [vmem:[#allocation75_spill] sm:$0xff]  ;;  %v8713_v40 = vld [vmem:[#allocation28_spill] sm:$0xff] }
 0x169   : > { %v2178_v34 = vmul.f32 %v8706_v1, %v7483_v33 }
 0x16a   : > { %6125 = vmatmul.mubr.msk.bf16.gmra.mrb[60].mxu0 %vm1018_vm1, %v2592_v49  ;;  %v7488_v49 = vld [vmem:[#allocation2 + $0xb1] sm:$0xff] }
 0x16b   : > { %6128 = vmatprep.mubr.msk.bf16.mxu0 %vm1018_vm1, %v2593_v5  ;;  %v8705_v5 = vld [vmem:[#allocation25_spill] sm:$0xff]  ;;  %v2181_v42 = vmul.f32 %v8708_v61, %v7488_v49  ;;  %v7510_v61 = vld [vmem:[#allocation2 + $0xc1] sm:$0xff] }
 0x16c   : > { %v2573_v7 = vmul.f32 %v8705_v5, %v7258_v53  ;;  %v8710_v53 = vld [vmem:[#allocation27_spill] sm:$0xff]  ;;  %v8712_v5 = vld [vmem:[#allocation26_spill] sm:$0xff] }
 0x16d   : > { %v2575_v22 = vmul.f32 %v8710_v53, %v7253_v12  ;;  %v2576_v1 = vmul.f32 %v8712_v5, %v8711_v60  ;;  %v8717_v53 = vld [vmem:[#allocation54_spill] sm:$0xff] }
 0x16e   : > { %6091 = vmatmul.mubr.msk.bf16.gmra.mrb[60].mxu1 %vm1018_vm1, %v2199_v20  ;;  %v2595_v11 = vpack.c.bf16 %v2574_v47, %v2573_v7  ;;  %v8709_v20 = vld [vmem:[#allocation51_spill] sm:$0xff]  ;;  %v2578_v47 = vmul.f32 %v8713_v40, %v7281_v17  ;;  %v7508_v7 = vld [vmem:[#allocation2 + $0xb9] sm:$0xff]  ;;  %v8716_v17 = vld [vmem:[#allocation52_spill] sm:$0xff] }
 0x16f   : > { %6094 = vmatprep.mubr.msk.bf16.mxu1 %vm1018_vm1, %v2200_v24  ;;  %v2180_v6 = vmul.f32 %v8709_v20, %v1988_v9  ;;  %v2201_v24 = vpack.c.bf16 %v2179_v45, %v2178_v34  ;;  %v7513_v9 = vld [vmem:[#allocation2 + $0xd1] sm:$0xff]  ;;  %v2596_v34 = vpack.c.bf16 %v2576_v1, %v2575_v22  ;;  %v2183_v45 = vmul.f32 %v8716_v17, %v7510_v61  ;;  %v8719_v1 = vld [vmem:[#allocation78_spill] sm:$0xff] }
 0x170   : > { %v2185_v40 = vmul.f32 %v8717_v53, %v7513_v9  ;;  %v8720_v22 = vld [vmem:[#allocation30_spill] sm:$0xff] }
 0x171   : > { %v2202_v33 = vpack.c.bf16 %v2181_v42, %v2180_v6  ;;  %v8715_v6 = vld [vmem:[#allocation53_spill] sm:$0xff]  ;;  %v7535_v53 = vld [vmem:[#allocation2 + $0xe1] sm:$0xff] }
 0x172   : > { %6129 = vmatmul.mubr.msk.bf16.gmra.mrb[64].mxu0 %vm1018_vm1, %v2594_v48  ;;  %v1992_v48 = vld [vmem:[#allocation2 + $0xc9] sm:$0xff]  ;;  %v2182_v42 = vmul.f32 %v8715_v6, %v7508_v7 }
 0x173   : > { %6132 = vmatprep.mubr.msk.bf16.mxu0 %vm1018_vm1, %v2595_v11  ;;  %v8714_v11 = vld [vmem:[#allocation29_spill] sm:$0xff] }
 0x174   : > { %v2577_v12 = vmul.f32 %v8714_v11, %v7290_v15  ;;  %v2579_v15 = vmul.f32 %v6875_v19, %v7285_v46  ;;  %v2580_v11 = vmul.f32 %v8720_v22, %v8719_v1  ;;  %v2581_v46 = vmul.f32 %v6884_v23, %v7317_v10 }
 0x175   : > { %v2583_v10 = vmul.f32 %v7392_v13, %v6892_v26  ;;  %v2584_v23 = vmul.f32 %v7400_v51, %v6887_v25  ;;  %v8725_v13 = vld [vmem:[#allocation64_spill] sm:$0xff] }
 0x176   : > { %6095 = vmatmul.mubr.msk.bf16.gmra.mrb[64].mxu1 %vm1018_vm1, %v2201_v24  ;;  %v2597_v60 = vpack.c.bf16 %v2578_v47, %v2577_v12  ;;  %v8718_v24 = vld [vmem:[#allocation55_spill] sm:$0xff]  ;;  %v2582_v47 = vmul.f32 %v6877_v21, %v7311_v31  ;;  %v7533_v12 = vld [vmem:[#allocation2 + $0xd9] sm:$0xff]  ;;  %v8722_v21 = vld [vmem:[#allocation56_spill] sm:$0xff] }
 0x177   : > { %6098 = vmatprep.mubr.msk.bf16.mxu1 %vm1018_vm1, %v2202_v33  ;;  %v2184_v5 = vmul.f32 %v8718_v24, %v1992_v48  ;;  %v2203_v33 = vpack.c.bf16 %v2183_v45, %v2182_v42  ;;  %v7538_v48 = vld [vmem:[#allocation2 + $0xf1] sm:$0xff]  ;;  %v2598_v42 = vpack.c.bf16 %v2580_v11, %v2579_v15  ;;  %v2187_v31 = vmul.f32 %v8722_v21, %v7535_v53 }
 0x178   : > { %v2599_v45 = vpack.c.bf16 %v2582_v47, %v2581_v46  ;;  %v3303_v15 = vmul.f32 %v6896_v28, %v7334_v29  ;;  %v3304_v47 = vmul.f32 %v6894_v27, %v7343_v56  ;;  %v7560_v46 = vld [vmem:[#allocation2 + $0xf9] sm:$0xff]  ;;  %v3306_v29 = vmul.f32 %v8681_v58, %v7346_v57 }
 0x179   : > { %v2204_v6 = vpack.c.bf16 %v2185_v40, %v2184_v5  ;;  %v8721_v5 = vld [vmem:[#allocation57_spill] sm:$0xff] }
 0x17a   : > { %6133 = vmatmul.mubr.msk.bf16.gmra.mrb[68].mxu0 %vm1018_vm1, %v2596_v34  ;;  %v1996_v34 = vld [vmem:[#allocation2 + $0xe9] sm:$0xff]  ;;  %v2186_v40 = vmul.f32 %v8721_v5, %v7533_v12 }
 0x17b   : > { %6136 = vmatprep.mubr.msk.bf16.mxu0 %vm1018_vm1, %v2597_v60  ;;  %v8723_v60 = vld [vmem:[#allocation59_spill] sm:$0xff] }
 0x17c   : > { %v2189_v1 = vmul.f32 %v8723_v60, %v7538_v48 }
 0x17e   : > { %6099 = vmatmul.mubr.msk.bf16.gmra.mrb[68].mxu1 %vm1018_vm1, %v2203_v33  ;;  %v8724_v33 = vld [vmem:[#allocation60_spill] sm:$0xff] }
 0x17f   : > { %6102 = vmatprep.mubr.msk.bf16.mxu1 %vm1018_vm1, %v2204_v6  ;;  %v2188_v19 = vmul.f32 %v8724_v33, %v1996_v34  ;;  %v2205_v6 = vpack.c.bf16 %v2187_v31, %v2186_v40  ;;  %v2600_v34 = vpack.c.bf16 %v2584_v23, %v2583_v10  ;;  %v2190_v40 = vmul.f32 %v8725_v13, %v7560_v46  ;;  %v8727_v10 = vld [vmem:[#allocation61_spill] sm:$0xff] }
 0x180   : > { %v3335_v31 = vpack.c.bf16 %v3304_v47, %v3303_v15  ;;  %v3311_v47 = vmul.f32 %v8690_v54, %v7425_v32 }
 0x181   : > { %v2206_v11 = vpack.c.bf16 %v2189_v1, %v2188_v19  ;;  %v8726_v19 = vld [vmem:[#allocation62_spill] sm:$0xff]  ;;  %v3308_v1 = vmul.f32 %v8682_v63, %v7384_v37 }
 0x182   : > { %6137 = vmatmul.mubr.msk.bf16.gmra.mrb[72].mxu0 %vm1018_vm1, %v2598_v42  ;;  %v7562_v42 = vld [vmem:[#allocation2 + $0x101] sm:$0xff] }
 0x183   : > { %6140 = vmatprep.mubr.msk.bf16.mxu0 %vm1018_vm1, %v2599_v45  ;;  %v2191_v51 = vmul.f32 %v8726_v19, %v7562_v42  ;;  %v3307_v45 = vmul.f32 %v8683_v16, %v7382_v59  ;;  %v8729_v59 = vrot.slane %v7361_v36, 2  ;;  %v8731_v36 = vld [vmem:[#allocation33_spill] sm:$0xff] }
 0x185   : > { %v2207_v56 = vpack.c.bf16 %v2191_v51, %v2190_v40  ;;  %v3337_v57 = vpack.c.bf16 %v3308_v1, %v3307_v45  ;;  %v3798_v37 = vsel %vm1410_vm3, %v8729_v59, 0  ;;  %v8730_v40 = vld [vmem:[#allocation58_spill] sm:$0xff]  ;;  %v8732_v51 = vld [vmem:[#allocation37_spill] sm:$0xff]  ;;  %v3316_v45 = vmul.f32 %v8694_v52, %v7457_v4  ;;  %v8734_v1 = vld [vmem:[#allocation67_spill] sm:$0xff] }
 0x186   : > { %6103 = vmatmul.mubr.msk.bf16.gmra.mrb[72].mxu1 %vm1018_vm1, %v2205_v6  ;;  %v3305_v6 = vmul.f32 %v8680_v30, %v7355_v55  ;;  %v3310_v55 = vmul.f32 %v8685_v35, %v7387_v43  ;;  %v8737_v4 = vld [vmem:[#allocation44_spill] sm:$0xff]  ;;  %v8739_v59 = vld [vmem:[#allocation47_spill] sm:$0xff] }
 0x187   : > { %6106 = vmatprep.mubr.msk.bf16.mxu1 %vm1018_vm1, %v2206_v11  ;;  %v8728_v11 = vrot.slane %v7339_v18, 3  ;;  %v3312_v18 = vmul.f32 %v8688_v44, %v7427_v50  ;;  %v3314_v50 = vmul.f32 %v8693_v38, %v7432_v14  ;;  %v8736_v14 = vld [vmem:[#allocation45_spill] sm:$0xff] }
 0x188   : > { %v3336_v23 = vpack.c.bf16 %v3306_v29, %v3305_v6  ;;  %v3315_v29 = vmul.f32 %v8695_v41, %v7455_v39  ;;  %v3313_v6 = vmul.f32 %v8692_v0, %v7441_v2  ;;  %v3317_v39 = vmul.f32 %v8736_v14, %v7460_v3  ;;  %v8740_v2 = vld [vmem:[#allocation46_spill] sm:$0xff]  ;;  %v7640_v3 = vld [vmem:[#allocation2 + $0xa9] sm:$0xff] }
 0x189   : > { %v4159_v15 = vsel %vm1410_vm3, %v8728_v11, 0  ;;  %v3339_v32 = vpack.c.bf16 %v3312_v18, %v3311_v47  ;;  %v8741_v47 = vld [vmem:[#allocation69_spill] sm:$0xff]  ;;  %v8742_v18 = vld [vmem:[#allocation70_spill] sm:$0xff] }
 0x18a   : > { %6141 = vmatmul.mubr.msk.bf16.gmra.mrb[76].mxu0 %vm1018_vm1, %v2600_v34  ;;  %v7600_v34 = vld [vmem:[%s8484_s7 + $0x8] sm:$0x1]  ;;  %v3341_v11 = vpack.c.bf16 %v3316_v45, %v3315_v29  ;;  %v8746_v29 = vld [vmem:[#allocation49_spill] sm:$0xff] }
 0x18b   : > { %6180 = vmatprep.mubr.msk.bf16.mxu0 %vm1018_vm1, %v3335_v31  ;;  %v3309_v31 = vmul.f32 %v8732_v51, %v8731_v36  ;;  %v3321_v45 = vmul.f32 %v7640_v3, %v8746_v29 }
 0x18d   : > { %v3338_v43 = vpack.c.bf16 %v3310_v55, %v3309_v31  ;;  %v3320_v55 = vmul.f32 %v8740_v2, %v7485_v8  ;;  %v3323_v8 = vmul.f32 %v8709_v20, %v7508_v7  ;;  %v3327_v7 = vmul.f32 %v8718_v24, %v7533_v12 }
 0x18e   : > { %6107 = vmatmul.mubr.msk.bf16.gmra.mrb[76].mxu1 %vm1018_vm1, %v2207_v56  ;;  %v8733_v56 = vld [vmem:[#allocation66_spill] sm:$0xff]  ;;  %v3330_v12 = vmul.f32 %v8722_v21, %v7538_v48 }
 0x18f   : > { %6146 = vmatprep.mubr.msk.bf16.mxu1 %vm1018_vm1, %v8727_v10  ;;  %v8735_v10 = vld [vmem:[#allocation68_spill] sm:$0xff] }
 0x192   : > { %6181 = vmatmul.mubr.msk.bf16.vlgmr.msra.gmra.mrb[80].mxu0 %vm1018_vm1, %v3336_v23  ;;  %v3340_v23 = vpack.c.bf16 %v3314_v50, %v3313_v6  ;;  %v8745_v50 = vld [vmem:[#allocation71_spill] sm:$0xff]  ;;  %v8747_v6 = vld [vmem:[#allocation73_spill] sm:$0xff] }
 0x193   : > { %6184 = vmatprep.mubr.msk.bf16.mxu0 %vm1018_vm1, %v3337_v57  ;;  %6247 = vmatpush3.bf16.msra.mxu0 %v4159_v15  ;;  %v3318_v15 = vmul.f32 %v8737_v4, %v7462_v62  ;;  %v8738_v57 = vld [vmem:[#allocation35_spill] sm:$0xff]  ;;  %v8743_v62 = vld [vmem:[#allocation48_spill] sm:$0xff] }
 0x194   : > { %v3322_v31 = vmul.f32 %v8743_v62, %v7488_v49  ;;  %v7656_v49 = vld [vmem:[#allocation2 + $0xc9] sm:$0xff] }
 0x196   : > { %6147 = vmatmul.mubr.msk.bf16.vlgmr.msra.gmra.mrb[80].mxu1 %vm1018_vm1, %v8730_v40  ;;  %v3342_v40 = vpack.c.bf16 %v3318_v15, %v3317_v39  ;;  %v8749_v15 = vld [vmem:[#allocation74_spill] sm:$0xff] }
 0x197   : > { %6213 = vmatpush3.bf16.msra.mxu1 %v3798_v37  ;;  %6150 = vmatprep.mubr.msk.bf16.mxu1 %vm1018_vm1, %v8733_v56  ;;  %v3319_v37 = vmul.f32 %v8739_v59, %v8738_v57  ;;  %v8750_v57 = vld [vmem:[#allocation53_spill] sm:$0xff] }
 0x198   : > { %6360 = vmatprep.subr.msk.bf16.mxu1 %vm1410_vm3, %v7600_v34 }
 0x199   : > { %v3343_v36 = vpack.c.bf16 %v3320_v55, %v3319_v37  ;;  %v3325_v37 = vmul.f32 %v7656_v49, %v8750_v57  ;;  %v8751_v55 = vld [vmem:[#allocation76_spill] sm:$0xff] }
 0x19a   : > { %6185 = vmatmul.mubr.msk.bf16.gmra.mrb[84].mxu0 %vm1018_vm1, %v3338_v43  ;;  %v8744_v43 = vld [vmem:[#allocation50_spill] sm:$0xff] }
 0x19b   : > { %6188 = vmatprep.mubr.msk.bf16.mxu0 %vm1018_vm1, %v3339_v32  ;;  %v3324_v32 = vmul.f32 %v8744_v43, %v7510_v61  ;;  %v3326_v61 = vmul.f32 %v8716_v17, %v7513_v9  ;;  %v3297_v9 = vld [vmem:[#allocation2 + $0xe9] sm:$0xff] }
 0x19e   : > { %6151 = vmatmul.mubr.msk.bf16.gmra.mrb[84].mxu1 %vm1018_vm1, %v8734_v1 }
 0x19f   : > { %6154 = vmatprep.mubr.msk.bf16.mxu1 %vm1018_vm1, %v8735_v10  ;;  %v3344_v10 = vpack.c.bf16 %v3322_v31, %v3321_v45  ;;  %v3329_v31 = vmul.f32 %v3297_v9, %v8721_v5  ;;  %v3301_v45 = vld [vmem:[#allocation2 + $0x109] sm:$0xff] }
 0x1a0   : > { %v3333_v48 = vmul.f32 %v3301_v45, %v8725_v13  ;;  %v8759_v45 = vld [vmem:[#allocation9_spill] sm:$0xff]  ;;  %v8777_v5 = vld [vmem:[#allocation23_spill] sm:$0xff] }
 0x1a2   : > { %6189 = vmatmul.mubr.msk.bf16.gmra.mrb[88].mxu0 %vm1018_vm1, %v3340_v23  ;;  %v3345_v23 = vpack.c.bf16 %v3324_v32, %v3323_v8  ;;  %v8753_v8 = vld [vmem:[#allocation79_spill] sm:$0xff]  ;;  %v3348_v32 = vpack.c.bf16 %v3330_v12, %v3329_v31 }
 0x1a3   : > { %6192 = vmatprep.mubr.msk.bf16.mxu0 %vm1018_vm1, %v3341_v11  ;;  %v8748_v11 = vld [vmem:[#allocation54_spill] sm:$0xff]  ;;  %v8757_v12 = vld [vmem:[#allocation7_spill] sm:$0xff] }
 0x1a4   : > { %v3328_v39 = vmul.f32 %v8748_v11, %v7535_v53  ;;  %v3331_v53 = vmul.f32 %v8724_v33, %v7560_v46  ;;  %v3669_v31 = vld [vmem:[#allocation2 + $0x4f] sm:$0xff] }
 0x1a6   : > { %6155 = vmatmul.mubr.msk.bf16.gmra.mrb[88].mxu1 %vm1018_vm1, %v8741_v47  ;;  %v3346_v47 = vpack.c.bf16 %v3326_v61, %v3325_v37  ;;  %v3665_v61 = vld [vmem:[#allocation2 + $0x2f] sm:$0xff] }
 0x1a7   : > { %6158 = vmatprep.mubr.msk.bf16.mxu1 %vm1018_vm1, %v8742_v18  ;;  %v3347_v18 = vpack.c.bf16 %v3328_v39, %v3327_v7  ;;  %v8755_v7 = vld [vmem:[#allocation81_spill] sm:$0xff]  ;;  %v3697_v13 = vmul.f32 %v3665_v61, %v8757_v12  ;;  %v4548_v61 = vsel %vm1410_vm3, %v7600_v34, 0  ;;  %v4065_v12 = vld [vmem:[#allocation2 + $0x68] sm:$0xff] }
 0x1aa   : > { %6193 = vmatmul.mubr.msk.bf16.gmra.mrb[92].mxu0 %vm1018_vm1, %v3342_v40  ;;  %v3332_v40 = vmul.f32 %v8723_v60, %v7562_v42  ;;  %v8754_v42 = vld [vmem:[#allocation80_spill] sm:$0xff] }
 0x1ab   : > { %6196 = vmatprep.mubr.msk.bf16.mxu0 %vm1018_vm1, %v3343_v36  ;;  %v8752_v36 = vld [vmem:[#allocation77_spill] sm:$0xff] }
 0x1ae   : > { %6159 = vmatmul.mubr.msk.bf16.gmra.mrb[92].mxu1 %vm1018_vm1, %v8745_v50  ;;  %v3349_v50 = vpack.c.bf16 %v3332_v40, %v3331_v53  ;;  %v3667_v40 = vld [vmem:[#allocation2 + $0x3f] sm:$0xff] }
 0x1af   : > { %6162 = vmatprep.mubr.msk.bf16.mxu1 %vm1018_vm1, %v8747_v6  ;;  %v3302_v6 = vld [vmem:[#allocation2 + $0x111] sm:$0xff] }
 0x1b0   : > { %v3334_v46 = vmul.f32 %v3302_v6, %v8726_v19 }
 0x1b2   : > { %6197 = vmatmul.mubr.msk.bf16.gmra.mrb[96].mxu0 %vm1018_vm1, %v3344_v10  ;;  %v4058_v10 = vld [vmem:[#allocation2 + $0x30] sm:$0xff]  ;;  %v3350_v39 = vpack.c.bf16 %v3334_v46, %v3333_v48 }
 0x1b3   : > { %6200 = vmatprep.mubr.msk.bf16.mxu0 %vm1018_vm1, %v3345_v23  ;;  %v3664_v23 = vld [vmem:[#allocation2 + $0x27] sm:$0xff]  ;;  %v8760_v48 = vld [vmem:[#allocation8_spill] sm:$0xff] }
 0x1b4   : > { %v3701_v46 = vmul.f32 %v3669_v31, %v8760_v48  ;;  %v3675_v48 = vld [vmem:[#allocation2 + $0x7f] sm:$0xff] }
 0x1b6   : > { %6163 = vmatmul.mubr.msk.bf16.gmra.mrb[96].mxu1 %vm1018_vm1, %v8749_v15  ;;  %v4057_v15 = vld [vmem:[#allocation2 + $0x28] sm:$0xff] }
 0x1b7   : > { %6166 = vmatprep.mubr.msk.bf16.mxu1 %vm1018_vm1, %v8751_v55  ;;  %v4089_v37 = vpack.c.bf16 %v4058_v10, %v4057_v15  ;;  %v2944_v55 = vld [vmem:[#allocation2 + $0x108] sm:$0xff]  ;;  %v3671_v15 = vld [vmem:[#allocation2 + $0x5f] sm:$0xff] }
 0x1ba   : > { %6201 = vmatmul.mubr.msk.bf16.gmra.mrb[100].mxu0 %vm1018_vm1, %v3346_v47  ;;  %v2945_v47 = vld [vmem:[#allocation2 + $0x110] sm:$0xff] }
 0x1bb   : > { %6204 = vmatprep.mubr.msk.bf16.mxu0 %vm1018_vm1, %v3347_v18  ;;  %v8756_v18 = vld [vmem:[#allocation5_spill] sm:$0xff]  ;;  %v7695_v19 = vpack.c.bf16 %v2945_v47, %v2944_v55  ;;  %v3672_v55 = vld [vmem:[#allocation2 + $0x67] sm:$0xff]  ;;  %v3673_v47 = vld [vmem:[#allocation2 + $0x6f] sm:$0xff] }
 0x1bc   : > { %v3696_v9 = vmul.f32 %v3664_v23, %v8756_v18  ;;  %v3670_v18 = vld [vmem:[#allocation2 + $0x57] sm:$0xff] }
 0x1be   : > { %6167 = vmatmul.mubr.msk.bf16.gmra.mrb[100].mxu1 %vm1018_vm1, %v8752_v36  ;;  %v3728_v53 = vpack.c.bf16 %v3697_v13, %v3696_v9  ;;  %v3668_v36 = vld [vmem:[#allocation2 + $0x47] sm:$0xff] }
 0x1bf   : > { %6170 = vmatprep.mubr.msk.bf16.mxu1 %vm1018_vm1, %v8753_v8  ;;  %v3666_v8 = vld [vmem:[#allocation2 + $0x37] sm:$0xff]  ;;  %v3700_v6 = vmul.f32 %v3668_v36, %v8759_v45 }
 0x1c0   : > { %v8764_v36 = vld [vmem:[#allocation12_spill] sm:$0xff] }
 0x1c1   : > { %v3705_v31 = vmul.f32 %v3673_v47, %v8764_v36 }
 0x1c2   : > { %6205 = vmatmul.mubr.msk.bf16.gmra.mrb[104].mxu0 %vm1018_vm1, %v3348_v32  ;;  %v8758_v32 = vld [vmem:[#allocation6_spill] sm:$0xff] }
 0x1c3   : > { %6208 = vmatprep.mubr.msk.bf16.mxu0 %vm1018_vm1, %v3349_v50  ;;  %v3699_v50 = vmul.f32 %v3667_v40, %v8758_v32  ;;  %v8763_v40 = vld [vmem:[#allocation13_spill] sm:$0xff] }
 0x1c4   : > { %v3704_v34 = vmul.f32 %v3672_v55, %v8763_v40 }
 0x1c6   : > { %6171 = vmatmul.mubr.msk.bf16.gmra.mrb[104].mxu1 %vm1018_vm1, %v8754_v42  ;;  %v8761_v42 = vld [vmem:[#allocation4_spill] sm:$0xff]  ;;  %v3732_v45 = vpack.c.bf16 %v3705_v31, %v3704_v34  ;;  %v4071_v31 = vld [vmem:[#allocation2 + $0x98] sm:$0xff] }
 0x1c7   : > { %6174 = vmatprep.mubr.msk.bf16.mxu1 %vm1018_vm1, %v8755_v7  ;;  %v3698_v10 = vmul.f32 %v3666_v8, %v8761_v42  ;;  %v3730_v7 = vpack.c.bf16 %v3701_v46, %v3700_v6  ;;  %v8765_v8 = vld [vmem:[#allocation11_spill] sm:$0xff]  ;;  %v4068_v6 = vld [vmem:[#allocation2 + $0x80] sm:$0xff]  ;;  %v4070_v46 = vld [vmem:[#allocation2 + $0x90] sm:$0xff] }
 0x1c8   : > { %v3702_v32 = vmul.f32 %v3670_v18, %v8765_v8  ;;  %v3676_v42 = vld [vmem:[#allocation2 + $0x87] sm:$0xff]  ;;  %v8767_v18 = vld [vmem:[#allocation17_spill] sm:$0xff] }
 0x1c9   : > { %v3729_v23 = vpack.c.bf16 %v3699_v50, %v3698_v10  ;;  %v3677_v10 = vld [vmem:[#allocation2 + $0x8f] sm:$0xff] }
 0x1ca   : > { %6209 = vmatmul.mubr.msk.bf16.gmra.mrb[108].mxu0 %vm1018_vm1, %v3350_v39  ;;  %v4064_v39 = vld [vmem:[#allocation2 + $0x60] sm:$0xff] }
 0x1cb   : > { %6248 = vmatprep.mubr.msk.bf16.mxu0 %vm1018_vm1, %v4089_v37  ;;  %v4066_v37 = vld [vmem:[#allocation2 + $0x70] sm:$0xff] }
 0x1ce   : > { %6175 = vmatmul.mubr.msk.bf16.gmra.mrb[108].mxu1 %vm1018_vm1, %v7695_v19 }
 0x1cf   : > { %6214 = vmatprep.mubr.msk.bf16.mxu1 %vm1018_vm1, %v3728_v53  ;;  %v4093_v53 = vpack.c.bf16 %v4066_v37, %v4065_v12  ;;  %v8766_v37 = vld [vmem:[#allocation14_spill] sm:$0xff]  ;;  %v8768_v12 = vld [vmem:[#allocation16_spill] sm:$0xff] }
 0x1d0   : > { %v3707_v55 = vmul.f32 %v3675_v48, %v8766_v37  ;;  %v3680_v48 = vld [vmem:[#allocation2 + $0xa7] sm:$0xff] }
 0x1d2   : > { %6249 = vmatmul.mubr.msk.bf16.vlgmr.msra.gmra.mrb[112].mxu0 %vm1018_vm1, %v8733_v56  ;;  %v4063_v56 = vld [vmem:[#allocation2 + $0x58] sm:$0xff] }
 0x1d3   : > { %6252 = vmatprep.mubr.msk.bf16.mxu0 %vm1018_vm1, %v8734_v1  ;;  %v4092_v9 = vpack.c.bf16 %v4064_v39, %v4063_v56  ;;  %v8762_v1 = vld [vmem:[#allocation10_spill] sm:$0xff] }
 0x1d4   : > { %v3703_v13 = vmul.f32 %v3671_v15, %v8762_v1  ;;  %v4069_v15 = vld [vmem:[#allocation2 + $0x88] sm:$0xff]  ;;  %v3709_v1 = vmul.f32 %v3677_v10, %v8768_v12 }
 0x1d5   : > { %v4095_v56 = vpack.c.bf16 %v4070_v46, %v4069_v15  ;;  %v3681_v46 = vld [vmem:[#allocation2 + $0xaf] sm:$0xff] }
 0x1d6   : > { %6215 = vmatmul.mubr.msk.bf16.vlgmr.msra.gmra.mrb[112].mxu1 %vm1018_vm1, %v3729_v23  ;;  %v3731_v50 = vpack.c.bf16 %v3703_v13, %v3702_v32  ;;  %v4067_v23 = vld [vmem:[#allocation2 + $0x78] sm:$0xff]  ;;  %v4072_v32 = vld [vmem:[#allocation2 + $0xa0] sm:$0xff] }
 0x1d7   : > { %6281 = vmatpush3.bf16.msra.mxu1 %v4548_v61  ;;  %6218 = vmatprep.mubr.msk.bf16.mxu1 %vm1018_vm1, %v3730_v7  ;;  %v3674_v61 = vld [vmem:[#allocation2 + $0x77] sm:$0xff]  ;;  %v4094_v39 = vpack.c.bf16 %v4068_v6, %v4067_v23  ;;  %v4096_v23 = vpack.c.bf16 %v4072_v32, %v4071_v31 }
 0x1d8   : > { %v4074_v6 = vld [vmem:[#allocation2 + $0xb0] sm:$0xff]  ;;  %v4075_v31 = vld [vmem:[#allocation2 + $0xb8] sm:$0xff] }
 0x1da   : > { %6253 = vmatmul.mubr.msk.bf16.gmra.mrb[116].mxu0 %vm1018_vm1, %v4092_v9  ;;  %v3708_v9 = vmul.f32 %v3676_v42, %v8767_v18  ;;  %v3679_v42 = vld [vmem:[#allocation2 + $0x9f] sm:$0xff]  ;;  %v8772_v18 = vld [vmem:[#allocation20_spill] sm:$0xff] }
 0x1db   : > { %6256 = vmatprep.mubr.msk.bf16.mxu0 %vm1018_vm1, %v4093_v53  ;;  %v8769_v53 = vld [vmem:[#allocation15_spill] sm:$0xff] }
 0x1dc   : > { %v3706_v40 = vmul.f32 %v3674_v61, %v8769_v53  ;;  %v3734_v8 = vpack.c.bf16 %v3709_v1, %v3708_v9  ;;  %v8770_v61 = vld [vmem:[#allocation19_spill] sm:$0xff]  ;;  %v3713_v9 = vmul.f32 %v3681_v46, %v8772_v18  ;;  %v8773_v1 = vld [vmem:[#allocation18_spill] sm:$0xff]  ;;  %v4078_v46 = vld [vmem:[#allocation2 + $0xd0] sm:$0xff] }
 0x1dd   : > { %v3711_v53 = vmul.f32 %v3679_v42, %v8773_v1  ;;  %v3684_v42 = vld [vmem:[#allocation2 + $0xc7] sm:$0xff] }
 0x1de   : > { %6219 = vmatmul.mubr.msk.bf16.gmra.mrb[116].mxu1 %vm1018_vm1, %v3731_v50  ;;  %v3733_v36 = vpack.c.bf16 %v3707_v55, %v3706_v40  ;;  %v4073_v50 = vld [vmem:[#allocation2 + $0xa8] sm:$0xff]  ;;  %v8771_v55 = vld [vmem:[#allocation21_spill] sm:$0xff] }
 0x1df   : > { %6222 = vmatprep.mubr.msk.bf16.mxu1 %vm1018_vm1, %v3732_v45  ;;  %v6046_v7 = vpop.f32.mrb[16].mxu0  ;;  %v3678_v45 = vld [vmem:[#allocation2 + $0x97] sm:$0xff]  ;;  %v4097_v37 = vpack.c.bf16 %v4074_v6, %v4073_v50  ;;  %v4076_v50 = vld [vmem:[#allocation2 + $0xc0] sm:$0xff] }
 0x1e0   : > { %v1745_v47 = vpop.f32.mrb[17].mxu0  ;;  %v3683_v6 = vld [vmem:[#allocation2 + $0xbf] sm:$0xff] }
 0x1e1   : > { %v7723_v13 = vpop.f32.mrb[18].mxu0 }
 0x1e2   : > { %6257 = vmatmul.mubr.msk.bf16.gmra.mrb[120].mxu0 %vm1018_vm1, %v4094_v39  ;;  %v7727_v34 = vpop.f32.mrb[19].mxu0  ;;  %v3710_v39 = vmul.f32 %v3678_v45, %v8770_v61  ;;  %v4077_v45 = vld [vmem:[#allocation2 + $0xc8] sm:$0xff]  ;;  %v3682_v61 = vld [vmem:[#allocation2 + $0xb7] sm:$0xff] }
 0x1e3   : > { %6260 = vmatprep.mubr.msk.bf16.mxu0 %vm1018_vm1, %v4095_v56  ;;  %v3712_v56 = vmul.f32 %v3680_v48, %v8771_v55  ;;  %v8774_v55 = vld [vmem:[#allocation22_spill] sm:$0xff]  ;;  %v4099_v1 = vpack.c.bf16 %v4078_v46, %v4077_v45  ;;  %v3714_v24 = vmul.f32 %v3682_v61, %v8777_v5  ;;  %v4079_v46 = vld [vmem:[#allocation2 + $0xd8] sm:$0xff] }
 0x1e4   : > { %v3688_v61 = vld [vmem:[#allocation2 + $0xe7] sm:$0xff] }
 0x1e5   : > { %v3736_v32 = vpack.c.bf16 %v3713_v9, %v3712_v56  ;;  %v3715_v56 = vmul.f32 %v3683_v6, %v8774_v55 }
 0x1e6   : > { %6223 = vmatmul.mubr.msk.bf16.gmra.mrb[120].mxu1 %vm1018_vm1, %v3733_v36  ;;  %v3735_v36 = vpack.c.bf16 %v3711_v53, %v3710_v39  ;;  %v8775_v53 = vld [vmem:[#allocation25_spill] sm:$0xff] }
 0x1e7   : > { %6226 = vmatprep.mubr.msk.bf16.mxu1 %vm1018_vm1, %v3734_v8  ;;  %v6012_v10 = vpop.f32.mrb[16].mxu1  ;;  %v3737_v6 = vpack.c.bf16 %v3715_v56, %v3714_v24 }
 0x1e8   : > { %1577 = vst.msk [vmem:[#allocation3 + $0x10] sm:$0xff] %vm1018_vm1, %v6012_v10  ;;  %v1448_v15 = vpop.f32.mrb[17].mxu1  ;;  %v3685_v10 = vld [vmem:[#allocation2 + $0xcf] sm:$0xff] }
 0x1e9   : > { %1575 = vst.msk [vmem:[#allocation3] sm:$0xff] %vm1018_vm1, %v1448_v15  ;;  %v6013_v12 = vpop.f32.mrb[18].mxu1 }
 0x1ea   : > { %6261 = vmatmul.mubr.msk.bf16.gmra.mrb[124].mxu0 %vm1018_vm1, %v4096_v23  ;;  %1578 = vst.msk [vmem:[#allocation3 + $0x18] sm:$0xff] %vm1018_vm1, %v6013_v12  ;;  %v1451_v40 = vpop.f32.mrb[19].mxu1 }
 0x1eb   : > { %6264 = vmatprep.mubr.msk.bf16.mxu0 %vm1018_vm1, %v4097_v37  ;;  %1576 = vst.msk [vmem:[#allocation3 + $0x8] sm:$0xff] %vm1018_vm1, %v1451_v40  ;;  %v4098_v37 = vpack.c.bf16 %v4076_v50, %v4075_v31  ;;  %v3716_v40 = vmul.f32 %v3684_v42, %v8775_v53  ;;  %v4081_v42 = vld [vmem:[#allocation2 + $0xe8] sm:$0xff]  ;;  %v8779_v53 = vld [vmem:[#allocation29_spill] sm:$0xff] }
 0x1ed   : > { %v7742_v8 = vpop.f32.mrb[20].mxu0 }
 0x1ee   : > { %6227 = vmatmul.mubr.msk.bf16.gmra.mrb[124].mxu1 %vm1018_vm1, %v3735_v36  ;;  %v7745_v48 = vpop.f32.mrb[21].mxu0  ;;  %v8776_v36 = vld [vmem:[#allocation24_spill] sm:$0xff] }
 0x1ef   : > { %6230 = vmatprep.mubr.msk.bf16.mxu1 %vm1018_vm1, %v3736_v32  ;;  %v7748_v23 = vpop.f32.mrb[22].mxu0  ;;  %v1874_v39 = vld [vmem:[#allocation3 + $0x10] sm:$0xff]  ;;  %v3717_v60 = vmul.f32 %v3685_v10, %v8776_v36  ;;  %v8780_v36 = vld [vmem:[#allocation28_spill] sm:$0xff] }
 0x1f0   : > { %v7750_v15 = vpop.f32.mrb[23].mxu0  ;;  %v1906_v18 = vadd.f32 %v6046_v7, %v1874_v39  ;;  %v1872_v9 = vld [vmem:[#allocation3] sm:$0xff]  ;;  %v3687_v10 = vld [vmem:[#allocation2 + $0xdf] sm:$0xff] }
 0x1f1   : > { %v6016_v12 = vpop.f32.mrb[20].mxu1  ;;  %v1904_v33 = vadd.f32 %v1872_v9, %v1745_v47  ;;  %v1875_v21 = vld [vmem:[#allocation3 + $0x18] sm:$0xff] }
 0x1f2   : > { %1581 = vst.msk [vmem:[#allocation3 + $0x30] sm:$0xff] %vm1018_vm1, %v6016_v12  ;;  %v1464_v32 = vpop.f32.mrb[21].mxu1  ;;  %6265 = vmatmul.mubr.msk.bf16.gmra.mrb[128].mxu0 %vm1018_vm1, %v4098_v37  ;;  %1938 = vst.msk [vmem:[#allocation3 + $0x10] sm:$0xff] %vm1018_vm1, %v1906_v18  ;;  %v1907_v7 = vadd.f32 %v7723_v13, %v1875_v21  ;;  %v1873_v31 = vld [vmem:[#allocation3 + $0x8] sm:$0xff]  ;;  %v3738_v21 = vpack.c.bf16 %v3717_v60, %v3716_v40  ;;  %v4080_v13 = vld [vmem:[#allocation2 + $0xe0] sm:$0xff]  ;;  %v3720_v40 = vmul.f32 %v3688_v61, %v8779_v53 }
 0x1f3   : > { %1579 = vst.msk [vmem:[#allocation3 + $0x20] sm:$0xff] %vm1018_vm1, %v1464_v32  ;;  %v6017_v50 = vpop.f32.mrb[22].mxu1  ;;  %6268 = vmatprep.mubr.msk.bf16.mxu0 %vm1018_vm1, %v4099_v1  ;;  %1936 = vst.msk [vmem:[#allocation3] sm:$0xff] %vm1018_vm1, %v1904_v33  ;;  %v1905_v47 = vadd.f32 %v1873_v31, %v7727_v34  ;;  %v4082_v34 = vld [vmem:[#allocation2 + $0xf0] sm:$0xff]  ;;  %v4100_v56 = vpack.c.bf16 %v4080_v13, %v4079_v46  ;;  %v8778_v18 = vld [vmem:[#allocation26_spill] sm:$0xff] }
 0x1f4   : > { %1582 = vst.msk [vmem:[#allocation3 + $0x38] sm:$0xff] %vm1018_vm1, %v6017_v50  ;;  %v1467_v45 = vpop.f32.mrb[23].mxu1  ;;  %1939 = vst.msk [vmem:[#allocation3 + $0x18] sm:$0xff] %vm1018_vm1, %v1907_v7  ;;  %v3689_v39 = vld [vmem:[#allocation2 + $0xef] sm:$0xff]  ;;  %v3686_v37 = vld [vmem:[#allocation2 + $0xd7] sm:$0xff]  ;;  %v3719_v60 = vmul.f32 %v3687_v10, %v8778_v18  ;;  %v4101_v1 = vpack.c.bf16 %v4082_v34, %v4081_v42 }
 0x1f5   : > { %1580 = vst.msk [vmem:[#allocation3 + $0x28] sm:$0xff] %vm1018_vm1, %v1467_v45  ;;  %v6054_v5 = vpop.f32.mrb[24].mxu0  ;;  %1937 = vst.msk [vmem:[#allocation3 + $0x8] sm:$0xff] %vm1018_vm1, %v1905_v47  ;;  %v3721_v32 = vmul.f32 %v3689_v39, %v8780_v36  ;;  %v8781_v47 = vld [vmem:[#allocation27_spill] sm:$0xff]  ;;  %v4083_v39 = vld [vmem:[#allocation2 + $0xf8] sm:$0xff] }
 0x1f6   : > { %6231 = vmatmul.mubr.msk.bf16.gmra.mrb[128].mxu1 %vm1018_vm1, %v3737_v6  ;;  %v1777_v33 = vpop.f32.mrb[25].mxu0  ;;  %v3718_v45 = vmul.f32 %v3686_v37, %v8781_v47  ;;  %v4084_v37 = vld [vmem:[#allocation2 + $0x100] sm:$0xff] }
 0x1f7   : > { %6234 = vmatprep.mubr.msk.bf16.mxu1 %vm1018_vm1, %v3738_v21  ;;  %v6055_v24 = vpop.f32.mrb[26].mxu0  ;;  %v3740_v61 = vpack.c.bf16 %v3721_v32, %v3720_v40 }
 0x1f8   : > { %v7770_v55 = vpop.f32.mrb[27].mxu0  ;;  %v3739_v10 = vpack.c.bf16 %v3719_v60, %v3718_v45  ;;  %v3690_v60 = vld [vmem:[#allocation2 + $0xf7] sm:$0xff] }
 0x1f9   : > { %v1878_v9 = vld [vmem:[#allocation3 + $0x30] sm:$0xff]  ;;  %v6020_v12 = vpop.f32.mrb[24].mxu1 }
 0x1fa   : > { %v1910_v7 = vadd.f32 %v7742_v8, %v1878_v9  ;;  %v1876_v31 = vld [vmem:[#allocation3 + $0x20] sm:$0xff]  ;;  %1585 = vst.msk [vmem:[#allocation3 + $0x50] sm:$0xff] %vm1018_vm1, %v6020_v12  ;;  %v1480_v50 = vpop.f32.mrb[25].mxu1  ;;  %6269 = vmatmul.mubr.msk.bf16.gmra.mrb[132].mxu0 %vm1018_vm1, %v4100_v56  ;;  %v3691_v56 = vld [vmem:[#allocation2 + $0xff] sm:$0xff] }
 0x1fb   : > { %v1908_v6 = vadd.f32 %v1876_v31, %v7745_v48  ;;  %v1879_v46 = vld [vmem:[#allocation3 + $0x38] sm:$0xff]  ;;  %1583 = vst.msk [vmem:[#allocation3 + $0x40] sm:$0xff] %vm1018_vm1, %v1480_v50  ;;  %v6021_v21 = vpop.f32.mrb[26].mxu1  ;;  %6272 = vmatprep.mubr.msk.bf16.mxu0 %vm1018_vm1, %v4101_v1  ;;  %v3723_v12 = vmul.f32 %v3691_v56, %v8720_v22  ;;  %v4087_v22 = vld [vmem:[#allocation2 + $0x118] sm:$0xff] }
 0x1fc   : > { %1942 = vst.msk [vmem:[#allocation3 + $0x30] sm:$0xff] %vm1018_vm1, %v1910_v7  ;;  %v1911_v8 = vadd.f32 %v7748_v23, %v1879_v46  ;;  %v1877_v13 = vld [vmem:[#allocation3 + $0x28] sm:$0xff]  ;;  %1586 = vst.msk [vmem:[#allocation3 + $0x58] sm:$0xff] %vm1018_vm1, %v6021_v21  ;;  %v1483_v42 = vpop.f32.mrb[27].mxu1  ;;  %v8782_v7 = vld [vmem:[#allocation31_spill] sm:$0xff] }
 0x1fd   : > { %1940 = vst.msk [vmem:[#allocation3 + $0x20] sm:$0xff] %vm1018_vm1, %v1908_v6  ;;  %v1909_v34 = vadd.f32 %v1877_v13, %v7750_v15  ;;  %1584 = vst.msk [vmem:[#allocation3 + $0x48] sm:$0xff] %vm1018_vm1, %v1483_v42  ;;  %v6058_v48 = vpop.f32.mrb[28].mxu0  ;;  %v4102_v15 = vpack.c.bf16 %v4084_v37, %v4083_v39  ;;  %v3722_v31 = vmul.f32 %v3690_v60, %v8782_v7  ;;  %v4088_v6 = vld [vmem:[#allocation2 + $0x120] sm:$0xff]  ;;  %v3694_v42 = vld [vmem:[#allocation2 + $0x117] sm:$0xff] }
 0x1fe   : > { %1943 = vst.msk [vmem:[#allocation3 + $0x38] sm:$0xff] %vm1018_vm1, %v1911_v8  ;;  %6235 = vmatmul.mubr.msk.bf16.gmra.mrb[132].mxu1 %vm1018_vm1, %v3739_v10  ;;  %v1793_v23 = vpop.f32.mrb[29].mxu0  ;;  %v4419_v10 = vld [vmem:[#allocation2 + $0x31] sm:$0xff]  ;;  %v3726_v60 = vmul.f32 %v3694_v42, %v6892_v26  ;;  %v4422_v42 = vld [vmem:[#allocation2 + $0x49] sm:$0xff] }
 0x1ff   : > { %1941 = vst.msk [vmem:[#allocation3 + $0x28] sm:$0xff] %vm1018_vm1, %v1909_v34  ;;  %6238 = vmatprep.mubr.msk.bf16.mxu1 %vm1018_vm1, %v3740_v61  ;;  %v6059_v18 = vpop.f32.mrb[30].mxu0  ;;  %v3741_v8 = vpack.c.bf16 %v3723_v12, %v3722_v31  ;;  %v3695_v34 = vld [vmem:[#allocation2 + $0x11f] sm:$0xff]  ;;  %v8784_v39 = vld [vmem:[#allocation32_spill] sm:$0xff] }
 0x200   : > { %v1796_v9 = vpop.f32.mrb[31].mxu0  ;;  %v8783_v61 = vld [vmem:[#allocation34_spill] sm:$0xff] }
 0x201   : > { %v1882_v1 = vld [vmem:[#allocation3 + $0x50] sm:$0xff]  ;;  %v6024_v53 = vpop.f32.mrb[28].mxu1  ;;  %v8785_v37 = vpack.c.bf16 %v8783_v61, %v8784_v39 }
 0x202   : > { %v1914_v40 = vadd.f32 %v6054_v5, %v1882_v1  ;;  %v1880_v36 = vld [vmem:[#allocation3 + $0x40] sm:$0xff]  ;;  %1589 = vst.msk [vmem:[#allocation3 + $0x70] sm:$0xff] %vm1018_vm1, %v6024_v53  ;;  %v1496_v32 = vpop.f32.mrb[29].mxu1  ;;  %6273 = vmatmul.mubr.msk.bf16.gmra.mrb[136].mxu0 %vm1018_vm1, %v4102_v15  ;;  %v4451_v53 = vmul.f32 %v4419_v10, %v6894_v27 }
 0x203   : > { %v1912_v50 = vadd.f32 %v1880_v36, %v1777_v33  ;;  %v1883_v47 = vld [vmem:[#allocation3 + $0x58] sm:$0xff]  ;;  %1587 = vst.msk [vmem:[#allocation3 + $0x60] sm:$0xff] %vm1018_vm1, %v1496_v32  ;;  %v6025_v45 = vpop.f32.mrb[30].mxu1  ;;  %6276 = vmatprep.mubr.msk.bf16.mxu0 %vm1018_vm1, %v7695_v19 }
 0x204   : > { %1946 = vst.msk [vmem:[#allocation3 + $0x50] sm:$0xff] %vm1018_vm1, %v1914_v40  ;;  %v1915_v5 = vadd.f32 %v6055_v24, %v1883_v47  ;;  %v1881_v46 = vld [vmem:[#allocation3 + $0x48] sm:$0xff]  ;;  %1590 = vst.msk [vmem:[#allocation3 + $0x78] sm:$0xff] %vm1018_vm1, %v6025_v45  ;;  %v1499_v21 = vpop.f32.mrb[31].mxu1  ;;  %v4104_v24 = vpack.c.bf16 %v4088_v6, %v4087_v22  ;;  %v4418_v15 = vld [vmem:[#allocation2 + $0x29] sm:$0xff]  ;;  %v3727_v40 = vmul.f32 %v3695_v34, %v6887_v25 }
 0x205   : > { %1944 = vst.msk [vmem:[#allocation3 + $0x40] sm:$0xff] %vm1018_vm1, %v1912_v50  ;;  %v1913_v33 = vadd.f32 %v1881_v46, %v7770_v55  ;;  %1588 = vst.msk [vmem:[#allocation3 + $0x68] sm:$0xff] %vm1018_vm1, %v1499_v21  ;;  %v6062_v13 = vpop.f32.mrb[32].mxu0  ;;  %v4450_v26 = vmul.f32 %v4418_v15, %v6896_v28  ;;  %v4421_v46 = vld [vmem:[#allocation2 + $0x41] sm:$0xff] }
 0x206   : > { %1947 = vst.msk [vmem:[#allocation3 + $0x58] sm:$0xff] %vm1018_vm1, %v1915_v5  ;;  %6239 = vmatmul.mubr.msk.bf16.gmra.mrb[136].mxu1 %vm1018_vm1, %v3741_v8  ;;  %v1809_v19 = vpop.f32.mrb[33].mxu0  ;;  %v4420_v5 = vld [vmem:[#allocation2 + $0x39] sm:$0xff] }
 0x207   : > { %1945 = vst.msk [vmem:[#allocation3 + $0x48] sm:$0xff] %vm1018_vm1, %v1913_v33  ;;  %6242 = vmatprep.mubr.msk.bf16.mxu1 %vm1018_vm1, %v8785_v37  ;;  %v6063_v55 = vpop.f32.mrb[34].mxu0  ;;  %v4482_v6 = vpack.c.bf16 %v4451_v53, %v4450_v26  ;;  %v4453_v33 = vmul.f32 %v4421_v46, %v8681_v58 }
 0x208   : > { %v1812_v56 = vpop.f32.mrb[35].mxu0 }
 0x209   : > { %v1886_v12 = vld [vmem:[#allocation3 + $0x70] sm:$0xff]  ;;  %v6028_v1 = vpop.f32.mrb[32].mxu1 }
 0x20a   : > { %v1918_v36 = vadd.f32 %v6058_v48, %v1886_v12  ;;  %v1884_v32 = vld [vmem:[#allocation3 + $0x60] sm:$0xff]  ;;  %1593 = vst.msk [vmem:[#allocation3 + $0x90] sm:$0xff] %vm1018_vm1, %v6028_v1  ;;  %v1512_v7 = vpop.f32.mrb[33].mxu1  ;;  %6277 = vmatmul.mubr.msk.bf16.gmra.mrb[140].mxu0 %vm1018_vm1, %v4104_v24  ;;  %v3743_v48 = vpack.c.bf16 %v3727_v40, %v3726_v60  ;;  %v4454_v1 = vmul.f32 %v4422_v42, %v8683_v16  ;;  %v4428_v42 = vld [vmem:[#allocation2 + $0x79] sm:$0xff] }
 0x20b   : > { %v1916_v31 = vadd.f32 %v1884_v32, %v1793_v23  ;;  %v1887_v50 = vld [vmem:[#allocation3 + $0x78] sm:$0xff]  ;;  %1591 = vst.msk [vmem:[#allocation3 + $0x80] sm:$0xff] %vm1018_vm1, %v1512_v7  ;;  %v6029_v47 = vpop.f32.mrb[34].mxu1 }
 0x20c   : > { %1950 = vst.msk [vmem:[#allocation3 + $0x70] sm:$0xff] %vm1018_vm1, %v1918_v36  ;;  %v1919_v45 = vadd.f32 %v6059_v18, %v1887_v50  ;;  %v1885_v27 = vld [vmem:[#allocation3 + $0x68] sm:$0xff]  ;;  %1594 = vst.msk [vmem:[#allocation3 + $0x98] sm:$0xff] %vm1018_vm1, %v6029_v47  ;;  %v1515_v25 = vpop.f32.mrb[35].mxu1  ;;  %v4425_v32 = vld [vmem:[#allocation2 + $0x61] sm:$0xff] }
 0x20d   : > { %1948 = vst.msk [vmem:[#allocation3 + $0x60] sm:$0xff] %vm1018_vm1, %v1916_v31  ;;  %v1917_v22 = vadd.f32 %v1885_v27, %v1796_v9  ;;  %1592 = vst.msk [vmem:[#allocation3 + $0x88] sm:$0xff] %vm1018_vm1, %v1515_v25  ;;  %v6066_v23 = vpop.f32.mrb[36].mxu0  ;;  %v4423_v18 = vld [vmem:[#allocation2 + $0x51] sm:$0xff]  ;;  %v4452_v9 = vmul.f32 %v4420_v5, %v8680_v30  ;;  %v4424_v36 = vld [vmem:[#allocation2 + $0x59] sm:$0xff]  ;;  %v4457_v50 = vmul.f32 %v4425_v32, %v8685_v35 }
 0x20e   : > { %1951 = vst.msk [vmem:[#allocation3 + $0x78] sm:$0xff] %vm1018_vm1, %v1919_v45  ;;  %6243 = vmatmul.mubr.msk.bf16.gmra.mrb[140].mxu1 %vm1018_vm1, %v3743_v48  ;;  %v1825_v28 = vpop.f32.mrb[37].mxu0  ;;  %v4455_v34 = vmul.f32 %v4423_v18, %v8682_v63  ;;  %v4426_v47 = vld [vmem:[#allocation2 + $0x69] sm:$0xff]  ;;  %v4432_v32 = vld [vmem:[#allocation2 + $0x99] sm:$0xff] }
 0x20f   : > { %1949 = vst.msk [vmem:[#allocation3 + $0x68] sm:$0xff] %vm1018_vm1, %v1917_v22  ;;  %6282 = vmatprep.mubr.msk.bf16.mxu1 %vm1018_vm1, %v4482_v6  ;;  %v6067_v21 = vpop.f32.mrb[38].mxu0  ;;  %v4483_v63 = vpack.c.bf16 %v4453_v33, %v4452_v9  ;;  %v4458_v18 = vmul.f32 %v4426_v47, %v8690_v54 }
 0x210   : > { %v1828_v8 = vpop.f32.mrb[39].mxu0  ;;  %v4484_v40 = vpack.c.bf16 %v4455_v34, %v4454_v1 }
 0x211   : > { %v1890_v10 = vld [vmem:[#allocation3 + $0x90] sm:$0xff]  ;;  %v6032_v24 = vpop.f32.mrb[36].mxu1 }
 0x212   : > { %v1922_v61 = vadd.f32 %v6062_v13, %v1890_v10  ;;  %v1888_v39 = vld [vmem:[#allocation3 + $0x80] sm:$0xff]  ;;  %1597 = vst.msk [vmem:[#allocation3 + $0xb0] sm:$0xff] %vm1018_vm1, %v6032_v24  ;;  %v1528_v37 = vpop.f32.mrb[37].mxu1  ;;  %v4429_v10 = vld [vmem:[#allocation2 + $0x81] sm:$0xff] }
 0x213   : > { %v1920_v60 = vadd.f32 %v1888_v39, %v1809_v19  ;;  %v1891_v15 = vld [vmem:[#allocation3 + $0x98] sm:$0xff]  ;;  %1595 = vst.msk [vmem:[#allocation3 + $0xa0] sm:$0xff] %vm1018_vm1, %v1528_v37  ;;  %v6033_v12 = vpop.f32.mrb[38].mxu1  ;;  %v4431_v24 = vld [vmem:[#allocation2 + $0x91] sm:$0xff]  ;;  %v4461_v39 = vmul.f32 %v4429_v10, %v8693_v38 }
 0x214   : > { %1954 = vst.msk [vmem:[#allocation3 + $0x90] sm:$0xff] %vm1018_vm1, %v1922_v61  ;;  %v1923_v30 = vadd.f32 %v6063_v55, %v1891_v15  ;;  %v1889_v58 = vld [vmem:[#allocation3 + $0x88] sm:$0xff]  ;;  %1598 = vst.msk [vmem:[#allocation3 + $0xb8] sm:$0xff] %vm1018_vm1, %v6033_v12  ;;  %v1531_v53 = vpop.f32.mrb[39].mxu1  ;;  %v4463_v12 = vmul.f32 %v4431_v24, %v8694_v52 }
 0x215   : > { %1952 = vst.msk [vmem:[#allocation3 + $0x80] sm:$0xff] %vm1018_vm1, %v1920_v60  ;;  %v1921_v13 = vadd.f32 %v1889_v58, %v1812_v56  ;;  %1596 = vst.msk [vmem:[#allocation3 + $0xa8] sm:$0xff] %vm1018_vm1, %v1531_v53  ;;  %v6070_v19 = vpop.f32.mrb[40].mxu0  ;;  %v4427_v55 = vld [vmem:[#allocation2 + $0x71] sm:$0xff]  ;;  %v4456_v56 = vmul.f32 %v4424_v36, %v8732_v51 }
 0x216   : > { %1955 = vst.msk [vmem:[#allocation3 + $0x98] sm:$0xff] %vm1018_vm1, %v1923_v30  ;;  %6283 = vmatmul.mubr.msk.bf16.vlgmr.msra.gmra.mrb[144].mxu1 %vm1018_vm1, %v4483_v63  ;;  %v1841_v16 = vpop.f32.mrb[41].mxu0  ;;  %v4459_v27 = vmul.f32 %v4427_v55, %v8688_v44 }
 0x217   : > { %1953 = vst.msk [vmem:[#allocation3 + $0x88] sm:$0xff] %vm1018_vm1, %v1921_v13  ;;  %6286 = vmatprep.mubr.msk.bf16.mxu1 %vm1018_vm1, %v4484_v40  ;;  %v6071_v7 = vpop.f32.mrb[42].mxu0  ;;  %v4485_v44 = vpack.c.bf16 %v4457_v50, %v4456_v56  ;;  %v4464_v50 = vmul.f32 %v4432_v32, %v8736_v14  ;;  %v4466_v14 = vmul.f32 %v7640_v3, %v8739_v59  ;;  %v4436_v59 = vld [vmem:[#allocation2 + $0xb9] sm:$0xff]  ;;  %v4437_v3 = vld [vmem:[#allocation2 + $0xc1] sm:$0xff] }
 0x218   : > { %v1844_v31 = vpop.f32.mrb[43].mxu0  ;;  %v4486_v33 = vpack.c.bf16 %v4459_v27, %v4458_v18  ;;  %v2427_v27 = vld [vmem:[#allocation3 + $0x10] sm:$0xff] }
 0x219   : > { %v1894_v26 = vld [vmem:[#allocation3 + $0xb0] sm:$0xff]  ;;  %v6036_v45 = vpop.f32.mrb[40].mxu1 }
 0x21a   : > { %v1926_v25 = vadd.f32 %v6066_v23, %v1894_v26  ;;  %v1892_v48 = vld [vmem:[#allocation3 + $0xa0] sm:$0xff]  ;;  %1601 = vst.msk [vmem:[#allocation3 + $0xd0] sm:$0xff] %vm1018_vm1, %v6036_v45  ;;  %v1544_v22 = vpop.f32.mrb[41].mxu1 }
 0x21b   : > { %v1924_v6 = vadd.f32 %v1892_v48, %v1825_v28  ;;  %v1895_v5 = vld [vmem:[#allocation3 + $0xb8] sm:$0xff]  ;;  %1599 = vst.msk [vmem:[#allocation3 + $0xc0] sm:$0xff] %vm1018_vm1, %v1544_v22  ;;  %v6037_v46 = vpop.f32.mrb[42].mxu1 }
 0x21c   : > { %1958 = vst.msk [vmem:[#allocation3 + $0xb0] sm:$0xff] %vm1018_vm1, %v1926_v25  ;;  %v1927_v35 = vadd.f32 %v6067_v21, %v1895_v5  ;;  %v1893_v51 = vld [vmem:[#allocation3 + $0xa8] sm:$0xff]  ;;  %1602 = vst.msk [vmem:[#allocation3 + $0xd8] sm:$0xff] %vm1018_vm1, %v6037_v46  ;;  %v1547_v9 = vpop.f32.mrb[43].mxu1  ;;  %v4430_v21 = vld [vmem:[#allocation2 + $0x89] sm:$0xff] }
 0x21d   : > { %1956 = vst.msk [vmem:[#allocation3 + $0xa0] sm:$0xff] %vm1018_vm1, %v1924_v6  ;;  %v1925_v23 = vadd.f32 %v1893_v51, %v1828_v8  ;;  %1600 = vst.msk [vmem:[#allocation3 + $0xc8] sm:$0xff] %vm1018_vm1, %v1547_v9  ;;  %v6074_v28 = vpop.f32.mrb[44].mxu0  ;;  %v4460_v8 = vmul.f32 %v4428_v42, %v8692_v0  ;;  %v4462_v15 = vmul.f32 %v4430_v21, %v8695_v41  ;;  %v2425_v46 = vld [vmem:[#allocation3] sm:$0xff] }
 0x21e   : > { %1959 = vst.msk [vmem:[#allocation3 + $0xb8] sm:$0xff] %vm1018_vm1, %v1927_v35  ;;  %6287 = vmatmul.mubr.msk.bf16.gmra.mrb[148].mxu1 %vm1018_vm1, %v4485_v44  ;;  %v1857_v54 = vpop.f32.mrb[45].mxu0  ;;  %v2428_v44 = vld [vmem:[#allocation3 + $0x18] sm:$0xff] }
 0x21f   : > { %1957 = vst.msk [vmem:[#allocation3 + $0xa8] sm:$0xff] %vm1018_vm1, %v1925_v23  ;;  %6290 = vmatprep.mubr.msk.bf16.mxu1 %vm1018_vm1, %v4486_v33  ;;  %v6075_v34 = vpop.f32.mrb[46].mxu0  ;;  %v4487_v41 = vpack.c.bf16 %v4461_v39, %v4460_v8  ;;  %v4488_v36 = vpack.c.bf16 %v4463_v12, %v4462_v15  ;;  %v2426_v33 = vld [vmem:[#allocation3 + $0x8] sm:$0xff]  ;;  %v2431_v12 = vld [vmem:[#allocation3 + $0x30] sm:$0xff] }
 0x220   : > { %v1860_v61 = vpop.f32.mrb[47].mxu0  ;;  %v4439_v8 = vld [vmem:[#allocation2 + $0xd1] sm:$0xff] }
 0x221   : > { %v1898_v37 = vld [vmem:[#allocation3 + $0xd0] sm:$0xff]  ;;  %v6040_v60 = vpop.f32.mrb[44].mxu1 }
 0x222   : > { %v1930_v1 = vadd.f32 %v6070_v19, %v1898_v37  ;;  %v1896_v30 = vld [vmem:[#allocation3 + $0xc0] sm:$0xff]  ;;  %1605 = vst.msk [vmem:[#allocation3 + $0xf0] sm:$0xff] %vm1018_vm1, %v6040_v60  ;;  %v1560_v58 = vpop.f32.mrb[45].mxu1  ;;  %v4468_v37 = vmul.f32 %v4436_v59, %v8746_v29  ;;  %v4469_v60 = vmul.f32 %v4437_v3, %v8743_v62  ;;  %v4444_v59 = vld [vmem:[#allocation2 + $0xf9] sm:$0xff]  ;;  %v4445_v3 = vld [vmem:[#allocation2 + $0x101] sm:$0xff] }
 0x223   : > { %v1928_v53 = vadd.f32 %v1896_v30, %v1841_v16  ;;  %v1899_v63 = vld [vmem:[#allocation3 + $0xd8] sm:$0xff]  ;;  %1603 = vst.msk [vmem:[#allocation3 + $0xe0] sm:$0xff] %vm1018_vm1, %v1560_v58  ;;  %v6041_v13 = vpop.f32.mrb[46].mxu1 }
 0x224   : > { %1962 = vst.msk [vmem:[#allocation3 + $0xd0] sm:$0xff] %vm1018_vm1, %v1930_v1  ;;  %v1931_v0 = vadd.f32 %v6071_v7, %v1899_v63  ;;  %v1897_v38 = vld [vmem:[#allocation3 + $0xc8] sm:$0xff]  ;;  %1606 = vst.msk [vmem:[#allocation3 + $0xf8] sm:$0xff] %vm1018_vm1, %v6041_v13  ;;  %v1563_v40 = vpop.f32.mrb[47].mxu1  ;;  %v4433_v16 = vld [vmem:[#allocation2 + $0xa1] sm:$0xff]  ;;  %v4471_v1 = vmul.f32 %v4439_v8, %v8744_v43  ;;  %v4491_v62 = vpack.c.bf16 %v4469_v60, %v4468_v37 }
 0x225   : > { %1960 = vst.msk [vmem:[#allocation3 + $0xc0] sm:$0xff] %vm1018_vm1, %v1928_v53  ;;  %v1929_v52 = vadd.f32 %v1897_v38, %v1844_v31  ;;  %1604 = vst.msk [vmem:[#allocation3 + $0xe8] sm:$0xff] %vm1018_vm1, %v1563_v40  ;;  %v7864_v19 = vpop.f32.mrb[48].mxu0  ;;  %v4435_v7 = vld [vmem:[#allocation2 + $0xb1] sm:$0xff]  ;;  %v4465_v47 = vmul.f32 %v4433_v16, %v8737_v4  ;;  %v4470_v38 = vmul.f32 %v7656_v49, %v8709_v20 }
 0x226   : > { %1963 = vst.msk [vmem:[#allocation3 + $0xd8] sm:$0xff] %vm1018_vm1, %v1931_v0  ;;  %6291 = vmatmul.mubr.msk.bf16.gmra.mrb[152].mxu1 %vm1018_vm1, %v4487_v41  ;;  %v7868_v55 = vpop.f32.mrb[49].mxu0  ;;  %v4467_v25 = vmul.f32 %v4435_v7, %v8740_v2  ;;  %v2429_v53 = vld [vmem:[#allocation3 + $0x20] sm:$0xff]  ;;  %v2432_v0 = vld [vmem:[#allocation3 + $0x38] sm:$0xff] }
 0x227   : > { %1961 = vst.msk [vmem:[#allocation3 + $0xc8] sm:$0xff] %vm1018_vm1, %v1929_v52  ;;  %6294 = vmatprep.mubr.msk.bf16.mxu1 %vm1018_vm1, %v4488_v36  ;;  %v7872_v56 = vpop.f32.mrb[50].mxu0  ;;  %v4489_v42 = vpack.c.bf16 %v4465_v47, %v4464_v50  ;;  %v2430_v52 = vld [vmem:[#allocation3 + $0x28] sm:$0xff]  ;;  %v4492_v7 = vpack.c.bf16 %v4471_v1, %v4470_v38  ;;  %v4441_v47 = vld [vmem:[#allocation2 + $0xe1] sm:$0xff] }
 0x228   : > { %v7874_v31 = vpop.f32.mrb[51].mxu0  ;;  %v4490_v24 = vpack.c.bf16 %v4467_v25, %v4466_v14  ;;  %v4440_v50 = vld [vmem:[#allocation2 + $0xd9] sm:$0xff]  ;;  %v2436_v14 = vld [vmem:[#allocation3 + $0x58] sm:$0xff] }
 0x229   : > { %v1902_v26 = vld [vmem:[#allocation3 + $0xf0] sm:$0xff]  ;;  %v6080_v45 = vpop.f32.mrb[48].mxu1 }
 0x22a   : > { %v1934_v48 = vadd.f32 %v6074_v28, %v1902_v26  ;;  %v1900_v22 = vld [vmem:[#allocation3 + $0xe0] sm:$0xff]  ;;  %v2459_v6 = vadd.f32 %v6080_v45, %v2427_v27  ;;  %v2298_v5 = vpop.f32.mrb[49].mxu1  ;;  %v2439_v38 = vld [vmem:[#allocation3 + $0x70] sm:$0xff] }
 0x22b   : > { %v1932_v18 = vadd.f32 %v1900_v22, %v1857_v54  ;;  %v1903_v35 = vld [vmem:[#allocation3 + $0xf8] sm:$0xff]  ;;  %v2457_v51 = vadd.f32 %v2425_v46, %v2298_v5  ;;  %v6081_v9 = vpop.f32.mrb[50].mxu1  ;;  %v4443_v45 = vld [vmem:[#allocation2 + $0xf1] sm:$0xff]  ;;  %v4472_v22 = vmul.f32 %v4440_v50, %v8750_v57  ;;  %v2435_v46 = vld [vmem:[#allocation3 + $0x50] sm:$0xff] }
 0x22c   : > { %1966 = vst.msk [vmem:[#allocation3 + $0xf0] sm:$0xff] %vm1018_vm1, %v1934_v48  ;;  %v1935_v4 = vadd.f32 %v6075_v34, %v1903_v35  ;;  %v1901_v23 = vld [vmem:[#allocation3 + $0xe8] sm:$0xff]  ;;  %2491 = vst.msk [vmem:[#allocation3 + $0x10] sm:$0xff] %vm1018_vm1, %v2459_v6  ;;  %v2460_v2 = vadd.f32 %v6081_v9, %v2428_v44  ;;  %v2301_v28 = vpop.f32.mrb[51].mxu1  ;;  %v4473_v6 = vmul.f32 %v4441_v47, %v8716_v17  ;;  %v4442_v5 = vld [vmem:[#allocation2 + $0xe9] sm:$0xff] }
 0x22d   : > { %1964 = vst.msk [vmem:[#allocation3 + $0xe0] sm:$0xff] %vm1018_vm1, %v1932_v18  ;;  %v1933_v10 = vadd.f32 %v1901_v23, %v1860_v61  ;;  %2489 = vst.msk [vmem:[#allocation3] sm:$0xff] %vm1018_vm1, %v2457_v51  ;;  %v2458_v54 = vadd.f32 %v2426_v33, %v2301_v28  ;;  %v7885_v21 = vpop.f32.mrb[52].mxu0  ;;  %v4475_v18 = vmul.f32 %v4443_v45, %v8748_v11  ;;  %v2433_v9 = vld [vmem:[#allocation3 + $0x40] sm:$0xff]  ;;  %v2434_v28 = vld [vmem:[#allocation3 + $0x48] sm:$0xff] }
 0x22e   : > { %1967 = vst.msk [vmem:[#allocation3 + $0xf8] sm:$0xff] %vm1018_vm1, %v1935_v4  ;;  %2492 = vst.msk [vmem:[#allocation3 + $0x18] sm:$0xff] %vm1018_vm1, %v2460_v2  ;;  %6295 = vmatmul.mubr.msk.bf16.gmra.mrb[156].mxu1 %vm1018_vm1, %v4489_v42  ;;  %v7890_v34 = vpop.f32.mrb[53].mxu0  ;;  %v8786_v4 = vld [vmem:[#allocation55_spill] sm:$0xff]  ;;  %v4493_v33 = vpack.c.bf16 %v4473_v6, %v4472_v22 }
 0x22f   : > { %1965 = vst.msk [vmem:[#allocation3 + $0xe8] sm:$0xff] %vm1018_vm1, %v1933_v10  ;;  %2490 = vst.msk [vmem:[#allocation3 + $0x8] sm:$0xff] %vm1018_vm1, %v2458_v54  ;;  %6298 = vmatprep.mubr.msk.bf16.mxu1 %vm1018_vm1, %v4490_v24  ;;  %v7895_v61 = vpop.f32.mrb[54].mxu0  ;;  %v4474_v23 = vmul.f32 %v4442_v5, %v8786_v4 }
 0x230   : > { %v7897_v39 = vpop.f32.mrb[55].mxu0 }
 0x231   : > { %v6084_v15 = vpop.f32.mrb[52].mxu1  ;;  %v4494_v24 = vpack.c.bf16 %v4475_v18, %v4474_v23  ;;  %v2441_v23 = vld [vmem:[#allocation3 + $0x80] sm:$0xff] }
 0x232   : > { %v2463_v30 = vadd.f32 %v6084_v15, %v2431_v12  ;;  %v2314_v58 = vpop.f32.mrb[53].mxu1  ;;  %v4446_v15 = vld [vmem:[#allocation2 + $0x109] sm:$0xff] }
 0x233   : > { %v2461_v63 = vadd.f32 %v2429_v53, %v2314_v58  ;;  %v6085_v13 = vpop.f32.mrb[54].mxu1  ;;  %v2820_v40 = vld [vmem:[#allocation3 + $0x10] sm:$0xff]  ;;  %v8787_v53 = vld [vmem:[#allocation57_spill] sm:$0xff] }
 0x234   : > { %2495 = vst.msk [vmem:[#allocation3 + $0x30] sm:$0xff] %vm1018_vm1, %v2463_v30  ;;  %v2464_v41 = vadd.f32 %v6085_v13, %v2432_v0  ;;  %v2317_v29 = vpop.f32.mrb[55].mxu1  ;;  %v2852_v36 = vadd.f32 %v7864_v19, %v2820_v40  ;;  %v2818_v32 = vld [vmem:[#allocation3] sm:$0xff] }
 0x235   : > { %2493 = vst.msk [vmem:[#allocation3 + $0x20] sm:$0xff] %vm1018_vm1, %v2461_v63  ;;  %v2462_v43 = vadd.f32 %v2430_v52, %v2317_v29  ;;  %v7907_v16 = vpop.f32.mrb[56].mxu0  ;;  %v2850_v20 = vadd.f32 %v2818_v32, %v7868_v55  ;;  %v2821_v49 = vld [vmem:[#allocation3 + $0x18] sm:$0xff]  ;;  %v4476_v63 = vmul.f32 %v4444_v59, %v8787_v53  ;;  %v8788_v13 = vld [vmem:[#allocation56_spill] sm:$0xff] }
 0x236   : > { %2496 = vst.msk [vmem:[#allocation3 + $0x38] sm:$0xff] %vm1018_vm1, %v2464_v41  ;;  %6299 = vmatmul.mubr.msk.bf16.gmra.mrb[160].mxu1 %vm1018_vm1, %v4491_v62  ;;  %v7912_v26 = vpop.f32.mrb[57].mxu0  ;;  %2884 = vst.msk [vmem:[#allocation3 + $0x10] sm:$0xff] %vm1018_vm1, %v2852_v36  ;;  %v2853_v19 = vadd.f32 %v7872_v56, %v2821_v49  ;;  %v2819_v27 = vld [vmem:[#allocation3 + $0x8] sm:$0xff]  ;;  %v4477_v0 = vmul.f32 %v4445_v3, %v8788_v13  ;;  %v8789_v40 = vld [vmem:[#allocation60_spill] sm:$0xff] }
 0x237   : > { %2494 = vst.msk [vmem:[#allocation3 + $0x28] sm:$0xff] %vm1018_vm1, %v2462_v43  ;;  %6302 = vmatprep.mubr.msk.bf16.mxu1 %vm1018_vm1, %v4492_v7  ;;  %v7918_v25 = vpop.f32.mrb[58].mxu0  ;;  %2882 = vst.msk [vmem:[#allocation3] sm:$0xff] %vm1018_vm1, %v2850_v20  ;;  %v2851_v55 = vadd.f32 %v2819_v27, %v7874_v31  ;;  %v4478_v41 = vmul.f32 %v4446_v15, %v8789_v40  ;;  %v8790_v29 = vld [vmem:[#allocation59_spill] sm:$0xff]  ;;  %v2437_v32 = vld [vmem:[#allocation3 + $0x60] sm:$0xff] }
 0x238   : > { %v7922_v48 = vpop.f32.mrb[59].mxu0  ;;  %2885 = vst.msk [vmem:[#allocation3 + $0x18] sm:$0xff] %vm1018_vm1, %v2853_v19  ;;  %v2440_v7 = vld [vmem:[#allocation3 + $0x78] sm:$0xff]  ;;  %v2438_v49 = vld [vmem:[#allocation3 + $0x68] sm:$0xff]  ;;  %v4495_v45 = vpack.c.bf16 %v4477_v0, %v4476_v63  ;;  %v2447_v13 = vld [vmem:[#allocation3 + $0xb0] sm:$0xff] }
 0x239   : > { %v6088_v56 = vpop.f32.mrb[56].mxu1  ;;  %2883 = vst.msk [vmem:[#allocation3 + $0x8] sm:$0xff] %vm1018_vm1, %v2851_v55  ;;  %v5004_v55 = vld [vmem:[%s8488_s11] sm:$0x1]  ;;  %v8792_v15 = vld [vmem:[#allocation65_spill] sm:$0xff] }
 0x23a   : > { %v2467_v35 = vadd.f32 %v6088_v56, %v2435_v46  ;;  %v2330_v51 = vpop.f32.mrb[57].mxu1  ;;  %6361 = vmatprep.subr.msk.bf16.mxu0 %vm1410_vm3, %v5004_v55  ;;  %v5061_v18 = vsel %vm1410_vm3, %v5004_v55, 0 }
 0x23b   : > { %v2465_v44 = vadd.f32 %v2433_v9, %v2330_v51  ;;  %v6089_v31 = vpop.f32.mrb[58].mxu1  ;;  %v2824_v57 = vld [vmem:[#allocation3 + $0x30] sm:$0xff]  ;;  %6315 = vmatpush3.bf16.msra.mxu0 %v5061_v18 }
 0x23c   : > { %2499 = vst.msk [vmem:[#allocation3 + $0x50] sm:$0xff] %vm1018_vm1, %v2467_v35  ;;  %v2468_v17 = vadd.f32 %v6089_v31, %v2436_v14  ;;  %v2333_v2 = vpop.f32.mrb[59].mxu1  ;;  %v2856_v42 = vadd.f32 %v7885_v21, %v2824_v57  ;;  %v2822_v11 = vld [vmem:[#allocation3 + $0x20] sm:$0xff]  ;;  %v2443_v14 = vld [vmem:[#allocation3 + $0x90] sm:$0xff] }
 0x23d   : > { %2497 = vst.msk [vmem:[#allocation3 + $0x40] sm:$0xff] %vm1018_vm1, %v2465_v44  ;;  %v2466_v10 = vadd.f32 %v2434_v28, %v2333_v2  ;;  %v7933_v54 = vpop.f32.mrb[60].mxu0  ;;  %v2854_v8 = vadd.f32 %v2822_v11, %v7890_v34  ;;  %v2825_v37 = vld [vmem:[#allocation3 + $0x38] sm:$0xff]  ;;  %v4447_v21 = vld [vmem:[#allocation2 + $0x111] sm:$0xff] }
 0x23e   : > { %2500 = vst.msk [vmem:[#allocation3 + $0x58] sm:$0xff] %vm1018_vm1, %v2468_v17  ;;  %6303 = vmatmul.mubr.msk.bf16.gmra.mrb[164].mxu1 %vm1018_vm1, %v4493_v33  ;;  %v7938_v60 = vpop.f32.mrb[61].mxu0  ;;  %2888 = vst.msk [vmem:[#allocation3 + $0x30] sm:$0xff] %vm1018_vm1, %v2856_v42  ;;  %v2857_v12 = vadd.f32 %v7895_v61, %v2825_v37  ;;  %v2823_v1 = vld [vmem:[#allocation3 + $0x28] sm:$0xff]  ;;  %v4479_v52 = vmul.f32 %v4447_v21, %v8790_v29  ;;  %v2444_v2 = vld [vmem:[#allocation3 + $0x98] sm:$0xff] }
 0x23f   : > { %2498 = vst.msk [vmem:[#allocation3 + $0x48] sm:$0xff] %vm1018_vm1, %v2466_v10  ;;  %6306 = vmatprep.mubr.msk.bf16.mxu1 %vm1018_vm1, %v4494_v24  ;;  %v7944_v30 = vpop.f32.mrb[62].mxu0  ;;  %2886 = vst.msk [vmem:[#allocation3 + $0x20] sm:$0xff] %vm1018_vm1, %v2854_v8  ;;  %v2855_v34 = vadd.f32 %v2823_v1, %v7897_v39  ;;  %v8791_v37 = vld [vmem:[#allocation63_spill] sm:$0xff] }
 0x240   : > { %v7948_v58 = vpop.f32.mrb[63].mxu0  ;;  %2889 = vst.msk [vmem:[#allocation3 + $0x38] sm:$0xff] %vm1018_vm1, %v2857_v12  ;;  %v4496_v5 = vpack.c.bf16 %v4479_v52, %v4478_v41  ;;  %v8793_v21 = vpack.c.bf16 %v8791_v37, %v8792_v15  ;;  %v2448_v41 = vld [vmem:[#allocation3 + $0xb8] sm:$0xff] }
 0x241   : > { %v6092_v61 = vpop.f32.mrb[60].mxu1  ;;  %2887 = vst.msk [vmem:[#allocation3 + $0x28] sm:$0xff] %vm1018_vm1, %v2855_v34  ;;  %v2456_v37 = vld [vmem:[#allocation3 + $0xf8] sm:$0xff] }
 0x242   : > { %v2471_v62 = vadd.f32 %v6092_v61, %v2439_v38  ;;  %v2346_v36 = vpop.f32.mrb[61].mxu1  ;;  %v2445_v38 = vld [vmem:[#allocation3 + $0xa0] sm:$0xff] }
 0x243   : > { %v2469_v39 = vadd.f32 %v2437_v32, %v2346_v36  ;;  %v6093_v43 = vpop.f32.mrb[62].mxu1  ;;  %v2828_v50 = vld [vmem:[#allocation3 + $0x50] sm:$0xff] }
 0x244   : > { %2503 = vst.msk [vmem:[#allocation3 + $0x70] sm:$0xff] %vm1018_vm1, %v2471_v62  ;;  %v2472_v47 = vadd.f32 %v6093_v43, %v2440_v7  ;;  %v2349_v20 = vpop.f32.mrb[63].mxu1  ;;  %v2860_v19 = vadd.f32 %v7907_v16, %v2828_v50  ;;  %v2826_v27 = vld [vmem:[#allocation3 + $0x40] sm:$0xff] }
 0x245   : > { %2501 = vst.msk [vmem:[#allocation3 + $0x60] sm:$0xff] %vm1018_vm1, %v2469_v39  ;;  %v2470_v22 = vadd.f32 %v2438_v49, %v2349_v20  ;;  %v7962_v6 = vpop.f32.mrb[64].mxu0  ;;  %v2858_v56 = vadd.f32 %v2826_v27, %v7912_v26  ;;  %v2829_v46 = vld [vmem:[#allocation3 + $0x58] sm:$0xff] }
 0x246   : > { %2504 = vst.msk [vmem:[#allocation3 + $0x78] sm:$0xff] %vm1018_vm1, %v2472_v47  ;;  %6307 = vmatmul.mubr.msk.bf16.gmra.mrb[168].mxu1 %vm1018_vm1, %v4495_v45  ;;  %v7969_v16 = vpop.f32.mrb[65].mxu0  ;;  %2892 = vst.msk [vmem:[#allocation3 + $0x50] sm:$0xff] %vm1018_vm1, %v2860_v19  ;;  %v2861_v35 = vadd.f32 %v7918_v25, %v2829_v46  ;;  %v2827_v51 = vld [vmem:[#allocation3 + $0x48] sm:$0xff] }
 0x247   : > { %2502 = vst.msk [vmem:[#allocation3 + $0x68] sm:$0xff] %vm1018_vm1, %v2470_v22  ;;  %6310 = vmatprep.mubr.msk.bf16.mxu1 %vm1018_vm1, %v4496_v5  ;;  %v6131_v26 = vpop.f32.mrb[66].mxu0  ;;  %2890 = vst.msk [vmem:[#allocation3 + $0x40] sm:$0xff] %vm1018_vm1, %v2858_v56  ;;  %v2859_v9 = vadd.f32 %v2827_v51, %v7922_v48  ;;  %v2442_v48 = vld [vmem:[#allocation3 + $0x88] sm:$0xff]  ;;  %v2451_v22 = vld [vmem:[#allocation3 + $0xd0] sm:$0xff] }
 0x248   : > { %v7977_v44 = vpop.f32.mrb[67].mxu0  ;;  %2893 = vst.msk [vmem:[#allocation3 + $0x58] sm:$0xff] %vm1018_vm1, %v2861_v35  ;;  %v2449_v56 = vld [vmem:[#allocation3 + $0xc0] sm:$0xff] }
 0x249   : > { %v6096_v31 = vpop.f32.mrb[64].mxu1  ;;  %2891 = vst.msk [vmem:[#allocation3 + $0x48] sm:$0xff] %vm1018_vm1, %v2859_v9  ;;  %v2450_v9 = vld [vmem:[#allocation3 + $0xc8] sm:$0xff] }
 0x24a   : > { %v2475_v25 = vadd.f32 %v6096_v31, %v2443_v14  ;;  %v2362_v4 = vpop.f32.mrb[65].mxu1 }
 0x24b   : > { %v2473_v57 = vadd.f32 %v2441_v23, %v2362_v4  ;;  %v6097_v17 = vpop.f32.mrb[66].mxu1  ;;  %v2832_v28 = vld [vmem:[#allocation3 + $0x70] sm:$0xff] }
 0x24c   : > { %2507 = vst.msk [vmem:[#allocation3 + $0x90] sm:$0xff] %vm1018_vm1, %v2475_v25  ;;  %v2476_v33 = vadd.f32 %v6097_v17, %v2444_v2  ;;  %v2365_v42 = vpop.f32.mrb[67].mxu1  ;;  %v2864_v11 = vadd.f32 %v7933_v54, %v2832_v28  ;;  %v2830_v10 = vld [vmem:[#allocation3 + $0x60] sm:$0xff] }
 0x24d   : > { %2505 = vst.msk [vmem:[#allocation3 + $0x80] sm:$0xff] %vm1018_vm1, %v2473_v57  ;;  %v2474_v24 = vadd.f32 %v2442_v48, %v2365_v42  ;;  %v6134_v59 = vpop.f32.mrb[68].mxu0  ;;  %v2862_v3 = vadd.f32 %v2830_v10, %v7938_v60  ;;  %v2833_v8 = vld [vmem:[#allocation3 + $0x78] sm:$0xff] }
 0x24e   : > { %2508 = vst.msk [vmem:[#allocation3 + $0x98] sm:$0xff] %vm1018_vm1, %v2476_v33  ;;  %6311 = vmatmul.mubr.msk.bf16.gmra.mrb[172].mxu1 %vm1018_vm1, %v8793_v21  ;;  %v2771_v12 = vpop.f32.mrb[69].mxu0  ;;  %2896 = vst.msk [vmem:[#allocation3 + $0x70] sm:$0xff] %vm1018_vm1, %v2864_v11  ;;  %v2865_v54 = vadd.f32 %v7944_v30, %v2833_v8  ;;  %v2831_v1 = vld [vmem:[#allocation3 + $0x68] sm:$0xff]  ;;  %v2455_v11 = vld [vmem:[#allocation3 + $0xf0] sm:$0xff] }
 0x24f   : > { %2506 = vst.msk [vmem:[#allocation3 + $0x88] sm:$0xff] %vm1018_vm1, %v2474_v24  ;;  %v6135_v34 = vpop.f32.mrb[70].mxu0  ;;  %2894 = vst.msk [vmem:[#allocation3 + $0x60] sm:$0xff] %vm1018_vm1, %v2862_v3  ;;  %v2863_v60 = vadd.f32 %v2831_v1, %v7948_v58  ;;  %v2446_v58 = vld [vmem:[#allocation3 + $0xa8] sm:$0xff] }
 0x250   : > { %v7995_v53 = vpop.f32.mrb[71].mxu0  ;;  %2897 = vst.msk [vmem:[#allocation3 + $0x78] sm:$0xff] %vm1018_vm1, %v2865_v54  ;;  %v2454_v54 = vld [vmem:[#allocation3 + $0xe8] sm:$0xff] }
 0x251   : > { %v6100_v63 = vpop.f32.mrb[68].mxu1  ;;  %2895 = vst.msk [vmem:[#allocation3 + $0x68] sm:$0xff] %vm1018_vm1, %v2863_v60 }
 0x252   : > { %v2479_v0 = vadd.f32 %v6100_v63, %v2447_v13  ;;  %v2378_v61 = vpop.f32.mrb[69].mxu1 }
 0x253   : > { %v2477_v30 = vadd.f32 %v2445_v38, %v2378_v61  ;;  %v6101_v40 = vpop.f32.mrb[70].mxu1  ;;  %v2836_v29 = vld [vmem:[#allocation3 + $0x90] sm:$0xff] }
 0x254   : > { %2511 = vst.msk [vmem:[#allocation3 + $0xb0] sm:$0xff] %vm1018_vm1, %v2479_v0  ;;  %v2480_v52 = vadd.f32 %v6101_v40, %v2448_v41  ;;  %v2381_v62 = vpop.f32.mrb[71].mxu1  ;;  %v2868_v36 = vadd.f32 %v7962_v6, %v2836_v29  ;;  %v2834_v32 = vld [vmem:[#allocation3 + $0x80] sm:$0xff] }
 0x255   : > { %2509 = vst.msk [vmem:[#allocation3 + $0xa0] sm:$0xff] %vm1018_vm1, %v2477_v30  ;;  %v2478_v39 = vadd.f32 %v2446_v58, %v2381_v62  ;;  %v6138_v43 = vpop.f32.mrb[72].mxu0  ;;  %v2866_v7 = vadd.f32 %v2834_v32, %v7969_v16  ;;  %v2837_v50 = vld [vmem:[#allocation3 + $0x98] sm:$0xff] }
 0x256   : > { %2512 = vst.msk [vmem:[#allocation3 + $0xb8] sm:$0xff] %vm1018_vm1, %v2480_v52  ;;  %v2787_v47 = vpop.f32.mrb[73].mxu0  ;;  %2900 = vst.msk [vmem:[#allocation3 + $0x90] sm:$0xff] %vm1018_vm1, %v2868_v36  ;;  %v2869_v20 = vadd.f32 %v6131_v26, %v2837_v50  ;;  %v2835_v49 = vld [vmem:[#allocation3 + $0x88] sm:$0xff]  ;;  %v2452_v16 = vld [vmem:[#allocation3 + $0xd8] sm:$0xff] }
 0x257   : > { %2510 = vst.msk [vmem:[#allocation3 + $0xa8] sm:$0xff] %vm1018_vm1, %v2478_v39  ;;  %v6139_v45 = vpop.f32.mrb[74].mxu0  ;;  %2898 = vst.msk [vmem:[#allocation3 + $0x80] sm:$0xff] %vm1018_vm1, %v2866_v7  ;;  %v2867_v19 = vadd.f32 %v2835_v49, %v7977_v44  ;;  %v3177_v52 = vld [vmem:[#allocation3 + $0x10] sm:$0xff]  ;;  %v3175_v36 = vld [vmem:[#allocation3] sm:$0xff] }
 0x258   : > { %v8008_v27 = vpop.f32.mrb[75].mxu0  ;;  %2901 = vst.msk [vmem:[#allocation3 + $0x98] sm:$0xff] %vm1018_vm1, %v2869_v20  ;;  %v3176_v20 = vld [vmem:[#allocation3 + $0x8] sm:$0xff] }
 0x259   : > { %v6104_v55 = vpop.f32.mrb[72].mxu1  ;;  %2899 = vst.msk [vmem:[#allocation3 + $0x88] sm:$0xff] %vm1018_vm1, %v2867_v19 }
 0x25a   : > { %v2483_v6 = vadd.f32 %v6104_v55, %v2451_v22  ;;  %v2394_v5 = vpop.f32.mrb[73].mxu1 }
 0x25b   : > { %v2481_v46 = vadd.f32 %v2449_v56, %v2394_v5  ;;  %v6105_v18 = vpop.f32.mrb[74].mxu1  ;;  %v2840_v35 = vld [vmem:[#allocation3 + $0xb0] sm:$0xff] }
 0x25c   : > { %2515 = vst.msk [vmem:[#allocation3 + $0xd0] sm:$0xff] %vm1018_vm1, %v2483_v6  ;;  %v2484_v51 = vadd.f32 %v6105_v18, %v2452_v16  ;;  %v2397_v26 = vpop.f32.mrb[75].mxu1  ;;  %v2872_v44 = vadd.f32 %v6134_v59, %v2840_v35  ;;  %v2838_v31 = vld [vmem:[#allocation3 + $0xa0] sm:$0xff] }
 0x25d   : > { %2513 = vst.msk [vmem:[#allocation3 + $0xc0] sm:$0xff] %vm1018_vm1, %v2481_v46  ;;  %v2482_v14 = vadd.f32 %v2450_v9, %v2397_v26  ;;  %v6142_v25 = vpop.f32.mrb[76].mxu0  ;;  %v2870_v4 = vadd.f32 %v2838_v31, %v2771_v12  ;;  %v2841_v23 = vld [vmem:[#allocation3 + $0xb8] sm:$0xff]  ;;  %v2453_v59 = vld [vmem:[#allocation3 + $0xe0] sm:$0xff] }
 0x25e   : > { %2516 = vst.msk [vmem:[#allocation3 + $0xd8] sm:$0xff] %vm1018_vm1, %v2484_v51  ;;  %v2803_v57 = vpop.f32.mrb[77].mxu0  ;;  %2904 = vst.msk [vmem:[#allocation3 + $0xb0] sm:$0xff] %vm1018_vm1, %v2872_v44  ;;  %v2873_v17 = vadd.f32 %v6135_v34, %v2841_v23  ;;  %v2839_v2 = vld [vmem:[#allocation3 + $0xa8] sm:$0xff]  ;;  %v3181_v51 = vld [vmem:[#allocation3 + $0x30] sm:$0xff] }
 0x25f   : > { %2514 = vst.msk [vmem:[#allocation3 + $0xc8] sm:$0xff] %vm1018_vm1, %v2482_v14  ;;  %v6143_v28 = vpop.f32.mrb[78].mxu0  ;;  %2902 = vst.msk [vmem:[#allocation3 + $0xa0] sm:$0xff] %vm1018_vm1, %v2870_v4  ;;  %v2871_v33 = vadd.f32 %v2839_v2, %v7995_v53  ;;  %v3179_v44 = vld [vmem:[#allocation3 + $0x20] sm:$0xff] }
 0x260   : > { %v8019_v42 = vpop.f32.mrb[79].mxu0  ;;  %2905 = vst.msk [vmem:[#allocation3 + $0xb8] sm:$0xff] %vm1018_vm1, %v2873_v17  ;;  %v3180_v17 = vld [vmem:[#allocation3 + $0x28] sm:$0xff] }
 0x261   : > { %v6108_v48 = vpop.f32.mrb[76].mxu1  ;;  %2903 = vst.msk [vmem:[#allocation3 + $0xa8] sm:$0xff] %vm1018_vm1, %v2871_v33 }
 0x262   : > { %v2487_v10 = vadd.f32 %v6108_v48, %v2455_v11  ;;  %v2410_v24 = vpop.f32.mrb[77].mxu1 }
 0x263   : > { %v2485_v3 = vadd.f32 %v2453_v59, %v2410_v24  ;;  %v6109_v8 = vpop.f32.mrb[78].mxu1  ;;  %v2844_v15 = vld [vmem:[#allocation3 + $0xd0] sm:$0xff] }
 0x264   : > { %2519 = vst.msk [vmem:[#allocation3 + $0xf0] sm:$0xff] %vm1018_vm1, %v2487_v10  ;;  %v2488_v21 = vadd.f32 %v6109_v8, %v2456_v37  ;;  %v2413_v12 = vpop.f32.mrb[79].mxu1  ;;  %v2876_v1 = vadd.f32 %v6138_v43, %v2844_v15  ;;  %v2842_v34 = vld [vmem:[#allocation3 + $0xc0] sm:$0xff]  ;;  %v3178_v43 = vld [vmem:[#allocation3 + $0x18] sm:$0xff] }
 0x265   : > { %2517 = vst.msk [vmem:[#allocation3 + $0xe0] sm:$0xff] %vm1018_vm1, %v2485_v3  ;;  %v2486_v60 = vadd.f32 %v2454_v54, %v2413_v12  ;;  %v6182_v53 = vpop.f32.mrb[80].mxu0  ;;  %v2874_v63 = vadd.f32 %v2842_v34, %v2787_v47  ;;  %v2845_v13 = vld [vmem:[#allocation3 + $0xd8] sm:$0xff] }
 0x266   : > { %2520 = vst.msk [vmem:[#allocation3 + $0xf8] sm:$0xff] %vm1018_vm1, %v2488_v21  ;;  %v3441_v0 = vpop.f32.mrb[81].mxu0  ;;  %2908 = vst.msk [vmem:[#allocation3 + $0xd0] sm:$0xff] %vm1018_vm1, %v2876_v1  ;;  %v2877_v61 = vadd.f32 %v6139_v45, %v2845_v13  ;;  %v2843_v38 = vld [vmem:[#allocation3 + $0xc8] sm:$0xff]  ;;  %v3185_v21 = vld [vmem:[#allocation3 + $0x50] sm:$0xff] }
 0x267   : > { %2518 = vst.msk [vmem:[#allocation3 + $0xe8] sm:$0xff] %vm1018_vm1, %v2486_v60  ;;  %v6183_v30 = vpop.f32.mrb[82].mxu0  ;;  %2906 = vst.msk [vmem:[#allocation3 + $0xc0] sm:$0xff] %vm1018_vm1, %v2874_v63  ;;  %v2875_v40 = vadd.f32 %v2843_v38, %v8008_v27  ;;  %v3183_v1 = vld [vmem:[#allocation3 + $0x40] sm:$0xff] }
 0x268   : > { %v8030_v41 = vpop.f32.mrb[83].mxu0  ;;  %2909 = vst.msk [vmem:[#allocation3 + $0xd8] sm:$0xff] %vm1018_vm1, %v2877_v61  ;;  %v3184_v61 = vld [vmem:[#allocation3 + $0x48] sm:$0xff] }
 0x269   : > { %v6148_v29 = vpop.f32.mrb[80].mxu1  ;;  %2907 = vst.msk [vmem:[#allocation3 + $0xc8] sm:$0xff] %vm1018_vm1, %v2875_v40 }
 0x26a   : > { %v3209_v62 = vadd.f32 %v6148_v29, %v3177_v52  ;;  %v3048_v58 = vpop.f32.mrb[81].mxu1 }
 0x26b   : > { %v3207_v32 = vadd.f32 %v3175_v36, %v3048_v58  ;;  %v6149_v39 = vpop.f32.mrb[82].mxu1  ;;  %v2848_v7 = vld [vmem:[#allocation3 + $0xf0] sm:$0xff] }
 0x26c   : > { %3241 = vst.msk [vmem:[#allocation3 + $0x10] sm:$0xff] %vm1018_vm1, %v3209_v62  ;;  %v3210_v50 = vadd.f32 %v6149_v39, %v3178_v43  ;;  %v3051_v47 = vpop.f32.mrb[83].mxu1  ;;  %v2880_v49 = vadd.f32 %v6142_v25, %v2848_v7  ;;  %v2846_v45 = vld [vmem:[#allocation3 + $0xe0] sm:$0xff]  ;;  %v3182_v25 = vld [vmem:[#allocation3 + $0x38] sm:$0xff] }
 0x26d   : > { %3239 = vst.msk [vmem:[#allocation3] sm:$0xff] %vm1018_vm1, %v3207_v32  ;;  %v3208_v19 = vadd.f32 %v3176_v20, %v3051_v47  ;;  %v6186_v27 = vpop.f32.mrb[84].mxu0  ;;  %v2878_v55 = vadd.f32 %v2846_v45, %v2803_v57  ;;  %v2849_v22 = vld [vmem:[#allocation3 + $0xf8] sm:$0xff] }
 0x26e   : > { %3242 = vst.msk [vmem:[#allocation3 + $0x18] sm:$0xff] %vm1018_vm1, %v3210_v50  ;;  %v3457_v6 = vpop.f32.mrb[85].mxu0  ;;  %2912 = vst.msk [vmem:[#allocation3 + $0xf0] sm:$0xff] %vm1018_vm1, %v2880_v49  ;;  %v2881_v5 = vadd.f32 %v6143_v28, %v2849_v22  ;;  %v2847_v56 = vld [vmem:[#allocation3 + $0xe8] sm:$0xff]  ;;  %v3189_v50 = vld [vmem:[#allocation3 + $0x70] sm:$0xff] }
 0x26f   : > { %3240 = vst.msk [vmem:[#allocation3 + $0x8] sm:$0xff] %vm1018_vm1, %v3208_v19  ;;  %v6187_v46 = vpop.f32.mrb[86].mxu0  ;;  %2910 = vst.msk [vmem:[#allocation3 + $0xe0] sm:$0xff] %vm1018_vm1, %v2878_v55  ;;  %v2879_v18 = vadd.f32 %v2847_v56, %v8019_v42  ;;  %v3187_v49 = vld [vmem:[#allocation3 + $0x60] sm:$0xff] }
 0x270   : > { %v8041_v16 = vpop.f32.mrb[87].mxu0  ;;  %2913 = vst.msk [vmem:[#allocation3 + $0xf8] sm:$0xff] %vm1018_vm1, %v2881_v5  ;;  %v3188_v5 = vld [vmem:[#allocation3 + $0x68] sm:$0xff] }
 0x271   : > { %v6152_v35 = vpop.f32.mrb[84].mxu1  ;;  %2911 = vst.msk [vmem:[#allocation3 + $0xe8] sm:$0xff] %vm1018_vm1, %v2879_v18 }
 0x272   : > { %v3213_v26 = vadd.f32 %v6152_v35, %v3181_v51  ;;  %v3064_v9 = vpop.f32.mrb[85].mxu1 }
 0x273   : > { %v3211_v31 = vadd.f32 %v3179_v44, %v3064_v9  ;;  %v6153_v14 = vpop.f32.mrb[86].mxu1  ;;  %v3570_v4 = vld [vmem:[#allocation3 + $0x10] sm:$0xff] }
 0x274   : > { %3245 = vst.msk [vmem:[#allocation3 + $0x30] sm:$0xff] %vm1018_vm1, %v3213_v26  ;;  %v3214_v23 = vadd.f32 %v6153_v14, %v3182_v25  ;;  %v3067_v57 = vpop.f32.mrb[87].mxu1  ;;  %v3602_v2 = vadd.f32 %v6182_v53, %v3570_v4  ;;  %v3568_v28 = vld [vmem:[#allocation3] sm:$0xff]  ;;  %v3186_v53 = vld [vmem:[#allocation3 + $0x58] sm:$0xff] }
 0x275   : > { %3243 = vst.msk [vmem:[#allocation3 + $0x20] sm:$0xff] %vm1018_vm1, %v3211_v31  ;;  %v3212_v33 = vadd.f32 %v3180_v17, %v3067_v57  ;;  %v6190_v42 = vpop.f32.mrb[88].mxu0  ;;  %v3600_v48 = vadd.f32 %v3568_v28, %v3441_v0  ;;  %v3571_v11 = vld [vmem:[#allocation3 + $0x18] sm:$0xff] }
 0x276   : > { %3246 = vst.msk [vmem:[#allocation3 + $0x38] sm:$0xff] %vm1018_vm1, %v3214_v23  ;;  %v3473_v10 = vpop.f32.mrb[89].mxu0  ;;  %3634 = vst.msk [vmem:[#allocation3 + $0x10] sm:$0xff] %vm1018_vm1, %v3602_v2  ;;  %v3603_v24 = vadd.f32 %v6183_v30, %v3571_v11  ;;  %v3569_v59 = vld [vmem:[#allocation3 + $0x8] sm:$0xff]  ;;  %v3193_v23 = vld [vmem:[#allocation3 + $0x90] sm:$0xff] }
 0x277   : > { %3244 = vst.msk [vmem:[#allocation3 + $0x28] sm:$0xff] %vm1018_vm1, %v3212_v33  ;;  %v6191_v3 = vpop.f32.mrb[90].mxu0  ;;  %3632 = vst.msk [vmem:[#allocation3] sm:$0xff] %vm1018_vm1, %v3600_v48  ;;  %v3601_v8 = vadd.f32 %v3569_v59, %v8030_v41  ;;  %v3191_v2 = vld [vmem:[#allocation3 + $0x80] sm:$0xff] }
 0x278   : > { %v8052_v37 = vpop.f32.mrb[91].mxu0  ;;  %3635 = vst.msk [vmem:[#allocation3 + $0x18] sm:$0xff] %vm1018_vm1, %v3603_v24  ;;  %v3192_v24 = vld [vmem:[#allocation3 + $0x88] sm:$0xff] }
 0x279   : > { %v6156_v15 = vpop.f32.mrb[88].mxu1  ;;  %3633 = vst.msk [vmem:[#allocation3 + $0x8] sm:$0xff] %vm1018_vm1, %v3601_v8 }
 0x27a   : > { %v3217_v12 = vadd.f32 %v6156_v15, %v3185_v21  ;;  %v3080_v54 = vpop.f32.mrb[89].mxu1 }
 0x27b   : > { %v3215_v34 = vadd.f32 %v3183_v1, %v3080_v54  ;;  %v6157_v60 = vpop.f32.mrb[90].mxu1  ;;  %v3574_v63 = vld [vmem:[#allocation3 + $0x30] sm:$0xff] }
 0x27c   : > { %3249 = vst.msk [vmem:[#allocation3 + $0x50] sm:$0xff] %vm1018_vm1, %v3217_v12  ;;  %v3218_v13 = vadd.f32 %v6157_v60, %v3186_v53  ;;  %v3083_v0 = vpop.f32.mrb[91].mxu1  ;;  %v3606_v38 = vadd.f32 %v6186_v27, %v3574_v63  ;;  %v3572_v30 = vld [vmem:[#allocation3 + $0x20] sm:$0xff]  ;;  %v3190_v27 = vld [vmem:[#allocation3 + $0x78] sm:$0xff] }
 0x27d   : > { %3247 = vst.msk [vmem:[#allocation3 + $0x40] sm:$0xff] %vm1018_vm1, %v3215_v34  ;;  %v3216_v40 = vadd.f32 %v3184_v61, %v3083_v0  ;;  %v6194_v41 = vpop.f32.mrb[92].mxu0  ;;  %v3604_v29 = vadd.f32 %v3572_v30, %v3457_v6  ;;  %v3575_v52 = vld [vmem:[#allocation3 + $0x38] sm:$0xff] }
 0x27e   : > { %3250 = vst.msk [vmem:[#allocation3 + $0x58] sm:$0xff] %vm1018_vm1, %v3218_v13  ;;  %v3489_v62 = vpop.f32.mrb[93].mxu0  ;;  %3638 = vst.msk [vmem:[#allocation3 + $0x30] sm:$0xff] %vm1018_vm1, %v3606_v38  ;;  %v3607_v58 = vadd.f32 %v6187_v46, %v3575_v52  ;;  %v3573_v36 = vld [vmem:[#allocation3 + $0x28] sm:$0xff]  ;;  %v3197_v13 = vld [vmem:[#allocation3 + $0xb0] sm:$0xff] }
 0x27f   : > { %3248 = vst.msk [vmem:[#allocation3 + $0x48] sm:$0xff] %vm1018_vm1, %v3216_v40  ;;  %v6195_v32 = vpop.f32.mrb[94].mxu0  ;;  %3636 = vst.msk [vmem:[#allocation3 + $0x20] sm:$0xff] %vm1018_vm1, %v3604_v29  ;;  %v3605_v39 = vadd.f32 %v3573_v36, %v8041_v16  ;;  %v3195_v38 = vld [vmem:[#allocation3 + $0xa0] sm:$0xff] }
 0x280   : > { %v8063_v43 = vpop.f32.mrb[95].mxu0  ;;  %3639 = vst.msk [vmem:[#allocation3 + $0x38] sm:$0xff] %vm1018_vm1, %v3607_v58  ;;  %v3196_v58 = vld [vmem:[#allocation3 + $0xa8] sm:$0xff] }
 0x281   : > { %v6160_v7 = vpop.f32.mrb[92].mxu1  ;;  %3637 = vst.msk [vmem:[#allocation3 + $0x28] sm:$0xff] %vm1018_vm1, %v3605_v39 }
 0x282   : > { %v3221_v47 = vadd.f32 %v6160_v7, %v3189_v50  ;;  %v3096_v20 = vpop.f32.mrb[93].mxu1 }
 0x283   : > { %v3219_v45 = vadd.f32 %v3187_v49, %v3096_v20  ;;  %v6161_v19 = vpop.f32.mrb[94].mxu1  ;;  %v3578_v55 = vld [vmem:[#allocation3 + $0x50] sm:$0xff] }
 0x284   : > { %3253 = vst.msk [vmem:[#allocation3 + $0x70] sm:$0xff] %vm1018_vm1, %v3221_v47  ;;  %v3222_v22 = vadd.f32 %v6161_v19, %v3190_v27  ;;  %v3099_v6 = vpop.f32.mrb[95].mxu1  ;;  %v3610_v56 = vadd.f32 %v6190_v42, %v3578_v55  ;;  %v3576_v46 = vld [vmem:[#allocation3 + $0x40] sm:$0xff]  ;;  %v3194_v42 = vld [vmem:[#allocation3 + $0x98] sm:$0xff] }
 0x285   : > { %3251 = vst.msk [vmem:[#allocation3 + $0x60] sm:$0xff] %vm1018_vm1, %v3219_v45  ;;  %v3220_v18 = vadd.f32 %v3188_v5, %v3099_v6  ;;  %v6198_v16 = vpop.f32.mrb[96].mxu0  ;;  %v3608_v35 = vadd.f32 %v3576_v46, %v3473_v10  ;;  %v3579_v51 = vld [vmem:[#allocation3 + $0x58] sm:$0xff] }
 0x286   : > { %3254 = vst.msk [vmem:[#allocation3 + $0x78] sm:$0xff] %vm1018_vm1, %v3222_v22  ;;  %v3505_v26 = vpop.f32.mrb[97].mxu0  ;;  %3642 = vst.msk [vmem:[#allocation3 + $0x50] sm:$0xff] %vm1018_vm1, %v3610_v56  ;;  %v3611_v9 = vadd.f32 %v6191_v3, %v3579_v51  ;;  %v3577_v44 = vld [vmem:[#allocation3 + $0x48] sm:$0xff]  ;;  %v3201_v22 = vld [vmem:[#allocation3 + $0xd0] sm:$0xff] }
 0x287   : > { %3252 = vst.msk [vmem:[#allocation3 + $0x68] sm:$0xff] %vm1018_vm1, %v3220_v18  ;;  %v6199_v31 = vpop.f32.mrb[98].mxu0  ;;  %3640 = vst.msk [vmem:[#allocation3 + $0x40] sm:$0xff] %vm1018_vm1, %v3608_v35  ;;  %v3609_v14 = vadd.f32 %v3577_v44, %v8052_v37  ;;  %v3199_v56 = vld [vmem:[#allocation3 + $0xc0] sm:$0xff] }
 0x288   : > { %v8074_v25 = vpop.f32.mrb[99].mxu0  ;;  %3643 = vst.msk [vmem:[#allocation3 + $0x58] sm:$0xff] %vm1018_vm1, %v3611_v9  ;;  %v3200_v9 = vld [vmem:[#allocation3 + $0xc8] sm:$0xff] }
 0x289   : > { %v6164_v4 = vpop.f32.mrb[96].mxu1  ;;  %3641 = vst.msk [vmem:[#allocation3 + $0x48] sm:$0xff] %vm1018_vm1, %v3609_v14 }
 0x28a   : > { %v3225_v57 = vadd.f32 %v6164_v4, %v3193_v23  ;;  %v3112_v17 = vpop.f32.mrb[97].mxu1 }
 0x28b   : > { %v3223_v28 = vadd.f32 %v3191_v2, %v3112_v17  ;;  %v6165_v33 = vpop.f32.mrb[98].mxu1  ;;  %v3582_v48 = vld [vmem:[#allocation3 + $0x70] sm:$0xff] }
 0x28c   : > { %3257 = vst.msk [vmem:[#allocation3 + $0x90] sm:$0xff] %vm1018_vm1, %v3225_v57  ;;  %v3226_v11 = vadd.f32 %v6165_v33, %v3194_v42  ;;  %v3115_v10 = vpop.f32.mrb[99].mxu1  ;;  %v3614_v59 = vadd.f32 %v6194_v41, %v3582_v48  ;;  %v3580_v3 = vld [vmem:[#allocation3 + $0x60] sm:$0xff]  ;;  %v3198_v41 = vld [vmem:[#allocation3 + $0xb8] sm:$0xff] }
 0x28d   : > { %3255 = vst.msk [vmem:[#allocation3 + $0x80] sm:$0xff] %vm1018_vm1, %v3223_v28  ;;  %v3224_v8 = vadd.f32 %v3192_v24, %v3115_v10  ;;  %v6202_v37 = vpop.f32.mrb[100].mxu0  ;;  %v3612_v15 = vadd.f32 %v3580_v3, %v3489_v62  ;;  %v3583_v21 = vld [vmem:[#allocation3 + $0x78] sm:$0xff] }
 0x28e   : > { %3258 = vst.msk [vmem:[#allocation3 + $0x98] sm:$0xff] %vm1018_vm1, %v3226_v11  ;;  %v3521_v12 = vpop.f32.mrb[101].mxu0  ;;  %3646 = vst.msk [vmem:[#allocation3 + $0x70] sm:$0xff] %vm1018_vm1, %v3614_v59  ;;  %v3615_v54 = vadd.f32 %v6195_v32, %v3583_v21  ;;  %v3581_v1 = vld [vmem:[#allocation3 + $0x68] sm:$0xff]  ;;  %v3205_v11 = vld [vmem:[#allocation3 + $0xf0] sm:$0xff] }
 0x28f   : > { %3256 = vst.msk [vmem:[#allocation3 + $0x88] sm:$0xff] %vm1018_vm1, %v3224_v8  ;;  %v6203_v34 = vpop.f32.mrb[102].mxu0  ;;  %3644 = vst.msk [vmem:[#allocation3 + $0x60] sm:$0xff] %vm1018_vm1, %v3612_v15  ;;  %v3613_v60 = vadd.f32 %v3581_v1, %v8063_v43  ;;  %v3203_v59 = vld [vmem:[#allocation3 + $0xe0] sm:$0xff] }
 0x290   : > { %v8085_v53 = vpop.f32.mrb[103].mxu0  ;;  %3647 = vst.msk [vmem:[#allocation3 + $0x78] sm:$0xff] %vm1018_vm1, %v3615_v54  ;;  %v3204_v54 = vld [vmem:[#allocation3 + $0xe8] sm:$0xff] }
 0x291   : > { %v6168_v63 = vpop.f32.mrb[100].mxu1  ;;  %3645 = vst.msk [vmem:[#allocation3 + $0x68] sm:$0xff] %vm1018_vm1, %v3613_v60 }
 0x292   : > { %v3229_v0 = vadd.f32 %v6168_v63, %v3197_v13  ;;  %v3128_v61 = vpop.f32.mrb[101].mxu1 }
 0x293   : > { %v3227_v30 = vadd.f32 %v3195_v38, %v3128_v61  ;;  %v6169_v40 = vpop.f32.mrb[102].mxu1  ;;  %v3586_v29 = vld [vmem:[#allocation3 + $0x90] sm:$0xff] }
 0x294   : > { %3261 = vst.msk [vmem:[#allocation3 + $0xb0] sm:$0xff] %vm1018_vm1, %v3229_v0  ;;  %v3230_v52 = vadd.f32 %v6169_v40, %v3198_v41  ;;  %v3131_v62 = vpop.f32.mrb[103].mxu1  ;;  %v3618_v36 = vadd.f32 %v6198_v16, %v3586_v29  ;;  %v3584_v32 = vld [vmem:[#allocation3 + $0x80] sm:$0xff]  ;;  %v3202_v16 = vld [vmem:[#allocation3 + $0xd8] sm:$0xff] }
 0x295   : > { %3259 = vst.msk [vmem:[#allocation3 + $0xa0] sm:$0xff] %vm1018_vm1, %v3227_v30  ;;  %v3228_v39 = vadd.f32 %v3196_v58, %v3131_v62  ;;  %v6206_v43 = vpop.f32.mrb[104].mxu0  ;;  %v3616_v7 = vadd.f32 %v3584_v32, %v3505_v26  ;;  %v3587_v50 = vld [vmem:[#allocation3 + $0x98] sm:$0xff] }
 0x296   : > { %3262 = vst.msk [vmem:[#allocation3 + $0xb8] sm:$0xff] %vm1018_vm1, %v3230_v52  ;;  %v3537_v47 = vpop.f32.mrb[105].mxu0  ;;  %3650 = vst.msk [vmem:[#allocation3 + $0x90] sm:$0xff] %vm1018_vm1, %v3618_v36  ;;  %v3619_v20 = vadd.f32 %v6199_v31, %v3587_v50  ;;  %v3585_v49 = vld [vmem:[#allocation3 + $0x88] sm:$0xff]  ;;  %v3963_v52 = vld [vmem:[#allocation3 + $0x10] sm:$0xff] }
 0x297   : > { %3260 = vst.msk [vmem:[#allocation3 + $0xa8] sm:$0xff] %vm1018_vm1, %v3228_v39  ;;  %v6207_v45 = vpop.f32.mrb[106].mxu0  ;;  %3648 = vst.msk [vmem:[#allocation3 + $0x80] sm:$0xff] %vm1018_vm1, %v3616_v7  ;;  %v3617_v19 = vadd.f32 %v3585_v49, %v8074_v25  ;;  %v3961_v36 = vld [vmem:[#allocation3] sm:$0xff] }
 0x298   : > { %v8096_v27 = vpop.f32.mrb[107].mxu0  ;;  %3651 = vst.msk [vmem:[#allocation3 + $0x98] sm:$0xff] %vm1018_vm1, %v3619_v20  ;;  %v3962_v20 = vld [vmem:[#allocation3 + $0x8] sm:$0xff] }
 0x299   : > { %v6172_v55 = vpop.f32.mrb[104].mxu1  ;;  %3649 = vst.msk [vmem:[#allocation3 + $0x88] sm:$0xff] %vm1018_vm1, %v3617_v19 }
 0x29a   : > { %v3233_v6 = vadd.f32 %v6172_v55, %v3201_v22  ;;  %v3144_v5 = vpop.f32.mrb[105].mxu1 }
 0x29b   : > { %v3231_v46 = vadd.f32 %v3199_v56, %v3144_v5  ;;  %v6173_v18 = vpop.f32.mrb[106].mxu1  ;;  %v3590_v35 = vld [vmem:[#allocation3 + $0xb0] sm:$0xff] }
 0x29c   : > { %3265 = vst.msk [vmem:[#allocation3 + $0xd0] sm:$0xff] %vm1018_vm1, %v3233_v6  ;;  %v3234_v51 = vadd.f32 %v6173_v18, %v3202_v16  ;;  %v3147_v26 = vpop.f32.mrb[107].mxu1  ;;  %v3622_v44 = vadd.f32 %v6202_v37, %v3590_v35  ;;  %v3588_v31 = vld [vmem:[#allocation3 + $0xa0] sm:$0xff]  ;;  %v3206_v37 = vld [vmem:[#allocation3 + $0xf8] sm:$0xff] }
 0x29d   : > { %3263 = vst.msk [vmem:[#allocation3 + $0xc0] sm:$0xff] %vm1018_vm1, %v3231_v46  ;;  %v3232_v14 = vadd.f32 %v3200_v9, %v3147_v26  ;;  %v6210_v25 = vpop.f32.mrb[108].mxu0  ;;  %v3620_v4 = vadd.f32 %v3588_v31, %v3521_v12  ;;  %v3591_v23 = vld [vmem:[#allocation3 + $0xb8] sm:$0xff] }
 0x29e   : > { %3266 = vst.msk [vmem:[#allocation3 + $0xd8] sm:$0xff] %vm1018_vm1, %v3234_v51  ;;  %v3553_v57 = vpop.f32.mrb[109].mxu0  ;;  %3654 = vst.msk [vmem:[#allocation3 + $0xb0] sm:$0xff] %vm1018_vm1, %v3622_v44  ;;  %v3623_v17 = vadd.f32 %v6203_v34, %v3591_v23  ;;  %v3589_v2 = vld [vmem:[#allocation3 + $0xa8] sm:$0xff]  ;;  %v3967_v51 = vld [vmem:[#allocation3 + $0x30] sm:$0xff] }
 0x29f   : > { %3264 = vst.msk [vmem:[#allocation3 + $0xc8] sm:$0xff] %vm1018_vm1, %v3232_v14  ;;  %v6211_v28 = vpop.f32.mrb[110].mxu0  ;;  %3652 = vst.msk [vmem:[#allocation3 + $0xa0] sm:$0xff] %vm1018_vm1, %v3620_v4  ;;  %v3621_v33 = vadd.f32 %v3589_v2, %v8085_v53  ;;  %v3965_v44 = vld [vmem:[#allocation3 + $0x20] sm:$0xff] }
 0x2a0   : > { %v8107_v42 = vpop.f32.mrb[111].mxu0  ;;  %3655 = vst.msk [vmem:[#allocation3 + $0xb8] sm:$0xff] %vm1018_vm1, %v3623_v17  ;;  %v3966_v17 = vld [vmem:[#allocation3 + $0x28] sm:$0xff] }
 0x2a1   : > { %v6176_v48 = vpop.f32.mrb[108].mxu1  ;;  %3653 = vst.msk [vmem:[#allocation3 + $0xa8] sm:$0xff] %vm1018_vm1, %v3621_v33 }
 0x2a2   : > { %v3237_v10 = vadd.f32 %v6176_v48, %v3205_v11  ;;  %v3160_v24 = vpop.f32.mrb[109].mxu1 }
 0x2a3   : > { %v3235_v3 = vadd.f32 %v3203_v59, %v3160_v24  ;;  %v6177_v8 = vpop.f32.mrb[110].mxu1  ;;  %v3594_v15 = vld [vmem:[#allocation3 + $0xd0] sm:$0xff] }
 0x2a4   : > { %3269 = vst.msk [vmem:[#allocation3 + $0xf0] sm:$0xff] %vm1018_vm1, %v3237_v10  ;;  %v3238_v21 = vadd.f32 %v6177_v8, %v3206_v37  ;;  %v3163_v12 = vpop.f32.mrb[111].mxu1  ;;  %v3626_v1 = vadd.f32 %v6206_v43, %v3594_v15  ;;  %v3592_v34 = vld [vmem:[#allocation3 + $0xc0] sm:$0xff]  ;;  %v3964_v43 = vld [vmem:[#allocation3 + $0x18] sm:$0xff] }
 0x2a5   : > { %3267 = vst.msk [vmem:[#allocation3 + $0xe0] sm:$0xff] %vm1018_vm1, %v3235_v3  ;;  %v3236_v60 = vadd.f32 %v3204_v54, %v3163_v12  ;;  %v6250_v53 = vpop.f32.mrb[112].mxu0  ;;  %v3624_v63 = vadd.f32 %v3592_v34, %v3537_v47  ;;  %v3595_v13 = vld [vmem:[#allocation3 + $0xd8] sm:$0xff] }
 0x2a6   : > { %3270 = vst.msk [vmem:[#allocation3 + $0xf8] sm:$0xff] %vm1018_vm1, %v3238_v21  ;;  %v4195_v0 = vpop.f32.mrb[113].mxu0  ;;  %3658 = vst.msk [vmem:[#allocation3 + $0xd0] sm:$0xff] %vm1018_vm1, %v3626_v1  ;;  %v3627_v61 = vadd.f32 %v6207_v45, %v3595_v13  ;;  %v3593_v38 = vld [vmem:[#allocation3 + $0xc8] sm:$0xff]  ;;  %v3971_v21 = vld [vmem:[#allocation3 + $0x50] sm:$0xff] }
 0x2a7   : > { %3268 = vst.msk [vmem:[#allocation3 + $0xe8] sm:$0xff] %vm1018_vm1, %v3236_v60  ;;  %v6251_v30 = vpop.f32.mrb[114].mxu0  ;;  %3656 = vst.msk [vmem:[#allocation3 + $0xc0] sm:$0xff] %vm1018_vm1, %v3624_v63  ;;  %v3625_v40 = vadd.f32 %v3593_v38, %v8096_v27  ;;  %v3969_v1 = vld [vmem:[#allocation3 + $0x40] sm:$0xff] }
 0x2a8   : > { %v8118_v41 = vpop.f32.mrb[115].mxu0  ;;  %3659 = vst.msk [vmem:[#allocation3 + $0xd8] sm:$0xff] %vm1018_vm1, %v3627_v61  ;;  %v3970_v61 = vld [vmem:[#allocation3 + $0x48] sm:$0xff] }
 0x2a9   : > { %v6216_v29 = vpop.f32.mrb[112].mxu1  ;;  %3657 = vst.msk [vmem:[#allocation3 + $0xc8] sm:$0xff] %vm1018_vm1, %v3625_v40 }
 0x2aa   : > { %v3995_v62 = vadd.f32 %v6216_v29, %v3963_v52  ;;  %v3834_v58 = vpop.f32.mrb[113].mxu1 }
 0x2ab   : > { %v3993_v32 = vadd.f32 %v3961_v36, %v3834_v58  ;;  %v6217_v39 = vpop.f32.mrb[114].mxu1  ;;  %v3598_v7 = vld [vmem:[#allocation3 + $0xf0] sm:$0xff] }
 0x2ac   : > { %4027 = vst.msk [vmem:[#allocation3 + $0x10] sm:$0xff] %vm1018_vm1, %v3995_v62  ;;  %v3996_v50 = vadd.f32 %v6217_v39, %v3964_v43  ;;  %v3837_v47 = vpop.f32.mrb[115].mxu1  ;;  %v3630_v49 = vadd.f32 %v6210_v25, %v3598_v7  ;;  %v3596_v45 = vld [vmem:[#allocation3 + $0xe0] sm:$0xff]  ;;  %v3968_v25 = vld [vmem:[#allocation3 + $0x38] sm:$0xff] }
 0x2ad   : > { %4025 = vst.msk [vmem:[#allocation3] sm:$0xff] %vm1018_vm1, %v3993_v32  ;;  %v3994_v19 = vadd.f32 %v3962_v20, %v3837_v47  ;;  %v6254_v27 = vpop.f32.mrb[116].mxu0  ;;  %v3628_v55 = vadd.f32 %v3596_v45, %v3553_v57  ;;  %v3599_v22 = vld [vmem:[#allocation3 + $0xf8] sm:$0xff] }
 0x2ae   : > { %4028 = vst.msk [vmem:[#allocation3 + $0x18] sm:$0xff] %vm1018_vm1, %v3996_v50  ;;  %v4211_v6 = vpop.f32.mrb[117].mxu0  ;;  %3662 = vst.msk [vmem:[#allocation3 + $0xf0] sm:$0xff] %vm1018_vm1, %v3630_v49  ;;  %v3631_v5 = vadd.f32 %v6211_v28, %v3599_v22  ;;  %v3597_v56 = vld [vmem:[#allocation3 + $0xe8] sm:$0xff]  ;;  %v3975_v50 = vld [vmem:[#allocation3 + $0x70] sm:$0xff] }
 0x2af   : > { %4026 = vst.msk [vmem:[#allocation3 + $0x8] sm:$0xff] %vm1018_vm1, %v3994_v19  ;;  %v6255_v46 = vpop.f32.mrb[118].mxu0  ;;  %3660 = vst.msk [vmem:[#allocation3 + $0xe0] sm:$0xff] %vm1018_vm1, %v3628_v55  ;;  %v3629_v18 = vadd.f32 %v3597_v56, %v8107_v42  ;;  %v3973_v49 = vld [vmem:[#allocation3 + $0x60] sm:$0xff] }
 0x2b0   : > { %v8129_v16 = vpop.f32.mrb[119].mxu0  ;;  %3663 = vst.msk [vmem:[#allocation3 + $0xf8] sm:$0xff] %vm1018_vm1, %v3631_v5  ;;  %v3974_v5 = vld [vmem:[#allocation3 + $0x68] sm:$0xff] }
 0x2b1   : > { %v6220_v35 = vpop.f32.mrb[116].mxu1  ;;  %3661 = vst.msk [vmem:[#allocation3 + $0xe8] sm:$0xff] %vm1018_vm1, %v3629_v18 }
 0x2b2   : > { %v3999_v26 = vadd.f32 %v6220_v35, %v3967_v51  ;;  %v3850_v9 = vpop.f32.mrb[117].mxu1 }
 0x2b3   : > { %v3997_v31 = vadd.f32 %v3965_v44, %v3850_v9  ;;  %v6221_v14 = vpop.f32.mrb[118].mxu1  ;;  %v4324_v4 = vld [vmem:[#allocation3 + $0x10] sm:$0xff] }
 0x2b4   : > { %4031 = vst.msk [vmem:[#allocation3 + $0x30] sm:$0xff] %vm1018_vm1, %v3999_v26  ;;  %v4000_v23 = vadd.f32 %v6221_v14, %v3968_v25  ;;  %v3853_v57 = vpop.f32.mrb[119].mxu1  ;;  %v4356_v2 = vadd.f32 %v6250_v53, %v4324_v4  ;;  %v4322_v28 = vld [vmem:[#allocation3] sm:$0xff]  ;;  %v3972_v53 = vld [vmem:[#allocation3 + $0x58] sm:$0xff] }
 0x2b5   : > { %4029 = vst.msk [vmem:[#allocation3 + $0x20] sm:$0xff] %vm1018_vm1, %v3997_v31  ;;  %v3998_v33 = vadd.f32 %v3966_v17, %v3853_v57  ;;  %v6258_v42 = vpop.f32.mrb[120].mxu0  ;;  %v4354_v48 = vadd.f32 %v4322_v28, %v4195_v0  ;;  %v4325_v11 = vld [vmem:[#allocation3 + $0x18] sm:$0xff] }
 0x2b6   : > { %4032 = vst.msk [vmem:[#allocation3 + $0x38] sm:$0xff] %vm1018_vm1, %v4000_v23  ;;  %v4227_v10 = vpop.f32.mrb[121].mxu0  ;;  %4388 = vst.msk [vmem:[#allocation3 + $0x10] sm:$0xff] %vm1018_vm1, %v4356_v2  ;;  %v4357_v24 = vadd.f32 %v6251_v30, %v4325_v11  ;;  %v4323_v59 = vld [vmem:[#allocation3 + $0x8] sm:$0xff]  ;;  %v3979_v23 = vld [vmem:[#allocation3 + $0x90] sm:$0xff] }
 0x2b7   : > { %4030 = vst.msk [vmem:[#allocation3 + $0x28] sm:$0xff] %vm1018_vm1, %v3998_v33  ;;  %v6259_v3 = vpop.f32.mrb[122].mxu0  ;;  %4386 = vst.msk [vmem:[#allocation3] sm:$0xff] %vm1018_vm1, %v4354_v48  ;;  %v4355_v8 = vadd.f32 %v4323_v59, %v8118_v41  ;;  %v3977_v2 = vld [vmem:[#allocation3 + $0x80] sm:$0xff] }
 0x2b8   : > { %v8140_v37 = vpop.f32.mrb[123].mxu0  ;;  %4389 = vst.msk [vmem:[#allocation3 + $0x18] sm:$0xff] %vm1018_vm1, %v4357_v24  ;;  %v3978_v24 = vld [vmem:[#allocation3 + $0x88] sm:$0xff] }
 0x2b9   : > { %v6224_v15 = vpop.f32.mrb[120].mxu1  ;;  %4387 = vst.msk [vmem:[#allocation3 + $0x8] sm:$0xff] %vm1018_vm1, %v4355_v8 }
 0x2ba   : > { %v4003_v12 = vadd.f32 %v6224_v15, %v3971_v21  ;;  %v3866_v54 = vpop.f32.mrb[121].mxu1 }
 0x2bb   : > { %v4001_v34 = vadd.f32 %v3969_v1, %v3866_v54  ;;  %v6225_v60 = vpop.f32.mrb[122].mxu1  ;;  %v4328_v63 = vld [vmem:[#allocation3 + $0x30] sm:$0xff] }
 0x2bc   : > { %4035 = vst.msk [vmem:[#allocation3 + $0x50] sm:$0xff] %vm1018_vm1, %v4003_v12  ;;  %v4004_v13 = vadd.f32 %v6225_v60, %v3972_v53  ;;  %v3869_v0 = vpop.f32.mrb[123].mxu1  ;;  %v4360_v38 = vadd.f32 %v6254_v27, %v4328_v63  ;;  %v4326_v30 = vld [vmem:[#allocation3 + $0x20] sm:$0xff]  ;;  %v3976_v27 = vld [vmem:[#allocation3 + $0x78] sm:$0xff] }
 0x2bd   : > { %4033 = vst.msk [vmem:[#allocation3 + $0x40] sm:$0xff] %vm1018_vm1, %v4001_v34  ;;  %v4002_v40 = vadd.f32 %v3970_v61, %v3869_v0  ;;  %v6262_v41 = vpop.f32.mrb[124].mxu0  ;;  %v4358_v29 = vadd.f32 %v4326_v30, %v4211_v6  ;;  %v4329_v52 = vld [vmem:[#allocation3 + $0x38] sm:$0xff] }
 0x2be   : > { %4036 = vst.msk [vmem:[#allocation3 + $0x58] sm:$0xff] %vm1018_vm1, %v4004_v13  ;;  %v4243_v62 = vpop.f32.mrb[125].mxu0  ;;  %4392 = vst.msk [vmem:[#allocation3 + $0x30] sm:$0xff] %vm1018_vm1, %v4360_v38  ;;  %v4361_v58 = vadd.f32 %v6255_v46, %v4329_v52  ;;  %v4327_v36 = vld [vmem:[#allocation3 + $0x28] sm:$0xff]  ;;  %v3983_v13 = vld [vmem:[#allocation3 + $0xb0] sm:$0xff] }
 0x2bf   : > { %4034 = vst.msk [vmem:[#allocation3 + $0x48] sm:$0xff] %vm1018_vm1, %v4002_v40  ;;  %v6263_v32 = vpop.f32.mrb[126].mxu0  ;;  %4390 = vst.msk [vmem:[#allocation3 + $0x20] sm:$0xff] %vm1018_vm1, %v4358_v29  ;;  %v4359_v39 = vadd.f32 %v4327_v36, %v8129_v16  ;;  %v3981_v38 = vld [vmem:[#allocation3 + $0xa0] sm:$0xff] }
 0x2c0   : > { %v8151_v43 = vpop.f32.mrb[127].mxu0  ;;  %4393 = vst.msk [vmem:[#allocation3 + $0x38] sm:$0xff] %vm1018_vm1, %v4361_v58  ;;  %v3982_v58 = vld [vmem:[#allocation3 + $0xa8] sm:$0xff] }
 0x2c1   : > { %v6228_v7 = vpop.f32.mrb[124].mxu1  ;;  %4391 = vst.msk [vmem:[#allocation3 + $0x28] sm:$0xff] %vm1018_vm1, %v4359_v39 }
 0x2c2   : > { %v4007_v47 = vadd.f32 %v6228_v7, %v3975_v50  ;;  %v3882_v20 = vpop.f32.mrb[125].mxu1 }
 0x2c3   : > { %v4005_v45 = vadd.f32 %v3973_v49, %v3882_v20  ;;  %v6229_v19 = vpop.f32.mrb[126].mxu1  ;;  %v4332_v55 = vld [vmem:[#allocation3 + $0x50] sm:$0xff] }
 0x2c4   : > { %4039 = vst.msk [vmem:[#allocation3 + $0x70] sm:$0xff] %vm1018_vm1, %v4007_v47  ;;  %v4008_v22 = vadd.f32 %v6229_v19, %v3976_v27  ;;  %v3885_v6 = vpop.f32.mrb[127].mxu1  ;;  %v4364_v56 = vadd.f32 %v6258_v42, %v4332_v55  ;;  %v4330_v46 = vld [vmem:[#allocation3 + $0x40] sm:$0xff]  ;;  %v3980_v42 = vld [vmem:[#allocation3 + $0x98] sm:$0xff] }
 0x2c5   : > { %4037 = vst.msk [vmem:[#allocation3 + $0x60] sm:$0xff] %vm1018_vm1, %v4005_v45  ;;  %v4006_v18 = vadd.f32 %v3974_v5, %v3885_v6  ;;  %v6266_v16 = vpop.f32.mrb[128].mxu0  ;;  %v4362_v35 = vadd.f32 %v4330_v46, %v4227_v10  ;;  %v4333_v51 = vld [vmem:[#allocation3 + $0x58] sm:$0xff] }
 0x2c6   : > { %4040 = vst.msk [vmem:[#allocation3 + $0x78] sm:$0xff] %vm1018_vm1, %v4008_v22  ;;  %v4259_v26 = vpop.f32.mrb[129].mxu0  ;;  %4396 = vst.msk [vmem:[#allocation3 + $0x50] sm:$0xff] %vm1018_vm1, %v4364_v56  ;;  %v4365_v9 = vadd.f32 %v6259_v3, %v4333_v51  ;;  %v4331_v44 = vld [vmem:[#allocation3 + $0x48] sm:$0xff]  ;;  %v3987_v22 = vld [vmem:[#allocation3 + $0xd0] sm:$0xff] }
 0x2c7   : > { %4038 = vst.msk [vmem:[#allocation3 + $0x68] sm:$0xff] %vm1018_vm1, %v4006_v18  ;;  %v6267_v31 = vpop.f32.mrb[130].mxu0  ;;  %4394 = vst.msk [vmem:[#allocation3 + $0x40] sm:$0xff] %vm1018_vm1, %v4362_v35  ;;  %v4363_v14 = vadd.f32 %v4331_v44, %v8140_v37  ;;  %v3985_v56 = vld [vmem:[#allocation3 + $0xc0] sm:$0xff] }
 0x2c8   : > { %v8162_v25 = vpop.f32.mrb[131].mxu0  ;;  %4397 = vst.msk [vmem:[#allocation3 + $0x58] sm:$0xff] %vm1018_vm1, %v4365_v9  ;;  %v3986_v9 = vld [vmem:[#allocation3 + $0xc8] sm:$0xff] }
 0x2c9   : > { %v6232_v4 = vpop.f32.mrb[128].mxu1  ;;  %4395 = vst.msk [vmem:[#allocation3 + $0x48] sm:$0xff] %vm1018_vm1, %v4363_v14 }
 0x2ca   : > { %v4011_v57 = vadd.f32 %v6232_v4, %v3979_v23  ;;  %v3898_v17 = vpop.f32.mrb[129].mxu1 }
 0x2cb   : > { %v4009_v28 = vadd.f32 %v3977_v2, %v3898_v17  ;;  %v6233_v33 = vpop.f32.mrb[130].mxu1  ;;  %v4336_v48 = vld [vmem:[#allocation3 + $0x70] sm:$0xff] }
 0x2cc   : > { %4043 = vst.msk [vmem:[#allocation3 + $0x90] sm:$0xff] %vm1018_vm1, %v4011_v57  ;;  %v4012_v11 = vadd.f32 %v6233_v33, %v3980_v42  ;;  %v3901_v10 = vpop.f32.mrb[131].mxu1  ;;  %v4368_v59 = vadd.f32 %v6262_v41, %v4336_v48  ;;  %v4334_v3 = vld [vmem:[#allocation3 + $0x60] sm:$0xff]  ;;  %v3984_v41 = vld [vmem:[#allocation3 + $0xb8] sm:$0xff] }
 0x2cd   : > { %4041 = vst.msk [vmem:[#allocation3 + $0x80] sm:$0xff] %vm1018_vm1, %v4009_v28  ;;  %v4010_v8 = vadd.f32 %v3978_v24, %v3901_v10  ;;  %v6270_v37 = vpop.f32.mrb[132].mxu0  ;;  %v4366_v15 = vadd.f32 %v4334_v3, %v4243_v62  ;;  %v4337_v21 = vld [vmem:[#allocation3 + $0x78] sm:$0xff] }
 0x2ce   : > { %4044 = vst.msk [vmem:[#allocation3 + $0x98] sm:$0xff] %vm1018_vm1, %v4012_v11  ;;  %v4275_v12 = vpop.f32.mrb[133].mxu0  ;;  %4400 = vst.msk [vmem:[#allocation3 + $0x70] sm:$0xff] %vm1018_vm1, %v4368_v59  ;;  %v4369_v54 = vadd.f32 %v6263_v32, %v4337_v21  ;;  %v4335_v1 = vld [vmem:[#allocation3 + $0x68] sm:$0xff]  ;;  %v3991_v11 = vld [vmem:[#allocation3 + $0xf0] sm:$0xff] }
 0x2cf   : > { %4042 = vst.msk [vmem:[#allocation3 + $0x88] sm:$0xff] %vm1018_vm1, %v4010_v8  ;;  %v6271_v34 = vpop.f32.mrb[134].mxu0  ;;  %4398 = vst.msk [vmem:[#allocation3 + $0x60] sm:$0xff] %vm1018_vm1, %v4366_v15  ;;  %v4367_v60 = vadd.f32 %v4335_v1, %v8151_v43  ;;  %v3989_v59 = vld [vmem:[#allocation3 + $0xe0] sm:$0xff] }
 0x2d0   : > { %v8173_v53 = vpop.f32.mrb[135].mxu0  ;;  %4401 = vst.msk [vmem:[#allocation3 + $0x78] sm:$0xff] %vm1018_vm1, %v4369_v54  ;;  %v3990_v54 = vld [vmem:[#allocation3 + $0xe8] sm:$0xff] }
 0x2d1   : > { %v6236_v63 = vpop.f32.mrb[132].mxu1  ;;  %4399 = vst.msk [vmem:[#allocation3 + $0x68] sm:$0xff] %vm1018_vm1, %v4367_v60 }
 0x2d2   : > { %v4015_v0 = vadd.f32 %v6236_v63, %v3983_v13  ;;  %v3914_v61 = vpop.f32.mrb[133].mxu1 }
 0x2d3   : > { %v4013_v30 = vadd.f32 %v3981_v38, %v3914_v61  ;;  %v6237_v40 = vpop.f32.mrb[134].mxu1  ;;  %v4340_v29 = vld [vmem:[#allocation3 + $0x90] sm:$0xff] }
 0x2d4   : > { %4047 = vst.msk [vmem:[#allocation3 + $0xb0] sm:$0xff] %vm1018_vm1, %v4015_v0  ;;  %v4016_v52 = vadd.f32 %v6237_v40, %v3984_v41  ;;  %v3917_v62 = vpop.f32.mrb[135].mxu1  ;;  %v4372_v36 = vadd.f32 %v6266_v16, %v4340_v29  ;;  %v4338_v32 = vld [vmem:[#allocation3 + $0x80] sm:$0xff]  ;;  %v3988_v16 = vld [vmem:[#allocation3 + $0xd8] sm:$0xff] }
 0x2d5   : > { %4045 = vst.msk [vmem:[#allocation3 + $0xa0] sm:$0xff] %vm1018_vm1, %v4013_v30  ;;  %v4014_v39 = vadd.f32 %v3982_v58, %v3917_v62  ;;  %v6274_v43 = vpop.f32.mrb[136].mxu0  ;;  %v4370_v7 = vadd.f32 %v4338_v32, %v4259_v26  ;;  %v4341_v50 = vld [vmem:[#allocation3 + $0x98] sm:$0xff]  ;;  %v4713_v30 = vld [vmem:[#allocation3 + $0x10] sm:$0xff]  ;;  %v4711_v29 = vld [vmem:[#allocation3] sm:$0xff] }
 0x2d6   : > { %4048 = vst.msk [vmem:[#allocation3 + $0xb8] sm:$0xff] %vm1018_vm1, %v4016_v52  ;;  %v4291_v47 = vpop.f32.mrb[137].mxu0  ;;  %4404 = vst.msk [vmem:[#allocation3 + $0x90] sm:$0xff] %vm1018_vm1, %v4372_v36  ;;  %v4373_v20 = vadd.f32 %v6267_v31, %v4341_v50  ;;  %v4339_v49 = vld [vmem:[#allocation3 + $0x88] sm:$0xff]  ;;  %v4714_v36 = vld [vmem:[#allocation3 + $0x18] sm:$0xff] }
 0x2d7   : > { %4046 = vst.msk [vmem:[#allocation3 + $0xa8] sm:$0xff] %vm1018_vm1, %v4014_v39  ;;  %v6275_v45 = vpop.f32.mrb[138].mxu0  ;;  %4402 = vst.msk [vmem:[#allocation3 + $0x80] sm:$0xff] %vm1018_vm1, %v4370_v7  ;;  %v4371_v19 = vadd.f32 %v4339_v49, %v8162_v25  ;;  %v4712_v50 = vld [vmem:[#allocation3 + $0x8] sm:$0xff] }
 0x2d8   : > { %v4294_v27 = vpop.f32.mrb[139].mxu0  ;;  %4405 = vst.msk [vmem:[#allocation3 + $0x98] sm:$0xff] %vm1018_vm1, %v4373_v20 }
 0x2d9   : > { %v6240_v55 = vpop.f32.mrb[136].mxu1  ;;  %4403 = vst.msk [vmem:[#allocation3 + $0x88] sm:$0xff] %vm1018_vm1, %v4371_v19 }
 0x2da   : > { %v4019_v6 = vadd.f32 %v6240_v55, %v3987_v22  ;;  %v3930_v5 = vpop.f32.mrb[137].mxu1  ;;  %v4717_v22 = vld [vmem:[#allocation3 + $0x30] sm:$0xff] }
 0x2db   : > { %v4017_v46 = vadd.f32 %v3985_v56, %v3930_v5  ;;  %v6241_v18 = vpop.f32.mrb[138].mxu1  ;;  %v4344_v35 = vld [vmem:[#allocation3 + $0xb0] sm:$0xff] }
 0x2dc   : > { %4051 = vst.msk [vmem:[#allocation3 + $0xd0] sm:$0xff] %vm1018_vm1, %v4019_v6  ;;  %v4020_v51 = vadd.f32 %v6241_v18, %v3988_v16  ;;  %v3933_v26 = vpop.f32.mrb[139].mxu1  ;;  %v4376_v44 = vadd.f32 %v6270_v37, %v4344_v35  ;;  %v4342_v31 = vld [vmem:[#allocation3 + $0xa0] sm:$0xff]  ;;  %v3992_v37 = vld [vmem:[#allocation3 + $0xf8] sm:$0xff]  ;;  %v8214_v6 = vld [vmem:[%s8485_s8] ss:$0 sm:$0xff] }
 0x2dd   : > { %4049 = vst.msk [vmem:[#allocation3 + $0xc0] sm:$0xff] %vm1018_vm1, %v4017_v46  ;;  %v4018_v14 = vadd.f32 %v3986_v9, %v3933_v26  ;;  %v6278_v25 = vpop.f32.mrb[140].mxu0  ;;  %v4374_v4 = vadd.f32 %v4342_v31, %v4275_v12  ;;  %v4345_v23 = vld [vmem:[#allocation3 + $0xb8] sm:$0xff]  ;;  %v4715_v46 = vld [vmem:[#allocation3 + $0x20] sm:$0xff]  ;;  %v4716_v31 = vld [vmem:[#allocation3 + $0x28] sm:$0xff] }
 0x2de   : > { %4052 = vst.msk [vmem:[#allocation3 + $0xd8] sm:$0xff] %vm1018_vm1, %v4020_v51  ;;  %v4307_v57 = vpop.f32.mrb[141].mxu0  ;;  %4408 = vst.msk [vmem:[#allocation3 + $0xb0] sm:$0xff] %vm1018_vm1, %v4376_v44  ;;  %v4377_v17 = vadd.f32 %v6271_v34, %v4345_v23  ;;  %v4343_v2 = vld [vmem:[#allocation3 + $0xa8] sm:$0xff]  ;;  %v4718_v35 = vld [vmem:[#allocation3 + $0x38] sm:$0xff] }
 0x2df   : > { %4050 = vst.msk [vmem:[#allocation3 + $0xc8] sm:$0xff] %vm1018_vm1, %v4018_v14  ;;  %v6279_v28 = vpop.f32.mrb[142].mxu0  ;;  %4406 = vst.msk [vmem:[#allocation3 + $0xa0] sm:$0xff] %vm1018_vm1, %v4374_v4  ;;  %v4375_v33 = vadd.f32 %v4343_v2, %v8173_v53  ;;  %v8219_v51 = vld [vmem:[%s8486_s9] ss:$0 sm:$0xff] }
 0x2e0   : > { %v4310_v42 = vpop.f32.mrb[143].mxu0  ;;  %4409 = vst.msk [vmem:[#allocation3 + $0xb8] sm:$0xff] %vm1018_vm1, %v4377_v17  ;;  %v8229_v2 = vld [vmem:[%s8487_s10] ss:$0 sm:$0xff] }
 0x2e1   : > { %v6244_v48 = vpop.f32.mrb[140].mxu1  ;;  %4407 = vst.msk [vmem:[#allocation3 + $0xa8] sm:$0xff] %vm1018_vm1, %v4375_v33 }
 0x2e2   : > { %v4023_v10 = vadd.f32 %v6244_v48, %v3991_v11  ;;  %v3946_v24 = vpop.f32.mrb[141].mxu1 }
 0x2e3   : > { %v4021_v3 = vadd.f32 %v3989_v59, %v3946_v24  ;;  %v6245_v8 = vpop.f32.mrb[142].mxu1  ;;  %v4348_v15 = vld [vmem:[#allocation3 + $0xd0] sm:$0xff] }
 0x2e4   : > { %4055 = vst.msk [vmem:[#allocation3 + $0xf0] sm:$0xff] %vm1018_vm1, %v4023_v10  ;;  %v4024_v21 = vadd.f32 %v6245_v8, %v3992_v37  ;;  %v3949_v12 = vpop.f32.mrb[143].mxu1  ;;  %v4380_v1 = vadd.f32 %v6274_v43, %v4348_v15  ;;  %v4346_v34 = vld [vmem:[#allocation3 + $0xc0] sm:$0xff]  ;;  %v4721_v24 = vld [vmem:[#allocation3 + $0x50] sm:$0xff] }
 0x2e5   : > { %4053 = vst.msk [vmem:[#allocation3 + $0xe0] sm:$0xff] %vm1018_vm1, %v4021_v3  ;;  %v4022_v60 = vadd.f32 %v3990_v54, %v3949_v12  ;;  %v4378_v53 = vadd.f32 %v4346_v34, %v4291_v47  ;;  %v4349_v63 = vld [vmem:[#allocation3 + $0xd8] sm:$0xff]  ;;  %v4719_v15 = vld [vmem:[#allocation3 + $0x40] sm:$0xff] }
 0x2e6   : > { %4056 = vst.msk [vmem:[#allocation3 + $0xf8] sm:$0xff] %vm1018_vm1, %v4024_v21  ;;  %4412 = vst.msk [vmem:[#allocation3 + $0xd0] sm:$0xff] %vm1018_vm1, %v4380_v1  ;;  %v4381_v13 = vadd.f32 %v6275_v45, %v4349_v63  ;;  %v4347_v0 = vld [vmem:[#allocation3 + $0xc8] sm:$0xff]  ;;  %v4722_v34 = vld [vmem:[#allocation3 + $0x58] sm:$0xff] }
 0x2e7   : > { %4054 = vst.msk [vmem:[#allocation3 + $0xe8] sm:$0xff] %vm1018_vm1, %v4022_v60  ;;  %4410 = vst.msk [vmem:[#allocation3 + $0xc0] sm:$0xff] %vm1018_vm1, %v4378_v53  ;;  %v4379_v61 = vadd.f32 %v4347_v0, %v4294_v27  ;;  %v4720_v0 = vld [vmem:[#allocation3 + $0x48] sm:$0xff] }
 0x2e8   : > { %4413 = vst.msk [vmem:[#allocation3 + $0xd8] sm:$0xff] %vm1018_vm1, %v4381_v13 }
 0x2e9   : > { %v6284_v38 = vpop.f32.mrb[144].mxu1  ;;  %4411 = vst.msk [vmem:[#allocation3 + $0xc8] sm:$0xff] %vm1018_vm1, %v4379_v61 }
 0x2ea   : > { %v4745_v40 = vadd.f32 %v6284_v38, %v4713_v30  ;;  %v4584_v41 = vpop.f32.mrb[145].mxu1 }
 0x2eb   : > { %v4743_v52 = vadd.f32 %v4711_v29, %v4584_v41  ;;  %v4352_v62 = vld [vmem:[#allocation3 + $0xf0] sm:$0xff]  ;;  %v6285_v58 = vpop.f32.mrb[146].mxu1 }
 0x2ec   : > { %4777 = vst.msk [vmem:[#allocation3 + $0x10] sm:$0xff] %vm1018_vm1, %v4745_v40  ;;  %v4384_v32 = vadd.f32 %v6278_v25, %v4352_v62  ;;  %v4746_v39 = vadd.f32 %v6285_v58, %v4714_v36  ;;  %v4350_v43 = vld [vmem:[#allocation3 + $0xe0] sm:$0xff]  ;;  %v4587_v7 = vpop.f32.mrb[147].mxu1 }
 0x2ed   : > { %4775 = vst.msk [vmem:[#allocation3] sm:$0xff] %vm1018_vm1, %v4743_v52  ;;  %v4382_v47 = vadd.f32 %v4350_v43, %v4307_v57  ;;  %v4744_v20 = vadd.f32 %v4712_v50, %v4587_v7  ;;  %v4353_v49 = vld [vmem:[#allocation3 + $0xf8] sm:$0xff] }
 0x2ee   : > { %4416 = vst.msk [vmem:[#allocation3 + $0xf0] sm:$0xff] %vm1018_vm1, %v4384_v32  ;;  %4778 = vst.msk [vmem:[#allocation3 + $0x18] sm:$0xff] %vm1018_vm1, %v4746_v39  ;;  %v4385_v45 = vadd.f32 %v6279_v28, %v4353_v49  ;;  %v4351_v19 = vld [vmem:[#allocation3 + $0xe8] sm:$0xff] }
 0x2ef   : > { %4414 = vst.msk [vmem:[#allocation3 + $0xe0] sm:$0xff] %vm1018_vm1, %v4382_v47  ;;  %4776 = vst.msk [vmem:[#allocation3 + $0x8] sm:$0xff] %vm1018_vm1, %v4744_v20  ;;  %v4383_v27 = vadd.f32 %v4351_v19, %v4310_v42 }
 0x2f0   : > { %4417 = vst.msk [vmem:[#allocation3 + $0xf8] sm:$0xff] %vm1018_vm1, %v4385_v45  ;;  %v4725_v45 = vld [vmem:[#allocation3 + $0x70] sm:$0xff] }
 0x2f1   : > { %4415 = vst.msk [vmem:[#allocation3 + $0xe8] sm:$0xff] %vm1018_vm1, %v4383_v27  ;;  %v6288_v55 = vpop.f32.mrb[148].mxu1 }
 0x2f2   : > { %v4749_v5 = vadd.f32 %v6288_v55, %v4717_v22  ;;  %v4600_v56 = vpop.f32.mrb[149].mxu1 }
 0x2f3   : > { %v4747_v18 = vadd.f32 %v4715_v46, %v4600_v56  ;;  %v6289_v16 = vpop.f32.mrb[150].mxu1  ;;  %v4809_v26 = vld [vmem:[#allocation3 + $0x10] sm:$0xff] }
 0x2f4   : > { %4781 = vst.msk [vmem:[#allocation3 + $0x30] sm:$0xff] %vm1018_vm1, %v4749_v5  ;;  %v4750_v9 = vadd.f32 %v6289_v16, %v4718_v35  ;;  %v4603_v44 = vpop.f32.mrb[151].mxu1  ;;  %v4807_v14 = vld [vmem:[#allocation3] sm:$0xff]  ;;  %v4848_v25 = vadd.f32 %v8214_v6, %v4809_v26  ;;  %v4726_v35 = vld [vmem:[#allocation3 + $0x78] sm:$0xff] }
 0x2f5   : > { %4779 = vst.msk [vmem:[#allocation3 + $0x20] sm:$0xff] %vm1018_vm1, %v4747_v18  ;;  %v4748_v4 = vadd.f32 %v4716_v31, %v4603_v44  ;;  %v4846_v23 = vadd.f32 %v8214_v6, %v4807_v14  ;;  %v4810_v57 = vld [vmem:[#allocation3 + $0x18] sm:$0xff]  ;;  %v4723_v5 = vld [vmem:[#allocation3 + $0x60] sm:$0xff]  ;;  %v4724_v14 = vld [vmem:[#allocation3 + $0x68] sm:$0xff] }
 0x2f6   : > { %4782 = vst.msk [vmem:[#allocation3 + $0x38] sm:$0xff] %vm1018_vm1, %v4750_v9  ;;  %v4808_v17 = vld [vmem:[#allocation3 + $0x8] sm:$0xff]  ;;  %v4849_v28 = vadd.f32 %v8214_v6, %v4810_v57  ;;  %v4887_v33 = vmul.f32 %v8219_v51, %v4848_v25 }
 0x2f7   : > { %4780 = vst.msk [vmem:[#allocation3 + $0x28] sm:$0xff] %vm1018_vm1, %v4748_v4  ;;  %v4847_v42 = vadd.f32 %v8214_v6, %v4808_v17  ;;  %v4885_v48 = vmul.f32 %v8219_v51, %v4846_v23 }
 0x2f8   : > { %v4888_v11 = vmul.f32 %v8219_v51, %v4849_v28  ;;  %v4926_v21 = vadd.f32 %v8229_v2, %v4887_v33 }
 0x2f9   : > { %v6292_v10 = vpop.f32.mrb[152].mxu1  ;;  %v4886_v59 = vmul.f32 %v8219_v51, %v4847_v42  ;;  %v4924_v3 = vadd.f32 %v8229_v2, %v4885_v48 }
 0x2fa   : > { %v4753_v8 = vadd.f32 %v6292_v10, %v4721_v24  ;;  %v4616_v37 = vpop.f32.mrb[153].mxu1  ;;  %v4927_v12 = vadd.f32 %v8229_v2, %v4888_v11  ;;  %v4958_v58 = vmax.f32 %v4926_v21, 0.0 }
 0x2fb   : > { %v4751_v54 = vadd.f32 %v4719_v15, %v4616_v37  ;;  %v6293_v1 = vpop.f32.mrb[154].mxu1  ;;  %v4925_v60 = vadd.f32 %v8229_v2, %v4886_v59  ;;  %v4813_v53 = vld [vmem:[#allocation3 + $0x30] sm:$0xff]  ;;  %v4956_v41 = vmax.f32 %v4924_v3, 0.0 }
 0x2fc   : > { %4785 = vst.msk [vmem:[#allocation3 + $0x50] sm:$0xff] %vm1018_vm1, %v4753_v8  ;;  %v4754_v63 = vadd.f32 %v6293_v1, %v4722_v34  ;;  %v4619_v13 = vpop.f32.mrb[155].mxu1  ;;  %v4959_v61 = vmax.f32 %v4927_v12, 0.0  ;;  %v4811_v38 = vld [vmem:[#allocation3 + $0x20] sm:$0xff]  ;;  %v4852_v30 = vadd.f32 %v8214_v6, %v4813_v53  ;;  %v4729_v12 = vld [vmem:[#allocation3 + $0x90] sm:$0xff] }
 0x2fd   : > { %4783 = vst.msk [vmem:[#allocation3 + $0x40] sm:$0xff] %vm1018_vm1, %v4751_v54  ;;  %v4752_v40 = vadd.f32 %v4720_v0, %v4619_v13  ;;  %v4957_v29 = vmax.f32 %v4925_v60, 0.0  ;;  %v4850_v52 = vadd.f32 %v8214_v6, %v4811_v38  ;;  %v4814_v62 = vld [vmem:[#allocation3 + $0x38] sm:$0xff]  ;;  %v4727_v53 = vld [vmem:[#allocation3 + $0x80] sm:$0xff] }
 0x2fe   : > { %4786 = vst.msk [vmem:[#allocation3 + $0x58] sm:$0xff] %vm1018_vm1, %v4754_v63  ;;  %v4812_v36 = vld [vmem:[#allocation3 + $0x28] sm:$0xff]  ;;  %v4853_v32 = vadd.f32 %v8214_v6, %v4814_v62  ;;  %v4891_v39 = vmul.f32 %v8219_v51, %v4852_v30  ;;  %v4989_v47 = vpack.c.bf16 %v4959_v61, %v4958_v58  ;;  %v4730_v38 = vld [vmem:[#allocation3 + $0x98] sm:$0xff] }
 0x2ff   : > { %4784 = vst.msk [vmem:[#allocation3 + $0x48] sm:$0xff] %vm1018_vm1, %v4752_v40  ;;  %v4988_v43 = vpack.c.bf16 %v4957_v29, %v4956_v41  ;;  %v4851_v7 = vadd.f32 %v8214_v6, %v4812_v36  ;;  %v4889_v50 = vmul.f32 %v8219_v51, %v4850_v52  ;;  %v4728_v52 = vld [vmem:[#allocation3 + $0x88] sm:$0xff] }
 0x300   : > { %v4892_v20 = vmul.f32 %v8219_v51, %v4853_v32  ;;  %v4930_v56 = vadd.f32 %v8229_v2, %v4891_v39 }
 0x301   : > { %v6296_v49 = vpop.f32.mrb[156].mxu1  ;;  %6316 = vmatprep.mubr.msk.bf16.mxu0 %vm1018_vm1, %v4988_v43  ;;  %v4890_v19 = vmul.f32 %v8219_v51, %v4851_v7  ;;  %v4928_v27 = vadd.f32 %v8229_v2, %v4889_v50 }
 0x302   : > { %v4757_v55 = vadd.f32 %v6296_v49, %v4725_v45  ;;  %v4632_v22 = vpop.f32.mrb[157].mxu1  ;;  %6317 = vmatmul.mubr.msk.bf16.vlgmr.msra.gmra.mrb[144].mxu0 %vm1018_vm1, %v4989_v47  ;;  %v4931_v46 = vadd.f32 %v8229_v2, %v4892_v20  ;;  %v4962_v48 = vmax.f32 %v4930_v56, 0.0 }
 0x303   : > { %v4755_v18 = vadd.f32 %v4723_v5, %v4632_v22  ;;  %v6297_v16 = vpop.f32.mrb[158].mxu1  ;;  %v4929_v26 = vadd.f32 %v8229_v2, %v4890_v19  ;;  %v4817_v9 = vld [vmem:[#allocation3 + $0x50] sm:$0xff]  ;;  %v4960_v17 = vmax.f32 %v4928_v27, 0.0 }
 0x304   : > { %4789 = vst.msk [vmem:[#allocation3 + $0x70] sm:$0xff] %vm1018_vm1, %v4757_v55  ;;  %v4758_v44 = vadd.f32 %v6297_v16, %v4726_v35  ;;  %v4635_v31 = vpop.f32.mrb[159].mxu1  ;;  %v4963_v25 = vmax.f32 %v4931_v46, 0.0  ;;  %v4815_v4 = vld [vmem:[#allocation3 + $0x40] sm:$0xff]  ;;  %v4856_v23 = vadd.f32 %v8214_v6, %v4817_v9  ;;  %v4733_v46 = vld [vmem:[#allocation3 + $0xb0] sm:$0xff] }
 0x305   : > { %4787 = vst.msk [vmem:[#allocation3 + $0x60] sm:$0xff] %vm1018_vm1, %v4755_v18  ;;  %v4756_v57 = vadd.f32 %v4724_v14, %v4635_v31  ;;  %v4961_v28 = vmax.f32 %v4929_v26, 0.0  ;;  %v4854_v33 = vadd.f32 %v8214_v6, %v4815_v4  ;;  %v4818_v42 = vld [vmem:[#allocation3 + $0x58] sm:$0xff]  ;;  %v4731_v9 = vld [vmem:[#allocation3 + $0xa0] sm:$0xff] }
 0x306   : > { %4790 = vst.msk [vmem:[#allocation3 + $0x78] sm:$0xff] %vm1018_vm1, %v4758_v44  ;;  %v4816_v11 = vld [vmem:[#allocation3 + $0x48] sm:$0xff]  ;;  %v4857_v10 = vadd.f32 %v8214_v6, %v4818_v42  ;;  %v4895_v24 = vmul.f32 %v8219_v51, %v4856_v23  ;;  %v4991_v37 = vpack.c.bf16 %v4963_v25, %v4962_v48  ;;  %v4734_v4 = vld [vmem:[#allocation3 + $0xb8] sm:$0xff] }
 0x307   : > { %4788 = vst.msk [vmem:[#allocation3 + $0x68] sm:$0xff] %vm1018_vm1, %v4756_v57  ;;  %v4990_v59 = vpack.c.bf16 %v4961_v28, %v4960_v17  ;;  %v4855_v3 = vadd.f32 %v8214_v6, %v4816_v11  ;;  %v4893_v8 = vmul.f32 %v8219_v51, %v4854_v33  ;;  %v4732_v33 = vld [vmem:[#allocation3 + $0xa8] sm:$0xff] }
 0x308   : > { %v4896_v15 = vmul.f32 %v8219_v51, %v4857_v10  ;;  %v4934_v63 = vadd.f32 %v8229_v2, %v4895_v24 }
 0x309   : > { %v6300_v21 = vpop.f32.mrb[160].mxu1  ;;  %6320 = vmatprep.mubr.msk.bf16.mxu0 %vm1018_vm1, %v4990_v59  ;;  %v4894_v54 = vmul.f32 %v8219_v51, %v4855_v3  ;;  %v4932_v1 = vadd.f32 %v8229_v2, %v4893_v8 }
 0x30a   : > { %v4761_v34 = vadd.f32 %v6300_v21, %v4729_v12  ;;  %v4648_v60 = vpop.f32.mrb[161].mxu1  ;;  %6321 = vmatmul.mubr.msk.bf16.gmra.mrb[148].mxu0 %vm1018_vm1, %v4991_v37  ;;  %v4935_v13 = vadd.f32 %v8229_v2, %v4896_v15  ;;  %v4966_v47 = vmax.f32 %v4934_v63, 0.0 }
 0x30b   : > { %v4759_v0 = vadd.f32 %v4727_v53, %v4648_v60  ;;  %v6301_v61 = vpop.f32.mrb[162].mxu1  ;;  %v4933_v30 = vadd.f32 %v8229_v2, %v4894_v54  ;;  %v4821_v40 = vld [vmem:[#allocation3 + $0x70] sm:$0xff]  ;;  %v4964_v39 = vmax.f32 %v4932_v1, 0.0 }
 0x30c   : > { %4793 = vst.msk [vmem:[#allocation3 + $0x90] sm:$0xff] %vm1018_vm1, %v4761_v34  ;;  %v4762_v41 = vadd.f32 %v6301_v61, %v4730_v38  ;;  %v4651_v29 = vpop.f32.mrb[163].mxu1  ;;  %v4967_v62 = vmax.f32 %v4935_v13, 0.0  ;;  %v4819_v58 = vld [vmem:[#allocation3 + $0x60] sm:$0xff]  ;;  %v4860_v36 = vadd.f32 %v8214_v6, %v4821_v40  ;;  %v4737_v13 = vld [vmem:[#allocation3 + $0xd0] sm:$0xff] }
 0x30d   : > { %4791 = vst.msk [vmem:[#allocation3 + $0x80] sm:$0xff] %vm1018_vm1, %v4759_v0  ;;  %v4760_v32 = vadd.f32 %v4728_v52, %v4651_v29  ;;  %v4965_v43 = vmax.f32 %v4933_v30, 0.0  ;;  %v4858_v7 = vadd.f32 %v8214_v6, %v4819_v58  ;;  %v4822_v50 = vld [vmem:[#allocation3 + $0x78] sm:$0xff]  ;;  %v4735_v40 = vld [vmem:[#allocation3 + $0xc0] sm:$0xff] }
 0x30e   : > { %4794 = vst.msk [vmem:[#allocation3 + $0x98] sm:$0xff] %vm1018_vm1, %v4762_v41  ;;  %v4820_v20 = vld [vmem:[#allocation3 + $0x68] sm:$0xff]  ;;  %v4861_v49 = vadd.f32 %v8214_v6, %v4822_v50  ;;  %v4899_v45 = vmul.f32 %v8219_v51, %v4860_v36  ;;  %v4993_v22 = vpack.c.bf16 %v4967_v62, %v4966_v47  ;;  %v4738_v58 = vld [vmem:[#allocation3 + $0xd8] sm:$0xff] }
 0x30f   : > { %4792 = vst.msk [vmem:[#allocation3 + $0x88] sm:$0xff] %vm1018_vm1, %v4760_v32  ;;  %v4992_v19 = vpack.c.bf16 %v4965_v43, %v4964_v39  ;;  %v4859_v27 = vadd.f32 %v8214_v6, %v4820_v20  ;;  %v4897_v55 = vmul.f32 %v8219_v51, %v4858_v7  ;;  %v4736_v7 = vld [vmem:[#allocation3 + $0xc8] sm:$0xff] }
 0x310   : > { %v4900_v5 = vmul.f32 %v8219_v51, %v4861_v49  ;;  %v4938_v44 = vadd.f32 %v8229_v2, %v4899_v45 }
 0x311   : > { %v6304_v56 = vpop.f32.mrb[164].mxu1  ;;  %6324 = vmatprep.mubr.msk.bf16.mxu0 %vm1018_vm1, %v4992_v19  ;;  %v4898_v18 = vmul.f32 %v8219_v51, %v4859_v27  ;;  %v4936_v16 = vadd.f32 %v8229_v2, %v4897_v55 }
 0x312   : > { %v4765_v35 = vadd.f32 %v6304_v56, %v4733_v46  ;;  %v4664_v26 = vpop.f32.mrb[165].mxu1  ;;  %6325 = vmatmul.mubr.msk.bf16.gmra.mrb[152].mxu0 %vm1018_vm1, %v4993_v22  ;;  %v4939_v31 = vadd.f32 %v8229_v2, %v4900_v5  ;;  %v4970_v37 = vmax.f32 %v4938_v44, 0.0 }
 0x313   : > { %v4763_v14 = vadd.f32 %v4731_v9, %v4664_v26  ;;  %v6305_v25 = vpop.f32.mrb[166].mxu1  ;;  %v4937_v23 = vadd.f32 %v8229_v2, %v4898_v18  ;;  %v4825_v57 = vld [vmem:[#allocation3 + $0x90] sm:$0xff]  ;;  %v4968_v24 = vmax.f32 %v4936_v16, 0.0 }
 0x314   : > { %4797 = vst.msk [vmem:[#allocation3 + $0xb0] sm:$0xff] %vm1018_vm1, %v4765_v35  ;;  %v4766_v17 = vadd.f32 %v6305_v25, %v4734_v4  ;;  %v4667_v28 = vpop.f32.mrb[167].mxu1  ;;  %v4971_v42 = vmax.f32 %v4939_v31, 0.0  ;;  %v4823_v48 = vld [vmem:[#allocation3 + $0x80] sm:$0xff]  ;;  %v4864_v11 = vadd.f32 %v8214_v6, %v4825_v57  ;;  %v4741_v31 = vld [vmem:[#allocation3 + $0xf0] sm:$0xff] }
 0x315   : > { %4795 = vst.msk [vmem:[#allocation3 + $0xa0] sm:$0xff] %vm1018_vm1, %v4763_v14  ;;  %v4764_v10 = vadd.f32 %v4732_v33, %v4667_v28  ;;  %v4969_v59 = vmax.f32 %v4937_v23, 0.0  ;;  %v4862_v3 = vadd.f32 %v8214_v6, %v4823_v48  ;;  %v4826_v8 = vld [vmem:[#allocation3 + $0x98] sm:$0xff]  ;;  %v4739_v57 = vld [vmem:[#allocation3 + $0xe0] sm:$0xff] }
 0x316   : > { %4798 = vst.msk [vmem:[#allocation3 + $0xb8] sm:$0xff] %vm1018_vm1, %v4766_v17  ;;  %v4824_v15 = vld [vmem:[#allocation3 + $0x88] sm:$0xff]  ;;  %v4865_v21 = vadd.f32 %v8214_v6, %v4826_v8  ;;  %v4903_v12 = vmul.f32 %v8219_v51, %v4864_v11  ;;  %v4995_v60 = vpack.c.bf16 %v4971_v42, %v4970_v37  ;;  %v4742_v48 = vld [vmem:[#allocation3 + $0xf8] sm:$0xff] }
 0x317   : > { %4796 = vst.msk [vmem:[#allocation3 + $0xa8] sm:$0xff] %vm1018_vm1, %v4764_v10  ;;  %v4994_v54 = vpack.c.bf16 %v4969_v59, %v4968_v24  ;;  %v4863_v1 = vadd.f32 %v8214_v6, %v4824_v15  ;;  %v4901_v34 = vmul.f32 %v8219_v51, %v4862_v3  ;;  %v4740_v3 = vld [vmem:[#allocation3 + $0xe8] sm:$0xff] }
 0x318   : > { %v4904_v53 = vmul.f32 %v8219_v51, %v4865_v21  ;;  %v4942_v41 = vadd.f32 %v8229_v2, %v4903_v12 }
 0x319   : > { %v6308_v63 = vpop.f32.mrb[168].mxu1  ;;  %6328 = vmatprep.mubr.msk.bf16.mxu0 %vm1018_vm1, %v4994_v54  ;;  %v4902_v0 = vmul.f32 %v8219_v51, %v4863_v1  ;;  %v4940_v61 = vadd.f32 %v8229_v2, %v4901_v34 }
 0x31a   : > { %v4769_v38 = vadd.f32 %v6308_v63, %v4737_v13  ;;  %v4680_v30 = vpop.f32.mrb[169].mxu1  ;;  %6329 = vmatmul.mubr.msk.bf16.gmra.mrb[156].mxu0 %vm1018_vm1, %v4995_v60  ;;  %v4943_v29 = vadd.f32 %v8229_v2, %v4904_v53  ;;  %v4974_v22 = vmax.f32 %v4942_v41, 0.0 }
 0x31b   : > { %v4767_v52 = vadd.f32 %v4735_v40, %v4680_v30  ;;  %v6309_v62 = vpop.f32.mrb[170].mxu1  ;;  %v4941_v36 = vadd.f32 %v8229_v2, %v4902_v0  ;;  %v4829_v32 = vld [vmem:[#allocation3 + $0xb0] sm:$0xff]  ;;  %v4972_v45 = vmax.f32 %v4940_v61, 0.0 }
 0x31c   : > { %4801 = vst.msk [vmem:[#allocation3 + $0xd0] sm:$0xff] %vm1018_vm1, %v4769_v38  ;;  %v4770_v39 = vadd.f32 %v6309_v62, %v4738_v58  ;;  %v4683_v43 = vpop.f32.mrb[171].mxu1  ;;  %v4975_v50 = vmax.f32 %v4943_v29, 0.0  ;;  %v4827_v47 = vld [vmem:[#allocation3 + $0xa0] sm:$0xff]  ;;  %v4868_v20 = vadd.f32 %v8214_v6, %v4829_v32 }
 0x31d   : > { %4799 = vst.msk [vmem:[#allocation3 + $0xc0] sm:$0xff] %vm1018_vm1, %v4767_v52  ;;  %v4768_v49 = vadd.f32 %v4736_v7, %v4683_v43  ;;  %v4973_v19 = vmax.f32 %v4941_v36, 0.0  ;;  %v4866_v27 = vadd.f32 %v8214_v6, %v4827_v47  ;;  %v4830_v55 = vld [vmem:[#allocation3 + $0xb8] sm:$0xff] }
 0x31e   : > { %4802 = vst.msk [vmem:[#allocation3 + $0xd8] sm:$0xff] %vm1018_vm1, %v4770_v39  ;;  %v4828_v5 = vld [vmem:[#allocation3 + $0xa8] sm:$0xff]  ;;  %v4869_v56 = vadd.f32 %v8214_v6, %v4830_v55  ;;  %v4907_v46 = vmul.f32 %v8219_v51, %v4868_v20  ;;  %v4997_v26 = vpack.c.bf16 %v4975_v50, %v4974_v22 }
 0x31f   : > { %4800 = vst.msk [vmem:[#allocation3 + $0xc8] sm:$0xff] %vm1018_vm1, %v4768_v49  ;;  %v4996_v18 = vpack.c.bf16 %v4973_v19, %v4972_v45  ;;  %v4867_v16 = vadd.f32 %v8214_v6, %v4828_v5  ;;  %v4905_v35 = vmul.f32 %v8219_v51, %v4866_v27 }
 0x320   : > { %v4908_v9 = vmul.f32 %v8219_v51, %v4869_v56  ;;  %v4946_v17 = vadd.f32 %v8229_v2, %v4907_v46 }
 0x321   : > { %v6312_v44 = vpop.f32.mrb[172].mxu1  ;;  %6332 = vmatprep.mubr.msk.bf16.mxu0 %vm1018_vm1, %v4996_v18  ;;  %v4906_v14 = vmul.f32 %v8219_v51, %v4867_v16  ;;  %v4944_v25 = vadd.f32 %v8229_v2, %v4905_v35 }
 0x322   : > { %v4773_v4 = vadd.f32 %v6312_v44, %v4741_v31  ;;  %v4696_v23 = vpop.f32.mrb[173].mxu1  ;;  %6333 = vmatmul.mubr.msk.bf16.gmra.mrb[160].mxu0 %vm1018_vm1, %v4997_v26  ;;  %v4947_v28 = vadd.f32 %v8229_v2, %v4908_v9  ;;  %v4978_v60 = vmax.f32 %v4946_v17, 0.0 }
 0x323   : > { %v4771_v33 = vadd.f32 %v4739_v57, %v4696_v23  ;;  %v6313_v42 = vpop.f32.mrb[174].mxu1  ;;  %v4945_v11 = vadd.f32 %v8229_v2, %v4906_v14  ;;  %v4833_v10 = vld [vmem:[#allocation3 + $0xd0] sm:$0xff]  ;;  %v4976_v12 = vmax.f32 %v4944_v25, 0.0 }
 0x324   : > { %4805 = vst.msk [vmem:[#allocation3 + $0xf0] sm:$0xff] %vm1018_vm1, %v4773_v4  ;;  %v4774_v24 = vadd.f32 %v6313_v42, %v4742_v48  ;;  %v4699_v59 = vpop.f32.mrb[175].mxu1  ;;  %v4979_v8 = vmax.f32 %v4947_v28, 0.0  ;;  %v4831_v37 = vld [vmem:[#allocation3 + $0xc0] sm:$0xff]  ;;  %v4872_v15 = vadd.f32 %v8214_v6, %v4833_v10 }
 0x325   : > { %4803 = vst.msk [vmem:[#allocation3 + $0xe0] sm:$0xff] %vm1018_vm1, %v4771_v33  ;;  %v4772_v21 = vadd.f32 %v4740_v3, %v4699_v59  ;;  %v4977_v54 = vmax.f32 %v4945_v11, 0.0  ;;  %v4870_v1 = vadd.f32 %v8214_v6, %v4831_v37  ;;  %v4834_v34 = vld [vmem:[#allocation3 + $0xd8] sm:$0xff] }
 0x326   : > { %4806 = vst.msk [vmem:[#allocation3 + $0xf8] sm:$0xff] %vm1018_vm1, %v4774_v24  ;;  %v4832_v53 = vld [vmem:[#allocation3 + $0xc8] sm:$0xff]  ;;  %v4873_v63 = vadd.f32 %v8214_v6, %v4834_v34  ;;  %v4911_v13 = vmul.f32 %v8219_v51, %v4872_v15  ;;  %v4999_v30 = vpack.c.bf16 %v4979_v8, %v4978_v60 }
 0x327   : > { %4804 = vst.msk [vmem:[#allocation3 + $0xe8] sm:$0xff] %vm1018_vm1, %v4772_v21  ;;  %v4998_v0 = vpack.c.bf16 %v4977_v54, %v4976_v12  ;;  %v4871_v61 = vadd.f32 %v8214_v6, %v4832_v53  ;;  %v4909_v38 = vmul.f32 %v8219_v51, %v4870_v1 }
 0x328   : > { %v4912_v40 = vmul.f32 %v8219_v51, %v4873_v63  ;;  %v4950_v52 = vadd.f32 %v8229_v2, %v4911_v13 }
 0x329   : > { %6336 = vmatprep.mubr.msk.bf16.mxu0 %vm1018_vm1, %v4998_v0  ;;  %v4910_v41 = vmul.f32 %v8219_v51, %v4871_v61  ;;  %v4948_v29 = vadd.f32 %v8229_v2, %v4909_v38 }
 0x32a   : > { %6337 = vmatmul.mubr.msk.bf16.gmra.mrb[164].mxu0 %vm1018_vm1, %v4999_v30  ;;  %v4951_v62 = vadd.f32 %v8229_v2, %v4912_v40  ;;  %v4982_v49 = vmax.f32 %v4950_v52, 0.0 }
 0x32b   : > { %v4949_v58 = vadd.f32 %v8229_v2, %v4910_v41  ;;  %v4837_v36 = vld [vmem:[#allocation3 + $0xf0] sm:$0xff]  ;;  %v4980_v7 = vmax.f32 %v4948_v29, 0.0 }
 0x32c   : > { %v4983_v32 = vmax.f32 %v4951_v62, 0.0  ;;  %v4835_v39 = vld [vmem:[#allocation3 + $0xe0] sm:$0xff]  ;;  %v4876_v43 = vadd.f32 %v8214_v6, %v4837_v36 }
 0x32d   : > { %v4981_v50 = vmax.f32 %v4949_v58, 0.0  ;;  %v4874_v47 = vadd.f32 %v8214_v6, %v4835_v39  ;;  %v4838_v20 = vld [vmem:[#allocation3 + $0xf8] sm:$0xff] }
 0x32e   : > { %v4836_v45 = vld [vmem:[#allocation3 + $0xe8] sm:$0xff]  ;;  %v4877_v19 = vadd.f32 %v8214_v6, %v4838_v20  ;;  %v4915_v27 = vmul.f32 %v8219_v51, %v4876_v43  ;;  %v5001_v56 = vpack.c.bf16 %v4983_v32, %v4982_v49 }
 0x32f   : > { %v5000_v55 = vpack.c.bf16 %v4981_v50, %v4980_v7  ;;  %v4875_v22 = vadd.f32 %v8214_v6, %v4836_v45  ;;  %v4913_v5 = vmul.f32 %v8219_v51, %v4874_v47 }
 0x330   : > { %v4916_v46 = vmul.f32 %v8219_v51, %v4877_v19  ;;  %v4954_v35 = vadd.f32 %v8229_v2, %v4915_v27 }
 0x331   : > { %6340 = vmatprep.mubr.msk.bf16.mxu0 %vm1018_vm1, %v5000_v55  ;;  %v4914_v18 = vmul.f32 %v8219_v51, %v4875_v22  ;;  %v4952_v16 = vadd.f32 %v8229_v2, %v4913_v5  ;;  %v8369_v51 = vld [vmem:[%s8489_s12] ss:$0 sm:$0xff] }
 0x332   : > { %6341 = vmatmul.mubr.msk.bf16.gmra.mrb[168].mxu0 %vm1018_vm1, %v5001_v56  ;;  %v4955_v26 = vadd.f32 %v8229_v2, %v4916_v46  ;;  %v4986_v14 = vmax.f32 %v4954_v35, 0.0 }
 0x333   : > { %v4953_v6 = vadd.f32 %v8229_v2, %v4914_v18  ;;  %v4984_v44 = vmax.f32 %v4952_v16, 0.0 }
 0x334   : > { %v4987_v9 = vmax.f32 %v4955_v26, 0.0 }
 0x335   : > { %v4985_v31 = vmax.f32 %v4953_v6, 0.0 }
 0x336   : > { %v5003_v4 = vpack.c.bf16 %v4987_v9, %v4986_v14 }
 0x337   : > { %v5002_v25 = vpack.c.bf16 %v4985_v31, %v4984_v44 }
 0x339   : > { %6344 = vmatprep.mubr.msk.bf16.mxu0 %vm1018_vm1, %v5002_v25 }
 0x33a   : > { %6345 = vmatmul.mubr.msk.bf16.gmra.mrb[172].mxu0 %vm1018_vm1, %v5003_v4 }
 0x3d5   : > { %v6318_v23 = vpop.f32.mrb[144].mxu0 }
 0x3d6   : > { %v5106_v57 = vadd.f32 %v6318_v23, %v8369_v51  ;;  %v5097_v17 = vpop.f32.mrb[145].mxu0 }
 0x3d7   : > { %v5098_v2 = vadd.f32 %v8369_v51, %v5097_v17  ;;  %v6319_v28 = vpop.f32.mrb[146].mxu0 }
 0x3d8   : > { %v5678_v33 = vpack.c.bf16 %v5106_v57, %v5106_v57  ;;  %v5109_v42 = vadd.f32 %v6319_v28, %v8369_v51  ;;  %v5100_v48 = vpop.f32.mrb[147].mxu0 }
 0x3d9   : > { %v5676_v11 = vpack.c.bf16 %v5098_v2, %v5098_v2  ;;  %v5101_v10 = vadd.f32 %v8369_v51, %v5100_v48 }
 0x3da   : > { %5355 = vst.msk [vmem:[%s8377_s27 + $0x8] sm:$0xf] %vm5352_vm4, %v5678_v33  ;;  %v5679_v24 = vpack.c.bf16 %v5109_v42, %v5109_v42 }
 0x3db   : > { %5353 = vst.msk [vmem:[%s8377_s27] sm:$0xf] %vm5352_vm4, %v5676_v11  ;;  %v5677_v59 = vpack.c.bf16 %v5101_v10, %v5101_v10 }
 0x3dc   : > { %5356 = vst.msk [vmem:[%s8377_s27 + $0xc] sm:$0xf] %vm5352_vm4, %v5679_v24 }
 0x3dd   : > { %5354 = vst.msk [vmem:[%s8377_s27 + $0x4] sm:$0xf] %vm5352_vm4, %v5677_v59  ;;  %v6322_v3 = vpop.f32.mrb[148].mxu0 }
 0x3de   : > { %v5122_v8 = vadd.f32 %v6322_v3, %v8369_v51  ;;  %v5113_v37 = vpop.f32.mrb[149].mxu0 }
 0x3df   : > { %v5114_v15 = vadd.f32 %v8369_v51, %v5113_v37  ;;  %v6323_v21 = vpop.f32.mrb[150].mxu0 }
 0x3e0   : > { %v5682_v12 = vpack.c.bf16 %v5122_v8, %v5122_v8  ;;  %v5125_v54 = vadd.f32 %v6323_v21, %v8369_v51  ;;  %v5116_v1 = vpop.f32.mrb[151].mxu0 }
 0x3e1   : > { %v5680_v34 = vpack.c.bf16 %v5114_v15, %v5114_v15  ;;  %v5117_v60 = vadd.f32 %v8369_v51, %v5116_v1 }
 0x3e2   : > { %5359 = vst.msk [vmem:[%s8377_s27 + $0x18] sm:$0xf] %vm5352_vm4, %v5682_v12  ;;  %v5683_v53 = vpack.c.bf16 %v5125_v54, %v5125_v54 }
 0x3e3   : > { %5357 = vst.msk [vmem:[%s8377_s27 + $0x10] sm:$0xf] %vm5352_vm4, %v5680_v34  ;;  %v5681_v63 = vpack.c.bf16 %v5117_v60, %v5117_v60 }
 0x3e4   : > { %5360 = vst.msk [vmem:[%s8377_s27 + $0x1c] sm:$0xf] %vm5352_vm4, %v5683_v53 }
 0x3e5   : > { %5358 = vst.msk [vmem:[%s8377_s27 + $0x14] sm:$0xf] %vm5352_vm4, %v5681_v63  ;;  %v6326_v13 = vpop.f32.mrb[152].mxu0 }
 0x3e6   : > { %v5138_v0 = vadd.f32 %v6326_v13, %v8369_v51  ;;  %v5129_v61 = vpop.f32.mrb[153].mxu0 }
 0x3e7   : > { %v5130_v38 = vadd.f32 %v8369_v51, %v5129_v61  ;;  %v6327_v30 = vpop.f32.mrb[154].mxu0 }
 0x3e8   : > { %v5686_v40 = vpack.c.bf16 %v5138_v0, %v5138_v0  ;;  %v5141_v41 = vadd.f32 %v6327_v30, %v8369_v51  ;;  %v5132_v29 = vpop.f32.mrb[155].mxu0 }
 0x3e9   : > { %v5684_v52 = vpack.c.bf16 %v5130_v38, %v5130_v38  ;;  %v5133_v62 = vadd.f32 %v8369_v51, %v5132_v29 }
 0x3ea   : > { %5363 = vst.msk [vmem:[%s8377_s27 + $0x28] sm:$0xf] %vm5352_vm4, %v5686_v40  ;;  %v5687_v58 = vpack.c.bf16 %v5141_v41, %v5141_v41 }
 0x3eb   : > { %5361 = vst.msk [vmem:[%s8377_s27 + $0x20] sm:$0xf] %vm5352_vm4, %v5684_v52  ;;  %v5685_v36 = vpack.c.bf16 %v5133_v62, %v5133_v62 }
 0x3ec   : > { %5364 = vst.msk [vmem:[%s8377_s27 + $0x2c] sm:$0xf] %vm5352_vm4, %v5687_v58 }
 0x3ed   : > { %5362 = vst.msk [vmem:[%s8377_s27 + $0x24] sm:$0xf] %vm5352_vm4, %v5685_v36  ;;  %v6330_v32 = vpop.f32.mrb[156].mxu0 }
 0x3ee   : > { %v5154_v39 = vadd.f32 %v6330_v32, %v8369_v51  ;;  %v5145_v43 = vpop.f32.mrb[157].mxu0 }
 0x3ef   : > { %v5146_v7 = vadd.f32 %v8369_v51, %v5145_v43  ;;  %v6331_v50 = vpop.f32.mrb[158].mxu0 }
 0x3f0   : > { %v5690_v47 = vpack.c.bf16 %v5154_v39, %v5154_v39  ;;  %v5157_v20 = vadd.f32 %v6331_v50, %v8369_v51  ;;  %v5148_v49 = vpop.f32.mrb[159].mxu0 }
 0x3f1   : > { %v5688_v45 = vpack.c.bf16 %v5146_v7, %v5146_v7  ;;  %v5149_v19 = vadd.f32 %v8369_v51, %v5148_v49 }
 0x3f2   : > { %5367 = vst.msk [vmem:[%s8377_s27 + $0x38] sm:$0xf] %vm5352_vm4, %v5690_v47  ;;  %v5691_v27 = vpack.c.bf16 %v5157_v20, %v5157_v20 }
 0x3f3   : > { %5365 = vst.msk [vmem:[%s8377_s27 + $0x30] sm:$0xf] %vm5352_vm4, %v5688_v45  ;;  %v5689_v55 = vpack.c.bf16 %v5149_v19, %v5149_v19 }
 0x3f4   : > { %5368 = vst.msk [vmem:[%s8377_s27 + $0x3c] sm:$0xf] %vm5352_vm4, %v5691_v27 }
 0x3f5   : > { %5366 = vst.msk [vmem:[%s8377_s27 + $0x34] sm:$0xf] %vm5352_vm4, %v5689_v55  ;;  %v6334_v22 = vpop.f32.mrb[160].mxu0 }
 0x3f6   : > { %v5170_v5 = vadd.f32 %v6334_v22, %v8369_v51  ;;  %v5161_v56 = vpop.f32.mrb[161].mxu0 }
 0x3f7   : > { %v5162_v46 = vadd.f32 %v8369_v51, %v5161_v56  ;;  %v6335_v18 = vpop.f32.mrb[162].mxu0 }
 0x3f8   : > { %v5694_v16 = vpack.c.bf16 %v5170_v5, %v5170_v5  ;;  %v5173_v35 = vadd.f32 %v6335_v18, %v8369_v51  ;;  %v5164_v26 = vpop.f32.mrb[163].mxu0 }
 0x3f9   : > { %v5692_v6 = vpack.c.bf16 %v5162_v46, %v5162_v46  ;;  %v5165_v9 = vadd.f32 %v8369_v51, %v5164_v26 }
 0x3fa   : > { %5371 = vst.msk [vmem:[%s8377_s27 + $0x48] sm:$0xf] %vm5352_vm4, %v5694_v16  ;;  %v5695_v44 = vpack.c.bf16 %v5173_v35, %v5173_v35 }
 0x3fb   : > { %5369 = vst.msk [vmem:[%s8377_s27 + $0x40] sm:$0xf] %vm5352_vm4, %v5692_v6  ;;  %v5693_v31 = vpack.c.bf16 %v5165_v9, %v5165_v9 }
 0x3fc   : > { %5372 = vst.msk [vmem:[%s8377_s27 + $0x4c] sm:$0xf] %vm5352_vm4, %v5695_v44 }
 0x3fd   : > { %5370 = vst.msk [vmem:[%s8377_s27 + $0x44] sm:$0xf] %vm5352_vm4, %v5693_v31  ;;  %v6338_v14 = vpop.f32.mrb[164].mxu0 }
 0x3fe   : > { %v5186_v25 = vadd.f32 %v6338_v14, %v8369_v51  ;;  %v5177_v4 = vpop.f32.mrb[165].mxu0 }
 0x3ff   : > { %v5178_v23 = vadd.f32 %v8369_v51, %v5177_v4  ;;  %v6339_v57 = vpop.f32.mrb[166].mxu0 }
 0x400   : > { %v5698_v17 = vpack.c.bf16 %v5186_v25, %v5186_v25  ;;  %v5189_v2 = vadd.f32 %v6339_v57, %v8369_v51  ;;  %v5180_v28 = vpop.f32.mrb[167].mxu0 }
 0x401   : > { %v5696_v33 = vpack.c.bf16 %v5178_v23, %v5178_v23  ;;  %v5181_v42 = vadd.f32 %v8369_v51, %v5180_v28 }
 0x402   : > { %5375 = vst.msk [vmem:[%s8377_s27 + $0x58] sm:$0xf] %vm5352_vm4, %v5698_v17  ;;  %v5699_v48 = vpack.c.bf16 %v5189_v2, %v5189_v2 }
 0x403   : > { %5373 = vst.msk [vmem:[%s8377_s27 + $0x50] sm:$0xf] %vm5352_vm4, %v5696_v33  ;;  %v5697_v11 = vpack.c.bf16 %v5181_v42, %v5181_v42 }
 0x404   : > { %5376 = vst.msk [vmem:[%s8377_s27 + $0x5c] sm:$0xf] %vm5352_vm4, %v5699_v48 }
 0x405   : > { %5374 = vst.msk [vmem:[%s8377_s27 + $0x54] sm:$0xf] %vm5352_vm4, %v5697_v11  ;;  %v6342_v10 = vpop.f32.mrb[168].mxu0 }
 0x406   : > { %v5202_v24 = vadd.f32 %v6342_v10, %v8369_v51  ;;  %v5193_v59 = vpop.f32.mrb[169].mxu0 }
 0x407   : > { %v5194_v3 = vadd.f32 %v8369_v51, %v5193_v59  ;;  %v6343_v8 = vpop.f32.mrb[170].mxu0 }
 0x408   : > { %v5702_v37 = vpack.c.bf16 %v5202_v24, %v5202_v24  ;;  %v5205_v15 = vadd.f32 %v6343_v8, %v8369_v51  ;;  %v5196_v21 = vpop.f32.mrb[171].mxu0 }
 0x409   : > { %v5700_v12 = vpack.c.bf16 %v5194_v3, %v5194_v3  ;;  %v5197_v54 = vadd.f32 %v8369_v51, %v5196_v21 }
 0x40a   : > { %5379 = vst.msk [vmem:[%s8377_s27 + $0x68] sm:$0xf] %vm5352_vm4, %v5702_v37  ;;  %v5703_v1 = vpack.c.bf16 %v5205_v15, %v5205_v15 }
 0x40b   : > { %5377 = vst.msk [vmem:[%s8377_s27 + $0x60] sm:$0xf] %vm5352_vm4, %v5700_v12  ;;  %v5701_v34 = vpack.c.bf16 %v5197_v54, %v5197_v54 }
 0x40c   : > { %5380 = vst.msk [vmem:[%s8377_s27 + $0x6c] sm:$0xf] %vm5352_vm4, %v5703_v1 }
 0x40d   : > { %5378 = vst.msk [vmem:[%s8377_s27 + $0x64] sm:$0xf] %vm5352_vm4, %v5701_v34  ;;  %v6346_v60 = vpop.f32.mrb[172].mxu0 }
 0x40e   : > { %v5218_v53 = vadd.f32 %v6346_v60, %v8369_v51  ;;  %v5209_v63 = vpop.f32.mrb[173].mxu0 }
 0x40f   : > { %v5210_v13 = vadd.f32 %v8369_v51, %v5209_v63  ;;  %v6347_v0 = vpop.f32.mrb[174].mxu0 }
 0x410   : > { %v5706_v61 = vpack.c.bf16 %v5218_v53, %v5218_v53  ;;  %v5221_v38 = vadd.f32 %v6347_v0, %v8369_v51  ;;  %v5212_v30 = vpop.f32.mrb[175].mxu0 }
 0x411   : > { %v5704_v40 = vpack.c.bf16 %v5210_v13, %v5210_v13  ;;  %v5213_v41 = vadd.f32 %v8369_v51, %v5212_v30 }
 0x412   : > { %5383 = vst.msk [vmem:[%s8377_s27 + $0x78] sm:$0xf] %vm5352_vm4, %v5706_v61  ;;  %v5707_v29 = vpack.c.bf16 %v5221_v38, %v5221_v38 }
 0x413   : > { %5381 = vst.msk [vmem:[%s8377_s27 + $0x70] sm:$0xf] %vm5352_vm4, %v5704_v40  ;;  %v5705_v52 = vpack.c.bf16 %v5213_v41, %v5213_v41 }
 0x414   : > { %5384 = vst.msk [vmem:[%s8377_s27 + $0x7c] sm:$0xf] %vm5352_vm4, %v5707_v29 }
 0x415   : > { %5382 = vst.msk [vmem:[%s8377_s27 + $0x74] sm:$0xf] %vm5352_vm4, %v5705_v52 }
 0x416 PF: > { %s25_s18 = sadd.s32 1, %s6386_s18  }
 0x417   : > { %p22_p4 = scmp.ge.s32.totalorder %s25_s18, 4  }
 0x419   :  { %24 = sbr.rel (!%p22_p4) target bundleno = 1 (0x1), region = 110 }

</bundles_post_ra>
